<compile_context>
chip_gen: v5e
topology: v5e:2x2
jax: 0.10.0
libtpu: 0.0.40
codegen_flags: <defaults>
</compile_context>

<pallas_src>
import jax
import jax.numpy as jnp
from jax.experimental import pallas as pl
from jax.experimental.pallas import tpu as pltpu


# bf16 MXU operands (f32 accumulation everywhere via preferred_element_type).
MATMUL_DTYPE = jnp.bfloat16


# ----------------------------- in-kernel GELU -------------------------------

def _erf_approx(x):
    # Abramowitz & Stegun 7.1.26 (|err| < 1.5e-7): only mul/add/div/exp/select,
    # all of which lower cleanly in Mosaic (exp runs on the EUP slot).
    a1, a2, a3, a4, a5 = (0.254829592, -0.284496736, 1.421413741,
                          -1.453152027, 1.061405429)
    p = 0.3275911
    ax = jnp.abs(x)
    t = 1.0 / (1.0 + p * ax)
    poly = t * (a1 + t * (a2 + t * (a3 + t * (a4 + t * a5))))
    y = 1.0 - poly * jnp.exp(-ax * ax)
    return jnp.where(x >= 0, y, -y)


def _gelu_f32(x):
    # Matches PyTorch nn.GELU (exact, erf-based) to ~1e-7.
    return 0.5 * x * (1.0 + _erf_approx(x * 0.7071067811865476))


# ----------------------------- Pallas kernels -------------------------------

def _make_linear_kernel(act, has_skip):
    if has_skip:
        def kernel(x_ref, w_ref, b_ref, s_ref, o_ref):
            y = jnp.dot(x_ref[...], w_ref[...],
                        preferred_element_type=jnp.float32)
            y = y + b_ref[...] + s_ref[...]
            if act:
                y = _gelu_f32(y)
            o_ref[...] = y
    else:
        def kernel(x_ref, w_ref, b_ref, o_ref):
            y = jnp.dot(x_ref[...], w_ref[...],
                        preferred_element_type=jnp.float32)
            y = y + b_ref[...]
            if act:
                y = _gelu_f32(y)
            o_ref[...] = y
    return kernel


def _row_block(M):
    for bm in (512, 256, 128):
        if M % bm == 0:
            return bm
    return M


def pallas_linear(x, w, bvec, skip=None, act=False):
    """y = [gelu](x @ w + b [+ skip]); x:(M,K), w:(K,N), b:(N,) -> (M,N) f32."""
    M, K = x.shape
    N = w.shape[1]
    bm = _row_block(M)
    grid = (M // bm,)
    in_specs = [pl.BlockSpec((bm, K), lambda i: (i, 0)),
                pl.BlockSpec((K, N), lambda i: (0, 0)),
                pl.BlockSpec((1, N), lambda i: (0, 0))]
    args = [x.astype(MATMUL_DTYPE), w.astype(MATMUL_DTYPE),
            bvec.reshape(1, N).astype(jnp.float32)]
    if skip is not None:
        in_specs.append(pl.BlockSpec((bm, N), lambda i: (i, 0)))
        args.append(skip.astype(jnp.float32))
    return pl.pallas_call(
        _make_linear_kernel(act, skip is not None),
        out_shape=jax.ShapeDtypeStruct((M, N), jnp.float32),
        grid=grid,
        in_specs=in_specs,
        out_specs=pl.BlockSpec((bm, N), lambda i: (i, 0)),
        compiler_params=pltpu.CompilerParams(
            dimension_semantics=("parallel",)),
    )(*args)


def _mode_mix_kernel(x_ref, w_ref, o_ref):
    # All modes resident in VMEM; one (B, 2C) x (2C, 2C) matmul per mode,
    # statically unrolled (M is small: 2*m1*m2).
    for m in range(x_ref.shape[0]):
        o_ref[m] = jnp.dot(x_ref[m], w_ref[m],
                           preferred_element_type=jnp.float32)


def pallas_mode_mix(x, w):
    """Per-mode packed-real complex mix: (M,B,2C) x (M,2C,2C) -> (M,B,2C) f32."""
    M, B, K = x.shape
    N = w.shape[2]
    return pl.pallas_call(
        _mode_mix_kernel,
        out_shape=jax.ShapeDtypeStruct((M, B, N), jnp.float32),
        grid=(1,),
        in_specs=[pl.BlockSpec((M, B, K), lambda i: (0, 0, 0)),
                  pl.BlockSpec((M, K, N), lambda i: (0, 0, 0))],
        out_specs=pl.BlockSpec((M, B, N), lambda i: (0, 0, 0)),
        compiler_params=pltpu.CompilerParams(
            dimension_semantics=("arbitrary",)),
    )(x.astype(MATMUL_DTYPE), w.astype(MATMUL_DTYPE))


def _timedec_kernel(p_ref, wc_ref, bc_ref, w1_ref, b1_ref, w2_ref, b2_ref,
                    w3_ref, b3_ref, o_ref):
    # per-sample 3x3 conv (im2col matmul) + GELU
    h = jnp.dot(p_ref[...], wc_ref[...],
                preferred_element_type=jnp.float32) + bc_ref[...]
    h = _gelu_f32(h)
    # decoder: fc1 -> gelu -> fc2 -> gelu -> fc3, all VMEM-resident
    y = jnp.dot(h.astype(MATMUL_DTYPE), w1_ref[...],
                preferred_element_type=jnp.float32) + b1_ref[...]
    y = _gelu_f32(y)
    y = jnp.dot(y.astype(MATMUL_DTYPE), w2_ref[...],
                preferred_element_type=jnp.float32) + b2_ref[...]
    y = _gelu_f32(y)
    y = jnp.dot(y.astype(MATMUL_DTYPE), w3_ref[...],
                preferred_element_type=jnp.float32) + b3_ref[...]
    o_ref[...] = y


def pallas_timeconv_decoder(patches, wconv, bconv, w1, b1, w2, b2, w3, b3):
    """Fused decoder_time + decoder.

    patches: (b, H*W, 9*C) im2col rows; wconv: (b, 9*C, C) per-sample conv
    weights; bconv: (b, C). Returns (b, H*W, out_dim) float32.
    """
    B, R, K9 = patches.shape
    Co = wconv.shape[2]
    N1, N2, N3 = w1.shape[1], w2.shape[1], w3.shape[1]

    def full2(shape):
        return pl.BlockSpec(shape, lambda i: (0, 0))

    return pl.pallas_call(
        _timedec_kernel,
        out_shape=jax.ShapeDtypeStruct((B, R, N3), jnp.float32),
        grid=(B,),
        in_specs=[
            pl.BlockSpec((None, R, K9), lambda i: (i, 0, 0)),
            pl.BlockSpec((None, K9, Co), lambda i: (i, 0, 0)),
            pl.BlockSpec((None, 1, Co), lambda i: (i, 0, 0)),
            full2((Co, N1)), full2((1, N1)),
            full2((N1, N2)), full2((1, N2)),
            full2((N2, N3)), full2((1, N3)),
        ],
        out_specs=pl.BlockSpec((None, R, N3), lambda i: (i, 0, 0)),
        compiler_params=pltpu.CompilerParams(
            dimension_semantics=("parallel",)),
    )(patches.astype(MATMUL_DTYPE), wconv.astype(MATMUL_DTYPE),
      bconv.reshape(B, 1, Co).astype(jnp.float32),
      w1.astype(MATMUL_DTYPE), b1.reshape(1, N1).astype(jnp.float32),
      w2.astype(MATMUL_DTYPE), b2.reshape(1, N2).astype(jnp.float32),
      w3.astype(MATMUL_DTYPE), b3.reshape(1, N3).astype(jnp.float32))


# ------------------------------ building blocks ------------------------------

def _pack_spectral_weights(sp, m1, m2):
    """Build Wc = [[wr, wi], [-wi, wr]] per mode: -> (2*m1*m2, 2C, 2C)."""
    C = sp['w1r'].shape[0]

    def modes(wm):                     # (Ci, Co, m1, m2) -> (m1*m2, Ci, Co)
        return jnp.transpose(wm, (2, 3, 0, 1)).reshape(m1 * m2, C, C)

    def pack(wr, wi):
        top = jnp.concatenate([wr, wi], axis=2)     # rows for xr
        bot = jnp.concatenate([-wi, wr], axis=2)    # rows for xi
        return jnp.concatenate([top, bot], axis=1)  # (M, 2C, 2C)

    wc1 = pack(modes(sp['w1r']), modes(sp['w1i']))
    wc2 = pack(modes(sp['w2r']), modes(sp['w2i']))
    return jnp.concatenate([wc1, wc2], axis=0)


def spectral_conv2d(x, wc, m1, m2):
    """FNO SpectralConv2d, NHWC. x: (B, H, W, C) f32 -> (B, H, W, C) f32."""
    B, H, W, C = x.shape
    x_ft = jnp.fft.rfft2(x, axes=(1, 2))            # (B, H, W//2+1, C) complex64
    top = x_ft[:, :m1, :m2, :]
    bot = x_ft[:, H - m1:, :m2, :]

    def pack(z):                    # (B, m1, m2, C) complex -> (m1*m2, B, 2C)
        zt = jnp.transpose(z, (1, 2, 0, 3)).reshape(m1 * m2, B, C)
        return jnp.concatenate([jnp.real(zt), jnp.imag(zt)], axis=-1)

    xin = jnp.concatenate([pack(top), pack(bot)], axis=0)   # (2*m1*m2, B, 2C)
    out = pallas_mode_mix(xin, wc)                          # (2*m1*m2, B, 2C)

    def unpack(o):                  # (m1*m2, B, 2C) -> (B, m1, m2, C) complex
        o = o.reshape(m1, m2, B, 2 * C)
        o = jnp.transpose(o, (2, 0, 1, 3))
        return jax.lax.complex(o[..., :C], o[..., C:])

    n = m1 * m2
    Wf = W // 2 + 1
    out_ft = jnp.zeros((B, H, Wf, C), dtype=jnp.complex64)
    out_ft = out_ft.at[:, :m1, :m2, :].set(unpack(out[:n]))
    out_ft = out_ft.at[:, H - m1:, :m2, :].set(unpack(out[n:]))
    return jnp.fft.irfft2(out_ft, s=(H, W), axes=(1, 2))


# ------------------------------ parameters ----------------------------------

def init_params(key, cfg):
    H, W = cfg['H'], cfg['W']
    hid = cfg['hidden']
    nl = cfg['no_layers']
    keys = iter(jax.random.split(key, 64))

    def dense(k, fan_in, fan_out):
        k1, k2 = jax.random.split(k)
        lim = 1.0 / jnp.sqrt(jnp.float32(fan_in))
        w = jax.random.uniform(k1, (fan_in, fan_out), jnp.float32, -lim, lim)
        b = jax.random.uniform(k2, (fan_out,), jnp.float32, -lim, lim)
        return w, b

    p = {}
    p['embed_day'] = 0.1 * jax.random.normal(next(keys), (8, 2), jnp.float32)
    p['embed_hour'] = 0.1 * jax.random.normal(next(keys), (24, 3), jnp.float32)
    p['ext_w1'], p['ext_b1'] = dense(next(keys), 6, 64)
    p['ext_w2'], p['ext_b2'] = dense(next(keys), 64, H * W)
    p['enc_w'], p['enc_b'] = dense(next(keys), cfg['in_dim'] + 1, hid)

    scale = 1.0 / (hid * hid)
    spec, ws = [], []
    for i in range(nl):
        m1, m2 = cfg['modes1'][i], cfg['modes2'][i]
        k1, k2, k3, k4 = jax.random.split(next(keys), 4)
        spec.append(dict(
            w1r=scale * jax.random.uniform(k1, (hid, hid, m1, m2), jnp.float32),
            w1i=scale * jax.random.uniform(k2, (hid, hid, m1, m2), jnp.float32),
            w2r=scale * jax.random.uniform(k3, (hid, hid, m1, m2), jnp.float32),
            w2i=scale * jax.random.uniform(k4, (hid, hid, m1, m2), jnp.float32),
        ))
        ws.append(dense(next(keys), hid, hid))      # Conv1d(hid, hid, 1)
    p['spec'] = spec
    p['ws'] = ws

    tw, tb = [], []
    lim = 1.0 / jnp.sqrt(jnp.float32(hid * 9))
    for _ in range(14):                              # time_span = 14
        k1, k2 = jax.random.split(next(keys))
        tw.append(jax.random.uniform(k1, (hid, hid, 3, 3), jnp.float32, -lim, lim))
        tb.append(jax.random.uniform(k2, (hid,), jnp.float32, -lim, lim))
    p['time_w'] = jnp.stack(tw)                      # (14, Co, Ci, 3, 3)
    p['time_b'] = jnp.stack(tb)                      # (14, Co)

    p['fc1_w'], p['fc1_b'] = dense(next(keys), hid, 128)
    p['fc2_w'], p['fc2_b'] = dense(next(keys), 128, hid)
    p['fc3_w'], p['fc3_b'] = dense(next(keys), hid, cfg['out_dim'])
    return p


# ------------------------------- forward ------------------------------------

def pino_img_forward(params, inp, ext, cfg):
    b, h, w, _ = inp.shape
    hid = cfg['hidden']
    nl = cfg['no_layers']
    ext = ext[:, 0, :]                               # ext.squeeze(1)

    # embed_ext + ext2lr_global  (use_exf=True).  Only b=2 rows: left to XLA —
    # a pallas launch would be pure overhead.  Dropout(0.3) = inference identity.
    day = ext[:, 2].astype(jnp.int32)
    hour = ext[:, 3].astype(jnp.int32)
    e = jnp.concatenate([ext[:, 0:1],
                         params['embed_day'][day],
                         params['embed_hour'][hour]], axis=1)        # (b, 6)
    g = jax.nn.gelu(e @ params['ext_w1'] + params['ext_b1'], approximate=False)
    g = jax.nn.gelu(g @ params['ext_w2'] + params['ext_b2'], approximate=False)
    ext_emb = g.reshape(b, h, w, 1)
    inp = jnp.concatenate([inp, ext_emb], axis=-1)                   # (b,h,w,in+1)

    # encoder (Linear over channels); activations stay NHWC end-to-end.
    x = pallas_linear(inp.reshape(b * h * w, -1),
                      params['enc_w'], params['enc_b'])
    x = x.reshape(b, h, w, hid)

    # integral: FNO layers; x = SpectralConv(x) + Conv1d_1x1(x), act except last.
    # The 1x1 conv + residual add + GELU are fused into one Pallas kernel.
    for i in range(nl):
        sp = params['spec'][i]
        m1, m2 = cfg['modes1'][i], cfg['modes2'][i]
        wc = _pack_spectral_weights(sp, m1, m2)
        x1 = spectral_conv2d(x, wc, m1, m2)                          # (b,h,w,C)
        w1, b1 = params['ws'][i]
        x = pallas_linear(x.reshape(b * h * w, hid), w1, b1,
                          skip=x1.reshape(b * h * w, hid),
                          act=(i != nl - 1)).reshape(b, h, w, hid)

    # decoder_time (per-sample 3x3 conv selected by hour-5) + decoder, fused.
    # TODO(synk): out-of-range hours clamp via jnp.take instead of erroring
    #             like PyTorch indexing would.
    t = hour - 5
    w_t = jnp.take(params['time_w'], t, axis=0)          # (b, Co, Ci, 3, 3)
    b_t = jnp.take(params['time_b'], t, axis=0)          # (b, Co)
    wconv = jnp.transpose(w_t, (0, 3, 4, 2, 1)).reshape(b, 9 * hid, hid)

    xpad = jnp.pad(x, ((0, 0), (1, 1), (1, 1), (0, 0)))
    patches = jnp.concatenate(
        [xpad[:, kh:kh + h, kw:kw + w, :]
         for kh in range(3) for kw in range(3)],
        axis=-1).reshape(b, h * w, 9 * hid)               # (b, H*W, 9C)

    y = pallas_timeconv_decoder(patches, wconv, b_t,
                                params['fc1_w'], params['fc1_b'],
                                params['fc2_w'], params['fc2_b'],
                                params['fc3_w'], params['fc3_b'])
    return y.reshape(b, h, w, cfg['out_dim'])


# --------------------------------- main --------------------------------------

if __name__ == "__main__":
    cfg = dict(in_dim=4, out_dim=2, hidden=32, no_layers=2,
               modes1=[4, 4], modes2=[4, 4], H=8, W=16)

    key = jax.random.PRNGKey(0)
    k_inp, k_ext, k_par = jax.random.split(key, 3)

    b, H, W = 2, cfg['H'], cfg['W']
    inp = jax.random.normal(k_inp, (b, H, W, cfg['in_dim']), jnp.float32)

    # ext: (b, 1, 4) = [scalar feature, unused, day idx in [0,8), hour in [5,18]]
    days = jnp.array([1.0, 3.0], jnp.float32)
    hours = jnp.array([6.0, 12.0], jnp.float32)
    vals = jax.random.uniform(k_ext, (b,), jnp.float32)
    ext = jnp.stack([vals, jnp.zeros((b,), jnp.float32), days, hours],
                    axis=1)[:, None, :]

    params = init_params(k_par, cfg)

    fwd = jax.jit(lambda p, i, e: pino_img_forward(p, i, e, cfg))
    out = fwd(params, inp, ext)
    jax.block_until_ready(out)
    assert out.shape == (b, H, W, cfg['out_dim'])
    assert bool(jnp.all(jnp.isfinite(out)))
    print("KERNEL_OK")
</pallas_src>

<mosaic_0001>
module attributes {stable_mosaic.version = 11 : i64} {
  func.func @kernel(%arg0: i32, %arg1: memref<256x5xbf16, #tpu.memory_space<vmem>>, %arg2: memref<5x32xbf16, #tpu.memory_space<vmem>>, %arg3: memref<1x32xf32, #tpu.memory_space<vmem>>, %arg4: memref<256x32xf32, #tpu.memory_space<vmem>>) attributes {dimension_semantics = [#tpu.dimension_semantics<parallel>], iteration_bounds = array<i64: 1>, scalar_prefetch = 0 : i64, scratch_operands = 0 : i64, tpu.core_type = #tpu.core_type<tc>, window_params = [{transform_indices = @transform_0, window_bounds = array<i64: 256, 5>}, {pipeline_mode = #tpu.pipeline_mode<synchronous>, transform_indices = @transform_1, window_bounds = array<i64: 5, 32>}, {pipeline_mode = #tpu.pipeline_mode<synchronous>, transform_indices = @transform_2, window_bounds = array<i64: 1, 32>}, {transform_indices = @transform_3, window_bounds = array<i64: 256, 32>}]} {
    %c0 = arith.constant 0 : index
    %c0_0 = arith.constant 0 : index
    %0 = vector.load %arg1[%c0, %c0_0] : memref<256x5xbf16, #tpu.memory_space<vmem>>, vector<256x5xbf16>
    %c0_1 = arith.constant 0 : index
    %c0_2 = arith.constant 0 : index
    %1 = vector.load %arg2[%c0_1, %c0_2] : memref<5x32xbf16, #tpu.memory_space<vmem>>, vector<5x32xbf16>
    %cst = arith.constant dense<0.000000e+00> : vector<256x32xf32>
    %2 = tpu.matmul %0, %1, %cst {dimension_numbers = #tpu.dot_dimension_numbers<[1], [0], [0], [1], [0, 0, 1, 1], [], []>} : vector<256x5xbf16>, vector<5x32xbf16>, vector<256x32xf32> -> vector<256x32xf32>
    %c0_3 = arith.constant 0 : index
    %c0_4 = arith.constant 0 : index
    %3 = vector.load %arg3[%c0_3, %c0_4] : memref<1x32xf32, #tpu.memory_space<vmem>>, vector<1x32xf32>
    %4 = vector.broadcast %3 : vector<1x32xf32> to vector<256x32xf32>
    %5 = arith.addf %2, %4 : vector<256x32xf32>
    %c0_5 = arith.constant 0 : index
    %c0_6 = arith.constant 0 : index
    %6 = vector.load %arg4[%c0_5, %c0_6] : memref<256x32xf32, #tpu.memory_space<vmem>>, vector<256x32xf32>
    tpu.vector_store %arg4[%c0_5, %c0_6], %5 {strides = array<i32>} : memref<256x32xf32, #tpu.memory_space<vmem>>, vector<256x32xf32>,
    return
  }
  func.func @transform_0(%arg0: i32) -> (i32, i32) {
    %c0_i32 = arith.constant 0 : i32
    %c0_i32_0 = arith.constant 0 : i32
    return %arg0, %c0_i32 : i32, i32
  }
  func.func @transform_1(%arg0: i32) -> (i32, i32) {
    %c0_i32 = arith.constant 0 : i32
    %c0_i32_0 = arith.constant 0 : i32
    %c0_i32_1 = arith.constant 0 : i32
    return %c0_i32, %c0_i32_0 : i32, i32
  }
  func.func @transform_2(%arg0: i32) -> (i32, i32) {
    %c0_i32 = arith.constant 0 : i32
    %c0_i32_0 = arith.constant 0 : i32
    %c0_i32_1 = arith.constant 0 : i32
    return %c0_i32, %c0_i32_0 : i32, i32
  }
  func.func @transform_3(%arg0: i32) -> (i32, i32) {
    %c0_i32 = arith.constant 0 : i32
    %c0_i32_0 = arith.constant 0 : i32
    return %arg0, %c0_i32 : i32, i32
  }
}

module attributes {stable_mosaic.version = 11 : i64} {
  func.func @_mode_mix_kernel(%arg0: i32, %arg1: memref<32x2x64xbf16, #tpu.memory_space<vmem>>, %arg2: memref<32x64x64xbf16, #tpu.memory_space<vmem>>, %arg3: memref<32x2x64xf32, #tpu.memory_space<vmem>>) attributes {dimension_semantics = [#tpu.dimension_semantics<arbitrary>], iteration_bounds = array<i64: 1>, scalar_prefetch = 0 : i64, scratch_operands = 0 : i64, tpu.core_type = #tpu.core_type<tc>, window_params = [{pipeline_mode = #tpu.pipeline_mode<synchronous>, transform_indices = @transform_0, window_bounds = array<i64: 32, 2, 64>}, {pipeline_mode = #tpu.pipeline_mode<synchronous>, transform_indices = @transform_1, window_bounds = array<i64: 32, 64, 64>}, {pipeline_mode = #tpu.pipeline_mode<synchronous>, transform_indices = @transform_2, window_bounds = array<i64: 32, 2, 64>}]} {
    %c0 = arith.constant 0 : index
    %c0_0 = arith.constant 0 : index
    %c0_1 = arith.constant 0 : index
    %0 = vector.load %arg1[%c0, %c0_0, %c0_1] : memref<32x2x64xbf16, #tpu.memory_space<vmem>>, vector<1x2x64xbf16>
    %1 = vector.shape_cast %0 : vector<1x2x64xbf16> to vector<2x64xbf16>
    %c0_2 = arith.constant 0 : index
    %c0_3 = arith.constant 0 : index
    %c0_4 = arith.constant 0 : index
    %2 = vector.load %arg2[%c0_2, %c0_3, %c0_4] : memref<32x64x64xbf16, #tpu.memory_space<vmem>>, vector<1x64x64xbf16>
    %3 = vector.shape_cast %2 : vector<1x64x64xbf16> to vector<64x64xbf16>
    %cst = arith.constant dense<0.000000e+00> : vector<2x64xf32>
    %4 = tpu.matmul %1, %3, %cst {dimension_numbers = #tpu.dot_dimension_numbers<[1], [0], [0], [1], [0, 0, 1, 1], [], []>} : vector<2x64xbf16>, vector<64x64xbf16>, vector<2x64xf32> -> vector<2x64xf32>
    %c0_5 = arith.constant 0 : index
    %c0_6 = arith.constant 0 : index
    %c0_7 = arith.constant 0 : index
    %5 = vector.load %arg3[%c0_5, %c0_6, %c0_7] : memref<32x2x64xf32, #tpu.memory_space<vmem>>, vector<1x2x64xf32>
    %6 = vector.shape_cast %5 : vector<1x2x64xf32> to vector<2x64xf32>
    %7 = vector.shape_cast %4 : vector<2x64xf32> to vector<1x2x64xf32>
    tpu.vector_store %arg3[%c0_5, %c0_6, %c0_7], %7 {strides = array<i32>} : memref<32x2x64xf32, #tpu.memory_space<vmem>>, vector<1x2x64xf32>,
    %c1 = arith.constant 1 : index
    %c0_8 = arith.constant 0 : index
    %c0_9 = arith.constant 0 : index
    %8 = vector.load %arg1[%c1, %c0_8, %c0_9] : memref<32x2x64xbf16, #tpu.memory_space<vmem>>, vector<1x2x64xbf16>
    %9 = vector.shape_cast %8 : vector<1x2x64xbf16> to vector<2x64xbf16>
    %c1_10 = arith.constant 1 : index
    %c0_11 = arith.constant 0 : index
    %c0_12 = arith.constant 0 : index
    %10 = vector.load %arg2[%c1_10, %c0_11, %c0_12] : memref<32x64x64xbf16, #tpu.memory_space<vmem>>, vector<1x64x64xbf16>
    %11 = vector.shape_cast %10 : vector<1x64x64xbf16> to vector<64x64xbf16>
    %cst_13 = arith.constant dense<0.000000e+00> : vector<2x64xf32>
    %12 = tpu.matmul %9, %11, %cst_13 {dimension_numbers = #tpu.dot_dimension_numbers<[1], [0], [0], [1], [0, 0, 1, 1], [], []>} : vector<2x64xbf16>, vector<64x64xbf16>, vector<2x64xf32> -> vector<2x64xf32>
    %c1_14 = arith.constant 1 : index
    %c0_15 = arith.constant 0 : index
    %c0_16 = arith.constant 0 : index
    %13 = vector.load %arg3[%c1_14, %c0_15, %c0_16] : memref<32x2x64xf32, #tpu.memory_space<vmem>>, vector<1x2x64xf32>
    %14 = vector.shape_cast %13 : vector<1x2x64xf32> to vector<2x64xf32>
    %15 = vector.shape_cast %12 : vector<2x64xf32> to vector<1x2x64xf32>
    tpu.vector_store %arg3[%c1_14, %c0_15, %c0_16], %15 {strides = array<i32>} : memref<32x2x64xf32, #tpu.memory_space<vmem>>, vector<1x2x64xf32>,
    %c2 = arith.constant 2 : index
    %c0_17 = arith.constant 0 : index
    %c0_18 = arith.constant 0 : index
    %16 = vector.load %arg1[%c2, %c0_17, %c0_18] : memref<32x2x64xbf16, #tpu.memory_space<vmem>>, vector<1x2x64xbf16>
    %17 = vector.shape_cast %16 : vector<1x2x64xbf16> to vector<2x64xbf16>
    %c2_19 = arith.constant 2 : index
    %c0_20 = arith.constant 0 : index
    %c0_21 = arith.constant 0 : index
    %18 = vector.load %arg2[%c2_19, %c0_20, %c0_21] : memref<32x64x64xbf16, #tpu.memory_space<vmem>>, vector<1x64x64xbf16>
    %19 = vector.shape_cast %18 : vector<1x64x64xbf16> to vector<64x64xbf16>
    %cst_22 = arith.constant dense<0.000000e+00> : vector<2x64xf32>
    %20 = tpu.matmul %17, %19, %cst_22 {dimension_numbers = #tpu.dot_dimension_numbers<[1], [0], [0], [1], [0, 0, 1, 1], [], []>} : vector<2x64xbf16>, vector<64x64xbf16>, vector<2x64xf32> -> vector<2x64xf32>
    %c2_23 = arith.constant 2 : index
    %c0_24 = arith.constant 0 : index
    %c0_25 = arith.constant 0 : index
    %21 = vector.load %arg3[%c2_23, %c0_24, %c0_25] : memref<32x2x64xf32, #tpu.memory_space<vmem>>, vector<1x2x64xf32>
    %22 = vector.shape_cast %21 : vector<1x2x64xf32> to vector<2x64xf32>
    %23 = vector.shape_cast %20 : vector<2x64xf32> to vector<1x2x64xf32>
    tpu.vector_store %arg3[%c2_23, %c0_24, %c0_25], %23 {strides = array<i32>} : memref<32x2x64xf32, #tpu.memory_space<vmem>>, vector<1x2x64xf32>,
    %c3 = arith.constant 3 : index
    %c0_26 = arith.constant 0 : index
    %c0_27 = arith.constant 0 : index
    %24 = vector.load %arg1[%c3, %c0_26, %c0_27] : memref<32x2x64xbf16, #tpu.memory_space<vmem>>, vector<1x2x64xbf16>
    %25 = vector.shape_cast %24 : vector<1x2x64xbf16> to vector<2x64xbf16>
    %c3_28 = arith.constant 3 : index
    %c0_29 = arith.constant 0 : index
    %c0_30 = arith.constant 0 : index
    %26 = vector.load %arg2[%c3_28, %c0_29, %c0_30] : memref<32x64x64xbf16, #tpu.memory_space<vmem>>, vector<1x64x64xbf16>
    %27 = vector.shape_cast %26 : vector<1x64x64xbf16> to vector<64x64xbf16>
    %cst_31 = arith.constant dense<0.000000e+00> : vector<2x64xf32>
    %28 = tpu.matmul %25, %27, %cst_31 {dimension_numbers = #tpu.dot_dimension_numbers<[1], [0], [0], [1], [0, 0, 1, 1], [], []>} : vector<2x64xbf16>, vector<64x64xbf16>, vector<2x64xf32> -> vector<2x64xf32>
    %c3_32 = arith.constant 3 : index
    %c0_33 = arith.constant 0 : index
    %c0_34 = arith.constant 0 : index
    %29 = vector.load %arg3[%c3_32, %c0_33, %c0_34] : memref<32x2x64xf32, #tpu.memory_space<vmem>>, vector<1x2x64xf32>
    %30 = vector.shape_cast %29 : vector<1x2x64xf32> to vector<2x64xf32>
    %31 = vector.shape_cast %28 : vector<2x64xf32> to vector<1x2x64xf32>
    tpu.vector_store %arg3[%c3_32, %c0_33, %c0_34], %31 {strides = array<i32>} : memref<32x2x64xf32, #tpu.memory_space<vmem>>, vector<1x2x64xf32>,
    %c4 = arith.constant 4 : index
    %c0_35 = arith.constant 0 : index
    %c0_36 = arith.constant 0 : index
    %32 = vector.load %arg1[%c4, %c0_35, %c0_36] : memref<32x2x64xbf16, #tpu.memory_space<vmem>>, vector<1x2x64xbf16>
    %33 = vector.shape_cast %32 : vector<1x2x64xbf16> to vector<2x64xbf16>
    %c4_37 = arith.constant 4 : index
    %c0_38 = arith.constant 0 : index
    %c0_39 = arith.constant 0 : index
    %34 = vector.load %arg2[%c4_37, %c0_38, %c0_39] : memref<32x64x64xbf16, #tpu.memory_space<vmem>>, vector<1x64x64xbf16>
    %35 = vector.shape_cast %34 : vector<1x64x64xbf16> to vector<64x64xbf16>
    %cst_40 = arith.constant dense<0.000000e+00> : vector<2x64xf32>
    %36 = tpu.matmul %33, %35, %cst_40 {dimension_numbers = #tpu.dot_dimension_numbers<[1], [0], [0], [1], [0, 0, 1, 1], [], []>} : vector<2x64xbf16>, vector<64x64xbf16>, vector<2x64xf32> -> vector<2x64xf32>
    %c4_41 = arith.constant 4 : index
    %c0_42 = arith.constant 0 : index
    %c0_43 = arith.constant 0 : index
    %37 = vector.load %arg3[%c4_41, %c0_42, %c0_43] : memref<32x2x64xf32, #tpu.memory_space<vmem>>, vector<1x2x64xf32>
    %38 = vector.shape_cast %37 : vector<1x2x64xf32> to vector<2x64xf32>
    %39 = vector.shape_cast %36 : vector<2x64xf32> to vector<1x2x64xf32>
    tpu.vector_store %arg3[%c4_41, %c0_42, %c0_43], %39 {strides = array<i32>} : memref<32x2x64xf32, #tpu.memory_space<vmem>>, vector<1x2x64xf32>,
    %c5 = arith.constant 5 : index
    %c0_44 = arith.constant 0 : index
    %c0_45 = arith.constant 0 : index
    %40 = vector.load %arg1[%c5, %c0_44, %c0_45] : memref<32x2x64xbf16, #tpu.memory_space<vmem>>, vector<1x2x64xbf16>
    %41 = vector.shape_cast %40 : vector<1x2x64xbf16> to vector<2x64xbf16>
    %c5_46 = arith.constant 5 : index
    %c0_47 = arith.constant 0 : index
    %c0_48 = arith.constant 0 : index
    %42 = vector.load %arg2[%c5_46, %c0_47, %c0_48] : memref<32x64x64xbf16, #tpu.memory_space<vmem>>, vector<1x64x64xbf16>
    %43 = vector.shape_cast %42 : vector<1x64x64xbf16> to vector<64x64xbf16>
    %cst_49 = arith.constant dense<0.000000e+00> : vector<2x64xf32>
    %44 = tpu.matmul %41, %43, %cst_49 {dimension_numbers = #tpu.dot_dimension_numbers<[1], [0], [0], [1], [0, 0, 1, 1], [], []>} : vector<2x64xbf16>, vector<64x64xbf16>, vector<2x64xf32> -> vector<2x64xf32>
    %c5_50 = arith.constant 5 : index
    %c0_51 = arith.constant 0 : index
    %c0_52 = arith.constant 0 : index
    %45 = vector.load %arg3[%c5_50, %c0_51, %c0_52] : memref<32x2x64xf32, #tpu.memory_space<vmem>>, vector<1x2x64xf32>
    %46 = vector.shape_cast %45 : vector<1x2x64xf32> to vector<2x64xf32>
    %47 = vector.shape_cast %44 : vector<2x64xf32> to vector<1x2x64xf32>
    tpu.vector_store %arg3[%c5_50, %c0_51, %c0_52], %47 {strides = array<i32>} : memref<32x2x64xf32, #tpu.memory_space<vmem>>, vector<1x2x64xf32>,
    %c6 = arith.constant 6 : index
    %c0_53 = arith.constant 0 : index
    %c0_54 = arith.constant 0 : index
    %48 = vector.load %arg1[%c6, %c0_53, %c0_54] : memref<32x2x64xbf16, #tpu.memory_space<vmem>>, vector<1x2x64xbf16>
    %49 = vector.shape_cast %48 : vector<1x2x64xbf16> to vector<2x64xbf16>
    %c6_55 = arith.constant 6 : index
    %c0_56 = arith.constant 0 : index
    %c0_57 = arith.constant 0 : index
    %50 = vector.load %arg2[%c6_55, %c0_56, %c0_57] : memref<32x64x64xbf16, #tpu.memory_space<vmem>>, vector<1x64x64xbf16>
    %51 = vector.shape_cast %50 : vector<1x64x64xbf16> to vector<64x64xbf16>
    %cst_58 = arith.constant dense<0.000000e+00> : vector<2x64xf32>
    %52 = tpu.matmul %49, %51, %cst_58 {dimension_numbers = #tpu.dot_dimension_numbers<[1], [0], [0], [1], [0, 0, 1, 1], [], []>} : vector<2x64xbf16>, vector<64x64xbf16>, vector<2x64xf32> -> vector<2x64xf32>
    %c6_59 = arith.constant 6 : index
    %c0_60 = arith.constant 0 : index
    %c0_61 = arith.constant 0 : index
    %53 = vector.load %arg3[%c6_59, %c0_60, %c0_61] : memref<32x2x64xf32, #tpu.memory_space<vmem>>, vector<1x2x64xf32>
    %54 = vector.shape_cast %53 : vector<1x2x64xf32> to vector<2x64xf32>
    %55 = vector.shape_cast %52 : vector<2x64xf32> to vector<1x2x64xf32>
    tpu.vector_store %arg3[%c6_59, %c0_60, %c0_61], %55 {strides = array<i32>} : memref<32x2x64xf32, #tpu.memory_space<vmem>>, vector<1x2x64xf32>,
    %c7 = arith.constant 7 : index
    %c0_62 = arith.constant 0 : index
    %c0_63 = arith.constant 0 : index
    %56 = vector.load %arg1[%c7, %c0_62, %c0_63] : memref<32x2x64xbf16, #tpu.memory_space<vmem>>, vector<1x2x64xbf16>
    %57 = vector.shape_cast %56 : vector<1x2x64xbf16> to vector<2x64xbf16>
    %c7_64 = arith.constant 7 : index
    %c0_65 = arith.constant 0 : index
    %c0_66 = arith.constant 0 : index
    %58 = vector.load %arg2[%c7_64, %c0_65, %c0_66] : memref<32x64x64xbf16, #tpu.memory_space<vmem>>, vector<1x64x64xbf16>
    %59 = vector.shape_cast %58 : vector<1x64x64xbf16> to vector<64x64xbf16>
    %cst_67 = arith.constant dense<0.000000e+00> : vector<2x64xf32>
    %60 = tpu.matmul %57, %59, %cst_67 {dimension_numbers = #tpu.dot_dimension_numbers<[1], [0], [0], [1], [0, 0, 1, 1], [], []>} : vector<2x64xbf16>, vector<64x64xbf16>, vector<2x64xf32> -> vector<2x64xf32>
    %c7_68 = arith.constant 7 : index
    %c0_69 = arith.constant 0 : index
    %c0_70 = arith.constant 0 : index
    %61 = vector.load %arg3[%c7_68, %c0_69, %c0_70] : memref<32x2x64xf32, #tpu.memory_space<vmem>>, vector<1x2x64xf32>
    %62 = vector.shape_cast %61 : vector<1x2x64xf32> to vector<2x64xf32>
    %63 = vector.shape_cast %60 : vector<2x64xf32> to vector<1x2x64xf32>
    tpu.vector_store %arg3[%c7_68, %c0_69, %c0_70], %63 {strides = array<i32>} : memref<32x2x64xf32, #tpu.memory_space<vmem>>, vector<1x2x64xf32>,
    %c8 = arith.constant 8 : index
    %c0_71 = arith.constant 0 : index
    %c0_72 = arith.constant 0 : index
    %64 = vector.load %arg1[%c8, %c0_71, %c0_72] : memref<32x2x64xbf16, #tpu.memory_space<vmem>>, vector<1x2x64xbf16>
    %65 = vector.shape_cast %64 : vector<1x2x64xbf16> to vector<2x64xbf16>
    %c8_73 = arith.constant 8 : index
    %c0_74 = arith.constant 0 : index
    %c0_75 = arith.constant 0 : index
    %66 = vector.load %arg2[%c8_73, %c0_74, %c0_75] : memref<32x64x64xbf16, #tpu.memory_space<vmem>>, vector<1x64x64xbf16>
    %67 = vector.shape_cast %66 : vector<1x64x64xbf16> to vector<64x64xbf16>
    %cst_76 = arith.constant dense<0.000000e+00> : vector<2x64xf32>
    %68 = tpu.matmul %65, %67, %cst_76 {dimension_numbers = #tpu.dot_dimension_numbers<[1], [0], [0], [1], [0, 0, 1, 1], [], []>} : vector<2x64xbf16>, vector<64x64xbf16>, vector<2x64xf32> -> vector<2x64xf32>
    %c8_77 = arith.constant 8 : index
    %c0_78 = arith.constant 0 : index
    %c0_79 = arith.constant 0 : index
    %69 = vector.load %arg3[%c8_77, %c0_78, %c0_79] : memref<32x2x64xf32, #tpu.memory_space<vmem>>, vector<1x2x64xf32>
    %70 = vector.shape_cast %69 : vector<1x2x64xf32> to vector<2x64xf32>
    %71 = vector.shape_cast %68 : vector<2x64xf32> to vector<1x2x64xf32>
    tpu.vector_store %arg3[%c8_77, %c0_78, %c0_79], %71 {strides = array<i32>} : memref<32x2x64xf32, #tpu.memory_space<vmem>>, vector<1x2x64xf32>,
    %c9 = arith.constant 9 : index
    %c0_80 = arith.constant 0 : index
    %c0_81 = arith.constant 0 : index
    %72 = vector.load %arg1[%c9, %c0_80, %c0_81] : memref<32x2x64xbf16, #tpu.memory_space<vmem>>, vector<1x2x64xbf16>
    %73 = vector.shape_cast %72 : vector<1x2x64xbf16> to vector<2x64xbf16>
    %c9_82 = arith.constant 9 : index
    %c0_83 = arith.constant 0 : index
    %c0_84 = arith.constant 0 : index
    %74 = vector.load %arg2[%c9_82, %c0_83, %c0_84] : memref<32x64x64xbf16, #tpu.memory_space<vmem>>, vector<1x64x64xbf16>
    %75 = vector.shape_cast %74 : vector<1x64x64xbf16> to vector<64x64xbf16>
    %cst_85 = arith.constant dense<0.000000e+00> : vector<2x64xf32>
    %76 = tpu.matmul %73, %75, %cst_85 {dimension_numbers = #tpu.dot_dimension_numbers<[1], [0], [0], [1], [0, 0, 1, 1], [], []>} : vector<2x64xbf16>, vector<64x64xbf16>, vector<2x64xf32> -> vector<2x64xf32>
    %c9_86 = arith.constant 9 : index
    %c0_87 = arith.constant 0 : index
    %c0_88 = arith.constant 0 : index
    %77 = vector.load %arg3[%c9_86, %c0_87, %c0_88] : memref<32x2x64xf32, #tpu.memory_space<vmem>>, vector<1x2x64xf32>
    %78 = vector.shape_cast %77 : vector<1x2x64xf32> to vector<2x64xf32>
    %79 = vector.shape_cast %76 : vector<2x64xf32> to vector<1x2x64xf32>
    tpu.vector_store %arg3[%c9_86, %c0_87, %c0_88], %79 {strides = array<i32>} : memref<32x2x64xf32, #tpu.memory_space<vmem>>, vector<1x2x64xf32>,
    %c10 = arith.constant 10 : index
    %c0_89 = arith.constant 0 : index
    %c0_90 = arith.constant 0 : index
    %80 = vector.load %arg1[%c10, %c0_89, %c0_90] : memref<32x2x64xbf16, #tpu.memory_space<vmem>>, vector<1x2x64xbf16>
    %81 = vector.shape_cast %80 : vector<1x2x64xbf16> to vector<2x64xbf16>
    %c10_91 = arith.constant 10 : index
    %c0_92 = arith.constant 0 : index
    %c0_93 = arith.constant 0 : index
    %82 = vector.load %arg2[%c10_91, %c0_92, %c0_93] : memref<32x64x64xbf16, #tpu.memory_space<vmem>>, vector<1x64x64xbf16>
    %83 = vector.shape_cast %82 : vector<1x64x64xbf16> to vector<64x64xbf16>
    %cst_94 = arith.constant dense<0.000000e+00> : vector<2x64xf32>
    %84 = tpu.matmul %81, %83, %cst_94 {dimension_numbers = #tpu.dot_dimension_numbers<[1], [0], [0], [1], [0, 0, 1, 1], [], []>} : vector<2x64xbf16>, vector<64x64xbf16>, vector<2x64xf32> -> vector<2x64xf32>
    %c10_95 = arith.constant 10 : index
    %c0_96 = arith.constant 0 : index
    %c0_97 = arith.constant 0 : index
    %85 = vector.load %arg3[%c10_95, %c0_96, %c0_97] : memref<32x2x64xf32, #tpu.memory_space<vmem>>, vector<1x2x64xf32>
    %86 = vector.shape_cast %85 : vector<1x2x64xf32> to vector<2x64xf32>
    %87 = vector.shape_cast %84 : vector<2x64xf32> to vector<1x2x64xf32>
    tpu.vector_store %arg3[%c10_95, %c0_96, %c0_97], %87 {strides = array<i32>} : memref<32x2x64xf32, #tpu.memory_space<vmem>>, vector<1x2x64xf32>,
    %c11 = arith.constant 11 : index
    %c0_98 = arith.constant 0 : index
    %c0_99 = arith.constant 0 : index
    %88 = vector.load %arg1[%c11, %c0_98, %c0_99] : memref<32x2x64xbf16, #tpu.memory_space<vmem>>, vector<1x2x64xbf16>
    %89 = vector.shape_cast %88 : vector<1x2x64xbf16> to vector<2x64xbf16>
    %c11_100 = arith.constant 11 : index
    %c0_101 = arith.constant 0 : index
    %c0_102 = arith.constant 0 : index
    %90 = vector.load %arg2[%c11_100, %c0_101, %c0_102] : memref<32x64x64xbf16, #tpu.memory_space<vmem>>, vector<1x64x64xbf16>
    %91 = vector.shape_cast %90 : vector<1x64x64xbf16> to vector<64x64xbf16>
    %cst_103 = arith.constant dense<0.000000e+00> : vector<2x64xf32>
    %92 = tpu.matmul %89, %91, %cst_103 {dimension_numbers = #tpu.dot_dimension_numbers<[1], [0], [0], [1], [0, 0, 1, 1], [], []>} : vector<2x64xbf16>, vector<64x64xbf16>, vector<2x64xf32> -> vector<2x64xf32>
    %c11_104 = arith.constant 11 : index
    %c0_105 = arith.constant 0 : index
    %c0_106 = arith.constant 0 : index
    %93 = vector.load %arg3[%c11_104, %c0_105, %c0_106] : memref<32x2x64xf32, #tpu.memory_space<vmem>>, vector<1x2x64xf32>
    %94 = vector.shape_cast %93 : vector<1x2x64xf32> to vector<2x64xf32>
    %95 = vector.shape_cast %92 : vector<2x64xf32> to vector<1x2x64xf32>
    tpu.vector_store %arg3[%c11_104, %c0_105, %c0_106], %95 {strides = array<i32>} : memref<32x2x64xf32, #tpu.memory_space<vmem>>, vector<1x2x64xf32>,
    %c12 = arith.constant 12 : index
    %c0_107 = arith.constant 0 : index
    %c0_108 = arith.constant 0 : index
    %96 = vector.load %arg1[%c12, %c0_107, %c0_108] : memref<32x2x64xbf16, #tpu.memory_space<vmem>>, vector<1x2x64xbf16>
    %97 = vector.shape_cast %96 : vector<1x2x64xbf16> to vector<2x64xbf16>
    %c12_109 = arith.constant 12 : index
    %c0_110 = arith.constant 0 : index
    %c0_111 = arith.constant 0 : index
    %98 = vector.load %arg2[%c12_109, %c0_110, %c0_111] : memref<32x64x64xbf16, #tpu.memory_space<vmem>>, vector<1x64x64xbf16>
    %99 = vector.shape_cast %98 : vector<1x64x64xbf16> to vector<64x64xbf16>
    %cst_112 = arith.constant dense<0.000000e+00> : vector<2x64xf32>
    %100 = tpu.matmul %97, %99, %cst_112 {dimension_numbers = #tpu.dot_dimension_numbers<[1], [0], [0], [1], [0, 0, 1, 1], [], []>} : vector<2x64xbf16>, vector<64x64xbf16>, vector<2x64xf32> -> vector<2x64xf32>
    %c12_113 = arith.constant 12 : index
    %c0_114 = arith.constant 0 : index
    %c0_115 = arith.constant 0 : index
    %101 = vector.load %arg3[%c12_113, %c0_114, %c0_115] : memref<32x2x64xf32, #tpu.memory_space<vmem>>, vector<1x2x64xf32>
    %102 = vector.shape_cast %101 : vector<1x2x64xf32> to vector<2x64xf32>
    %103 = vector.shape_cast %100 : vector<2x64xf32> to vector<1x2x64xf32>
    tpu.vector_store %arg3[%c12_113, %c0_114, %c0_115], %103 {strides = array<i32>} : memref<32x2x64xf32, #tpu.memory_space<vmem>>, vector<1x2x64xf32>,
    %c13 = arith.constant 13 : index
    %c0_116 = arith.constant 0 : index
    %c0_117 = arith.constant 0 : index
    %104 = vector.load %arg1[%c13, %c0_116, %c0_117] : memref<32x2x64xbf16, #tpu.memory_space<vmem>>, vector<1x2x64xbf16>
    %105 = vector.shape_cast %104 : vector<1x2x64xbf16> to vector<2x64xbf16>
    %c13_118 = arith.constant 13 : index
    %c0_119 = arith.constant 0 : index
    %c0_120 = arith.constant 0 : index
    %106 = vector.load %arg2[%c13_118, %c0_119, %c0_120] : memref<32x64x64xbf16, #tpu.memory_space<vmem>>, vector<1x64x64xbf16>
    %107 = vector.shape_cast %106 : vector<1x64x64xbf16> to vector<64x64xbf16>
    %cst_121 = arith.constant dense<0.000000e+00> : vector<2x64xf32>
    %108 = tpu.matmul %105, %107, %cst_121 {dimension_numbers = #tpu.dot_dimension_numbers<[1], [0], [0], [1], [0, 0, 1, 1], [], []>} : vector<2x64xbf16>, vector<64x64xbf16>, vector<2x64xf32> -> vector<2x64xf32>
    %c13_122 = arith.constant 13 : index
    %c0_123 = arith.constant 0 : index
    %c0_124 = arith.constant 0 : index
    %109 = vector.load %arg3[%c13_122, %c0_123, %c0_124] : memref<32x2x64xf32, #tpu.memory_space<vmem>>, vector<1x2x64xf32>
    %110 = vector.shape_cast %109 : vector<1x2x64xf32> to vector<2x64xf32>
    %111 = vector.shape_cast %108 : vector<2x64xf32> to vector<1x2x64xf32>
    tpu.vector_store %arg3[%c13_122, %c0_123, %c0_124], %111 {strides = array<i32>} : memref<32x2x64xf32, #tpu.memory_space<vmem>>, vector<1x2x64xf32>,
    %c14 = arith.constant 14 : index
    %c0_125 = arith.constant 0 : index
    %c0_126 = arith.constant 0 : index
    %112 = vector.load %arg1[%c14, %c0_125, %c0_126] : memref<32x2x64xbf16, #tpu.memory_space<vmem>>, vector<1x2x64xbf16>
    %113 = vector.shape_cast %112 : vector<1x2x64xbf16> to vector<2x64xbf16>
    %c14_127 = arith.constant 14 : index
    %c0_128 = arith.constant 0 : index
    %c0_129 = arith.constant 0 : index
    %114 = vector.load %arg2[%c14_127, %c0_128, %c0_129] : memref<32x64x64xbf16, #tpu.memory_space<vmem>>, vector<1x64x64xbf16>
    %115 = vector.shape_cast %114 : vector<1x64x64xbf16> to vector<64x64xbf16>
    %cst_130 = arith.constant dense<0.000000e+00> : vector<2x64xf32>
    %116 = tpu.matmul %113, %115, %cst_130 {dimension_numbers = #tpu.dot_dimension_numbers<[1], [0], [0], [1], [0, 0, 1, 1], [], []>} : vector<2x64xbf16>, vector<64x64xbf16>, vector<2x64xf32> -> vector<2x64xf32>
    %c14_131 = arith.constant 14 : index
    %c0_132 = arith.constant 0 : index
    %c0_133 = arith.constant 0 : index
    %117 = vector.load %arg3[%c14_131, %c0_132, %c0_133] : memref<32x2x64xf32, #tpu.memory_space<vmem>>, vector<1x2x64xf32>
    %118 = vector.shape_cast %117 : vector<1x2x64xf32> to vector<2x64xf32>
    %119 = vector.shape_cast %116 : vector<2x64xf32> to vector<1x2x64xf32>
    tpu.vector_store %arg3[%c14_131, %c0_132, %c0_133], %119 {strides = array<i32>} : memref<32x2x64xf32, #tpu.memory_space<vmem>>, vector<1x2x64xf32>,
    %c15 = arith.constant 15 : index
    %c0_134 = arith.constant 0 : index
    %c0_135 = arith.constant 0 : index
    %120 = vector.load %arg1[%c15, %c0_134, %c0_135] : memref<32x2x64xbf16, #tpu.memory_space<vmem>>, vector<1x2x64xbf16>
    %121 = vector.shape_cast %120 : vector<1x2x64xbf16> to vector<2x64xbf16>
    %c15_136 = arith.constant 15 : index
    %c0_137 = arith.constant 0 : index
    %c0_138 = arith.constant 0 : index
    %122 = vector.load %arg2[%c15_136, %c0_137, %c0_138] : memref<32x64x64xbf16, #tpu.memory_space<vmem>>, vector<1x64x64xbf16>
    %123 = vector.shape_cast %122 : vector<1x64x64xbf16> to vector<64x64xbf16>
    %cst_139 = arith.constant dense<0.000000e+00> : vector<2x64xf32>
    %124 = tpu.matmul %121, %123, %cst_139 {dimension_numbers = #tpu.dot_dimension_numbers<[1], [0], [0], [1], [0, 0, 1, 1], [], []>} : vector<2x64xbf16>, vector<64x64xbf16>, vector<2x64xf32> -> vector<2x64xf32>
    %c15_140 = arith.constant 15 : index
    %c0_141 = arith.constant 0 : index
    %c0_142 = arith.constant 0 : index
    %125 = vector.load %arg3[%c15_140, %c0_141, %c0_142] : memref<32x2x64xf32, #tpu.memory_space<vmem>>, vector<1x2x64xf32>
    %126 = vector.shape_cast %125 : vector<1x2x64xf32> to vector<2x64xf32>
    %127 = vector.shape_cast %124 : vector<2x64xf32> to vector<1x2x64xf32>
    tpu.vector_store %arg3[%c15_140, %c0_141, %c0_142], %127 {strides = array<i32>} : memref<32x2x64xf32, #tpu.memory_space<vmem>>, vector<1x2x64xf32>,
    %c16 = arith.constant 16 : index
    %c0_143 = arith.constant 0 : index
    %c0_144 = arith.constant 0 : index
    %128 = vector.load %arg1[%c16, %c0_143, %c0_144] : memref<32x2x64xbf16, #tpu.memory_space<vmem>>, vector<1x2x64xbf16>
    %129 = vector.shape_cast %128 : vector<1x2x64xbf16> to vector<2x64xbf16>
    %c16_145 = arith.constant 16 : index
    %c0_146 = arith.constant 0 : index
    %c0_147 = arith.constant 0 : index
    %130 = vector.load %arg2[%c16_145, %c0_146, %c0_147] : memref<32x64x64xbf16, #tpu.memory_space<vmem>>, vector<1x64x64xbf16>
    %131 = vector.shape_cast %130 : vector<1x64x64xbf16> to vector<64x64xbf16>
    %cst_148 = arith.constant dense<0.000000e+00> : vector<2x64xf32>
    %132 = tpu.matmul %129, %131, %cst_148 {dimension_numbers = #tpu.dot_dimension_numbers<[1], [0], [0], [1], [0, 0, 1, 1], [], []>} : vector<2x64xbf16>, vector<64x64xbf16>, vector<2x64xf32> -> vector<2x64xf32>
    %c16_149 = arith.constant 16 : index
    %c0_150 = arith.constant 0 : index
    %c0_151 = arith.constant 0 : index
    %133 = vector.load %arg3[%c16_149, %c0_150, %c0_151] : memref<32x2x64xf32, #tpu.memory_space<vmem>>, vector<1x2x64xf32>
    %134 = vector.shape_cast %133 : vector<1x2x64xf32> to vector<2x64xf32>
    %135 = vector.shape_cast %132 : vector<2x64xf32> to vector<1x2x64xf32>
    tpu.vector_store %arg3[%c16_149, %c0_150, %c0_151], %135 {strides = array<i32>} : memref<32x2x64xf32, #tpu.memory_space<vmem>>, vector<1x2x64xf32>,
    %c17 = arith.constant 17 : index
    %c0_152 = arith.constant 0 : index
    %c0_153 = arith.constant 0 : index
    %136 = vector.load %arg1[%c17, %c0_152, %c0_153] : memref<32x2x64xbf16, #tpu.memory_space<vmem>>, vector<1x2x64xbf16>
    %137 = vector.shape_cast %136 : vector<1x2x64xbf16> to vector<2x64xbf16>
    %c17_154 = arith.constant 17 : index
    %c0_155 = arith.constant 0 : index
    %c0_156 = arith.constant 0 : index
    %138 = vector.load %arg2[%c17_154, %c0_155, %c0_156] : memref<32x64x64xbf16, #tpu.memory_space<vmem>>, vector<1x64x64xbf16>
    %139 = vector.shape_cast %138 : vector<1x64x64xbf16> to vector<64x64xbf16>
    %cst_157 = arith.constant dense<0.000000e+00> : vector<2x64xf32>
    %140 = tpu.matmul %137, %139, %cst_157 {dimension_numbers = #tpu.dot_dimension_numbers<[1], [0], [0], [1], [0, 0, 1, 1], [], []>} : vector<2x64xbf16>, vector<64x64xbf16>, vector<2x64xf32> -> vector<2x64xf32>
    %c17_158 = arith.constant 17 : index
    %c0_159 = arith.constant 0 : index
    %c0_160 = arith.constant 0 : index
    %141 = vector.load %arg3[%c17_158, %c0_159, %c0_160] : memref<32x2x64xf32, #tpu.memory_space<vmem>>, vector<1x2x64xf32>
    %142 = vector.shape_cast %141 : vector<1x2x64xf32> to vector<2x64xf32>
    %143 = vector.shape_cast %140 : vector<2x64xf32> to vector<1x2x64xf32>
    tpu.vector_store %arg3[%c17_158, %c0_159, %c0_160], %143 {strides = array<i32>} : memref<32x2x64xf32, #tpu.memory_space<vmem>>, vector<1x2x64xf32>,
    %c18 = arith.constant 18 : index
    %c0_161 = arith.constant 0 : index
    %c0_162 = arith.constant 0 : index
    %144 = vector.load %arg1[%c18, %c0_161, %c0_162] : memref<32x2x64xbf16, #tpu.memory_space<vmem>>, vector<1x2x64xbf16>
    %145 = vector.shape_cast %144 : vector<1x2x64xbf16> to vector<2x64xbf16>
    %c18_163 = arith.constant 18 : index
    %c0_164 = arith.constant 0 : index
    %c0_165 = arith.constant 0 : index
    %146 = vector.load %arg2[%c18_163, %c0_164, %c0_165] : memref<32x64x64xbf16, #tpu.memory_space<vmem>>, vector<1x64x64xbf16>
    %147 = vector.shape_cast %146 : vector<1x64x64xbf16> to vector<64x64xbf16>
    %cst_166 = arith.constant dense<0.000000e+00> : vector<2x64xf32>
    %148 = tpu.matmul %145, %147, %cst_166 {dimension_numbers = #tpu.dot_dimension_numbers<[1], [0], [0], [1], [0, 0, 1, 1], [], []>} : vector<2x64xbf16>, vector<64x64xbf16>, vector<2x64xf32> -> vector<2x64xf32>
    %c18_167 = arith.constant 18 : index
    %c0_168 = arith.constant 0 : index
    %c0_169 = arith.constant 0 : index
    %149 = vector.load %arg3[%c18_167, %c0_168, %c0_169] : memref<32x2x64xf32, #tpu.memory_space<vmem>>, vector<1x2x64xf32>
    %150 = vector.shape_cast %149 : vector<1x2x64xf32> to vector<2x64xf32>
    %151 = vector.shape_cast %148 : vector<2x64xf32> to vector<1x2x64xf32>
    tpu.vector_store %arg3[%c18_167, %c0_168, %c0_169], %151 {strides = array<i32>} : memref<32x2x64xf32, #tpu.memory_space<vmem>>, vector<1x2x64xf32>,
    %c19 = arith.constant 19 : index
    %c0_170 = arith.constant 0 : index
    %c0_171 = arith.constant 0 : index
    %152 = vector.load %arg1[%c19, %c0_170, %c0_171] : memref<32x2x64xbf16, #tpu.memory_space<vmem>>, vector<1x2x64xbf16>
    %153 = vector.shape_cast %152 : vector<1x2x64xbf16> to vector<2x64xbf16>
    %c19_172 = arith.constant 19 : index
    %c0_173 = arith.constant 0 : index
    %c0_174 = arith.constant 0 : index
    %154 = vector.load %arg2[%c19_172, %c0_173, %c0_174] : memref<32x64x64xbf16, #tpu.memory_space<vmem>>, vector<1x64x64xbf16>
    %155 = vector.shape_cast %154 : vector<1x64x64xbf16> to vector<64x64xbf16>
    %cst_175 = arith.constant dense<0.000000e+00> : vector<2x64xf32>
    %156 = tpu.matmul %153, %155, %cst_175 {dimension_numbers = #tpu.dot_dimension_numbers<[1], [0], [0], [1], [0, 0, 1, 1], [], []>} : vector<2x64xbf16>, vector<64x64xbf16>, vector<2x64xf32> -> vector<2x64xf32>
    %c19_176 = arith.constant 19 : index
    %c0_177 = arith.constant 0 : index
    %c0_178 = arith.constant 0 : index
    %157 = vector.load %arg3[%c19_176, %c0_177, %c0_178] : memref<32x2x64xf32, #tpu.memory_space<vmem>>, vector<1x2x64xf32>
    %158 = vector.shape_cast %157 : vector<1x2x64xf32> to vector<2x64xf32>
    %159 = vector.shape_cast %156 : vector<2x64xf32> to vector<1x2x64xf32>
    tpu.vector_store %arg3[%c19_176, %c0_177, %c0_178], %159 {strides = array<i32>} : memref<32x2x64xf32, #tpu.memory_space<vmem>>, vector<1x2x64xf32>,
    %c20 = arith.constant 20 : index
    %c0_179 = arith.constant 0 : index
    %c0_180 = arith.constant 0 : index
    %160 = vector.load %arg1[%c20, %c0_179, %c0_180] : memref<32x2x64xbf16, #tpu.memory_space<vmem>>, vector<1x2x64xbf16>
    %161 = vector.shape_cast %160 : vector<1x2x64xbf16> to vector<2x64xbf16>
    %c20_181 = arith.constant 20 : index
    %c0_182 = arith.constant 0 : index
    %c0_183 = arith.constant 0 : index
    %162 = vector.load %arg2[%c20_181, %c0_182, %c0_183] : memref<32x64x64xbf16, #tpu.memory_space<vmem>>, vector<1x64x64xbf16>
    %163 = vector.shape_cast %162 : vector<1x64x64xbf16> to vector<64x64xbf16>
    %cst_184 = arith.constant dense<0.000000e+00> : vector<2x64xf32>
    %164 = tpu.matmul %161, %163, %cst_184 {dimension_numbers = #tpu.dot_dimension_numbers<[1], [0], [0], [1], [0, 0, 1, 1], [], []>} : vector<2x64xbf16>, vector<64x64xbf16>, vector<2x64xf32> -> vector<2x64xf32>
    %c20_185 = arith.constant 20 : index
    %c0_186 = arith.constant 0 : index
    %c0_187 = arith.constant 0 : index
    %165 = vector.load %arg3[%c20_185, %c0_186, %c0_187] : memref<32x2x64xf32, #tpu.memory_space<vmem>>, vector<1x2x64xf32>
    %166 = vector.shape_cast %165 : vector<1x2x64xf32> to vector<2x64xf32>
    %167 = vector.shape_cast %164 : vector<2x64xf32> to vector<1x2x64xf32>
    tpu.vector_store %arg3[%c20_185, %c0_186, %c0_187], %167 {strides = array<i32>} : memref<32x2x64xf32, #tpu.memory_space<vmem>>, vector<1x2x64xf32>,
    %c21 = arith.constant 21 : index
    %c0_188 = arith.constant 0 : index
    %c0_189 = arith.constant 0 : index
    %168 = vector.load %arg1[%c21, %c0_188, %c0_189] : memref<32x2x64xbf16, #tpu.memory_space<vmem>>, vector<1x2x64xbf16>
    %169 = vector.shape_cast %168 : vector<1x2x64xbf16> to vector<2x64xbf16>
    %c21_190 = arith.constant 21 : index
    %c0_191 = arith.constant 0 : index
    %c0_192 = arith.constant 0 : index
    %170 = vector.load %arg2[%c21_190, %c0_191, %c0_192] : memref<32x64x64xbf16, #tpu.memory_space<vmem>>, vector<1x64x64xbf16>
    %171 = vector.shape_cast %170 : vector<1x64x64xbf16> to vector<64x64xbf16>
    %cst_193 = arith.constant dense<0.000000e+00> : vector<2x64xf32>
    %172 = tpu.matmul %169, %171, %cst_193 {dimension_numbers = #tpu.dot_dimension_numbers<[1], [0], [0], [1], [0, 0, 1, 1], [], []>} : vector<2x64xbf16>, vector<64x64xbf16>, vector<2x64xf32> -> vector<2x64xf32>
    %c21_194 = arith.constant 21 : index
    %c0_195 = arith.constant 0 : index
    %c0_196 = arith.constant 0 : index
    %173 = vector.load %arg3[%c21_194, %c0_195, %c0_196] : memref<32x2x64xf32, #tpu.memory_space<vmem>>, vector<1x2x64xf32>
    %174 = vector.shape_cast %173 : vector<1x2x64xf32> to vector<2x64xf32>
    %175 = vector.shape_cast %172 : vector<2x64xf32> to vector<1x2x64xf32>
    tpu.vector_store %arg3[%c21_194, %c0_195, %c0_196], %175 {strides = array<i32>} : memref<32x2x64xf32, #tpu.memory_space<vmem>>, vector<1x2x64xf32>,
    %c22 = arith.constant 22 : index
    %c0_197 = arith.constant 0 : index
    %c0_198 = arith.constant 0 : index
    %176 = vector.load %arg1[%c22, %c0_197, %c0_198] : memref<32x2x64xbf16, #tpu.memory_space<vmem>>, vector<1x2x64xbf16>
    %177 = vector.shape_cast %176 : vector<1x2x64xbf16> to vector<2x64xbf16>
    %c22_199 = arith.constant 22 : index
    %c0_200 = arith.constant 0 : index
    %c0_201 = arith.constant 0 : index
    %178 = vector.load %arg2[%c22_199, %c0_200, %c0_201] : memref<32x64x64xbf16, #tpu.memory_space<vmem>>, vector<1x64x64xbf16>
    %179 = vector.shape_cast %178 : vector<1x64x64xbf16> to vector<64x64xbf16>
    %cst_202 = arith.constant dense<0.000000e+00> : vector<2x64xf32>
    %180 = tpu.matmul %177, %179, %cst_202 {dimension_numbers = #tpu.dot_dimension_numbers<[1], [0], [0], [1], [0, 0, 1, 1], [], []>} : vector<2x64xbf16>, vector<64x64xbf16>, vector<2x64xf32> -> vector<2x64xf32>
    %c22_203 = arith.constant 22 : index
    %c0_204 = arith.constant 0 : index
    %c0_205 = arith.constant 0 : index
    %181 = vector.load %arg3[%c22_203, %c0_204, %c0_205] : memref<32x2x64xf32, #tpu.memory_space<vmem>>, vector<1x2x64xf32>
    %182 = vector.shape_cast %181 : vector<1x2x64xf32> to vector<2x64xf32>
    %183 = vector.shape_cast %180 : vector<2x64xf32> to vector<1x2x64xf32>
    tpu.vector_store %arg3[%c22_203, %c0_204, %c0_205], %183 {strides = array<i32>} : memref<32x2x64xf32, #tpu.memory_space<vmem>>, vector<1x2x64xf32>,
    %c23 = arith.constant 23 : index
    %c0_206 = arith.constant 0 : index
    %c0_207 = arith.constant 0 : index
    %184 = vector.load %arg1[%c23, %c0_206, %c0_207] : memref<32x2x64xbf16, #tpu.memory_space<vmem>>, vector<1x2x64xbf16>
    %185 = vector.shape_cast %184 : vector<1x2x64xbf16> to vector<2x64xbf16>
    %c23_208 = arith.constant 23 : index
    %c0_209 = arith.constant 0 : index
    %c0_210 = arith.constant 0 : index
    %186 = vector.load %arg2[%c23_208, %c0_209, %c0_210] : memref<32x64x64xbf16, #tpu.memory_space<vmem>>, vector<1x64x64xbf16>
    %187 = vector.shape_cast %186 : vector<1x64x64xbf16> to vector<64x64xbf16>
    %cst_211 = arith.constant dense<0.000000e+00> : vector<2x64xf32>
    %188 = tpu.matmul %185, %187, %cst_211 {dimension_numbers = #tpu.dot_dimension_numbers<[1], [0], [0], [1], [0, 0, 1, 1], [], []>} : vector<2x64xbf16>, vector<64x64xbf16>, vector<2x64xf32> -> vector<2x64xf32>
    %c23_212 = arith.constant 23 : index
    %c0_213 = arith.constant 0 : index
    %c0_214 = arith.constant 0 : index
    %189 = vector.load %arg3[%c23_212, %c0_213, %c0_214] : memref<32x2x64xf32, #tpu.memory_space<vmem>>, vector<1x2x64xf32>
    %190 = vector.shape_cast %189 : vector<1x2x64xf32> to vector<2x64xf32>
    %191 = vector.shape_cast %188 : vector<2x64xf32> to vector<1x2x64xf32>
    tpu.vector_store %arg3[%c23_212, %c0_213, %c0_214], %191 {strides = array<i32>} : memref<32x2x64xf32, #tpu.memory_space<vmem>>, vector<1x2x64xf32>,
    %c24 = arith.constant 24 : index
    %c0_215 = arith.constant 0 : index
    %c0_216 = arith.constant 0 : index
    %192 = vector.load %arg1[%c24, %c0_215, %c0_216] : memref<32x2x64xbf16, #tpu.memory_space<vmem>>, vector<1x2x64xbf16>
    %193 = vector.shape_cast %192 : vector<1x2x64xbf16> to vector<2x64xbf16>
    %c24_217 = arith.constant 24 : index
    %c0_218 = arith.constant 0 : index
    %c0_219 = arith.constant 0 : index
    %194 = vector.load %arg2[%c24_217, %c0_218, %c0_219] : memref<32x64x64xbf16, #tpu.memory_space<vmem>>, vector<1x64x64xbf16>
    %195 = vector.shape_cast %194 : vector<1x64x64xbf16> to vector<64x64xbf16>
    %cst_220 = arith.constant dense<0.000000e+00> : vector<2x64xf32>
    %196 = tpu.matmul %193, %195, %cst_220 {dimension_numbers = #tpu.dot_dimension_numbers<[1], [0], [0], [1], [0, 0, 1, 1], [], []>} : vector<2x64xbf16>, vector<64x64xbf16>, vector<2x64xf32> -> vector<2x64xf32>
    %c24_221 = arith.constant 24 : index
    %c0_222 = arith.constant 0 : index
    %c0_223 = arith.constant 0 : index
    %197 = vector.load %arg3[%c24_221, %c0_222, %c0_223] : memref<32x2x64xf32, #tpu.memory_space<vmem>>, vector<1x2x64xf32>
    %198 = vector.shape_cast %197 : vector<1x2x64xf32> to vector<2x64xf32>
    %199 = vector.shape_cast %196 : vector<2x64xf32> to vector<1x2x64xf32>
    tpu.vector_store %arg3[%c24_221, %c0_222, %c0_223], %199 {strides = array<i32>} : memref<32x2x64xf32, #tpu.memory_space<vmem>>, vector<1x2x64xf32>,
    %c25 = arith.constant 25 : index
    %c0_224 = arith.constant 0 : index
    %c0_225 = arith.constant 0 : index
    %200 = vector.load %arg1[%c25, %c0_224, %c0_225] : memref<32x2x64xbf16, #tpu.memory_space<vmem>>, vector<1x2x64xbf16>
    %201 = vector.shape_cast %200 : vector<1x2x64xbf16> to vector<2x64xbf16>
    %c25_226 = arith.constant 25 : index
    %c0_227 = arith.constant 0 : index
    %c0_228 = arith.constant 0 : index
    %202 = vector.load %arg2[%c25_226, %c0_227, %c0_228] : memref<32x64x64xbf16, #tpu.memory_space<vmem>>, vector<1x64x64xbf16>
    %203 = vector.shape_cast %202 : vector<1x64x64xbf16> to vector<64x64xbf16>
    %cst_229 = arith.constant dense<0.000000e+00> : vector<2x64xf32>
    %204 = tpu.matmul %201, %203, %cst_229 {dimension_numbers = #tpu.dot_dimension_numbers<[1], [0], [0], [1], [0, 0, 1, 1], [], []>} : vector<2x64xbf16>, vector<64x64xbf16>, vector<2x64xf32> -> vector<2x64xf32>
    %c25_230 = arith.constant 25 : index
    %c0_231 = arith.constant 0 : index
    %c0_232 = arith.constant 0 : index
    %205 = vector.load %arg3[%c25_230, %c0_231, %c0_232] : memref<32x2x64xf32, #tpu.memory_space<vmem>>, vector<1x2x64xf32>
    %206 = vector.shape_cast %205 : vector<1x2x64xf32> to vector<2x64xf32>
    %207 = vector.shape_cast %204 : vector<2x64xf32> to vector<1x2x64xf32>
    tpu.vector_store %arg3[%c25_230, %c0_231, %c0_232], %207 {strides = array<i32>} : memref<32x2x64xf32, #tpu.memory_space<vmem>>, vector<1x2x64xf32>,
    %c26 = arith.constant 26 : index
    %c0_233 = arith.constant 0 : index
    %c0_234 = arith.constant 0 : index
    %208 = vector.load %arg1[%c26, %c0_233, %c0_234] : memref<32x2x64xbf16, #tpu.memory_space<vmem>>, vector<1x2x64xbf16>
    %209 = vector.shape_cast %208 : vector<1x2x64xbf16> to vector<2x64xbf16>
    %c26_235 = arith.constant 26 : index
    %c0_236 = arith.constant 0 : index
    %c0_237 = arith.constant 0 : index
    %210 = vector.load %arg2[%c26_235, %c0_236, %c0_237] : memref<32x64x64xbf16, #tpu.memory_space<vmem>>, vector<1x64x64xbf16>
    %211 = vector.shape_cast %210 : vector<1x64x64xbf16> to vector<64x64xbf16>
    %cst_238 = arith.constant dense<0.000000e+00> : vector<2x64xf32>
    %212 = tpu.matmul %209, %211, %cst_238 {dimension_numbers = #tpu.dot_dimension_numbers<[1], [0], [0], [1], [0, 0, 1, 1], [], []>} : vector<2x64xbf16>, vector<64x64xbf16>, vector<2x64xf32> -> vector<2x64xf32>
    %c26_239 = arith.constant 26 : index
    %c0_240 = arith.constant 0 : index
    %c0_241 = arith.constant 0 : index
    %213 = vector.load %arg3[%c26_239, %c0_240, %c0_241] : memref<32x2x64xf32, #tpu.memory_space<vmem>>, vector<1x2x64xf32>
    %214 = vector.shape_cast %213 : vector<1x2x64xf32> to vector<2x64xf32>
    %215 = vector.shape_cast %212 : vector<2x64xf32> to vector<1x2x64xf32>
    tpu.vector_store %arg3[%c26_239, %c0_240, %c0_241], %215 {strides = array<i32>} : memref<32x2x64xf32, #tpu.memory_space<vmem>>, vector<1x2x64xf32>,
    %c27 = arith.constant 27 : index
    %c0_242 = arith.constant 0 : index
    %c0_243 = arith.constant 0 : index
    %216 = vector.load %arg1[%c27, %c0_242, %c0_243] : memref<32x2x64xbf16, #tpu.memory_space<vmem>>, vector<1x2x64xbf16>
    %217 = vector.shape_cast %216 : vector<1x2x64xbf16> to vector<2x64xbf16>
    %c27_244 = arith.constant 27 : index
    %c0_245 = arith.constant 0 : index
    %c0_246 = arith.constant 0 : index
    %218 = vector.load %arg2[%c27_244, %c0_245, %c0_246] : memref<32x64x64xbf16, #tpu.memory_space<vmem>>, vector<1x64x64xbf16>
    %219 = vector.shape_cast %218 : vector<1x64x64xbf16> to vector<64x64xbf16>
    %cst_247 = arith.constant dense<0.000000e+00> : vector<2x64xf32>
    %220 = tpu.matmul %217, %219, %cst_247 {dimension_numbers = #tpu.dot_dimension_numbers<[1], [0], [0], [1], [0, 0, 1, 1], [], []>} : vector<2x64xbf16>, vector<64x64xbf16>, vector<2x64xf32> -> vector<2x64xf32>
    %c27_248 = arith.constant 27 : index
    %c0_249 = arith.constant 0 : index
    %c0_250 = arith.constant 0 : index
    %221 = vector.load %arg3[%c27_248, %c0_249, %c0_250] : memref<32x2x64xf32, #tpu.memory_space<vmem>>, vector<1x2x64xf32>
    %222 = vector.shape_cast %221 : vector<1x2x64xf32> to vector<2x64xf32>
    %223 = vector.shape_cast %220 : vector<2x64xf32> to vector<1x2x64xf32>
    tpu.vector_store %arg3[%c27_248, %c0_249, %c0_250], %223 {strides = array<i32>} : memref<32x2x64xf32, #tpu.memory_space<vmem>>, vector<1x2x64xf32>,
    %c28 = arith.constant 28 : index
    %c0_251 = arith.constant 0 : index
    %c0_252 = arith.constant 0 : index
    %224 = vector.load %arg1[%c28, %c0_251, %c0_252] : memref<32x2x64xbf16, #tpu.memory_space<vmem>>, vector<1x2x64xbf16>
    %225 = vector.shape_cast %224 : vector<1x2x64xbf16> to vector<2x64xbf16>
    %c28_253 = arith.constant 28 : index
    %c0_254 = arith.constant 0 : index
    %c0_255 = arith.constant 0 : index
    %226 = vector.load %arg2[%c28_253, %c0_254, %c0_255] : memref<32x64x64xbf16, #tpu.memory_space<vmem>>, vector<1x64x64xbf16>
    %227 = vector.shape_cast %226 : vector<1x64x64xbf16> to vector<64x64xbf16>
    %cst_256 = arith.constant dense<0.000000e+00> : vector<2x64xf32>
    %228 = tpu.matmul %225, %227, %cst_256 {dimension_numbers = #tpu.dot_dimension_numbers<[1], [0], [0], [1], [0, 0, 1, 1], [], []>} : vector<2x64xbf16>, vector<64x64xbf16>, vector<2x64xf32> -> vector<2x64xf32>
    %c28_257 = arith.constant 28 : index
    %c0_258 = arith.constant 0 : index
    %c0_259 = arith.constant 0 : index
    %229 = vector.load %arg3[%c28_257, %c0_258, %c0_259] : memref<32x2x64xf32, #tpu.memory_space<vmem>>, vector<1x2x64xf32>
    %230 = vector.shape_cast %229 : vector<1x2x64xf32> to vector<2x64xf32>
    %231 = vector.shape_cast %228 : vector<2x64xf32> to vector<1x2x64xf32>
    tpu.vector_store %arg3[%c28_257, %c0_258, %c0_259], %231 {strides = array<i32>} : memref<32x2x64xf32, #tpu.memory_space<vmem>>, vector<1x2x64xf32>,
    %c29 = arith.constant 29 : index
    %c0_260 = arith.constant 0 : index
    %c0_261 = arith.constant 0 : index
    %232 = vector.load %arg1[%c29, %c0_260, %c0_261] : memref<32x2x64xbf16, #tpu.memory_space<vmem>>, vector<1x2x64xbf16>
    %233 = vector.shape_cast %232 : vector<1x2x64xbf16> to vector<2x64xbf16>
    %c29_262 = arith.constant 29 : index
    %c0_263 = arith.constant 0 : index
    %c0_264 = arith.constant 0 : index
    %234 = vector.load %arg2[%c29_262, %c0_263, %c0_264] : memref<32x64x64xbf16, #tpu.memory_space<vmem>>, vector<1x64x64xbf16>
    %235 = vector.shape_cast %234 : vector<1x64x64xbf16> to vector<64x64xbf16>
    %cst_265 = arith.constant dense<0.000000e+00> : vector<2x64xf32>
    %236 = tpu.matmul %233, %235, %cst_265 {dimension_numbers = #tpu.dot_dimension_numbers<[1], [0], [0], [1], [0, 0, 1, 1], [], []>} : vector<2x64xbf16>, vector<64x64xbf16>, vector<2x64xf32> -> vector<2x64xf32>
    %c29_266 = arith.constant 29 : index
    %c0_267 = arith.constant 0 : index
    %c0_268 = arith.constant 0 : index
    %237 = vector.load %arg3[%c29_266, %c0_267, %c0_268] : memref<32x2x64xf32, #tpu.memory_space<vmem>>, vector<1x2x64xf32>
    %238 = vector.shape_cast %237 : vector<1x2x64xf32> to vector<2x64xf32>
    %239 = vector.shape_cast %236 : vector<2x64xf32> to vector<1x2x64xf32>
    tpu.vector_store %arg3[%c29_266, %c0_267, %c0_268], %239 {strides = array<i32>} : memref<32x2x64xf32, #tpu.memory_space<vmem>>, vector<1x2x64xf32>,
    %c30 = arith.constant 30 : index
    %c0_269 = arith.constant 0 : index
    %c0_270 = arith.constant 0 : index
    %240 = vector.load %arg1[%c30, %c0_269, %c0_270] : memref<32x2x64xbf16, #tpu.memory_space<vmem>>, vector<1x2x64xbf16>
    %241 = vector.shape_cast %240 : vector<1x2x64xbf16> to vector<2x64xbf16>
    %c30_271 = arith.constant 30 : index
    %c0_272 = arith.constant 0 : index
    %c0_273 = arith.constant 0 : index
    %242 = vector.load %arg2[%c30_271, %c0_272, %c0_273] : memref<32x64x64xbf16, #tpu.memory_space<vmem>>, vector<1x64x64xbf16>
    %243 = vector.shape_cast %242 : vector<1x64x64xbf16> to vector<64x64xbf16>
    %cst_274 = arith.constant dense<0.000000e+00> : vector<2x64xf32>
    %244 = tpu.matmul %241, %243, %cst_274 {dimension_numbers = #tpu.dot_dimension_numbers<[1], [0], [0], [1], [0, 0, 1, 1], [], []>} : vector<2x64xbf16>, vector<64x64xbf16>, vector<2x64xf32> -> vector<2x64xf32>
    %c30_275 = arith.constant 30 : index
    %c0_276 = arith.constant 0 : index
    %c0_277 = arith.constant 0 : index
    %245 = vector.load %arg3[%c30_275, %c0_276, %c0_277] : memref<32x2x64xf32, #tpu.memory_space<vmem>>, vector<1x2x64xf32>
    %246 = vector.shape_cast %245 : vector<1x2x64xf32> to vector<2x64xf32>
    %247 = vector.shape_cast %244 : vector<2x64xf32> to vector<1x2x64xf32>
    tpu.vector_store %arg3[%c30_275, %c0_276, %c0_277], %247 {strides = array<i32>} : memref<32x2x64xf32, #tpu.memory_space<vmem>>, vector<1x2x64xf32>,
    %c31 = arith.constant 31 : index
    %c0_278 = arith.constant 0 : index
    %c0_279 = arith.constant 0 : index
    %248 = vector.load %arg1[%c31, %c0_278, %c0_279] : memref<32x2x64xbf16, #tpu.memory_space<vmem>>, vector<1x2x64xbf16>
    %249 = vector.shape_cast %248 : vector<1x2x64xbf16> to vector<2x64xbf16>
    %c31_280 = arith.constant 31 : index
    %c0_281 = arith.constant 0 : index
    %c0_282 = arith.constant 0 : index
    %250 = vector.load %arg2[%c31_280, %c0_281, %c0_282] : memref<32x64x64xbf16, #tpu.memory_space<vmem>>, vector<1x64x64xbf16>
    %251 = vector.shape_cast %250 : vector<1x64x64xbf16> to vector<64x64xbf16>
    %cst_283 = arith.constant dense<0.000000e+00> : vector<2x64xf32>
    %252 = tpu.matmul %249, %251, %cst_283 {dimension_numbers = #tpu.dot_dimension_numbers<[1], [0], [0], [1], [0, 0, 1, 1], [], []>} : vector<2x64xbf16>, vector<64x64xbf16>, vector<2x64xf32> -> vector<2x64xf32>
    %c31_284 = arith.constant 31 : index
    %c0_285 = arith.constant 0 : index
    %c0_286 = arith.constant 0 : index
    %253 = vector.load %arg3[%c31_284, %c0_285, %c0_286] : memref<32x2x64xf32, #tpu.memory_space<vmem>>, vector<1x2x64xf32>
    %254 = vector.shape_cast %253 : vector<1x2x64xf32> to vector<2x64xf32>
    %255 = vector.shape_cast %252 : vector<2x64xf32> to vector<1x2x64xf32>
    tpu.vector_store %arg3[%c31_284, %c0_285, %c0_286], %255 {strides = array<i32>} : memref<32x2x64xf32, #tpu.memory_space<vmem>>, vector<1x2x64xf32>,
    return
  }
  func.func @transform_0(%arg0: i32) -> (i32, i32, i32) {
    %c0_i32 = arith.constant 0 : i32
    %c0_i32_0 = arith.constant 0 : i32
    %c0_i32_1 = arith.constant 0 : i32
    %c0_i32_2 = arith.constant 0 : i32
    return %c0_i32, %c0_i32_0, %c0_i32_1 : i32, i32, i32
  }
  func.func @transform_1(%arg0: i32) -> (i32, i32, i32) {
    %c0_i32 = arith.constant 0 : i32
    %c0_i32_0 = arith.constant 0 : i32
    %c0_i32_1 = arith.constant 0 : i32
    %c0_i32_2 = arith.constant 0 : i32
    return %c0_i32, %c0_i32_0, %c0_i32_1 : i32, i32, i32
  }
  func.func @transform_2(%arg0: i32) -> (i32, i32, i32) {
    %c0_i32 = arith.constant 0 : i32
    %c0_i32_0 = arith.constant 0 : i32
    %c0_i32_1 = arith.constant 0 : i32
    %c0_i32_2 = arith.constant 0 : i32
    return %c0_i32, %c0_i32_0, %c0_i32_1 : i32, i32, i32
  }
}

module attributes {stable_mosaic.version = 11 : i64} {
  func.func @kernel(%arg0: i32, %arg1: memref<256x32xbf16, #tpu.memory_space<vmem>>, %arg2: memref<32x32xbf16, #tpu.memory_space<vmem>>, %arg3: memref<1x32xf32, #tpu.memory_space<vmem>>, %arg4: memref<256x32xf32, #tpu.memory_space<vmem>>, %arg5: memref<256x32xf32, #tpu.memory_space<vmem>>) attributes {dimension_semantics = [#tpu.dimension_semantics<parallel>], iteration_bounds = array<i64: 1>, scalar_prefetch = 0 : i64, scratch_operands = 0 : i64, tpu.core_type = #tpu.core_type<tc>, window_params = [{transform_indices = @transform_0, window_bounds = array<i64: 256, 32>}, {pipeline_mode = #tpu.pipeline_mode<synchronous>, transform_indices = @transform_1, window_bounds = array<i64: 32, 32>}, {pipeline_mode = #tpu.pipeline_mode<synchronous>, transform_indices = @transform_2, window_bounds = array<i64: 1, 32>}, {transform_indices = @transform_3, window_bounds = array<i64: 256, 32>}, {transform_indices = @transform_4, window_bounds = array<i64: 256, 32>}]} {
    %c0 = arith.constant 0 : index
    %c0_0 = arith.constant 0 : index
    %0 = vector.load %arg1[%c0, %c0_0] : memref<256x32xbf16, #tpu.memory_space<vmem>>, vector<256x32xbf16>
    %c0_1 = arith.constant 0 : index
    %c0_2 = arith.constant 0 : index
    %1 = vector.load %arg2[%c0_1, %c0_2] : memref<32x32xbf16, #tpu.memory_space<vmem>>, vector<32x32xbf16>
    %cst = arith.constant dense<0.000000e+00> : vector<256x32xf32>
    %2 = tpu.matmul %0, %1, %cst {dimension_numbers = #tpu.dot_dimension_numbers<[1], [0], [0], [1], [0, 0, 1, 1], [], []>} : vector<256x32xbf16>, vector<32x32xbf16>, vector<256x32xf32> -> vector<256x32xf32>
    %c0_3 = arith.constant 0 : index
    %c0_4 = arith.constant 0 : index
    %3 = vector.load %arg3[%c0_3, %c0_4] : memref<1x32xf32, #tpu.memory_space<vmem>>, vector<1x32xf32>
    %4 = vector.broadcast %3 : vector<1x32xf32> to vector<256x32xf32>
    %5 = arith.addf %2, %4 : vector<256x32xf32>
    %c0_5 = arith.constant 0 : index
    %c0_6 = arith.constant 0 : index
    %6 = vector.load %arg4[%c0_5, %c0_6] : memref<256x32xf32, #tpu.memory_space<vmem>>, vector<256x32xf32>
    %7 = arith.addf %5, %6 : vector<256x32xf32>
    %cst_7 = arith.constant 5.000000e-01 : f32
    %8 = vector.broadcast %cst_7 : f32 to vector<256x32xf32>
    %9 = arith.mulf %8, %7 : vector<256x32xf32>
    %cst_8 = arith.constant 0.707106769 : f32
    %10 = vector.broadcast %cst_8 : f32 to vector<256x32xf32>
    %11 = arith.mulf %7, %10 : vector<256x32xf32>
    %12 = math.absf %11 : vector<256x32xf32>
    %cst_9 = arith.constant 0.327591091 : f32
    %13 = vector.broadcast %cst_9 : f32 to vector<256x32xf32>
    %14 = arith.mulf %13, %12 : vector<256x32xf32>
    %cst_10 = arith.constant 1.000000e+00 : f32
    %15 = vector.broadcast %cst_10 : f32 to vector<256x32xf32>
    %16 = arith.addf %15, %14 : vector<256x32xf32>
    %cst_11 = arith.constant 1.000000e+00 : f32
    %17 = vector.broadcast %cst_11 : f32 to vector<256x32xf32>
    %18 = arith.divf %17, %16 : vector<256x32xf32>
    %cst_12 = arith.constant 1.06140542 : f32
    %19 = vector.broadcast %cst_12 : f32 to vector<256x32xf32>
    %20 = arith.mulf %18, %19 : vector<256x32xf32>
    %cst_13 = arith.constant -1.45315206 : f32
    %21 = vector.broadcast %cst_13 : f32 to vector<256x32xf32>
    %22 = arith.addf %21, %20 : vector<256x32xf32>
    %23 = arith.mulf %18, %22 : vector<256x32xf32>
    %cst_14 = arith.constant 1.42141378 : f32
    %24 = vector.broadcast %cst_14 : f32 to vector<256x32xf32>
    %25 = arith.addf %24, %23 : vector<256x32xf32>
    %26 = arith.mulf %18, %25 : vector<256x32xf32>
    %cst_15 = arith.constant -0.284496725 : f32
    %27 = vector.broadcast %cst_15 : f32 to vector<256x32xf32>
    %28 = arith.addf %27, %26 : vector<256x32xf32>
    %29 = arith.mulf %18, %28 : vector<256x32xf32>
    %cst_16 = arith.constant 0.254829586 : f32
    %30 = vector.broadcast %cst_16 : f32 to vector<256x32xf32>
    %31 = arith.addf %30, %29 : vector<256x32xf32>
    %32 = arith.mulf %18, %31 : vector<256x32xf32>
    %cst_17 = arith.constant 0.000000e+00 : f32
    %33 = vector.broadcast %cst_17 : f32 to vector<256x32xf32>
    %34 = arith.subf %33, %12 : vector<256x32xf32>
    %35 = arith.mulf %34, %12 : vector<256x32xf32>
    %36 = math.exp %35 : vector<256x32xf32>
    %37 = arith.mulf %32, %36 : vector<256x32xf32>
    %cst_18 = arith.constant 1.000000e+00 : f32
    %38 = vector.broadcast %cst_18 : f32 to vector<256x32xf32>
    %39 = arith.subf %38, %37 : vector<256x32xf32>
    %cst_19 = arith.constant 0.000000e+00 : f32
    %40 = vector.broadcast %cst_19 : f32 to vector<256x32xf32>
    %41 = arith.cmpf oge, %11, %40 : vector<256x32xf32>
    %cst_20 = arith.constant 0.000000e+00 : f32
    %42 = vector.broadcast %cst_20 : f32 to vector<256x32xf32>
    %43 = arith.subf %42, %39 : vector<256x32xf32>
    %44 = arith.select %41, %39, %43 : vector<256x32xi1>, vector<256x32xf32>
    %cst_21 = arith.constant 1.000000e+00 : f32
    %45 = vector.broadcast %cst_21 : f32 to vector<256x32xf32>
    %46 = arith.addf %45, %44 : vector<256x32xf32>
    %47 = arith.mulf %9, %46 : vector<256x32xf32>
    %c0_22 = arith.constant 0 : index
    %c0_23 = arith.constant 0 : index
    %48 = vector.load %arg5[%c0_22, %c0_23] : memref<256x32xf32, #tpu.memory_space<vmem>>, vector<256x32xf32>
    tpu.vector_store %arg5[%c0_22, %c0_23], %47 {strides = array<i32>} : memref<256x32xf32, #tpu.memory_space<vmem>>, vector<256x32xf32>,
    return
  }
  func.func @transform_0(%arg0: i32) -> (i32, i32) {
    %c0_i32 = arith.constant 0 : i32
    %c0_i32_0 = arith.constant 0 : i32
    return %arg0, %c0_i32 : i32, i32
  }
  func.func @transform_1(%arg0: i32) -> (i32, i32) {
    %c0_i32 = arith.constant 0 : i32
    %c0_i32_0 = arith.constant 0 : i32
    %c0_i32_1 = arith.constant 0 : i32
    return %c0_i32, %c0_i32_0 : i32, i32
  }
  func.func @transform_2(%arg0: i32) -> (i32, i32) {
    %c0_i32 = arith.constant 0 : i32
    %c0_i32_0 = arith.constant 0 : i32
    %c0_i32_1 = arith.constant 0 : i32
    return %c0_i32, %c0_i32_0 : i32, i32
  }
  func.func @transform_3(%arg0: i32) -> (i32, i32) {
    %c0_i32 = arith.constant 0 : i32
    %c0_i32_0 = arith.constant 0 : i32
    return %arg0, %c0_i32 : i32, i32
  }
  func.func @transform_4(%arg0: i32) -> (i32, i32) {
    %c0_i32 = arith.constant 0 : i32
    %c0_i32_0 = arith.constant 0 : i32
    return %arg0, %c0_i32 : i32, i32
  }
}

module attributes {stable_mosaic.version = 11 : i64} {
  func.func @kernel(%arg0: i32, %arg1: memref<256x32xbf16, #tpu.memory_space<vmem>>, %arg2: memref<32x32xbf16, #tpu.memory_space<vmem>>, %arg3: memref<1x32xf32, #tpu.memory_space<vmem>>, %arg4: memref<256x32xf32, #tpu.memory_space<vmem>>, %arg5: memref<256x32xf32, #tpu.memory_space<vmem>>) attributes {dimension_semantics = [#tpu.dimension_semantics<parallel>], iteration_bounds = array<i64: 1>, scalar_prefetch = 0 : i64, scratch_operands = 0 : i64, tpu.core_type = #tpu.core_type<tc>, window_params = [{transform_indices = @transform_0, window_bounds = array<i64: 256, 32>}, {pipeline_mode = #tpu.pipeline_mode<synchronous>, transform_indices = @transform_1, window_bounds = array<i64: 32, 32>}, {pipeline_mode = #tpu.pipeline_mode<synchronous>, transform_indices = @transform_2, window_bounds = array<i64: 1, 32>}, {transform_indices = @transform_3, window_bounds = array<i64: 256, 32>}, {transform_indices = @transform_4, window_bounds = array<i64: 256, 32>}]} {
    %c0 = arith.constant 0 : index
    %c0_0 = arith.constant 0 : index
    %0 = vector.load %arg1[%c0, %c0_0] : memref<256x32xbf16, #tpu.memory_space<vmem>>, vector<256x32xbf16>
    %c0_1 = arith.constant 0 : index
    %c0_2 = arith.constant 0 : index
    %1 = vector.load %arg2[%c0_1, %c0_2] : memref<32x32xbf16, #tpu.memory_space<vmem>>, vector<32x32xbf16>
    %cst = arith.constant dense<0.000000e+00> : vector<256x32xf32>
    %2 = tpu.matmul %0, %1, %cst {dimension_numbers = #tpu.dot_dimension_numbers<[1], [0], [0], [1], [0, 0, 1, 1], [], []>} : vector<256x32xbf16>, vector<32x32xbf16>, vector<256x32xf32> -> vector<256x32xf32>
    %c0_3 = arith.constant 0 : index
    %c0_4 = arith.constant 0 : index
    %3 = vector.load %arg3[%c0_3, %c0_4] : memref<1x32xf32, #tpu.memory_space<vmem>>, vector<1x32xf32>
    %4 = vector.broadcast %3 : vector<1x32xf32> to vector<256x32xf32>
    %5 = arith.addf %2, %4 : vector<256x32xf32>
    %c0_5 = arith.constant 0 : index
    %c0_6 = arith.constant 0 : index
    %6 = vector.load %arg4[%c0_5, %c0_6] : memref<256x32xf32, #tpu.memory_space<vmem>>, vector<256x32xf32>
    %7 = arith.addf %5, %6 : vector<256x32xf32>
    %c0_7 = arith.constant 0 : index
    %c0_8 = arith.constant 0 : index
    %8 = vector.load %arg5[%c0_7, %c0_8] : memref<256x32xf32, #tpu.memory_space<vmem>>, vector<256x32xf32>
    tpu.vector_store %arg5[%c0_7, %c0_8], %7 {strides = array<i32>} : memref<256x32xf32, #tpu.memory_space<vmem>>, vector<256x32xf32>,
    return
  }
  func.func @transform_0(%arg0: i32) -> (i32, i32) {
    %c0_i32 = arith.constant 0 : i32
    %c0_i32_0 = arith.constant 0 : i32
    return %arg0, %c0_i32 : i32, i32
  }
  func.func @transform_1(%arg0: i32) -> (i32, i32) {
    %c0_i32 = arith.constant 0 : i32
    %c0_i32_0 = arith.constant 0 : i32
    %c0_i32_1 = arith.constant 0 : i32
    return %c0_i32, %c0_i32_0 : i32, i32
  }
  func.func @transform_2(%arg0: i32) -> (i32, i32) {
    %c0_i32 = arith.constant 0 : i32
    %c0_i32_0 = arith.constant 0 : i32
    %c0_i32_1 = arith.constant 0 : i32
    return %c0_i32, %c0_i32_0 : i32, i32
  }
  func.func @transform_3(%arg0: i32) -> (i32, i32) {
    %c0_i32 = arith.constant 0 : i32
    %c0_i32_0 = arith.constant 0 : i32
    return %arg0, %c0_i32 : i32, i32
  }
  func.func @transform_4(%arg0: i32) -> (i32, i32) {
    %c0_i32 = arith.constant 0 : i32
    %c0_i32_0 = arith.constant 0 : i32
    return %arg0, %c0_i32 : i32, i32
  }
}

module attributes {stable_mosaic.version = 11 : i64} {
  func.func @_timedec_kernel(%arg0: i32, %arg1: memref<1x128x288xbf16, #tpu.memory_space<vmem>>, %arg2: memref<1x288x32xbf16, #tpu.memory_space<vmem>>, %arg3: memref<1x1x32xf32, #tpu.memory_space<vmem>>, %arg4: memref<32x128xbf16, #tpu.memory_space<vmem>>, %arg5: memref<1x128xf32, #tpu.memory_space<vmem>>, %arg6: memref<128x32xbf16, #tpu.memory_space<vmem>>, %arg7: memref<1x32xf32, #tpu.memory_space<vmem>>, %arg8: memref<32x2xbf16, #tpu.memory_space<vmem>>, %arg9: memref<1x2xf32, #tpu.memory_space<vmem>>, %arg10: memref<1x128x2xf32, #tpu.memory_space<vmem>>) attributes {dimension_semantics = [#tpu.dimension_semantics<parallel>], iteration_bounds = array<i64: 2>, scalar_prefetch = 0 : i64, scratch_operands = 0 : i64, tpu.core_type = #tpu.core_type<tc>, window_params = [{transform_indices = @transform_0, window_bounds = array<i64: 1, 128, 288>}, {transform_indices = @transform_1, window_bounds = array<i64: 1, 288, 32>}, {transform_indices = @transform_2, window_bounds = array<i64: 1, 1, 32>}, {pipeline_mode = #tpu.pipeline_mode<synchronous>, transform_indices = @transform_3, window_bounds = array<i64: 32, 128>}, {pipeline_mode = #tpu.pipeline_mode<synchronous>, transform_indices = @transform_4, window_bounds = array<i64: 1, 128>}, {pipeline_mode = #tpu.pipeline_mode<synchronous>, transform_indices = @transform_5, window_bounds = array<i64: 128, 32>}, {pipeline_mode = #tpu.pipeline_mode<synchronous>, transform_indices = @transform_6, window_bounds = array<i64: 1, 32>}, {pipeline_mode = #tpu.pipeline_mode<synchronous>, transform_indices = @transform_7, window_bounds = array<i64: 32, 2>}, {pipeline_mode = #tpu.pipeline_mode<synchronous>, transform_indices = @transform_8, window_bounds = array<i64: 1, 2>}, {transform_indices = @transform_9, window_bounds = array<i64: 1, 128, 2>}]} {
    %c0 = arith.constant 0 : index
    %c0_0 = arith.constant 0 : index
    %c0_1 = arith.constant 0 : index
    %0 = vector.load %arg1[%c0, %c0_0, %c0_1] : memref<1x128x288xbf16, #tpu.memory_space<vmem>>, vector<1x128x288xbf16>
    %1 = vector.shape_cast %0 : vector<1x128x288xbf16> to vector<128x288xbf16>
    %c0_2 = arith.constant 0 : index
    %c0_3 = arith.constant 0 : index
    %c0_4 = arith.constant 0 : index
    %2 = vector.load %arg2[%c0_2, %c0_3, %c0_4] : memref<1x288x32xbf16, #tpu.memory_space<vmem>>, vector<1x288x32xbf16>
    %3 = vector.shape_cast %2 : vector<1x288x32xbf16> to vector<288x32xbf16>
    %cst = arith.constant dense<0.000000e+00> : vector<128x32xf32>
    %4 = tpu.matmul %1, %3, %cst {dimension_numbers = #tpu.dot_dimension_numbers<[1], [0], [0], [1], [0, 0, 1, 1], [], []>} : vector<128x288xbf16>, vector<288x32xbf16>, vector<128x32xf32> -> vector<128x32xf32>
    %c0_5 = arith.constant 0 : index
    %c0_6 = arith.constant 0 : index
    %c0_7 = arith.constant 0 : index
    %5 = vector.load %arg3[%c0_5, %c0_6, %c0_7] : memref<1x1x32xf32, #tpu.memory_space<vmem>>, vector<1x1x32xf32>
    %6 = vector.shape_cast %5 : vector<1x1x32xf32> to vector<1x32xf32>
    %7 = vector.broadcast %6 : vector<1x32xf32> to vector<128x32xf32>
    %8 = arith.addf %4, %7 : vector<128x32xf32>
    %cst_8 = arith.constant 5.000000e-01 : f32
    %9 = vector.broadcast %cst_8 : f32 to vector<128x32xf32>
    %10 = arith.mulf %9, %8 : vector<128x32xf32>
    %cst_9 = arith.constant 0.707106769 : f32
    %11 = vector.broadcast %cst_9 : f32 to vector<128x32xf32>
    %12 = arith.mulf %8, %11 : vector<128x32xf32>
    %13 = math.absf %12 : vector<128x32xf32>
    %cst_10 = arith.constant 0.327591091 : f32
    %14 = vector.broadcast %cst_10 : f32 to vector<128x32xf32>
    %15 = arith.mulf %14, %13 : vector<128x32xf32>
    %cst_11 = arith.constant 1.000000e+00 : f32
    %16 = vector.broadcast %cst_11 : f32 to vector<128x32xf32>
    %17 = arith.addf %16, %15 : vector<128x32xf32>
    %cst_12 = arith.constant 1.000000e+00 : f32
    %18 = vector.broadcast %cst_12 : f32 to vector<128x32xf32>
    %19 = arith.divf %18, %17 : vector<128x32xf32>
    %cst_13 = arith.constant 1.06140542 : f32
    %20 = vector.broadcast %cst_13 : f32 to vector<128x32xf32>
    %21 = arith.mulf %19, %20 : vector<128x32xf32>
    %cst_14 = arith.constant -1.45315206 : f32
    %22 = vector.broadcast %cst_14 : f32 to vector<128x32xf32>
    %23 = arith.addf %22, %21 : vector<128x32xf32>
    %24 = arith.mulf %19, %23 : vector<128x32xf32>
    %cst_15 = arith.constant 1.42141378 : f32
    %25 = vector.broadcast %cst_15 : f32 to vector<128x32xf32>
    %26 = arith.addf %25, %24 : vector<128x32xf32>
    %27 = arith.mulf %19, %26 : vector<128x32xf32>
    %cst_16 = arith.constant -0.284496725 : f32
    %28 = vector.broadcast %cst_16 : f32 to vector<128x32xf32>
    %29 = arith.addf %28, %27 : vector<128x32xf32>
    %30 = arith.mulf %19, %29 : vector<128x32xf32>
    %cst_17 = arith.constant 0.254829586 : f32
    %31 = vector.broadcast %cst_17 : f32 to vector<128x32xf32>
    %32 = arith.addf %31, %30 : vector<128x32xf32>
    %33 = arith.mulf %19, %32 : vector<128x32xf32>
    %cst_18 = arith.constant 0.000000e+00 : f32
    %34 = vector.broadcast %cst_18 : f32 to vector<128x32xf32>
    %35 = arith.subf %34, %13 : vector<128x32xf32>
    %36 = arith.mulf %35, %13 : vector<128x32xf32>
    %37 = math.exp %36 : vector<128x32xf32>
    %38 = arith.mulf %33, %37 : vector<128x32xf32>
    %cst_19 = arith.constant 1.000000e+00 : f32
    %39 = vector.broadcast %cst_19 : f32 to vector<128x32xf32>
    %40 = arith.subf %39, %38 : vector<128x32xf32>
    %cst_20 = arith.constant 0.000000e+00 : f32
    %41 = vector.broadcast %cst_20 : f32 to vector<128x32xf32>
    %42 = arith.cmpf oge, %12, %41 : vector<128x32xf32>
    %cst_21 = arith.constant 0.000000e+00 : f32
    %43 = vector.broadcast %cst_21 : f32 to vector<128x32xf32>
    %44 = arith.subf %43, %40 : vector<128x32xf32>
    %45 = arith.select %42, %40, %44 : vector<128x32xi1>, vector<128x32xf32>
    %cst_22 = arith.constant 1.000000e+00 : f32
    %46 = vector.broadcast %cst_22 : f32 to vector<128x32xf32>
    %47 = arith.addf %46, %45 : vector<128x32xf32>
    %48 = arith.mulf %10, %47 : vector<128x32xf32>
    %49 = arith.truncf %48 : vector<128x32xf32> to vector<128x32xbf16>
    %c0_23 = arith.constant 0 : index
    %c0_24 = arith.constant 0 : index
    %50 = vector.load %arg4[%c0_23, %c0_24] : memref<32x128xbf16, #tpu.memory_space<vmem>>, vector<32x128xbf16>
    %cst_25 = arith.constant dense<0.000000e+00> : vector<128x128xf32>
    %51 = tpu.matmul %49, %50, %cst_25 {dimension_numbers = #tpu.dot_dimension_numbers<[1], [0], [0], [1], [0, 0, 1, 1], [], []>} : vector<128x32xbf16>, vector<32x128xbf16>, vector<128x128xf32> -> vector<128x128xf32>
    %c0_26 = arith.constant 0 : index
    %c0_27 = arith.constant 0 : index
    %52 = vector.load %arg5[%c0_26, %c0_27] : memref<1x128xf32, #tpu.memory_space<vmem>>, vector<1x128xf32>
    %53 = vector.broadcast %52 : vector<1x128xf32> to vector<128x128xf32>
    %54 = arith.addf %51, %53 : vector<128x128xf32>
    %cst_28 = arith.constant 5.000000e-01 : f32
    %55 = vector.broadcast %cst_28 : f32 to vector<128x128xf32>
    %56 = arith.mulf %55, %54 : vector<128x128xf32>
    %cst_29 = arith.constant 0.707106769 : f32
    %57 = vector.broadcast %cst_29 : f32 to vector<128x128xf32>
    %58 = arith.mulf %54, %57 : vector<128x128xf32>
    %59 = math.absf %58 : vector<128x128xf32>
    %cst_30 = arith.constant 0.327591091 : f32
    %60 = vector.broadcast %cst_30 : f32 to vector<128x128xf32>
    %61 = arith.mulf %60, %59 : vector<128x128xf32>
    %cst_31 = arith.constant 1.000000e+00 : f32
    %62 = vector.broadcast %cst_31 : f32 to vector<128x128xf32>
    %63 = arith.addf %62, %61 : vector<128x128xf32>
    %cst_32 = arith.constant 1.000000e+00 : f32
    %64 = vector.broadcast %cst_32 : f32 to vector<128x128xf32>
    %65 = arith.divf %64, %63 : vector<128x128xf32>
    %cst_33 = arith.constant 1.06140542 : f32
    %66 = vector.broadcast %cst_33 : f32 to vector<128x128xf32>
    %67 = arith.mulf %65, %66 : vector<128x128xf32>
    %cst_34 = arith.constant -1.45315206 : f32
    %68 = vector.broadcast %cst_34 : f32 to vector<128x128xf32>
    %69 = arith.addf %68, %67 : vector<128x128xf32>
    %70 = arith.mulf %65, %69 : vector<128x128xf32>
    %cst_35 = arith.constant 1.42141378 : f32
    %71 = vector.broadcast %cst_35 : f32 to vector<128x128xf32>
    %72 = arith.addf %71, %70 : vector<128x128xf32>
    %73 = arith.mulf %65, %72 : vector<128x128xf32>
    %cst_36 = arith.constant -0.284496725 : f32
    %74 = vector.broadcast %cst_36 : f32 to vector<128x128xf32>
    %75 = arith.addf %74, %73 : vector<128x128xf32>
    %76 = arith.mulf %65, %75 : vector<128x128xf32>
    %cst_37 = arith.constant 0.254829586 : f32
    %77 = vector.broadcast %cst_37 : f32 to vector<128x128xf32>
    %78 = arith.addf %77, %76 : vector<128x128xf32>
    %79 = arith.mulf %65, %78 : vector<128x128xf32>
    %cst_38 = arith.constant 0.000000e+00 : f32
    %80 = vector.broadcast %cst_38 : f32 to vector<128x128xf32>
    %81 = arith.subf %80, %59 : vector<128x128xf32>
    %82 = arith.mulf %81, %59 : vector<128x128xf32>
    %83 = math.exp %82 : vector<128x128xf32>
    %84 = arith.mulf %79, %83 : vector<128x128xf32>
    %cst_39 = arith.constant 1.000000e+00 : f32
    %85 = vector.broadcast %cst_39 : f32 to vector<128x128xf32>
    %86 = arith.subf %85, %84 : vector<128x128xf32>
    %cst_40 = arith.constant 0.000000e+00 : f32
    %87 = vector.broadcast %cst_40 : f32 to vector<128x128xf32>
    %88 = arith.cmpf oge, %58, %87 : vector<128x128xf32>
    %cst_41 = arith.constant 0.000000e+00 : f32
    %89 = vector.broadcast %cst_41 : f32 to vector<128x128xf32>
    %90 = arith.subf %89, %86 : vector<128x128xf32>
    %91 = arith.select %88, %86, %90 : vector<128x128xi1>, vector<128x128xf32>
    %cst_42 = arith.constant 1.000000e+00 : f32
    %92 = vector.broadcast %cst_42 : f32 to vector<128x128xf32>
    %93 = arith.addf %92, %91 : vector<128x128xf32>
    %94 = arith.mulf %56, %93 : vector<128x128xf32>
    %95 = arith.truncf %94 : vector<128x128xf32> to vector<128x128xbf16>
    %c0_43 = arith.constant 0 : index
    %c0_44 = arith.constant 0 : index
    %96 = vector.load %arg6[%c0_43, %c0_44] : memref<128x32xbf16, #tpu.memory_space<vmem>>, vector<128x32xbf16>
    %cst_45 = arith.constant dense<0.000000e+00> : vector<128x32xf32>
    %97 = tpu.matmul %95, %96, %cst_45 {dimension_numbers = #tpu.dot_dimension_numbers<[1], [0], [0], [1], [0, 0, 1, 1], [], []>} : vector<128x128xbf16>, vector<128x32xbf16>, vector<128x32xf32> -> vector<128x32xf32>
    %c0_46 = arith.constant 0 : index
    %c0_47 = arith.constant 0 : index
    %98 = vector.load %arg7[%c0_46, %c0_47] : memref<1x32xf32, #tpu.memory_space<vmem>>, vector<1x32xf32>
    %99 = vector.broadcast %98 : vector<1x32xf32> to vector<128x32xf32>
    %100 = arith.addf %97, %99 : vector<128x32xf32>
    %cst_48 = arith.constant 5.000000e-01 : f32
    %101 = vector.broadcast %cst_48 : f32 to vector<128x32xf32>
    %102 = arith.mulf %101, %100 : vector<128x32xf32>
    %cst_49 = arith.constant 0.707106769 : f32
    %103 = vector.broadcast %cst_49 : f32 to vector<128x32xf32>
    %104 = arith.mulf %100, %103 : vector<128x32xf32>
    %105 = math.absf %104 : vector<128x32xf32>
    %cst_50 = arith.constant 0.327591091 : f32
    %106 = vector.broadcast %cst_50 : f32 to vector<128x32xf32>
    %107 = arith.mulf %106, %105 : vector<128x32xf32>
    %cst_51 = arith.constant 1.000000e+00 : f32
    %108 = vector.broadcast %cst_51 : f32 to vector<128x32xf32>
    %109 = arith.addf %108, %107 : vector<128x32xf32>
    %cst_52 = arith.constant 1.000000e+00 : f32
    %110 = vector.broadcast %cst_52 : f32 to vector<128x32xf32>
    %111 = arith.divf %110, %109 : vector<128x32xf32>
    %cst_53 = arith.constant 1.06140542 : f32
    %112 = vector.broadcast %cst_53 : f32 to vector<128x32xf32>
    %113 = arith.mulf %111, %112 : vector<128x32xf32>
    %cst_54 = arith.constant -1.45315206 : f32
    %114 = vector.broadcast %cst_54 : f32 to vector<128x32xf32>
    %115 = arith.addf %114, %113 : vector<128x32xf32>
    %116 = arith.mulf %111, %115 : vector<128x32xf32>
    %cst_55 = arith.constant 1.42141378 : f32
    %117 = vector.broadcast %cst_55 : f32 to vector<128x32xf32>
    %118 = arith.addf %117, %116 : vector<128x32xf32>
    %119 = arith.mulf %111, %118 : vector<128x32xf32>
    %cst_56 = arith.constant -0.284496725 : f32
    %120 = vector.broadcast %cst_56 : f32 to vector<128x32xf32>
    %121 = arith.addf %120, %119 : vector<128x32xf32>
    %122 = arith.mulf %111, %121 : vector<128x32xf32>
    %cst_57 = arith.constant 0.254829586 : f32
    %123 = vector.broadcast %cst_57 : f32 to vector<128x32xf32>
    %124 = arith.addf %123, %122 : vector<128x32xf32>
    %125 = arith.mulf %111, %124 : vector<128x32xf32>
    %cst_58 = arith.constant 0.000000e+00 : f32
    %126 = vector.broadcast %cst_58 : f32 to vector<128x32xf32>
    %127 = arith.subf %126, %105 : vector<128x32xf32>
    %128 = arith.mulf %127, %105 : vector<128x32xf32>
    %129 = math.exp %128 : vector<128x32xf32>
    %130 = arith.mulf %125, %129 : vector<128x32xf32>
    %cst_59 = arith.constant 1.000000e+00 : f32
    %131 = vector.broadcast %cst_59 : f32 to vector<128x32xf32>
    %132 = arith.subf %131, %130 : vector<128x32xf32>
    %cst_60 = arith.constant 0.000000e+00 : f32
    %133 = vector.broadcast %cst_60 : f32 to vector<128x32xf32>
    %134 = arith.cmpf oge, %104, %133 : vector<128x32xf32>
    %cst_61 = arith.constant 0.000000e+00 : f32
    %135 = vector.broadcast %cst_61 : f32 to vector<128x32xf32>
    %136 = arith.subf %135, %132 : vector<128x32xf32>
    %137 = arith.select %134, %132, %136 : vector<128x32xi1>, vector<128x32xf32>
    %cst_62 = arith.constant 1.000000e+00 : f32
    %138 = vector.broadcast %cst_62 : f32 to vector<128x32xf32>
    %139 = arith.addf %138, %137 : vector<128x32xf32>
    %140 = arith.mulf %102, %139 : vector<128x32xf32>
    %141 = arith.truncf %140 : vector<128x32xf32> to vector<128x32xbf16>
    %c0_63 = arith.constant 0 : index
    %c0_64 = arith.constant 0 : index
    %142 = vector.load %arg8[%c0_63, %c0_64] : memref<32x2xbf16, #tpu.memory_space<vmem>>, vector<32x2xbf16>
    %cst_65 = arith.constant dense<0.000000e+00> : vector<128x2xf32>
    %143 = tpu.matmul %141, %142, %cst_65 {dimension_numbers = #tpu.dot_dimension_numbers<[1], [0], [0], [1], [0, 0, 1, 1], [], []>} : vector<128x32xbf16>, vector<32x2xbf16>, vector<128x2xf32> -> vector<128x2xf32>
    %c0_66 = arith.constant 0 : index
    %c0_67 = arith.constant 0 : index
    %144 = vector.load %arg9[%c0_66, %c0_67] : memref<1x2xf32, #tpu.memory_space<vmem>>, vector<1x2xf32>
    %145 = vector.broadcast %144 : vector<1x2xf32> to vector<128x2xf32>
    %146 = arith.addf %143, %145 : vector<128x2xf32>
    %c0_68 = arith.constant 0 : index
    %c0_69 = arith.constant 0 : index
    %c0_70 = arith.constant 0 : index
    %147 = vector.load %arg10[%c0_68, %c0_69, %c0_70] : memref<1x128x2xf32, #tpu.memory_space<vmem>>, vector<1x128x2xf32>
    %148 = vector.shape_cast %147 : vector<1x128x2xf32> to vector<128x2xf32>
    %149 = vector.shape_cast %146 : vector<128x2xf32> to vector<1x128x2xf32>
    tpu.vector_store %arg10[%c0_68, %c0_69, %c0_70], %149 {strides = array<i32>} : memref<1x128x2xf32, #tpu.memory_space<vmem>>, vector<1x128x2xf32>,
    return
  }
  func.func @transform_0(%arg0: i32) -> (i32, i32, i32) {
    %c0_i32 = arith.constant 0 : i32
    %c0_i32_0 = arith.constant 0 : i32
    %c0_i32_1 = arith.constant 0 : i32
    return %arg0, %c0_i32, %c0_i32_0 : i32, i32, i32
  }
  func.func @transform_1(%arg0: i32) -> (i32, i32, i32) {
    %c0_i32 = arith.constant 0 : i32
    %c0_i32_0 = arith.constant 0 : i32
    %c0_i32_1 = arith.constant 0 : i32
    return %arg0, %c0_i32, %c0_i32_0 : i32, i32, i32
  }
  func.func @transform_2(%arg0: i32) -> (i32, i32, i32) {
    %c0_i32 = arith.constant 0 : i32
    %c0_i32_0 = arith.constant 0 : i32
    %c0_i32_1 = arith.constant 0 : i32
    return %arg0, %c0_i32, %c0_i32_0 : i32, i32, i32
  }
  func.func @transform_3(%arg0: i32) -> (i32, i32) {
    %c0_i32 = arith.constant 0 : i32
    %c0_i32_0 = arith.constant 0 : i32
    %c0_i32_1 = arith.constant 0 : i32
    return %c0_i32, %c0_i32_0 : i32, i32
  }
  func.func @transform_4(%arg0: i32) -> (i32, i32) {
    %c0_i32 = arith.constant 0 : i32
    %c0_i32_0 = arith.constant 0 : i32
    %c0_i32_1 = arith.constant 0 : i32
    return %c0_i32, %c0_i32_0 : i32, i32
  }
  func.func @transform_5(%arg0: i32) -> (i32, i32) {
    %c0_i32 = arith.constant 0 : i32
    %c0_i32_0 = arith.constant 0 : i32
    %c0_i32_1 = arith.constant 0 : i32
    return %c0_i32, %c0_i32_0 : i32, i32
  }
  func.func @transform_6(%arg0: i32) -> (i32, i32) {
    %c0_i32 = arith.constant 0 : i32
    %c0_i32_0 = arith.constant 0 : i32
    %c0_i32_1 = arith.constant 0 : i32
    return %c0_i32, %c0_i32_0 : i32, i32
  }
  func.func @transform_7(%arg0: i32) -> (i32, i32) {
    %c0_i32 = arith.constant 0 : i32
    %c0_i32_0 = arith.constant 0 : i32
    %c0_i32_1 = arith.constant 0 : i32
    return %c0_i32, %c0_i32_0 : i32, i32
  }
  func.func @transform_8(%arg0: i32) -> (i32, i32) {
    %c0_i32 = arith.constant 0 : i32
    %c0_i32_0 = arith.constant 0 : i32
    %c0_i32_1 = arith.constant 0 : i32
    return %c0_i32, %c0_i32_0 : i32, i32
  }
  func.func @transform_9(%arg0: i32) -> (i32, i32, i32) {
    %c0_i32 = arith.constant 0 : i32
    %c0_i32_0 = arith.constant 0 : i32
    %c0_i32_1 = arith.constant 0 : i32
    return %arg0, %c0_i32, %c0_i32_0 : i32, i32, i32
  }
}

</mosaic_0001>

<bundles_post_ra>
// kernel: _lambda_.6
= control target key start
LH: loop header
LB: loop body
LE: loop exit
PB: predicated region body
PF: predicated region fallthrough
CT: control target
= control target key end

     0   :  { %8 = vsyncpa [#allocation3], 0  ;;  %s457_s15 = smov [#allocation2]   ;;  %s711_s0 = inlined_call_operand.vmem [shape: bf16[256,5], index: 0, kind: input, shape index: {}]   ;;  %s712_s1 = inlined_call_operand.vmem [shape: bf16[5,32], index: 1, kind: input, shape index: {}]   ;;  %s713_s2 = inlined_call_operand.hbm [shape: f32[1,32], index: 2, kind: input, shape index: {}]   ;;  %s714_s3 = inlined_call_operand.vmem [shape: f32[256,32], index: 3, kind: output, shape index: {}]  }
   0x1   :  { %s18_s14 = sshll.u32 %s713_s2, 4  ;;  %s20_s16 = sshll.u32 %s457_s15, 4  ;;  %s19_s14 = int_to_ptr.hbm [resolvable:$true] %s18_s14  ;;  %s21_s16 = int_to_ptr.vmem [resolvable:$true] %s20_s16 }
   0x2   :  { %23 = dma.hbm_to_vmem [thread:$0]  %s19_s14, 16, %s21_s16, [#allocation3]  }
   0x3   :  { %455 = dma.done.wait [#allocation3], 16  }
   0x4   :  { %456 = vsyncadd [#allocation3], 4294967280  ;;  %vm195_vm0 = vcmask 1041408   ;;  %vm196_vm1 = vcmask 1042432   ;;  %v458_v0 = vmov 65535   ;;  %v409_v5 = vld [vmem:[%s711_s0] sm:$0xff] }
   0x5   :  { %v197_v1 = vsel %vm195_vm0, 4294967295, %v458_v0  ;;  %v61_v3 = vld [vmem:[%s712_s1] sm:$0x7]  ;;  %vm146_vm2 = vcmask 39936   ;;  %v410_v9 = vld [vmem:[%s711_s0 + $0x8] sm:$0xff]  ;;  %v411_v13 = vld [vmem:[%s711_s0 + $0x10] sm:$0xff] }
   0x6   :  { %v198_v2 = vsel %vm196_vm1, %v197_v1, 0  ;;  %v413_v6 = vld [vmem:[%s711_s0 + $0x20] sm:$0xff]  ;;  %v414_v10 = vld [vmem:[%s711_s0 + $0x28] sm:$0xff]  ;;  %v415_v14 = vld [vmem:[%s711_s0 + $0x30] sm:$0xff]  ;;  %vm291_vm3 = vcmask 261120  }
   0x7   :  { %v200_v4 = vand.u32 %v198_v2, %v61_v3  ;;  %v417_v7 = vld [vmem:[%s711_s0 + $0x40] sm:$0xff]  ;;  %v418_v11 = vld [vmem:[%s711_s0 + $0x48] sm:$0xff]  ;;  %v419_v15 = vld [vmem:[%s711_s0 + $0x50] sm:$0xff] }
   0x8   :  { %v421_v8 = vld [vmem:[%s711_s0 + $0x60] sm:$0xff]  ;;  %v422_v12 = vld [vmem:[%s711_s0 + $0x68] sm:$0xff]  ;;  %v423_v16 = vld [vmem:[%s711_s0 + $0x70] sm:$0xff] }
   0x9   :  { %209 = vmatpush.bf16.msra.mxu0 %v200_v4  ;;  %425 = vmatpush.bf16.msra.mxu1 %v200_v4  ;;  %v412_v17 = vld [vmem:[%s711_s0 + $0x18] sm:$0xff]  ;;  %v549_v21 = vld [vmem:[#allocation2] ss:$0 sm:$0xff] }
   0xa   :  { %426 = vmatpush.bf16.msra.mxu2 %v200_v4  ;;  %427 = vmatpush.bf16.msra.mxu3 %v200_v4  ;;  %v416_v18 = vld [vmem:[%s711_s0 + $0x38] sm:$0xff] }
   0xb   :  { %v420_v19 = vld [vmem:[%s711_s0 + $0x58] sm:$0xff] }
   0xc   :  { %393 = vmatmul.msk.bf16.vlgmr.msra.gmra.mxu0 %vm146_vm2, %v409_v5  ;;  %397 = vmatmul.msk.bf16.vlgmr.msra.gmra.mxu1 %vm146_vm2, %v413_v6  ;;  %v424_v20 = vld [vmem:[%s711_s0 + $0x78] sm:$0xff] }
   0xd   :  { %401 = vmatmul.msk.bf16.vlgmr.msra.gmra.mxu2 %vm146_vm2, %v417_v7  ;;  %405 = vmatmul.msk.bf16.vlgmr.msra.gmra.mxu3 %vm146_vm2, %v421_v8 }
  0x1c   :  { %394 = vmatmul.msk.bf16.gmra.mxu0 %vm146_vm2, %v410_v9  ;;  %398 = vmatmul.msk.bf16.gmra.mxu1 %vm146_vm2, %v414_v10 }
  0x1d   :  { %402 = vmatmul.msk.bf16.gmra.mxu2 %vm146_vm2, %v418_v11  ;;  %406 = vmatmul.msk.bf16.gmra.mxu3 %vm146_vm2, %v422_v12 }
  0x2c   :  { %395 = vmatmul.msk.bf16.gmra.mxu0 %vm146_vm2, %v411_v13  ;;  %399 = vmatmul.msk.bf16.gmra.mxu1 %vm146_vm2, %v415_v14 }
  0x2d   :  { %403 = vmatmul.msk.bf16.gmra.mxu2 %vm146_vm2, %v419_v15  ;;  %407 = vmatmul.msk.bf16.gmra.mxu3 %vm146_vm2, %v423_v16 }
  0x3c   :  { %396 = vmatmul.msk.bf16.gmra.mxu0 %vm146_vm2, %v412_v17  ;;  %400 = vmatmul.msk.bf16.gmra.mxu1 %vm146_vm2, %v416_v18 }
  0x3d   :  { %404 = vmatmul.msk.bf16.gmra.mxu2 %vm146_vm2, %v420_v19  ;;  %408 = vmatmul.msk.bf16.gmra.mxu3 %vm146_vm2, %v424_v20 }
  0x89   :  { %v211_v22 = vpop.f32.mrf.mxu0  ;;  %v231_v23 = vpop.f32.mrf.mxu1 }
  0x8a   :  { %v212_v24 = vadd.f32 %v549_v21, %v211_v22  ;;  %v232_v25 = vadd.f32 %v549_v21, %v231_v23 }
  0x8c   :  { %292 = vst.msk [vmem:[%s714_s3] sm:$0xff] %vm291_vm3, %v212_v24 }
  0x8d   :  { %300 = vst.msk [vmem:[%s714_s3 + $0x40] sm:$0xff] %vm291_vm3, %v232_v25 }
  0x90   :  { %v251_v26 = vpop.f32.mrf.mxu2  ;;  %v271_v27 = vpop.f32.mrf.mxu3 }
  0x91   :  { %v252_v28 = vadd.f32 %v549_v21, %v251_v26  ;;  %v272_v29 = vadd.f32 %v549_v21, %v271_v27  ;;  %v213_v30 = vpop.f32.mrf.mxu0  ;;  %v233_v31 = vpop.f32.mrf.mxu1 }
  0x92   :  { %v214_v32 = vadd.f32 %v549_v21, %v213_v30  ;;  %v234_v33 = vadd.f32 %v549_v21, %v233_v31 }
  0x93   :  { %308 = vst.msk [vmem:[%s714_s3 + $0x80] sm:$0xff] %vm291_vm3, %v252_v28 }
  0x94   :  { %316 = vst.msk [vmem:[%s714_s3 + $0xc0] sm:$0xff] %vm291_vm3, %v272_v29 }
  0x95   :  { %293 = vst.msk [vmem:[%s714_s3 + $0x8] sm:$0xff] %vm291_vm3, %v214_v32 }
  0x96   :  { %301 = vst.msk [vmem:[%s714_s3 + $0x48] sm:$0xff] %vm291_vm3, %v234_v33 }
  0x98   :  { %v253_v34 = vpop.f32.mrf.mxu2  ;;  %v273_v35 = vpop.f32.mrf.mxu3 }
  0x99   :  { %v254_v36 = vadd.f32 %v549_v21, %v253_v34  ;;  %v274_v37 = vadd.f32 %v549_v21, %v273_v35  ;;  %v216_v38 = vpop.f32.mrf.mxu0  ;;  %v236_v39 = vpop.f32.mrf.mxu1 }
  0x9a   :  { %v217_v40 = vadd.f32 %v549_v21, %v216_v38  ;;  %v237_v41 = vadd.f32 %v549_v21, %v236_v39 }
  0x9b   :  { %309 = vst.msk [vmem:[%s714_s3 + $0x88] sm:$0xff] %vm291_vm3, %v254_v36 }
  0x9c   :  { %317 = vst.msk [vmem:[%s714_s3 + $0xc8] sm:$0xff] %vm291_vm3, %v274_v37 }
  0x9d   :  { %294 = vst.msk [vmem:[%s714_s3 + $0x10] sm:$0xff] %vm291_vm3, %v217_v40 }
  0x9e   :  { %302 = vst.msk [vmem:[%s714_s3 + $0x50] sm:$0xff] %vm291_vm3, %v237_v41 }
  0xa0   :  { %v256_v42 = vpop.f32.mrf.mxu2  ;;  %v276_v43 = vpop.f32.mrf.mxu3 }
  0xa1   :  { %v257_v44 = vadd.f32 %v549_v21, %v256_v42  ;;  %v277_v45 = vadd.f32 %v549_v21, %v276_v43  ;;  %v218_v46 = vpop.f32.mrf.mxu0  ;;  %v238_v47 = vpop.f32.mrf.mxu1 }
  0xa2   :  { %v219_v48 = vadd.f32 %v549_v21, %v218_v46  ;;  %v239_v49 = vadd.f32 %v549_v21, %v238_v47 }
  0xa3   :  { %310 = vst.msk [vmem:[%s714_s3 + $0x90] sm:$0xff] %vm291_vm3, %v257_v44 }
  0xa4   :  { %318 = vst.msk [vmem:[%s714_s3 + $0xd0] sm:$0xff] %vm291_vm3, %v277_v45 }
  0xa5   :  { %295 = vst.msk [vmem:[%s714_s3 + $0x18] sm:$0xff] %vm291_vm3, %v219_v48 }
  0xa6   :  { %303 = vst.msk [vmem:[%s714_s3 + $0x58] sm:$0xff] %vm291_vm3, %v239_v49 }
  0xa8   :  { %v258_v50 = vpop.f32.mrf.mxu2  ;;  %v278_v51 = vpop.f32.mrf.mxu3 }
  0xa9   :  { %v259_v52 = vadd.f32 %v549_v21, %v258_v50  ;;  %v279_v53 = vadd.f32 %v549_v21, %v278_v51  ;;  %v221_v54 = vpop.f32.mrf.mxu0  ;;  %v241_v55 = vpop.f32.mrf.mxu1 }
  0xaa   :  { %v222_v56 = vadd.f32 %v549_v21, %v221_v54  ;;  %v242_v57 = vadd.f32 %v549_v21, %v241_v55 }
  0xab   :  { %311 = vst.msk [vmem:[%s714_s3 + $0x98] sm:$0xff] %vm291_vm3, %v259_v52 }
  0xac   :  { %319 = vst.msk [vmem:[%s714_s3 + $0xd8] sm:$0xff] %vm291_vm3, %v279_v53 }
  0xad   :  { %296 = vst.msk [vmem:[%s714_s3 + $0x20] sm:$0xff] %vm291_vm3, %v222_v56 }
  0xae   :  { %304 = vst.msk [vmem:[%s714_s3 + $0x60] sm:$0xff] %vm291_vm3, %v242_v57 }
  0xb0   :  { %v261_v58 = vpop.f32.mrf.mxu2  ;;  %v281_v59 = vpop.f32.mrf.mxu3 }
  0xb1   :  { %v262_v60 = vadd.f32 %v549_v21, %v261_v58  ;;  %v282_v61 = vadd.f32 %v549_v21, %v281_v59  ;;  %v223_v62 = vpop.f32.mrf.mxu0  ;;  %v243_v63 = vpop.f32.mrf.mxu1 }
  0xb2   :  { %v224_v0 = vadd.f32 %v549_v21, %v223_v62  ;;  %v244_v1 = vadd.f32 %v549_v21, %v243_v63 }
  0xb3   :  { %312 = vst.msk [vmem:[%s714_s3 + $0xa0] sm:$0xff] %vm291_vm3, %v262_v60 }
  0xb4   :  { %320 = vst.msk [vmem:[%s714_s3 + $0xe0] sm:$0xff] %vm291_vm3, %v282_v61 }
  0xb5   :  { %297 = vst.msk [vmem:[%s714_s3 + $0x28] sm:$0xff] %vm291_vm3, %v224_v0 }
  0xb6   :  { %305 = vst.msk [vmem:[%s714_s3 + $0x68] sm:$0xff] %vm291_vm3, %v244_v1 }
  0xb8   :  { %v263_v2 = vpop.f32.mrf.mxu2  ;;  %v283_v3 = vpop.f32.mrf.mxu3 }
  0xb9   :  { %v264_v4 = vadd.f32 %v549_v21, %v263_v2  ;;  %v284_v5 = vadd.f32 %v549_v21, %v283_v3  ;;  %v226_v6 = vpop.f32.mrf.mxu0  ;;  %v246_v7 = vpop.f32.mrf.mxu1 }
  0xba   :  { %v227_v8 = vadd.f32 %v549_v21, %v226_v6  ;;  %v247_v9 = vadd.f32 %v549_v21, %v246_v7 }
  0xbb   :  { %313 = vst.msk [vmem:[%s714_s3 + $0xa8] sm:$0xff] %vm291_vm3, %v264_v4 }
  0xbc   :  { %321 = vst.msk [vmem:[%s714_s3 + $0xe8] sm:$0xff] %vm291_vm3, %v284_v5 }
  0xbd   :  { %298 = vst.msk [vmem:[%s714_s3 + $0x30] sm:$0xff] %vm291_vm3, %v227_v8 }
  0xbe   :  { %306 = vst.msk [vmem:[%s714_s3 + $0x70] sm:$0xff] %vm291_vm3, %v247_v9 }
  0xc0   :  { %v266_v10 = vpop.f32.mrf.mxu2  ;;  %v286_v11 = vpop.f32.mrf.mxu3 }
  0xc1   :  { %v267_v12 = vadd.f32 %v549_v21, %v266_v10  ;;  %v287_v13 = vadd.f32 %v549_v21, %v286_v11  ;;  %v228_v14 = vpop.f32.mrf.mxu0  ;;  %v248_v15 = vpop.f32.mrf.mxu1 }
  0xc2   :  { %v229_v16 = vadd.f32 %v549_v21, %v228_v14  ;;  %v249_v17 = vadd.f32 %v549_v21, %v248_v15 }
  0xc3   :  { %314 = vst.msk [vmem:[%s714_s3 + $0xb0] sm:$0xff] %vm291_vm3, %v267_v12 }
  0xc4   :  { %322 = vst.msk [vmem:[%s714_s3 + $0xf0] sm:$0xff] %vm291_vm3, %v287_v13 }
  0xc5   :  { %299 = vst.msk [vmem:[%s714_s3 + $0x38] sm:$0xff] %vm291_vm3, %v229_v16 }
  0xc6   :  { %307 = vst.msk [vmem:[%s714_s3 + $0x78] sm:$0xff] %vm291_vm3, %v249_v17 }
  0xc8   :  { %v268_v18 = vpop.f32.mrf.mxu2  ;;  %v288_v19 = vpop.f32.mrf.mxu3 }
  0xc9   :  { %v269_v20 = vadd.f32 %v549_v21, %v268_v18  ;;  %v289_v22 = vadd.f32 %v549_v21, %v288_v19 }
  0xcb   :  { %315 = vst.msk [vmem:[%s714_s3 + $0xb8] sm:$0xff] %vm291_vm3, %v269_v20 }
  0xcc   :  { %323 = vst.msk [vmem:[%s714_s3 + $0xf8] sm:$0xff] %vm291_vm3, %v289_v22 }
  0xcd   :  { %328 = vsyncpa [#allocation3], 1 }

// kernel: reverse.4
= control target key start
LH: loop header
LB: loop body
LE: loop exit
PB: predicated region body
PF: predicated region fallthrough
CT: control target
= control target key end

     0   :  { %s176_s0 = inlined_call_operand.vmem [shape: f32[2,32,8,7], index: 0, kind: input, shape index: {}]   ;;  %s177_s1 = inlined_call_operand.vmem [shape: f32[2,32,8,7], index: 1, kind: output, shape index: {}]  }
   0x1   :  { %v56_v0 = vld [vmem:[%s176_s0 + $0x30] sm:$0xff]  ;;  %v57_v1 = vld [vmem:[%s176_s0 + $0x68] sm:$0xff]  ;;  %v61_v3 = vld [vmem:[%s176_s0 + $0x60] sm:$0xff] }
   0x2   :  { %v59_v2 = vld [vmem:[%s176_s0 + $0x28] sm:$0xff]  ;;  %4 = vst [vmem:[%s177_s1] sm:$0xff] %v56_v0  ;;  %v63_v4 = vld [vmem:[%s176_s0 + $0x20] sm:$0xff]  ;;  %v65_v5 = vld [vmem:[%s176_s0 + $0x58] sm:$0xff] }
   0x3   :  { %58 = vst [vmem:[%s177_s1 + $0x38] sm:$0xff] %v57_v1  ;;  %v67_v6 = vld [vmem:[%s176_s0 + $0x18] sm:$0xff]  ;;  %v69_v7 = vld [vmem:[%s176_s0 + $0x50] sm:$0xff]  ;;  %v73_v9 = vld [vmem:[%s176_s0 + $0x48] sm:$0xff] }
   0x4   :  { %60 = vst [vmem:[%s177_s1 + $0x8] sm:$0xff] %v59_v2  ;;  %v71_v8 = vld [vmem:[%s176_s0 + $0x10] sm:$0xff]  ;;  %v75_v10 = vld [vmem:[%s176_s0 + $0x8] sm:$0xff]  ;;  %v77_v11 = vld [vmem:[%s176_s0 + $0x40] sm:$0xff] }
   0x5   :  { %62 = vst [vmem:[%s177_s1 + $0x40] sm:$0xff] %v61_v3  ;;  %v49_v12 = vld [vmem:[%s176_s0] sm:$0xff]  ;;  %v80_v13 = vld [vmem:[%s176_s0 + $0x38] sm:$0xff] }
   0x6   :  { %64 = vst [vmem:[%s177_s1 + $0x10] sm:$0xff] %v63_v4 }
   0x7   :  { %66 = vst [vmem:[%s177_s1 + $0x48] sm:$0xff] %v65_v5 }
   0x8   :  { %68 = vst [vmem:[%s177_s1 + $0x18] sm:$0xff] %v67_v6 }
   0x9   :  { %70 = vst [vmem:[%s177_s1 + $0x50] sm:$0xff] %v69_v7 }
   0xa   :  { %72 = vst [vmem:[%s177_s1 + $0x20] sm:$0xff] %v71_v8 }
   0xb   :  { %74 = vst [vmem:[%s177_s1 + $0x58] sm:$0xff] %v73_v9 }
   0xc   :  { %76 = vst [vmem:[%s177_s1 + $0x28] sm:$0xff] %v75_v10 }
   0xd   :  { %78 = vst [vmem:[%s177_s1 + $0x60] sm:$0xff] %v77_v11 }
   0xe   :  { %79 = vst [vmem:[%s177_s1 + $0x30] sm:$0xff] %v49_v12 }
   0xf   :  { %81 = vst [vmem:[%s177_s1 + $0x68] sm:$0xff] %v80_v13 }

// kernel: _lambda_.7
= control target key start
LH: loop header
LB: loop body
LE: loop exit
PB: predicated region body
PF: predicated region fallthrough
CT: control target
= control target key end

     0   :  { %vm45_vm0 = vcmask 523264   ;;  %vm62_vm1 = vcmask 517120   ;;  %s3348_s1 = inlined_call_operand.vmem [shape: bf16[32,64,64], index: 1, kind: input, shape index: {}]   ;;  %s3349_s0 = inlined_call_operand.vmem [shape: bf16[32,2,64], index: 0, kind: input, shape index: {}]   ;;  %s3350_s2 = inlined_call_operand.vmem [shape: f32[32,2,64], index: 2, kind: output, shape index: {}]  }
   0x1   :  { %v2568_v0 = vld [vmem:[%s3348_s1 + $0x18] sm:$0xff]  ;;  %v2567_v4 = vld [vmem:[%s3348_s1 + $0x10] sm:$0xff]  ;;  %v2566_v8 = vld [vmem:[%s3348_s1 + $0x8] sm:$0xff] }
   0x2   :  { %v2572_v1 = vld [vmem:[%s3348_s1 + $0x38] sm:$0xff]  ;;  %53 = vmatpush.bf16.msra.mxu0 %v2568_v0  ;;  %v2571_v5 = vld [vmem:[%s3348_s1 + $0x30] sm:$0xff]  ;;  %v2570_v9 = vld [vmem:[%s3348_s1 + $0x28] sm:$0xff] }
   0x3   :  { %v2576_v2 = vld [vmem:[%s3348_s1 + $0x58] sm:$0xff]  ;;  %106 = vmatpush.bf16.msra.mxu1 %v2572_v1  ;;  %v2575_v6 = vld [vmem:[%s3348_s1 + $0x50] sm:$0xff]  ;;  %v2574_v10 = vld [vmem:[%s3348_s1 + $0x48] sm:$0xff] }
   0x4   :  { %v2580_v3 = vld [vmem:[%s3348_s1 + $0x78] sm:$0xff]  ;;  %159 = vmatpush.bf16.msra.mxu2 %v2576_v2  ;;  %v2579_v7 = vld [vmem:[%s3348_s1 + $0x70] sm:$0xff]  ;;  %v2578_v11 = vld [vmem:[%s3348_s1 + $0x68] sm:$0xff] }
   0x5   :  { %212 = vmatpush.bf16.msra.mxu3 %v2580_v3  ;;  %v2565_v12 = vld [vmem:[%s3348_s1] sm:$0xff]  ;;  %v2592_v16 = vld [vmem:[%s3348_s1 + $0xd8] sm:$0xff]  ;;  %v2591_v24 = vld [vmem:[%s3348_s1 + $0xd0] sm:$0xff] }
   0x6   :  { %54 = vmatpush.bf16.msra.mxu0 %v2567_v4  ;;  %v2569_v13 = vld [vmem:[%s3348_s1 + $0x20] sm:$0xff]  ;;  %v2596_v17 = vld [vmem:[%s3348_s1 + $0xf8] sm:$0xff]  ;;  %v2595_v25 = vld [vmem:[%s3348_s1 + $0xf0] sm:$0xff] }
   0x7   :  { %107 = vmatpush.bf16.msra.mxu1 %v2571_v5  ;;  %v2573_v14 = vld [vmem:[%s3348_s1 + $0x40] sm:$0xff]  ;;  %v2584_v22 = vld [vmem:[%s3348_s1 + $0x98] sm:$0xff]  ;;  %v2583_v26 = vld [vmem:[%s3348_s1 + $0x90] sm:$0xff] }
   0x8   :  { %160 = vmatpush.bf16.msra.mxu2 %v2575_v6  ;;  %v2577_v15 = vld [vmem:[%s3348_s1 + $0x60] sm:$0xff]  ;;  %v2588_v23 = vld [vmem:[%s3348_s1 + $0xb8] sm:$0xff]  ;;  %v2587_v27 = vld [vmem:[%s3348_s1 + $0xb0] sm:$0xff] }
   0x9   :  { %213 = vmatpush.bf16.msra.mxu3 %v2579_v7  ;;  %v12_v18 = vld [vmem:[%s3349_s0] sm:$0x1]  ;;  %v1728_v19 = vld [vmem:[%s3349_s0 + $0x1] sm:$0x1]  ;;  %v1755_v20 = vld [vmem:[%s3349_s0 + $0x2] sm:$0x1] }
   0xa   :  { %55 = vmatpush.bf16.msra.mxu0 %v2566_v8  ;;  %v1782_v21 = vld [vmem:[%s3349_s0 + $0x3] sm:$0x1]  ;;  %v2590_v28 = vld [vmem:[%s3348_s1 + $0xc8] sm:$0xff]  ;;  %v2608_v34 = vld [vmem:[%s3348_s1 + $0x158] sm:$0xff] }
   0xb   :  { %108 = vmatpush.bf16.msra.mxu1 %v2570_v9  ;;  %v2594_v29 = vld [vmem:[%s3348_s1 + $0xe8] sm:$0xff]  ;;  %v2589_v32 = vld [vmem:[%s3348_s1 + $0xc0] sm:$0xff]  ;;  %v2612_v35 = vld [vmem:[%s3348_s1 + $0x178] sm:$0xff] }
   0xc   :  { %161 = vmatpush.bf16.msra.mxu2 %v2574_v10  ;;  %v2582_v30 = vld [vmem:[%s3348_s1 + $0x88] sm:$0xff]  ;;  %v2593_v33 = vld [vmem:[%s3348_s1 + $0xe0] sm:$0xff]  ;;  %v2600_v38 = vld [vmem:[%s3348_s1 + $0x118] sm:$0xff] }
   0xd   :  { %214 = vmatpush.bf16.msra.mxu3 %v2578_v11  ;;  %v2586_v31 = vld [vmem:[%s3348_s1 + $0xa8] sm:$0xff]  ;;  %v2581_v36 = vld [vmem:[%s3348_s1 + $0x80] sm:$0xff]  ;;  %v2604_v39 = vld [vmem:[%s3348_s1 + $0x138] sm:$0xff] }
   0xe   :  { %56 = vmatpush.bf16.msra.mxu0 %v2565_v12  ;;  %v2585_v37 = vld [vmem:[%s3348_s1 + $0xa0] sm:$0xff]  ;;  %v2607_v40 = vld [vmem:[%s3348_s1 + $0x150] sm:$0xff]  ;;  %v2606_v48 = vld [vmem:[%s3348_s1 + $0x148] sm:$0xff] }
   0xf   :  { %109 = vmatpush.bf16.msra.mxu1 %v2569_v13  ;;  %v2611_v41 = vld [vmem:[%s3348_s1 + $0x170] sm:$0xff]  ;;  %v1809_v42 = vld [vmem:[%s3349_s0 + $0x4] sm:$0x1]  ;;  %v1836_v43 = vld [vmem:[%s3349_s0 + $0x5] sm:$0x1] }
  0x10   :  { %162 = vmatpush.bf16.msra.mxu2 %v2573_v14  ;;  %v1863_v44 = vld [vmem:[%s3349_s0 + $0x6] sm:$0x1]  ;;  %v1890_v45 = vld [vmem:[%s3349_s0 + $0x7] sm:$0x1]  ;;  %v2599_v46 = vld [vmem:[%s3348_s1 + $0x110] sm:$0xff] }
  0x11   :  { %215 = vmatpush.bf16.msra.mxu3 %v2577_v15  ;;  %1727 = vmatmul.msk.bf16.vlgmr.msra.gmra.mxu0 %vm45_vm0, %v12_v18  ;;  %v2603_v47 = vld [vmem:[%s3348_s1 + $0x130] sm:$0xff]  ;;  %v2610_v49 = vld [vmem:[%s3348_s1 + $0x168] sm:$0xff]  ;;  %v2605_v52 = vld [vmem:[%s3348_s1 + $0x140] sm:$0xff] }
  0x12   :  { %1753 = vmatmul.msk.bf16.vlgmr.msra.gmra.mxu1 %vm45_vm0, %v1728_v19  ;;  %265 = vmatpush.bf16.msrb.mxu0 %v2584_v22  ;;  %v2598_v50 = vld [vmem:[%s3348_s1 + $0x108] sm:$0xff]  ;;  %v2609_v53 = vld [vmem:[%s3348_s1 + $0x160] sm:$0xff]  ;;  %v2624_v54 = vld [vmem:[%s3348_s1 + $0x1d8] sm:$0xff] }
  0x13   :  { %1780 = vmatmul.msk.bf16.vlgmr.msra.gmra.mxu2 %vm45_vm0, %v1755_v20  ;;  %318 = vmatpush.bf16.msrb.mxu1 %v2588_v23  ;;  %v2602_v51 = vld [vmem:[%s3348_s1 + $0x128] sm:$0xff]  ;;  %v2628_v55 = vld [vmem:[%s3348_s1 + $0x1f8] sm:$0xff]  ;;  %v2597_v56 = vld [vmem:[%s3348_s1 + $0x100] sm:$0xff] }
  0x14   :  { %371 = vmatpush.bf16.msrb.mxu2 %v2592_v16  ;;  %1807 = vmatmul.msk.bf16.vlgmr.msra.gmra.mxu3 %vm45_vm0, %v1782_v21  ;;  %v2601_v57 = vld [vmem:[%s3348_s1 + $0x120] sm:$0xff]  ;;  %v2616_v58 = vld [vmem:[%s3348_s1 + $0x198] sm:$0xff]  ;;  %v2623_v60 = vld [vmem:[%s3348_s1 + $0x1d0] sm:$0xff] }
  0x15   :  { %424 = vmatpush.bf16.msrb.mxu3 %v2596_v17  ;;  %v2620_v59 = vld [vmem:[%s3348_s1 + $0x1b8] sm:$0xff]  ;;  %v2627_v61 = vld [vmem:[%s3348_s1 + $0x1f0] sm:$0xff]  ;;  %v1917_v0 = vld [vmem:[%s3349_s0 + $0x8] sm:$0x1] }
  0x16   :  { %266 = vmatpush.bf16.msrb.mxu0 %v2583_v26  ;;  %v2615_v62 = vld [vmem:[%s3348_s1 + $0x190] sm:$0xff]  ;;  %v1944_v1 = vld [vmem:[%s3349_s0 + $0x9] sm:$0x1]  ;;  %v1971_v2 = vld [vmem:[%s3349_s0 + $0xa] sm:$0x1] }
  0x17   :  { %319 = vmatpush.bf16.msrb.mxu1 %v2587_v27  ;;  %v2619_v63 = vld [vmem:[%s3348_s1 + $0x1b0] sm:$0xff]  ;;  %v1998_v3 = vld [vmem:[%s3349_s0 + $0xb] sm:$0x1]  ;;  %v2621_v8 = vld [vmem:[%s3348_s1 + $0x1c0] sm:$0xff] }
  0x18   :  { %372 = vmatpush.bf16.msrb.mxu2 %v2591_v24  ;;  %v2622_v4 = vld [vmem:[%s3348_s1 + $0x1c8] sm:$0xff]  ;;  %v2625_v9 = vld [vmem:[%s3348_s1 + $0x1e0] sm:$0xff]  ;;  %v2640_v12 = vld [vmem:[%s3348_s1 + $0x258] sm:$0xff] }
  0x19   :  { %425 = vmatpush.bf16.msrb.mxu3 %v2595_v25  ;;  %v2626_v5 = vld [vmem:[%s3348_s1 + $0x1e8] sm:$0xff]  ;;  %v2613_v10 = vld [vmem:[%s3348_s1 + $0x180] sm:$0xff]  ;;  %v2644_v13 = vld [vmem:[%s3348_s1 + $0x278] sm:$0xff] }
  0x1a   :  { %267 = vmatpush.bf16.msrb.mxu0 %v2582_v30  ;;  %v2614_v6 = vld [vmem:[%s3348_s1 + $0x188] sm:$0xff]  ;;  %v2617_v11 = vld [vmem:[%s3348_s1 + $0x1a0] sm:$0xff]  ;;  %v2632_v14 = vld [vmem:[%s3348_s1 + $0x218] sm:$0xff] }
  0x1b   :  { %320 = vmatpush.bf16.msrb.mxu1 %v2586_v31  ;;  %v2618_v7 = vld [vmem:[%s3348_s1 + $0x1a8] sm:$0xff]  ;;  %v2636_v15 = vld [vmem:[%s3348_s1 + $0x238] sm:$0xff]  ;;  %v2639_v16 = vld [vmem:[%s3348_s1 + $0x250] sm:$0xff] }
  0x1c   :  { %373 = vmatpush.bf16.msrb.mxu2 %v2590_v28  ;;  %v2643_v17 = vld [vmem:[%s3348_s1 + $0x270] sm:$0xff]  ;;  %v2025_v20 = vld [vmem:[%s3349_s0 + $0xc] sm:$0x1]  ;;  %v2052_v21 = vld [vmem:[%s3349_s0 + $0xd] sm:$0x1] }
  0x1d   :  { %426 = vmatpush.bf16.msrb.mxu3 %v2594_v29  ;;  %v2631_v18 = vld [vmem:[%s3348_s1 + $0x210] sm:$0xff]  ;;  %v2079_v22 = vld [vmem:[%s3349_s0 + $0xe] sm:$0x1]  ;;  %v2106_v23 = vld [vmem:[%s3349_s0 + $0xf] sm:$0x1] }
  0x1e   :  { %268 = vmatpush.bf16.msrb.mxu0 %v2581_v36  ;;  %v2635_v19 = vld [vmem:[%s3348_s1 + $0x230] sm:$0xff]  ;;  %v2638_v24 = vld [vmem:[%s3348_s1 + $0x248] sm:$0xff]  ;;  %v2637_v28 = vld [vmem:[%s3348_s1 + $0x240] sm:$0xff] }
  0x1f   :  { %321 = vmatpush.bf16.msrb.mxu1 %v2585_v37  ;;  %v2642_v25 = vld [vmem:[%s3348_s1 + $0x268] sm:$0xff]  ;;  %v2641_v29 = vld [vmem:[%s3348_s1 + $0x260] sm:$0xff]  ;;  %v2655_v36 = vld [vmem:[%s3348_s1 + $0x2d0] sm:$0xff] }
  0x20   :  { %374 = vmatpush.bf16.msrb.mxu2 %v2589_v32  ;;  %v2630_v26 = vld [vmem:[%s3348_s1 + $0x208] sm:$0xff]  ;;  %v2629_v30 = vld [vmem:[%s3348_s1 + $0x200] sm:$0xff]  ;;  %v2656_v32 = vld [vmem:[%s3348_s1 + $0x2d8] sm:$0xff] }
  0x21   :  { %427 = vmatpush.bf16.msrb.mxu3 %v2593_v33  ;;  %1834 = vmatmul.msk.bf16.vlgmr.msrb.gmra.mxu0 %vm45_vm0, %v1809_v42  ;;  %v2634_v27 = vld [vmem:[%s3348_s1 + $0x228] sm:$0xff]  ;;  %v2633_v31 = vld [vmem:[%s3348_s1 + $0x220] sm:$0xff]  ;;  %v2660_v33 = vld [vmem:[%s3348_s1 + $0x2f8] sm:$0xff] }
  0x22   :  { %477 = vmatpush.bf16.msra.mxu0 %v2600_v38  ;;  %1861 = vmatmul.msk.bf16.vlgmr.msrb.gmra.mxu1 %vm45_vm0, %v1836_v43  ;;  %v2659_v37 = vld [vmem:[%s3348_s1 + $0x2f0] sm:$0xff] }
  0x23   :  { %530 = vmatpush.bf16.msra.mxu1 %v2604_v39  ;;  %1888 = vmatmul.msk.bf16.vlgmr.msrb.gmra.mxu2 %vm45_vm0, %v1863_v44  ;;  %v2647_v38 = vld [vmem:[%s3348_s1 + $0x290] sm:$0xff]  ;;  %v2654_v44 = vld [vmem:[%s3348_s1 + $0x2c8] sm:$0xff] }
  0x24   :  { %583 = vmatpush.bf16.msra.mxu2 %v2608_v34  ;;  %1915 = vmatmul.msk.bf16.vlgmr.msrb.gmra.mxu3 %vm45_vm0, %v1890_v45  ;;  %v2648_v34 = vld [vmem:[%s3348_s1 + $0x298] sm:$0xff]  ;;  %v2651_v39 = vld [vmem:[%s3348_s1 + $0x2b0] sm:$0xff]  ;;  %v2658_v45 = vld [vmem:[%s3348_s1 + $0x2e8] sm:$0xff] }
  0x25   :  { %636 = vmatpush.bf16.msra.mxu3 %v2612_v35  ;;  %v2652_v35 = vld [vmem:[%s3348_s1 + $0x2b8] sm:$0xff]  ;;  %v2187_v42 = vld [vmem:[%s3349_s0 + $0x12] sm:$0x1]  ;;  %v2214_v43 = vld [vmem:[%s3349_s0 + $0x13] sm:$0x1] }
  0x26   :  { %478 = vmatpush.bf16.msra.mxu0 %v2599_v46  ;;  %v2646_v46 = vld [vmem:[%s3348_s1 + $0x288] sm:$0xff] }
  0x27   :  { %531 = vmatpush.bf16.msra.mxu1 %v2603_v47  ;;  %v2650_v47 = vld [vmem:[%s3348_s1 + $0x2a8] sm:$0xff] }
  0x28   :  { %584 = vmatpush.bf16.msra.mxu2 %v2607_v40  ;;  %v2133_v40 = vld [vmem:[%s3349_s0 + $0x10] sm:$0x1] }
  0x29   :  { %637 = vmatpush.bf16.msra.mxu3 %v2611_v41  ;;  %v2160_v41 = vld [vmem:[%s3349_s0 + $0x11] sm:$0x1] }
  0x2a   :  { %479 = vmatpush.bf16.msra.mxu0 %v2598_v50  ;;  %v2645_v50 = vld [vmem:[%s3348_s1 + $0x280] sm:$0xff] }
  0x2b   :  { %532 = vmatpush.bf16.msra.mxu1 %v2602_v51  ;;  %v2649_v51 = vld [vmem:[%s3348_s1 + $0x2a0] sm:$0xff] }
  0x2c   :  { %585 = vmatpush.bf16.msra.mxu2 %v2606_v48  ;;  %v2653_v48 = vld [vmem:[%s3348_s1 + $0x2c0] sm:$0xff] }
  0x2d   :  { %638 = vmatpush.bf16.msra.mxu3 %v2610_v49  ;;  %v2657_v49 = vld [vmem:[%s3348_s1 + $0x2e0] sm:$0xff] }
  0x2e   :  { %480 = vmatpush.bf16.msra.mxu0 %v2597_v56  ;;  %v2671_v56 = vld [vmem:[%s3348_s1 + $0x350] sm:$0xff] }
  0x2f   :  { %533 = vmatpush.bf16.msra.mxu1 %v2601_v57  ;;  %v2675_v57 = vld [vmem:[%s3348_s1 + $0x370] sm:$0xff] }
  0x30   :  { %586 = vmatpush.bf16.msra.mxu2 %v2605_v52  ;;  %v2672_v52 = vld [vmem:[%s3348_s1 + $0x358] sm:$0xff] }
  0x31   :  { %639 = vmatpush.bf16.msra.mxu3 %v2609_v53  ;;  %1942 = vmatmul.msk.bf16.vlgmr.msra.gmra.mxu0 %vm45_vm0, %v1917_v0  ;;  %v2676_v53 = vld [vmem:[%s3348_s1 + $0x378] sm:$0xff]  ;;  %v2670_v0 = vld [vmem:[%s3348_s1 + $0x348] sm:$0xff] }
  0x32   :  { %689 = vmatpush.bf16.msrb.mxu0 %v2616_v58  ;;  %1969 = vmatmul.msk.bf16.vlgmr.msra.gmra.mxu1 %vm45_vm0, %v1944_v1  ;;  %v2663_v58 = vld [vmem:[%s3348_s1 + $0x310] sm:$0xff]  ;;  %v2674_v1 = vld [vmem:[%s3348_s1 + $0x368] sm:$0xff] }
  0x33   :  { %742 = vmatpush.bf16.msrb.mxu1 %v2620_v59  ;;  %1996 = vmatmul.msk.bf16.vlgmr.msra.gmra.mxu2 %vm45_vm0, %v1971_v2  ;;  %v2667_v59 = vld [vmem:[%s3348_s1 + $0x330] sm:$0xff]  ;;  %v2662_v2 = vld [vmem:[%s3348_s1 + $0x308] sm:$0xff] }
  0x34   :  { %795 = vmatpush.bf16.msrb.mxu2 %v2624_v54  ;;  %2023 = vmatmul.msk.bf16.vlgmr.msra.gmra.mxu3 %vm45_vm0, %v1998_v3  ;;  %v2664_v54 = vld [vmem:[%s3348_s1 + $0x318] sm:$0xff]  ;;  %v2666_v3 = vld [vmem:[%s3348_s1 + $0x328] sm:$0xff] }
  0x35   :  { %848 = vmatpush.bf16.msrb.mxu3 %v2628_v55  ;;  %v2668_v55 = vld [vmem:[%s3348_s1 + $0x338] sm:$0xff] }
  0x36   :  { %690 = vmatpush.bf16.msrb.mxu0 %v2615_v62  ;;  %v2295_v62 = vld [vmem:[%s3349_s0 + $0x16] sm:$0x1] }
  0x37   :  { %743 = vmatpush.bf16.msrb.mxu1 %v2619_v63  ;;  %v2322_v63 = vld [vmem:[%s3349_s0 + $0x17] sm:$0x1] }
  0x38   :  { %796 = vmatpush.bf16.msrb.mxu2 %v2623_v60  ;;  %v2241_v60 = vld [vmem:[%s3349_s0 + $0x14] sm:$0x1] }
  0x39   :  { %849 = vmatpush.bf16.msrb.mxu3 %v2627_v61  ;;  %v2268_v61 = vld [vmem:[%s3349_s0 + $0x15] sm:$0x1] }
  0x3a   :  { %691 = vmatpush.bf16.msrb.mxu0 %v2614_v6  ;;  %v2661_v6 = vld [vmem:[%s3348_s1 + $0x300] sm:$0xff] }
  0x3b   :  { %744 = vmatpush.bf16.msrb.mxu1 %v2618_v7  ;;  %v2665_v7 = vld [vmem:[%s3348_s1 + $0x320] sm:$0xff] }
  0x3c   :  { %797 = vmatpush.bf16.msrb.mxu2 %v2622_v4  ;;  %v2669_v4 = vld [vmem:[%s3348_s1 + $0x340] sm:$0xff] }
  0x3d   :  { %850 = vmatpush.bf16.msrb.mxu3 %v2626_v5  ;;  %v2673_v5 = vld [vmem:[%s3348_s1 + $0x360] sm:$0xff] }
  0x3e   :  { %692 = vmatpush.bf16.msrb.mxu0 %v2613_v10  ;;  %v2680_v10 = vld [vmem:[%s3348_s1 + $0x398] sm:$0xff] }
  0x3f   :  { %745 = vmatpush.bf16.msrb.mxu1 %v2617_v11  ;;  %v2684_v11 = vld [vmem:[%s3348_s1 + $0x3b8] sm:$0xff] }
  0x40   :  { %798 = vmatpush.bf16.msrb.mxu2 %v2621_v8  ;;  %v2688_v8 = vld [vmem:[%s3348_s1 + $0x3d8] sm:$0xff] }
  0x41   :  { %851 = vmatpush.bf16.msrb.mxu3 %v2625_v9  ;;  %2050 = vmatmul.msk.bf16.vlgmr.msrb.gmra.mxu0 %vm45_vm0, %v2025_v20  ;;  %v2692_v9 = vld [vmem:[%s3348_s1 + $0x3f8] sm:$0xff]  ;;  %v2686_v20 = vld [vmem:[%s3348_s1 + $0x3c8] sm:$0xff] }
  0x42   :  { %901 = vmatpush.bf16.msra.mxu0 %v2632_v14  ;;  %2077 = vmatmul.msk.bf16.vlgmr.msrb.gmra.mxu1 %vm45_vm0, %v2052_v21  ;;  %v2679_v14 = vld [vmem:[%s3348_s1 + $0x390] sm:$0xff]  ;;  %v2690_v21 = vld [vmem:[%s3348_s1 + $0x3e8] sm:$0xff] }
  0x43   :  { %954 = vmatpush.bf16.msra.mxu1 %v2636_v15  ;;  %2104 = vmatmul.msk.bf16.vlgmr.msrb.gmra.mxu2 %vm45_vm0, %v2079_v22  ;;  %v2683_v15 = vld [vmem:[%s3348_s1 + $0x3b0] sm:$0xff]  ;;  %v2678_v22 = vld [vmem:[%s3348_s1 + $0x388] sm:$0xff] }
  0x44   :  { %1007 = vmatpush.bf16.msra.mxu2 %v2640_v12  ;;  %2131 = vmatmul.msk.bf16.vlgmr.msrb.gmra.mxu3 %vm45_vm0, %v2106_v23  ;;  %v2687_v12 = vld [vmem:[%s3348_s1 + $0x3d0] sm:$0xff]  ;;  %v2682_v23 = vld [vmem:[%s3348_s1 + $0x3a8] sm:$0xff] }
  0x45   :  { %1060 = vmatpush.bf16.msra.mxu3 %v2644_v13  ;;  %v2691_v13 = vld [vmem:[%s3348_s1 + $0x3f0] sm:$0xff] }
  0x46   :  { %902 = vmatpush.bf16.msra.mxu0 %v2631_v18  ;;  %v2403_v18 = vld [vmem:[%s3349_s0 + $0x1a] sm:$0x1] }
  0x47   :  { %955 = vmatpush.bf16.msra.mxu1 %v2635_v19  ;;  %v2430_v19 = vld [vmem:[%s3349_s0 + $0x1b] sm:$0x1] }
  0x48   :  { %1008 = vmatpush.bf16.msra.mxu2 %v2639_v16  ;;  %v2349_v16 = vld [vmem:[%s3349_s0 + $0x18] sm:$0x1] }
  0x49   :  { %1061 = vmatpush.bf16.msra.mxu3 %v2643_v17  ;;  %v2376_v17 = vld [vmem:[%s3349_s0 + $0x19] sm:$0x1] }
  0x4a   :  { %903 = vmatpush.bf16.msra.mxu0 %v2630_v26  ;;  %v2677_v26 = vld [vmem:[%s3348_s1 + $0x380] sm:$0xff] }
  0x4b   :  { %956 = vmatpush.bf16.msra.mxu1 %v2634_v27  ;;  %v2681_v27 = vld [vmem:[%s3348_s1 + $0x3a0] sm:$0xff] }
  0x4c   :  { %1009 = vmatpush.bf16.msra.mxu2 %v2638_v24  ;;  %v2685_v24 = vld [vmem:[%s3348_s1 + $0x3c0] sm:$0xff] }
  0x4d   :  { %1062 = vmatpush.bf16.msra.mxu3 %v2642_v25  ;;  %v2689_v25 = vld [vmem:[%s3348_s1 + $0x3e0] sm:$0xff] }
  0x4e   :  { %904 = vmatpush.bf16.msra.mxu0 %v2629_v30  ;;  %v2511_v30 = vld [vmem:[%s3349_s0 + $0x1e] sm:$0x1] }
  0x4f   :  { %957 = vmatpush.bf16.msra.mxu1 %v2633_v31  ;;  %v2538_v31 = vld [vmem:[%s3349_s0 + $0x1f] sm:$0x1] }
  0x50   :  { %1010 = vmatpush.bf16.msra.mxu2 %v2637_v28  ;;  %v2457_v28 = vld [vmem:[%s3349_s0 + $0x1c] sm:$0x1] }
  0x51   :  { %1063 = vmatpush.bf16.msra.mxu3 %v2641_v29  ;;  %2158 = vmatmul.msk.bf16.vlgmr.msra.gmra.mxu0 %vm45_vm0, %v2133_v40  ;;  %v2484_v29 = vld [vmem:[%s3349_s0 + $0x1d] sm:$0x1] }
  0x52   :  { %1113 = vmatpush.bf16.msrb.mxu0 %v2648_v34  ;;  %2185 = vmatmul.msk.bf16.vlgmr.msra.gmra.mxu1 %vm45_vm0, %v2160_v41 }
  0x53   :  { %1166 = vmatpush.bf16.msrb.mxu1 %v2652_v35  ;;  %2212 = vmatmul.msk.bf16.vlgmr.msra.gmra.mxu2 %vm45_vm0, %v2187_v42 }
  0x54   :  { %1219 = vmatpush.bf16.msrb.mxu2 %v2656_v32  ;;  %2239 = vmatmul.msk.bf16.vlgmr.msra.gmra.mxu3 %vm45_vm0, %v2214_v43 }
  0x55   :  { %1272 = vmatpush.bf16.msrb.mxu3 %v2660_v33 }
  0x56   :  { %1114 = vmatpush.bf16.msrb.mxu0 %v2647_v38 }
  0x57   :  { %1167 = vmatpush.bf16.msrb.mxu1 %v2651_v39 }
  0x58   :  { %1220 = vmatpush.bf16.msrb.mxu2 %v2655_v36 }
  0x59   :  { %1273 = vmatpush.bf16.msrb.mxu3 %v2659_v37 }
  0x5a   :  { %1115 = vmatpush.bf16.msrb.mxu0 %v2646_v46 }
  0x5b   :  { %1168 = vmatpush.bf16.msrb.mxu1 %v2650_v47 }
  0x5c   :  { %1221 = vmatpush.bf16.msrb.mxu2 %v2654_v44 }
  0x5d   :  { %1274 = vmatpush.bf16.msrb.mxu3 %v2658_v45 }
  0x5e   :  { %1116 = vmatpush.bf16.msrb.mxu0 %v2645_v50 }
  0x5f   :  { %1169 = vmatpush.bf16.msrb.mxu1 %v2649_v51 }
  0x60   :  { %1222 = vmatpush.bf16.msrb.mxu2 %v2653_v48 }
  0x61   :  { %1275 = vmatpush.bf16.msrb.mxu3 %v2657_v49  ;;  %2266 = vmatmul.msk.bf16.vlgmr.msrb.gmra.mxu0 %vm45_vm0, %v2241_v60 }
  0x62   :  { %1325 = vmatpush.bf16.msra.mxu0 %v2664_v54  ;;  %2293 = vmatmul.msk.bf16.vlgmr.msrb.gmra.mxu1 %vm45_vm0, %v2268_v61 }
  0x63   :  { %1378 = vmatpush.bf16.msra.mxu1 %v2668_v55  ;;  %2320 = vmatmul.msk.bf16.vlgmr.msrb.gmra.mxu2 %vm45_vm0, %v2295_v62 }
  0x64   :  { %1431 = vmatpush.bf16.msra.mxu2 %v2672_v52  ;;  %2347 = vmatmul.msk.bf16.vlgmr.msrb.gmra.mxu3 %vm45_vm0, %v2322_v63 }
  0x65   :  { %1484 = vmatpush.bf16.msra.mxu3 %v2676_v53 }
  0x66   :  { %1326 = vmatpush.bf16.msra.mxu0 %v2663_v58 }
  0x67   :  { %1379 = vmatpush.bf16.msra.mxu1 %v2667_v59 }
  0x68   :  { %1432 = vmatpush.bf16.msra.mxu2 %v2671_v56 }
  0x69   :  { %1485 = vmatpush.bf16.msra.mxu3 %v2675_v57 }
  0x6a   :  { %1327 = vmatpush.bf16.msra.mxu0 %v2662_v2 }
  0x6b   :  { %1380 = vmatpush.bf16.msra.mxu1 %v2666_v3 }
  0x6c   :  { %1433 = vmatpush.bf16.msra.mxu2 %v2670_v0 }
  0x6d   :  { %1486 = vmatpush.bf16.msra.mxu3 %v2674_v1 }
  0x6e   :  { %1328 = vmatpush.bf16.msra.mxu0 %v2661_v6 }
  0x6f   :  { %1381 = vmatpush.bf16.msra.mxu1 %v2665_v7 }
  0x70   :  { %1434 = vmatpush.bf16.msra.mxu2 %v2669_v4 }
  0x71   :  { %1487 = vmatpush.bf16.msra.mxu3 %v2673_v5  ;;  %2374 = vmatmul.msk.bf16.vlgmr.msra.gmra.mxu0 %vm45_vm0, %v2349_v16 }
  0x72   :  { %1537 = vmatpush.bf16.msrb.mxu0 %v2680_v10  ;;  %2401 = vmatmul.msk.bf16.vlgmr.msra.gmra.mxu1 %vm45_vm0, %v2376_v17 }
  0x73   :  { %1590 = vmatpush.bf16.msrb.mxu1 %v2684_v11  ;;  %2428 = vmatmul.msk.bf16.vlgmr.msra.gmra.mxu2 %vm45_vm0, %v2403_v18 }
  0x74   :  { %1643 = vmatpush.bf16.msrb.mxu2 %v2688_v8  ;;  %2455 = vmatmul.msk.bf16.vlgmr.msra.gmra.mxu3 %vm45_vm0, %v2430_v19 }
  0x75   :  { %1696 = vmatpush.bf16.msrb.mxu3 %v2692_v9 }
  0x76   :  { %1538 = vmatpush.bf16.msrb.mxu0 %v2679_v14 }
  0x77   :  { %1591 = vmatpush.bf16.msrb.mxu1 %v2683_v15 }
  0x78   :  { %1644 = vmatpush.bf16.msrb.mxu2 %v2687_v12 }
  0x79   :  { %1697 = vmatpush.bf16.msrb.mxu3 %v2691_v13 }
  0x7a   :  { %1539 = vmatpush.bf16.msrb.mxu0 %v2678_v22 }
  0x7b   :  { %1592 = vmatpush.bf16.msrb.mxu1 %v2682_v23 }
  0x7c   :  { %1645 = vmatpush.bf16.msrb.mxu2 %v2686_v20 }
  0x7d   :  { %1698 = vmatpush.bf16.msrb.mxu3 %v2690_v21 }
  0x7e   :  { %1540 = vmatpush.bf16.msrb.mxu0 %v2677_v26 }
  0x7f   :  { %1593 = vmatpush.bf16.msrb.mxu1 %v2681_v27 }
  0x80   :  { %1646 = vmatpush.bf16.msrb.mxu2 %v2685_v24 }
  0x81   :  { %1699 = vmatpush.bf16.msrb.mxu3 %v2689_v25  ;;  %2482 = vmatmul.msk.bf16.vlgmr.msrb.gmra.mxu0 %vm45_vm0, %v2457_v28 }
  0x82   :  { %2509 = vmatmul.msk.bf16.vlgmr.msrb.gmra.mxu1 %vm45_vm0, %v2484_v29 }
  0x83   :  { %2536 = vmatmul.msk.bf16.vlgmr.msrb.gmra.mxu2 %vm45_vm0, %v2511_v30 }
  0x84   :  { %2563 = vmatmul.msk.bf16.vlgmr.msrb.gmra.mxu3 %vm45_vm0, %v2538_v31 }
  0x8e   :  { %v58_v32 = vpop.f32.mrf.mxu0 }
  0x8f   :  { %v111_v33 = vpop.f32.mrf.mxu1  ;;  %63 = vst.msk [vmem:[%s3350_s2] sm:$0x3] %vm62_vm1, %v58_v32 }
  0x90   :  { %1754 = vst.msk [vmem:[%s3350_s2 + $0x2] sm:$0x3] %vm62_vm1, %v111_v33 }
  0x96   :  { %v164_v34 = vpop.f32.mrf.mxu2  ;;  %v60_v36 = vpop.f32.mrf.mxu0 }
  0x97   :  { %v217_v35 = vpop.f32.mrf.mxu3  ;;  %1781 = vst.msk [vmem:[%s3350_s2 + $0x4] sm:$0x3] %vm62_vm1, %v164_v34  ;;  %v113_v37 = vpop.f32.mrf.mxu1 }
  0x98   :  { %1808 = vst.msk [vmem:[%s3350_s2 + $0x6] sm:$0x3] %vm62_vm1, %v217_v35 }
  0x9e   :  { %v166_v38 = vpop.f32.mrf.mxu2  ;;  %v270_v40 = vpop.f32.mrf.mxu0 }
  0x9f   :  { %v219_v39 = vpop.f32.mrf.mxu3  ;;  %v323_v41 = vpop.f32.mrf.mxu1  ;;  %1835 = vst.msk [vmem:[%s3350_s2 + $0x8] sm:$0x3] %vm62_vm1, %v270_v40 }
  0xa0   :  { %1862 = vst.msk [vmem:[%s3350_s2 + $0xa] sm:$0x3] %vm62_vm1, %v323_v41 }
  0xa6   :  { %v376_v42 = vpop.f32.mrf.mxu2  ;;  %v272_v44 = vpop.f32.mrf.mxu0 }
  0xa7   :  { %v429_v43 = vpop.f32.mrf.mxu3  ;;  %1889 = vst.msk [vmem:[%s3350_s2 + $0xc] sm:$0x3] %vm62_vm1, %v376_v42  ;;  %v325_v45 = vpop.f32.mrf.mxu1 }
  0xa8   :  { %1916 = vst.msk [vmem:[%s3350_s2 + $0xe] sm:$0x3] %vm62_vm1, %v429_v43 }
  0xae   :  { %v378_v46 = vpop.f32.mrf.mxu2  ;;  %v482_v48 = vpop.f32.mrf.mxu0 }
  0xaf   :  { %v431_v47 = vpop.f32.mrf.mxu3  ;;  %v535_v49 = vpop.f32.mrf.mxu1  ;;  %1943 = vst.msk [vmem:[%s3350_s2 + $0x10] sm:$0x3] %vm62_vm1, %v482_v48 }
  0xb0   :  { %1970 = vst.msk [vmem:[%s3350_s2 + $0x12] sm:$0x3] %vm62_vm1, %v535_v49 }
  0xb6   :  { %v588_v50 = vpop.f32.mrf.mxu2  ;;  %v484_v52 = vpop.f32.mrf.mxu0 }
  0xb7   :  { %v641_v51 = vpop.f32.mrf.mxu3  ;;  %1997 = vst.msk [vmem:[%s3350_s2 + $0x14] sm:$0x3] %vm62_vm1, %v588_v50  ;;  %v537_v53 = vpop.f32.mrf.mxu1 }
  0xb8   :  { %2024 = vst.msk [vmem:[%s3350_s2 + $0x16] sm:$0x3] %vm62_vm1, %v641_v51 }
  0xbe   :  { %v590_v54 = vpop.f32.mrf.mxu2  ;;  %v694_v56 = vpop.f32.mrf.mxu0 }
  0xbf   :  { %v643_v55 = vpop.f32.mrf.mxu3  ;;  %v747_v57 = vpop.f32.mrf.mxu1  ;;  %2051 = vst.msk [vmem:[%s3350_s2 + $0x18] sm:$0x3] %vm62_vm1, %v694_v56 }
  0xc0   :  { %2078 = vst.msk [vmem:[%s3350_s2 + $0x1a] sm:$0x3] %vm62_vm1, %v747_v57 }
  0xc6   :  { %v800_v58 = vpop.f32.mrf.mxu2  ;;  %v696_v60 = vpop.f32.mrf.mxu0 }
  0xc7   :  { %v853_v59 = vpop.f32.mrf.mxu3  ;;  %2105 = vst.msk [vmem:[%s3350_s2 + $0x1c] sm:$0x3] %vm62_vm1, %v800_v58  ;;  %v749_v61 = vpop.f32.mrf.mxu1 }
  0xc8   :  { %2132 = vst.msk [vmem:[%s3350_s2 + $0x1e] sm:$0x3] %vm62_vm1, %v853_v59 }
  0xce   :  { %v802_v62 = vpop.f32.mrf.mxu2  ;;  %v906_v0 = vpop.f32.mrf.mxu0 }
  0xcf   :  { %v855_v63 = vpop.f32.mrf.mxu3  ;;  %v959_v1 = vpop.f32.mrf.mxu1  ;;  %2159 = vst.msk [vmem:[%s3350_s2 + $0x20] sm:$0x3] %vm62_vm1, %v906_v0 }
  0xd0   :  { %2186 = vst.msk [vmem:[%s3350_s2 + $0x22] sm:$0x3] %vm62_vm1, %v959_v1 }
  0xd6   :  { %v1012_v2 = vpop.f32.mrf.mxu2  ;;  %v908_v4 = vpop.f32.mrf.mxu0 }
  0xd7   :  { %v1065_v3 = vpop.f32.mrf.mxu3  ;;  %2213 = vst.msk [vmem:[%s3350_s2 + $0x24] sm:$0x3] %vm62_vm1, %v1012_v2  ;;  %v961_v5 = vpop.f32.mrf.mxu1 }
  0xd8   :  { %2240 = vst.msk [vmem:[%s3350_s2 + $0x26] sm:$0x3] %vm62_vm1, %v1065_v3 }
  0xde   :  { %v1014_v6 = vpop.f32.mrf.mxu2  ;;  %v1118_v8 = vpop.f32.mrf.mxu0 }
  0xdf   :  { %v1067_v7 = vpop.f32.mrf.mxu3  ;;  %v1171_v9 = vpop.f32.mrf.mxu1  ;;  %2267 = vst.msk [vmem:[%s3350_s2 + $0x28] sm:$0x3] %vm62_vm1, %v1118_v8 }
  0xe0   :  { %2294 = vst.msk [vmem:[%s3350_s2 + $0x2a] sm:$0x3] %vm62_vm1, %v1171_v9 }
  0xe6   :  { %v1224_v10 = vpop.f32.mrf.mxu2  ;;  %v1120_v12 = vpop.f32.mrf.mxu0 }
  0xe7   :  { %v1277_v11 = vpop.f32.mrf.mxu3  ;;  %2321 = vst.msk [vmem:[%s3350_s2 + $0x2c] sm:$0x3] %vm62_vm1, %v1224_v10  ;;  %v1173_v13 = vpop.f32.mrf.mxu1 }
  0xe8   :  { %2348 = vst.msk [vmem:[%s3350_s2 + $0x2e] sm:$0x3] %vm62_vm1, %v1277_v11 }
  0xee   :  { %v1226_v14 = vpop.f32.mrf.mxu2  ;;  %v1330_v16 = vpop.f32.mrf.mxu0 }
  0xef   :  { %v1279_v15 = vpop.f32.mrf.mxu3  ;;  %v1383_v17 = vpop.f32.mrf.mxu1  ;;  %2375 = vst.msk [vmem:[%s3350_s2 + $0x30] sm:$0x3] %vm62_vm1, %v1330_v16 }
  0xf0   :  { %2402 = vst.msk [vmem:[%s3350_s2 + $0x32] sm:$0x3] %vm62_vm1, %v1383_v17 }
  0xf6   :  { %v1436_v18 = vpop.f32.mrf.mxu2  ;;  %v1332_v20 = vpop.f32.mrf.mxu0 }
  0xf7   :  { %v1489_v19 = vpop.f32.mrf.mxu3  ;;  %2429 = vst.msk [vmem:[%s3350_s2 + $0x34] sm:$0x3] %vm62_vm1, %v1436_v18  ;;  %v1385_v21 = vpop.f32.mrf.mxu1 }
  0xf8   :  { %2456 = vst.msk [vmem:[%s3350_s2 + $0x36] sm:$0x3] %vm62_vm1, %v1489_v19 }
  0xfe   :  { %v1438_v22 = vpop.f32.mrf.mxu2  ;;  %v1542_v24 = vpop.f32.mrf.mxu0 }
  0xff   :  { %v1491_v23 = vpop.f32.mrf.mxu3  ;;  %v1595_v25 = vpop.f32.mrf.mxu1  ;;  %2483 = vst.msk [vmem:[%s3350_s2 + $0x38] sm:$0x3] %vm62_vm1, %v1542_v24 }
 0x100   :  { %2510 = vst.msk [vmem:[%s3350_s2 + $0x3a] sm:$0x3] %vm62_vm1, %v1595_v25 }
 0x106   :  { %v1648_v26 = vpop.f32.mrf.mxu2  ;;  %v1544_v28 = vpop.f32.mrf.mxu0 }
 0x107   :  { %v1701_v27 = vpop.f32.mrf.mxu3  ;;  %2537 = vst.msk [vmem:[%s3350_s2 + $0x3c] sm:$0x3] %vm62_vm1, %v1648_v26  ;;  %v1597_v29 = vpop.f32.mrf.mxu1 }
 0x108   :  { %2564 = vst.msk [vmem:[%s3350_s2 + $0x3e] sm:$0x3] %vm62_vm1, %v1701_v27 }
 0x10e   :  { %v1650_v30 = vpop.f32.mrf.mxu2 }
 0x10f   :  { %v1703_v31 = vpop.f32.mrf.mxu3 }

// kernel: _lambda_.10
= control target key start
LH: loop header
LB: loop body
LE: loop exit
PB: predicated region body
PF: predicated region fallthrough
CT: control target
= control target key end

     0   :  { %vm150_vm0 = vcmask 261120   ;;  %s857_s1 = inlined_call_operand.vmem [shape: bf16[32,32], index: 1, kind: input, shape index: {}]   ;;  %s858_s0 = inlined_call_operand.vmem [shape: bf16[256,32], index: 0, kind: input, shape index: {}]   ;;  %s859_s2 = inlined_call_operand.vmem [shape: f32[1,32], index: 2, kind: input, shape index: {}]   ;;  %s860_s3 = inlined_call_operand.vmem [shape: f32[256,32], index: 3, kind: input, shape index: {}]   ;;  %s861_s4 = inlined_call_operand.vmem [shape: f32[256,32], index: 4, kind: output, shape index: {}]  }
   0x1   :  { %v493_v0 = vld [vmem:[%s857_s1 + $0x8] sm:$0xff]  ;;  %v492_v1 = vld [vmem:[%s857_s1] sm:$0xff]  ;;  %v478_v10 = vld [vmem:[%s858_s0 + $0x10] sm:$0xff] }
   0x2   :  { %205 = vmatpush.bf16.msra.mxu0 %v493_v0  ;;  %494 = vmatpush.bf16.msra.mxu1 %v493_v0  ;;  %v476_v2 = vld [vmem:[%s858_s0] sm:$0xff]  ;;  %v477_v6 = vld [vmem:[%s858_s0 + $0x8] sm:$0xff]  ;;  %v482_v11 = vld [vmem:[%s858_s0 + $0x30] sm:$0xff] }
   0x3   :  { %495 = vmatpush.bf16.msra.mxu2 %v493_v0  ;;  %496 = vmatpush.bf16.msra.mxu3 %v493_v0  ;;  %v480_v3 = vld [vmem:[%s858_s0 + $0x20] sm:$0xff]  ;;  %v481_v7 = vld [vmem:[%s858_s0 + $0x28] sm:$0xff]  ;;  %v486_v12 = vld [vmem:[%s858_s0 + $0x50] sm:$0xff] }
   0x4   :  { %v484_v4 = vld [vmem:[%s858_s0 + $0x40] sm:$0xff]  ;;  %v485_v8 = vld [vmem:[%s858_s0 + $0x48] sm:$0xff]  ;;  %v490_v13 = vld [vmem:[%s858_s0 + $0x70] sm:$0xff] }
   0x5   :  { %v488_v5 = vld [vmem:[%s858_s0 + $0x60] sm:$0xff]  ;;  %v489_v9 = vld [vmem:[%s858_s0 + $0x68] sm:$0xff]  ;;  %v479_v14 = vld [vmem:[%s858_s0 + $0x18] sm:$0xff] }
   0x6   :  { %206 = vmatpush.bf16.msra.mxu0 %v492_v1  ;;  %497 = vmatpush.bf16.msra.mxu1 %v492_v1  ;;  %v483_v15 = vld [vmem:[%s858_s0 + $0x38] sm:$0xff]  ;;  %v599_v18 = vld [vmem:[%s859_s2] ss:$0 sm:$0xff]  ;;  %v289_v34 = vld [vmem:[%s860_s3 + $0x8] sm:$0xff] }
   0x7   :  { %498 = vmatpush.bf16.msra.mxu2 %v492_v1  ;;  %499 = vmatpush.bf16.msra.mxu3 %v492_v1  ;;  %v487_v16 = vld [vmem:[%s858_s0 + $0x58] sm:$0xff]  ;;  %v288_v20 = vld [vmem:[%s860_s3] sm:$0xff]  ;;  %v297_v36 = vld [vmem:[%s860_s3 + $0x48] sm:$0xff] }
   0x8   :  { %v491_v17 = vld [vmem:[%s858_s0 + $0x78] sm:$0xff]  ;;  %v296_v22 = vld [vmem:[%s860_s3 + $0x40] sm:$0xff]  ;;  %v305_v44 = vld [vmem:[%s860_s3 + $0x88] sm:$0xff] }
   0x9   :  { %460 = vmatmul.msk.bf16.vlgmr.msra.gmra.mxu0 %vm150_vm0, %v476_v2  ;;  %464 = vmatmul.msk.bf16.vlgmr.msra.gmra.mxu1 %vm150_vm0, %v480_v3  ;;  %v304_v28 = vld [vmem:[%s860_s3 + $0x80] sm:$0xff]  ;;  %v313_v46 = vld [vmem:[%s860_s3 + $0xc8] sm:$0xff]  ;;  %v290_v50 = vld [vmem:[%s860_s3 + $0x10] sm:$0xff] }
   0xa   :  { %468 = vmatmul.msk.bf16.vlgmr.msra.gmra.mxu2 %vm150_vm0, %v484_v4  ;;  %472 = vmatmul.msk.bf16.vlgmr.msra.gmra.mxu3 %vm150_vm0, %v488_v5  ;;  %v312_v30 = vld [vmem:[%s860_s3 + $0xc0] sm:$0xff]  ;;  %v298_v52 = vld [vmem:[%s860_s3 + $0x50] sm:$0xff]  ;;  %v291_v2 = vld [vmem:[%s860_s3 + $0x18] sm:$0xff] }
   0xb   :  { %v306_v60 = vld [vmem:[%s860_s3 + $0x90] sm:$0xff]  ;;  %v299_v4 = vld [vmem:[%s860_s3 + $0x58] sm:$0xff] }
   0xc   :  { %v314_v62 = vld [vmem:[%s860_s3 + $0xd0] sm:$0xff] }
  0x19   :  { %461 = vmatmul.msk.bf16.gmra.mxu0 %vm150_vm0, %v477_v6  ;;  %465 = vmatmul.msk.bf16.gmra.mxu1 %vm150_vm0, %v481_v7 }
  0x1a   :  { %469 = vmatmul.msk.bf16.gmra.mxu2 %vm150_vm0, %v485_v8  ;;  %473 = vmatmul.msk.bf16.gmra.mxu3 %vm150_vm0, %v489_v9 }
  0x29   :  { %462 = vmatmul.msk.bf16.gmra.mxu0 %vm150_vm0, %v478_v10  ;;  %466 = vmatmul.msk.bf16.gmra.mxu1 %vm150_vm0, %v482_v11 }
  0x2a   :  { %470 = vmatmul.msk.bf16.gmra.mxu2 %vm150_vm0, %v486_v12  ;;  %474 = vmatmul.msk.bf16.gmra.mxu3 %vm150_vm0, %v490_v13  ;;  %v307_v12 = vld [vmem:[%s860_s3 + $0x98] sm:$0xff] }
  0x39   :  { %463 = vmatmul.msk.bf16.gmra.mxu0 %vm150_vm0, %v479_v14  ;;  %467 = vmatmul.msk.bf16.gmra.mxu1 %vm150_vm0, %v483_v15  ;;  %v315_v14 = vld [vmem:[%s860_s3 + $0xd8] sm:$0xff] }
  0x3a   :  { %471 = vmatmul.msk.bf16.gmra.mxu2 %vm150_vm0, %v487_v16  ;;  %475 = vmatmul.msk.bf16.gmra.mxu3 %vm150_vm0, %v491_v17 }
  0x86   :  { %v208_v19 = vpop.f32.mrf.mxu0  ;;  %v228_v21 = vpop.f32.mrf.mxu1 }
  0x87   :  { %v209_v23 = vadd.f32 %v599_v18, %v208_v19  ;;  %v229_v24 = vadd.f32 %v599_v18, %v228_v21  ;;  %v292_v19 = vld [vmem:[%s860_s3 + $0x20] sm:$0xff] }
  0x88   :  { %v300_v21 = vld [vmem:[%s860_s3 + $0x60] sm:$0xff] }
  0x89   :  { %v320_v25 = vadd.f32 %v288_v20, %v209_v23  ;;  %v328_v26 = vadd.f32 %v296_v22, %v229_v24 }
  0x8b   :  { %352 = vst.msk [vmem:[%s861_s4] sm:$0xff] %vm150_vm0, %v320_v25 }
  0x8c   :  { %360 = vst.msk [vmem:[%s861_s4 + $0x40] sm:$0xff] %vm150_vm0, %v328_v26 }
  0x8d   :  { %v248_v27 = vpop.f32.mrf.mxu2  ;;  %v268_v29 = vpop.f32.mrf.mxu3 }
  0x8e   :  { %v249_v31 = vadd.f32 %v599_v18, %v248_v27  ;;  %v269_v32 = vadd.f32 %v599_v18, %v268_v29  ;;  %v210_v33 = vpop.f32.mrf.mxu0  ;;  %v230_v35 = vpop.f32.mrf.mxu1  ;;  %v308_v29 = vld [vmem:[%s860_s3 + $0xa0] sm:$0xff] }
  0x8f   :  { %v211_v37 = vadd.f32 %v599_v18, %v210_v33  ;;  %v231_v38 = vadd.f32 %v599_v18, %v230_v35  ;;  %v293_v35 = vld [vmem:[%s860_s3 + $0x28] sm:$0xff] }
  0x90   :  { %v336_v39 = vadd.f32 %v304_v28, %v249_v31  ;;  %v344_v40 = vadd.f32 %v312_v30, %v269_v32  ;;  %v316_v31 = vld [vmem:[%s860_s3 + $0xe0] sm:$0xff] }
  0x91   :  { %v321_v41 = vadd.f32 %v289_v34, %v211_v37  ;;  %v329_v42 = vadd.f32 %v297_v36, %v231_v38  ;;  %v301_v37 = vld [vmem:[%s860_s3 + $0x68] sm:$0xff] }
  0x92   :  { %368 = vst.msk [vmem:[%s861_s4 + $0x80] sm:$0xff] %vm150_vm0, %v336_v39 }
  0x93   :  { %376 = vst.msk [vmem:[%s861_s4 + $0xc0] sm:$0xff] %vm150_vm0, %v344_v40 }
  0x94   :  { %353 = vst.msk [vmem:[%s861_s4 + $0x8] sm:$0xff] %vm150_vm0, %v321_v41 }
  0x95   :  { %361 = vst.msk [vmem:[%s861_s4 + $0x48] sm:$0xff] %vm150_vm0, %v329_v42  ;;  %v250_v43 = vpop.f32.mrf.mxu2  ;;  %v270_v45 = vpop.f32.mrf.mxu3 }
  0x96   :  { %v251_v47 = vadd.f32 %v599_v18, %v250_v43  ;;  %v271_v48 = vadd.f32 %v599_v18, %v270_v45  ;;  %v213_v49 = vpop.f32.mrf.mxu0  ;;  %v233_v51 = vpop.f32.mrf.mxu1  ;;  %v309_v45 = vld [vmem:[%s860_s3 + $0xa8] sm:$0xff] }
  0x97   :  { %v214_v53 = vadd.f32 %v599_v18, %v213_v49  ;;  %v234_v54 = vadd.f32 %v599_v18, %v233_v51  ;;  %v294_v51 = vld [vmem:[%s860_s3 + $0x30] sm:$0xff] }
  0x98   :  { %v337_v55 = vadd.f32 %v305_v44, %v251_v47  ;;  %v345_v56 = vadd.f32 %v313_v46, %v271_v48  ;;  %v317_v47 = vld [vmem:[%s860_s3 + $0xe8] sm:$0xff] }
  0x99   :  { %v322_v57 = vadd.f32 %v290_v50, %v214_v53  ;;  %v330_v58 = vadd.f32 %v298_v52, %v234_v54  ;;  %v302_v53 = vld [vmem:[%s860_s3 + $0x70] sm:$0xff] }
  0x9a   :  { %369 = vst.msk [vmem:[%s861_s4 + $0x88] sm:$0xff] %vm150_vm0, %v337_v55 }
  0x9b   :  { %377 = vst.msk [vmem:[%s861_s4 + $0xc8] sm:$0xff] %vm150_vm0, %v345_v56 }
  0x9c   :  { %354 = vst.msk [vmem:[%s861_s4 + $0x10] sm:$0xff] %vm150_vm0, %v322_v57 }
  0x9d   :  { %362 = vst.msk [vmem:[%s861_s4 + $0x50] sm:$0xff] %vm150_vm0, %v330_v58  ;;  %v253_v59 = vpop.f32.mrf.mxu2  ;;  %v273_v61 = vpop.f32.mrf.mxu3 }
  0x9e   :  { %v254_v63 = vadd.f32 %v599_v18, %v253_v59  ;;  %v274_v0 = vadd.f32 %v599_v18, %v273_v61  ;;  %v215_v1 = vpop.f32.mrf.mxu0  ;;  %v235_v3 = vpop.f32.mrf.mxu1  ;;  %v310_v61 = vld [vmem:[%s860_s3 + $0xb0] sm:$0xff] }
  0x9f   :  { %v216_v5 = vadd.f32 %v599_v18, %v215_v1  ;;  %v236_v6 = vadd.f32 %v599_v18, %v235_v3  ;;  %v295_v3 = vld [vmem:[%s860_s3 + $0x38] sm:$0xff] }
  0xa0   :  { %v338_v7 = vadd.f32 %v306_v60, %v254_v63  ;;  %v346_v8 = vadd.f32 %v314_v62, %v274_v0  ;;  %v318_v63 = vld [vmem:[%s860_s3 + $0xf0] sm:$0xff] }
  0xa1   :  { %v323_v9 = vadd.f32 %v291_v2, %v216_v5  ;;  %v331_v10 = vadd.f32 %v299_v4, %v236_v6  ;;  %v303_v5 = vld [vmem:[%s860_s3 + $0x78] sm:$0xff] }
  0xa2   :  { %370 = vst.msk [vmem:[%s861_s4 + $0x90] sm:$0xff] %vm150_vm0, %v338_v7 }
  0xa3   :  { %378 = vst.msk [vmem:[%s861_s4 + $0xd0] sm:$0xff] %vm150_vm0, %v346_v8 }
  0xa4   :  { %355 = vst.msk [vmem:[%s861_s4 + $0x18] sm:$0xff] %vm150_vm0, %v323_v9 }
  0xa5   :  { %363 = vst.msk [vmem:[%s861_s4 + $0x58] sm:$0xff] %vm150_vm0, %v331_v10  ;;  %v255_v11 = vpop.f32.mrf.mxu2  ;;  %v275_v13 = vpop.f32.mrf.mxu3 }
  0xa6   :  { %v256_v15 = vadd.f32 %v599_v18, %v255_v11  ;;  %v276_v16 = vadd.f32 %v599_v18, %v275_v13  ;;  %v218_v17 = vpop.f32.mrf.mxu0  ;;  %v238_v20 = vpop.f32.mrf.mxu1  ;;  %v311_v13 = vld [vmem:[%s860_s3 + $0xb8] sm:$0xff] }
  0xa7   :  { %v219_v22 = vadd.f32 %v599_v18, %v218_v17  ;;  %v239_v23 = vadd.f32 %v599_v18, %v238_v20 }
  0xa8   :  { %v339_v24 = vadd.f32 %v307_v12, %v256_v15  ;;  %v347_v25 = vadd.f32 %v315_v14, %v276_v16  ;;  %v319_v15 = vld [vmem:[%s860_s3 + $0xf8] sm:$0xff] }
  0xa9   :  { %v324_v26 = vadd.f32 %v292_v19, %v219_v22  ;;  %v332_v27 = vadd.f32 %v300_v21, %v239_v23 }
  0xaa   :  { %371 = vst.msk [vmem:[%s861_s4 + $0x98] sm:$0xff] %vm150_vm0, %v339_v24 }
  0xab   :  { %379 = vst.msk [vmem:[%s861_s4 + $0xd8] sm:$0xff] %vm150_vm0, %v347_v25 }
  0xac   :  { %356 = vst.msk [vmem:[%s861_s4 + $0x20] sm:$0xff] %vm150_vm0, %v324_v26 }
  0xad   :  { %364 = vst.msk [vmem:[%s861_s4 + $0x60] sm:$0xff] %vm150_vm0, %v332_v27  ;;  %v258_v28 = vpop.f32.mrf.mxu2  ;;  %v278_v30 = vpop.f32.mrf.mxu3 }
  0xae   :  { %v259_v32 = vadd.f32 %v599_v18, %v258_v28  ;;  %v279_v33 = vadd.f32 %v599_v18, %v278_v30  ;;  %v220_v34 = vpop.f32.mrf.mxu0  ;;  %v240_v36 = vpop.f32.mrf.mxu1 }
  0xaf   :  { %v221_v38 = vadd.f32 %v599_v18, %v220_v34  ;;  %v241_v39 = vadd.f32 %v599_v18, %v240_v36 }
  0xb0   :  { %v340_v40 = vadd.f32 %v308_v29, %v259_v32  ;;  %v348_v41 = vadd.f32 %v316_v31, %v279_v33 }
  0xb1   :  { %v325_v42 = vadd.f32 %v293_v35, %v221_v38  ;;  %v333_v43 = vadd.f32 %v301_v37, %v241_v39 }
  0xb2   :  { %372 = vst.msk [vmem:[%s861_s4 + $0xa0] sm:$0xff] %vm150_vm0, %v340_v40 }
  0xb3   :  { %380 = vst.msk [vmem:[%s861_s4 + $0xe0] sm:$0xff] %vm150_vm0, %v348_v41 }
  0xb4   :  { %357 = vst.msk [vmem:[%s861_s4 + $0x28] sm:$0xff] %vm150_vm0, %v325_v42 }
  0xb5   :  { %365 = vst.msk [vmem:[%s861_s4 + $0x68] sm:$0xff] %vm150_vm0, %v333_v43  ;;  %v260_v44 = vpop.f32.mrf.mxu2  ;;  %v280_v46 = vpop.f32.mrf.mxu3 }
  0xb6   :  { %v261_v48 = vadd.f32 %v599_v18, %v260_v44  ;;  %v281_v49 = vadd.f32 %v599_v18, %v280_v46  ;;  %v223_v50 = vpop.f32.mrf.mxu0  ;;  %v243_v52 = vpop.f32.mrf.mxu1 }
  0xb7   :  { %v224_v54 = vadd.f32 %v599_v18, %v223_v50  ;;  %v244_v55 = vadd.f32 %v599_v18, %v243_v52 }
  0xb8   :  { %v341_v56 = vadd.f32 %v309_v45, %v261_v48  ;;  %v349_v57 = vadd.f32 %v317_v47, %v281_v49 }
  0xb9   :  { %v326_v58 = vadd.f32 %v294_v51, %v224_v54  ;;  %v334_v59 = vadd.f32 %v302_v53, %v244_v55 }
  0xba   :  { %373 = vst.msk [vmem:[%s861_s4 + $0xa8] sm:$0xff] %vm150_vm0, %v341_v56 }
  0xbb   :  { %381 = vst.msk [vmem:[%s861_s4 + $0xe8] sm:$0xff] %vm150_vm0, %v349_v57 }
  0xbc   :  { %358 = vst.msk [vmem:[%s861_s4 + $0x30] sm:$0xff] %vm150_vm0, %v326_v58 }
  0xbd   :  { %366 = vst.msk [vmem:[%s861_s4 + $0x70] sm:$0xff] %vm150_vm0, %v334_v59  ;;  %v263_v60 = vpop.f32.mrf.mxu2  ;;  %v283_v62 = vpop.f32.mrf.mxu3 }
  0xbe   :  { %v264_v0 = vadd.f32 %v599_v18, %v263_v60  ;;  %v284_v1 = vadd.f32 %v599_v18, %v283_v62  ;;  %v225_v2 = vpop.f32.mrf.mxu0  ;;  %v245_v4 = vpop.f32.mrf.mxu1 }
  0xbf   :  { %v226_v6 = vadd.f32 %v599_v18, %v225_v2  ;;  %v246_v7 = vadd.f32 %v599_v18, %v245_v4 }
  0xc0   :  { %v342_v8 = vadd.f32 %v310_v61, %v264_v0  ;;  %v350_v9 = vadd.f32 %v318_v63, %v284_v1 }
  0xc1   :  { %v327_v10 = vadd.f32 %v295_v3, %v226_v6  ;;  %v335_v11 = vadd.f32 %v303_v5, %v246_v7 }
  0xc2   :  { %374 = vst.msk [vmem:[%s861_s4 + $0xb0] sm:$0xff] %vm150_vm0, %v342_v8 }
  0xc3   :  { %382 = vst.msk [vmem:[%s861_s4 + $0xf0] sm:$0xff] %vm150_vm0, %v350_v9 }
  0xc4   :  { %359 = vst.msk [vmem:[%s861_s4 + $0x38] sm:$0xff] %vm150_vm0, %v327_v10 }
  0xc5   :  { %367 = vst.msk [vmem:[%s861_s4 + $0x78] sm:$0xff] %vm150_vm0, %v335_v11  ;;  %v265_v12 = vpop.f32.mrf.mxu2  ;;  %v285_v14 = vpop.f32.mrf.mxu3 }
  0xc6   :  { %v266_v16 = vadd.f32 %v599_v18, %v265_v12  ;;  %v286_v17 = vadd.f32 %v599_v18, %v285_v14 }
  0xc8   :  { %v343_v19 = vadd.f32 %v311_v13, %v266_v16  ;;  %v351_v20 = vadd.f32 %v319_v15, %v286_v17 }
  0xca   :  { %375 = vst.msk [vmem:[%s861_s4 + $0xb8] sm:$0xff] %vm150_vm0, %v343_v19 }
  0xcb   :  { %383 = vst.msk [vmem:[%s861_s4 + $0xf8] sm:$0xff] %vm150_vm0, %v351_v20 }

// kernel: _lambda_.8
= control target key start
LH: loop header
LB: loop body
LE: loop exit
PB: predicated region body
PF: predicated region fallthrough
CT: control target
= control target key end

     0   :  { %vm150_vm0 = vcmask 261120   ;;  %s3266_s1 = inlined_call_operand.vmem [shape: bf16[32,32], index: 1, kind: input, shape index: {}]   ;;  %s3267_s0 = inlined_call_operand.vmem [shape: bf16[256,32], index: 0, kind: input, shape index: {}]   ;;  %s3268_s2 = inlined_call_operand.vmem [shape: f32[1,32], index: 2, kind: input, shape index: {}]   ;;  %s3269_s3 = inlined_call_operand.vmem [shape: f32[256,32], index: 3, kind: input, shape index: {}]   ;;  %s3270_s4 = inlined_call_operand.vmem [shape: f32[256,32], index: 4, kind: output, shape index: {}]  }
   0x1   :  { %v1773_v0 = vld [vmem:[%s3266_s1 + $0x8] sm:$0xff]  ;;  %v1772_v1 = vld [vmem:[%s3266_s1] sm:$0xff]  ;;  %v1758_v10 = vld [vmem:[%s3267_s0 + $0x10] sm:$0xff] }
   0x2   :  { %205 = vmatpush.bf16.msra.mxu0 %v1773_v0  ;;  %1774 = vmatpush.bf16.msra.mxu1 %v1773_v0  ;;  %v1756_v2 = vld [vmem:[%s3267_s0] sm:$0xff]  ;;  %v1757_v6 = vld [vmem:[%s3267_s0 + $0x8] sm:$0xff]  ;;  %v1762_v11 = vld [vmem:[%s3267_s0 + $0x30] sm:$0xff] }
   0x3   :  { %1775 = vmatpush.bf16.msra.mxu2 %v1773_v0  ;;  %1776 = vmatpush.bf16.msra.mxu3 %v1773_v0  ;;  %v1760_v3 = vld [vmem:[%s3267_s0 + $0x20] sm:$0xff]  ;;  %v1761_v7 = vld [vmem:[%s3267_s0 + $0x28] sm:$0xff]  ;;  %v1766_v12 = vld [vmem:[%s3267_s0 + $0x50] sm:$0xff] }
   0x4   :  { %v1764_v4 = vld [vmem:[%s3267_s0 + $0x40] sm:$0xff]  ;;  %v1765_v8 = vld [vmem:[%s3267_s0 + $0x48] sm:$0xff]  ;;  %v1770_v13 = vld [vmem:[%s3267_s0 + $0x70] sm:$0xff] }
   0x5   :  { %v1768_v5 = vld [vmem:[%s3267_s0 + $0x60] sm:$0xff]  ;;  %v1769_v9 = vld [vmem:[%s3267_s0 + $0x68] sm:$0xff]  ;;  %v1759_v14 = vld [vmem:[%s3267_s0 + $0x18] sm:$0xff] }
   0x6   :  { %206 = vmatpush.bf16.msra.mxu0 %v1772_v1  ;;  %1777 = vmatpush.bf16.msra.mxu1 %v1772_v1  ;;  %v1763_v15 = vld [vmem:[%s3267_s0 + $0x38] sm:$0xff]  ;;  %v2009_v18 = vld [vmem:[%s3268_s2] ss:$0 sm:$0xff] }
   0x7   :  { %1778 = vmatpush.bf16.msra.mxu2 %v1772_v1  ;;  %1779 = vmatpush.bf16.msra.mxu3 %v1772_v1  ;;  %v1767_v16 = vld [vmem:[%s3267_s0 + $0x58] sm:$0xff]  ;;  %v288_v20 = vld [vmem:[%s3269_s3] sm:$0xff] }
   0x8   :  { %v1771_v17 = vld [vmem:[%s3267_s0 + $0x78] sm:$0xff]  ;;  %v296_v22 = vld [vmem:[%s3269_s3 + $0x40] sm:$0xff] }
   0x9   :  { %1740 = vmatmul.msk.bf16.vlgmr.msra.gmra.mxu0 %vm150_vm0, %v1756_v2  ;;  %1744 = vmatmul.msk.bf16.vlgmr.msra.gmra.mxu1 %vm150_vm0, %v1760_v3  ;;  %v304_v32 = vld [vmem:[%s3269_s3 + $0x80] sm:$0xff] }
   0xa   :  { %1748 = vmatmul.msk.bf16.vlgmr.msra.gmra.mxu2 %vm150_vm0, %v1764_v4  ;;  %1752 = vmatmul.msk.bf16.vlgmr.msra.gmra.mxu3 %vm150_vm0, %v1768_v5  ;;  %v312_v34 = vld [vmem:[%s3269_s3 + $0xc0] sm:$0xff]  ;;  %v289_v5 = vld [vmem:[%s3269_s3 + $0x8] sm:$0xff] }
  0x19   :  { %1741 = vmatmul.msk.bf16.gmra.mxu0 %vm150_vm0, %v1757_v6  ;;  %1745 = vmatmul.msk.bf16.gmra.mxu1 %vm150_vm0, %v1761_v7 }
  0x1a   :  { %1749 = vmatmul.msk.bf16.gmra.mxu2 %vm150_vm0, %v1765_v8  ;;  %1753 = vmatmul.msk.bf16.gmra.mxu3 %vm150_vm0, %v1769_v9  ;;  %v297_v9 = vld [vmem:[%s3269_s3 + $0x48] sm:$0xff] }
  0x29   :  { %1742 = vmatmul.msk.bf16.gmra.mxu0 %vm150_vm0, %v1758_v10  ;;  %1746 = vmatmul.msk.bf16.gmra.mxu1 %vm150_vm0, %v1762_v11 }
  0x2a   :  { %1750 = vmatmul.msk.bf16.gmra.mxu2 %vm150_vm0, %v1766_v12  ;;  %1754 = vmatmul.msk.bf16.gmra.mxu3 %vm150_vm0, %v1770_v13 }
  0x39   :  { %1743 = vmatmul.msk.bf16.gmra.mxu0 %vm150_vm0, %v1759_v14  ;;  %1747 = vmatmul.msk.bf16.gmra.mxu1 %vm150_vm0, %v1763_v15 }
  0x3a   :  { %1751 = vmatmul.msk.bf16.gmra.mxu2 %vm150_vm0, %v1767_v16  ;;  %1755 = vmatmul.msk.bf16.gmra.mxu3 %vm150_vm0, %v1771_v17 }
  0x86   :  { %v208_v19 = vpop.f32.mrf.mxu0  ;;  %v228_v21 = vpop.f32.mrf.mxu1 }
  0x87   :  { %v209_v23 = vadd.f32 %v2009_v18, %v208_v19  ;;  %v229_v24 = vadd.f32 %v2009_v18, %v228_v21 }
  0x89   :  { %v320_v25 = vadd.f32 %v288_v20, %v209_v23  ;;  %v328_v26 = vadd.f32 %v296_v22, %v229_v24 }
  0x8b   :  { %v2019_v27 = vmul.f32 0.70710677, %v320_v25  ;;  %v2021_v28 = vmul.f32 0.70710677, %v328_v26  ;;  %v2046_v50 = vmul.f32 0.5, %v320_v25  ;;  %v2049_v55 = vmul.f32 0.5, %v328_v26 }
  0x8d   :  { %v416_v29 = vand.u32 2147483647, %v2019_v27  ;;  %v424_v30 = vand.u32 2147483647, %v2021_v28  ;;  %v248_v31 = vpop.f32.mrf.mxu2  ;;  %v268_v33 = vpop.f32.mrf.mxu3 }
  0x8e   :  { %v249_v35 = vadd.f32 %v2009_v18, %v248_v31  ;;  %v269_v36 = vadd.f32 %v2009_v18, %v268_v33  ;;  %v210_v48 = vpop.f32.mrf.mxu0  ;;  %v230_v49 = vpop.f32.mrf.mxu1 }
  0x8f   :  { %v448_v37 = vmul.f32 0.3275911, %v416_v29  ;;  %v1280_v38 = vsub.f32 0.0, %v416_v29  ;;  %v456_v39 = vmul.f32 0.3275911, %v424_v30  ;;  %v1288_v47 = vsub.f32 0.0, %v424_v30 }
  0x90   :  { %v2033_v40 = vadd.f32 %v304_v32, %v249_v35  ;;  %v2035_v41 = vadd.f32 %v312_v34, %v269_v36  ;;  %v211_v59 = vadd.f32 %v2009_v18, %v210_v48  ;;  %v231_v60 = vadd.f32 %v2009_v18, %v230_v49 }
  0x91   :  { %v480_v42 = vadd.f32 1.0, %v448_v37  ;;  %v2037_v43 = vadd.f32 1.0, %v456_v39  ;;  %v1312_v45 = vmul.f32 %v1280_v38, %v416_v29  ;;  %v1320_v57 = vmul.f32 %v1288_v47, %v424_v30 }
  0x92   :  { %v2040_v44 = vmul.f32 0.70710677, %v2033_v40  ;;  %v2043_v46 = vmul.f32 0.70710677, %v2035_v41  ;;  %v2074_v15 = vadd.f32 %v289_v5, %v211_v59  ;;  %v2076_v20 = vadd.f32 %v297_v9, %v231_v60 }
  0x93   :  { %1781 = vrcp.f32 %v480_v42  ;;  %v521_v51 = vand.u32 2147483647, %v480_v42  ;;  %v523_v53 = vand.u32 2147483648, %v480_v42  ;;  %v1344_v54 = vmul.f32 1.442695, %v1312_v45 }
  0x94   :  { %1783 = vrcp.f32 %v2037_v43  ;;  %v432_v52 = vand.u32 2147483647, %v2040_v44  ;;  %v440_v56 = vand.u32 2147483647, %v2043_v46  ;;  %vm517_vm1 = vweird.f32 %v480_v42 }
  0x95   :  { %vm637_vm2 = vweird.f32 %v2037_v43  ;;  %v641_v62 = vand.u32 2147483647, %v2037_v43  ;;  %vm2056_vm3 = vcmp.eq.f32.partialorder %v521_v51, 8.507059e+37  ;;  %v524_v6 = vor.u32 1.1754944e-38, %v523_v53  ;;  %v250_v16 = vpop.f32.mrf.mxu2 }
  0x96   :  { %v464_v58 = vmul.f32 0.3275911, %v432_v52  ;;  %v472_v63 = vmul.f32 0.3275911, %v440_v56  ;;  %v1296_v4 = vsub.f32 0.0, %v432_v52  ;;  %1785 = vpow2.f32 %v1344_v54 }
  0x97   :  { %v643_v11 = vand.u32 2147483648, %v2037_v43  ;;  %v1360_v12 = vmul.f32 1.442695, %v1320_v57  ;;  %v1304_v14 = vsub.f32 0.0, %v440_v56  ;;  %vm2078_vm6 = vcmp.eq.f32.partialorder %v641_v62, 8.507059e+37 }
  0x98   :  { %v2060_v3 = vadd.f32 1.0, %v464_v58  ;;  %v2066_v8 = vadd.f32 1.0, %v472_v63  ;;  %v1328_v19 = vmul.f32 %v1296_v4, %v432_v52  ;;  %v2084_v26 = vadd.f32 %v2009_v18, %v250_v16 }
  0x99   :  { %v1782_v61 = vpop.eup %1781  ;;  %v644_v25 = vor.u32 1.1754944e-38, %v643_v11  ;;  %v1336_v32 = vmul.f32 %v1304_v14, %v440_v56  ;;  %v2091_v33 = vmul.f32 0.70710677, %v2074_v15  ;;  %v2098_v37 = vmul.f32 0.70710677, %v2076_v20 }
  0x9a   :  { %v1784_v0 = vpop.eup %1783  ;;  %v513_v1 = vmul.f32 %v1782_v61, %v480_v42  ;;  %1787 = vrcp.f32 %v2060_v3  ;;  %vm518_vm4 = vweird.f32 %v1782_v61  ;;  %v761_v23 = vand.u32 2147483647, %v2060_v3 }
  0x9b   :  { %v633_v7 = vmul.f32 %v1784_v0, %v2037_v43  ;;  %1789 = vrcp.f32 %v2066_v8  ;;  %vm638_vm5 = vweird.f32 %v1784_v0  ;;  %vm519_vm7 = vmor %vm517_vm1, %vm518_vm4  ;;  %v763_v31 = vand.u32 2147483648, %v2060_v3 }
  0x9c   :  { %v514_v10 = vsub.f32 1.0, %v513_v1  ;;  %1791 = vpow2.f32 %v1360_v12  ;;  %v2086_v29 = vpop.eup %1785  ;;  %vm639_vm8 = vmor %vm637_vm2, %vm638_vm5  ;;  %vm757_vm9 = vweird.f32 %v2060_v3  ;;  %v1376_v36 = vmul.f32 1.442695, %v1328_v19 }
  0x9d   :  { %v634_v13 = vsub.f32 1.0, %v633_v7  ;;  %vm2105_vm10 = vcmp.eq.f32.partialorder %v761_v23, 8.507059e+37  ;;  %vm877_vm11 = vweird.f32 %v2066_v8  ;;  %v881_v51 = vand.u32 2147483647, %v2066_v8 }
  0x9e   :  { %v515_v17 = vmul.f32 %v1782_v61, %v514_v10  ;;  %v764_v54 = vor.u32 1.1754944e-38, %v763_v31  ;;  %v417_v56 = vand.u32 2147483647, %v2091_v33  ;;  %v883_v60 = vand.u32 2147483648, %v2066_v8 }
  0x9f   :  { %v635_v21 = vmul.f32 %v1784_v0, %v634_v13  ;;  %1793 = vpow2.f32 %v1376_v36  ;;  %v1392_v11 = vmul.f32 1.442695, %v1336_v32  ;;  %vm882_vm1 = vcmp.eq.f32.partialorder %v881_v51, 8.507059e+37 }
  0xa0   :  { %v516_v24 = vadd.f32 %v1782_v61, %v515_v17  ;;  %v1788_v34 = vpop.eup %1787  ;;  %v884_v16 = vor.u32 1.1754944e-38, %v883_v60  ;;  %vm1472_vm4 = vcmp.ge.f32.partialorder %v2019_v27, 0.0  ;;  %vm1480_vm5 = vcmp.ge.f32.partialorder %v2021_v28, 0.0 }
  0xa1   :  { %v636_v30 = vadd.f32 %v1784_v0, %v635_v21  ;;  %v1790_v38 = vpop.eup %1789  ;;  %v753_v45 = vmul.f32 %v1788_v34, %v2060_v3  ;;  %vm758_vm12 = vweird.f32 %v1788_v34 }
  0xa2   :  { %v520_v35 = vsel %vm519_vm7, %v1782_v61, %v516_v24  ;;  %v873_v49 = vmul.f32 %v1790_v38, %v2066_v8  ;;  %v2119_v57 = vpop.eup %1791  ;;  %v2123_v61 = vand.u32 2147483647, %v2098_v37  ;;  %vm878_vm13 = vweird.f32 %v1790_v38  ;;  %vm759_vm14 = vmor %vm757_vm9, %vm758_vm12  ;;  %v305_v8 = vld [vmem:[%s3269_s3 + $0x88] sm:$0xff] }
  0xa3   :  { %v2102_v39 = vsel %vm2056_vm3, %v524_v6, %v520_v35  ;;  %v640_v42 = vsel %vm639_vm8, %v1784_v0, %v636_v30  ;;  %v754_v53 = vsub.f32 1.0, %v753_v45  ;;  %v449_v0 = vmul.f32 0.3275911, %v417_v56  ;;  %vm879_vm15 = vmor %vm877_vm11, %vm878_vm13 }
  0xa4   :  { %v992_v43 = vmul.f32 1.0614054, %v2102_v39  ;;  %v2113_v48 = vsel %vm2078_vm6, %v644_v25, %v640_v42  ;;  %v874_v59 = vsub.f32 1.0, %v873_v49  ;;  %v457_v4 = vmul.f32 0.3275911, %v2123_v61 }
  0xa5   :  { %v1000_v52 = vmul.f32 1.0614054, %v2113_v48  ;;  %v755_v63 = vmul.f32 %v1788_v34, %v754_v53  ;;  %v2128_v7 = vadd.f32 1.0, %v449_v0  ;;  %v1281_v24 = vsub.f32 0.0, %v417_v56  ;;  %v2152_v32 = vpop.eup %1793 }
  0xa6   :  { %v1024_v58 = vadd.f32 -1.4531521, %v992_v43  ;;  %v875_v2 = vmul.f32 %v1790_v38, %v874_v59  ;;  %v2132_v12 = vadd.f32 1.0, %v457_v4  ;;  %v1289_v45 = vsub.f32 0.0, %v2123_v61 }
  0xa7   :  { %v1032_v62 = vadd.f32 -1.4531521, %v1000_v52  ;;  %v756_v6 = vadd.f32 %v1788_v34, %v755_v63  ;;  %1795 = vrcp.f32 %v2128_v7  ;;  %v536_v31 = vand.u32 2147483647, %v2128_v7 }
  0xa8   :  { %v1056_v1 = vmul.f32 %v1024_v58, %v2102_v39  ;;  %v876_v10 = vadd.f32 %v1790_v38, %v875_v2  ;;  %1797 = vrcp.f32 %v2132_v12  ;;  %v538_v36 = vand.u32 2147483648, %v2128_v7 }
  0xa9   :  { %v1064_v5 = vmul.f32 %v1032_v62, %v2113_v48  ;;  %v760_v14 = vsel %vm759_vm14, %v1788_v34, %v756_v6  ;;  %1799 = vpow2.f32 %v1392_v11  ;;  %v2158_v47 = vadd.f32 %v305_v8, %v2084_v26 }
  0xaa   :  { %v1088_v9 = vadd.f32 1.4214138, %v1056_v1  ;;  %v2140_v19 = vsel %vm2105_vm10, %v764_v54, %v760_v14  ;;  %v880_v3 = vsel %vm879_vm15, %v1790_v38, %v876_v10  ;;  %vm532_vm2 = vweird.f32 %v2128_v7 }
  0xab   :  { %v1096_v13 = vadd.f32 1.4214138, %v1064_v5  ;;  %v1008_v22 = vmul.f32 1.0614054, %v2140_v19  ;;  %v2144_v23 = vsel %vm882_vm1, %v884_v16, %v880_v3  ;;  %v2163_v52 = vmul.f32 %v1281_v24, %v417_v56 }
  0xac   :  { %v1120_v17 = vmul.f32 %v1088_v9, %v2102_v39  ;;  %v1016_v30 = vmul.f32 1.0614054, %v2144_v23  ;;  %vm2167_vm3 = vcmp.eq.f32.partialorder %v536_v31, 8.507059e+37  ;;  %v656_v26 = vand.u32 2147483647, %v2132_v12 }
  0xad   :  { %v1128_v21 = vmul.f32 %v1096_v13, %v2113_v48  ;;  %v1040_v35 = vadd.f32 -1.4531521, %v1008_v22  ;;  %v1796_v43 = vpop.eup %1795  ;;  %v539_v63 = vor.u32 1.1754944e-38, %v538_v36  ;;  %v658_v0 = vand.u32 2147483648, %v2132_v12 }
  0xae   :  { %v1152_v25 = vadd.f32 -0.28449672, %v1120_v17  ;;  %v1048_v42 = vadd.f32 -1.4531521, %v1016_v30  ;;  %v528_v58 = vmul.f32 %v1796_v43, %v2128_v7  ;;  %v1798_v56 = vpop.eup %1797  ;;  %vm652_vm6 = vweird.f32 %v2132_v12 }
  0xaf   :  { %v1160_v34 = vadd.f32 -0.28449672, %v1128_v21  ;;  %v1072_v51 = vmul.f32 %v1040_v35, %v2140_v19  ;;  %v1800_v5 = vpop.eup %1799  ;;  %vm533_vm7 = vweird.f32 %v1796_v43  ;;  %v648_v10 = vmul.f32 %v1798_v56, %v2132_v12 }
  0xb0   :  { %v1184_v38 = vmul.f32 %v1152_v25, %v2102_v39  ;;  %v1080_v54 = vmul.f32 %v1048_v42, %v2144_v23  ;;  %v529_v4 = vsub.f32 1.0, %v528_v58  ;;  %vm2182_vm8 = vcmp.eq.f32.partialorder %v656_v26, 8.507059e+37  ;;  %vm534_vm9 = vmor %vm532_vm2, %vm533_vm7 }
  0xb1   :  { %v1192_v49 = vmul.f32 %v1160_v34, %v2113_v48  ;;  %v1104_v62 = vadd.f32 1.4214138, %v1072_v51  ;;  %v649_v3 = vsub.f32 1.0, %v648_v10  ;;  %v659_v21 = vor.u32 1.1754944e-38, %v658_v0  ;;  %v270_v0 = vpop.f32.mrf.mxu3 }
  0xb2   :  { %v1216_v53 = vadd.f32 0.2548296, %v1184_v38  ;;  %v1112_v2 = vadd.f32 1.4214138, %v1080_v54  ;;  %v530_v14 = vmul.f32 %v1796_v43, %v529_v4  ;;  %v2188_v8 = vmul.f32 0.70710677, %v2158_v47 }
  0xb3   :  { %v1224_v60 = vadd.f32 0.2548296, %v1192_v49  ;;  %v1136_v9 = vmul.f32 %v1104_v62, %v2140_v19  ;;  %v650_v30 = vmul.f32 %v1798_v56, %v649_v3  ;;  %vm653_vm10 = vweird.f32 %v1798_v56 }
  0xb4   :  { %v1248_v1 = vmul.f32 %v1216_v53, %v2102_v39  ;;  %v1144_v13 = vmul.f32 %v1112_v2, %v2144_v23  ;;  %v531_v24 = vadd.f32 %v1796_v43, %v530_v14  ;;  %v2196_v35 = vand.u32 2147483647, %v2188_v8  ;;  %vm654_vm11 = vmor %vm652_vm6, %vm653_vm10 }
  0xb5   :  { %v1256_v6 = vmul.f32 %v1224_v60, %v2113_v48  ;;  %v1168_v17 = vadd.f32 -0.28449672, %v1136_v9  ;;  %v651_v49 = vadd.f32 %v1798_v56, %v650_v30  ;;  %v1346_v10 = vmul.f32 1.442695, %v2163_v52 }
  0xb6   :  { %v1408_v11 = vmul.f32 %v2086_v29, %v1248_v1  ;;  %v1176_v22 = vadd.f32 -0.28449672, %v1144_v13  ;;  %v535_v34 = vsel %vm534_vm9, %v1796_v43, %v531_v24  ;;  %v465_v43 = vmul.f32 0.3275911, %v2196_v35 }
  0xb7   :  { %v1416_v16 = vmul.f32 %v2119_v57, %v1256_v6  ;;  %v1200_v29 = vmul.f32 %v1168_v17, %v2140_v19  ;;  %v2200_v42 = vsel %vm2167_vm3, %v539_v63, %v535_v34  ;;  %v655_v26 = vsel %vm654_vm11, %v1798_v56, %v651_v49 }
  0xb8   :  { %v1440_v48 = vsub.f32 1.0, %v1408_v11  ;;  %v1208_v57 = vmul.f32 %v1176_v22, %v2144_v23  ;;  %v993_v53 = vmul.f32 1.0614054, %v2200_v42  ;;  %v2214_v63 = vsel %vm2182_vm8, %v659_v21, %v655_v26 }
  0xb9   :  { %v1448_v25 = vsub.f32 1.0, %v1416_v16  ;;  %v1232_v38 = vadd.f32 0.2548296, %v1200_v29  ;;  %v1001_v2 = vmul.f32 1.0614054, %v2214_v63  ;;  %v2219_v28 = vadd.f32 1.0, %v465_v43 }
  0xba   :  { %v1504_v31 = vsub.f32 0.0, %v1440_v48  ;;  %v1240_v51 = vadd.f32 0.2548296, %v1208_v57  ;;  %v1025_v27 = vadd.f32 -1.4531521, %v993_v53  ;;  %v271_v6 = vadd.f32 %v2009_v18, %v270_v0 }
  0xbb   :  { %v1512_v36 = vsub.f32 0.0, %v1448_v25  ;;  %v1264_v59 = vmul.f32 %v1232_v38, %v2140_v19  ;;  %1801 = vrcp.f32 %v2219_v28  ;;  %vm1488_vm12 = vcmp.ge.f32.partialorder %v2040_v44, 0.0  ;;  %v233_v38 = vpop.f32.mrf.mxu1 }
  0xbc   :  { %v1536_v7 = vsel %vm1472_vm4, %v1440_v48, %v1504_v31  ;;  %v1272_v62 = vmul.f32 %v1240_v51, %v2144_v23  ;;  %v1057_v4 = vmul.f32 %v1025_v27, %v2200_v42  ;;  %v1321_v23 = vmul.f32 %v1289_v45, %v2123_v61  ;;  %v313_v61 = vld [vmem:[%s3269_s3 + $0xc8] sm:$0xff] }
  0xbd   :  { %v1568_v54 = vadd.f32 1.0, %v1536_v7  ;;  %v1544_v58 = vsel %vm1480_vm5, %v1448_v25, %v1512_v36  ;;  %v1424_v1 = vmul.f32 %v2152_v32, %v1264_v59  ;;  %v1033_v32 = vadd.f32 -1.4531521, %v1001_v2  ;;  %v213_v25 = vpop.f32.mrf.mxu0  ;;  %v290_v36 = vld [vmem:[%s3269_s3 + $0x10] sm:$0xff] }
  0xbe   :  { %v1576_v60 = vadd.f32 1.0, %v1544_v58  ;;  %v1432_v56 = vmul.f32 %v1800_v5, %v1272_v62  ;;  %v1089_v5 = vadd.f32 1.4214138, %v1057_v4  ;;  %v368_v45 = vmul.f32 0.5, %v2033_v40  ;;  %v298_v2 = vld [vmem:[%s3269_s3 + $0x50] sm:$0xff] }
  0xbf   :  { %v1600_v12 = vmul.f32 %v1568_v54, %v2046_v50  ;;  %v1456_v50 = vsub.f32 1.0, %v1424_v1  ;;  %v1065_v11 = vmul.f32 %v1033_v32, %v2214_v63  ;;  %vm1496_vm13 = vcmp.ge.f32.partialorder %v2043_v46, 0.0 }
  0xc0   :  { %v1608_v19 = vmul.f32 %v1576_v60, %v2049_v55  ;;  %v1464_v55 = vsub.f32 1.0, %v1432_v56  ;;  %v1121_v14 = vmul.f32 %v1089_v5, %v2200_v42  ;;  %v1362_v17 = vmul.f32 1.442695, %v1321_v23 }
  0xc1   :  { %1632 = vst.msk [vmem:[%s3270_s4] sm:$0xff] %vm150_vm0, %v1600_v12  ;;  %v1520_v9 = vsub.f32 0.0, %v1456_v50  ;;  %v1097_v16 = vadd.f32 1.4214138, %v1065_v11  ;;  %v2245_v3 = vadd.f32 %v313_v61, %v271_v6  ;;  %v376_v40 = vmul.f32 0.5, %v2035_v41  ;;  %v1802_v52 = vpop.eup %1801 }
  0xc2   :  { %1640 = vst.msk [vmem:[%s3270_s4 + $0x40] sm:$0xff] %vm150_vm0, %v1608_v19  ;;  %v1528_v13 = vsub.f32 0.0, %v1464_v55  ;;  %v1153_v22 = vadd.f32 -0.28449672, %v1121_v14  ;;  %1803 = vpow2.f32 %v1346_v10  ;;  %v768_v31 = vmul.f32 %v1802_v52, %v2219_v28 }
  0xc3   :  { %v1552_v39 = vsel %vm1488_vm12, %v1456_v50, %v1520_v9  ;;  %v1129_v44 = vmul.f32 %v1097_v16, %v2214_v63  ;;  %v2250_v46 = vmul.f32 0.70710677, %v2245_v3  ;;  %1805 = vpow2.f32 %v1362_v17  ;;  %v253_v16 = vpop.f32.mrf.mxu2 }
  0xc4   :  { %v1584_v21 = vadd.f32 1.0, %v1552_v39  ;;  %v1560_v48 = vsel %vm1496_vm13, %v1464_v55, %v1528_v13  ;;  %v1185_v30 = vmul.f32 %v1153_v22, %v2200_v42  ;;  %v769_v7 = vsub.f32 1.0, %v768_v31 }
  0xc5   :  { %v1592_v24 = vadd.f32 1.0, %v1560_v48  ;;  %v1161_v34 = vadd.f32 -0.28449672, %v1129_v44  ;;  %v2255_v41 = vand.u32 2147483647, %v2250_v46  ;;  %v214_v53 = vadd.f32 %v2009_v18, %v213_v25 }
  0xc6   :  { %v1616_v29 = vmul.f32 %v1584_v21, %v368_v45  ;;  %v1217_v49 = vadd.f32 0.2548296, %v1185_v30  ;;  %v776_v51 = vand.u32 2147483647, %v2219_v28  ;;  %vm773_vm14 = vweird.f32 %v1802_v52 }
  0xc7   :  { %v1624_v57 = vmul.f32 %v1592_v24, %v376_v40  ;;  %v1193_v43 = vmul.f32 %v1161_v34, %v2214_v63  ;;  %v778_v54 = vand.u32 2147483648, %v2219_v28  ;;  %v473_v58 = vmul.f32 0.3275911, %v2255_v41 }
  0xc8   :  { %1648 = vst.msk [vmem:[%s3270_s4 + $0x80] sm:$0xff] %vm150_vm0, %v1616_v29  ;;  %v1249_v59 = vmul.f32 %v1217_v49, %v2200_v42  ;;  %v770_v26 = vmul.f32 %v1802_v52, %v769_v7  ;;  %v2274_v60 = vadd.f32 %v290_v36, %v214_v53  ;;  %v234_v62 = vadd.f32 %v2009_v18, %v233_v38  ;;  %v1804_v27 = vpop.eup %1803  ;;  %v306_v36 = vld [vmem:[%s3269_s3 + $0x90] sm:$0xff]  ;;  %v273_v7 = vpop.f32.mrf.mxu3 }
  0xc9   :  { %1656 = vst.msk [vmem:[%s3270_s4 + $0xc0] sm:$0xff] %vm150_vm0, %v1624_v57  ;;  %v1225_v0 = vadd.f32 0.2548296, %v1193_v43  ;;  %v1297_v12 = vsub.f32 0.0, %v2196_v35  ;;  %v2278_v1 = vadd.f32 1.0, %v473_v58  ;;  %vm772_vm15 = vweird.f32 %v2219_v28  ;;  %v1806_v4 = vpop.eup %1805 }
  0xca   :  { %v1409_v19 = vmul.f32 %v1804_v27, %v1249_v59  ;;  %v771_v56 = vadd.f32 %v1802_v52, %v770_v26  ;;  %v2285_v42 = vmul.f32 0.70710677, %v2274_v60  ;;  %vm774_vm1 = vmor %vm772_vm15, %vm773_vm14  ;;  %v779_v50 = vor.u32 1.1754944e-38, %v778_v54 }
  0xcb   :  { %v1257_v23 = vmul.f32 %v1225_v0, %v2214_v63  ;;  %1807 = vrcp.f32 %v2278_v1  ;;  %vm777_vm2 = vcmp.eq.f32.partialorder %v776_v51, 8.507059e+37  ;;  %v2290_v55 = vadd.f32 %v298_v2, %v234_v62 }
  0xcc   :  { %v1441_v32 = vsub.f32 1.0, %v1409_v19  ;;  %v775_v6 = vsel %vm774_vm1, %v1802_v52, %v771_v56  ;;  %v1329_v28 = vmul.f32 %v1297_v12, %v2196_v35  ;;  %v2296_v45 = vand.u32 2147483647, %v2285_v42  ;;  %v314_v19 = vld [vmem:[%s3269_s3 + $0xd0] sm:$0xff] }
  0xcd   :  { %v1417_v5 = vmul.f32 %v1806_v4, %v1257_v23  ;;  %v2292_v61 = vsel %vm777_vm2, %v779_v50, %v775_v6  ;;  %v353_v63 = vmul.f32 0.5, %v2074_v15  ;;  %v361_v10 = vmul.f32 0.5, %v2076_v20 }
  0xce   :  { %v1505_v9 = vsub.f32 0.0, %v1441_v32  ;;  %v1009_v11 = vmul.f32 1.0614054, %v2292_v61  ;;  %vm1473_vm3 = vcmp.ge.f32.partialorder %v2091_v33, 0.0  ;;  %v1305_v14 = vsub.f32 0.0, %v2255_v41 }
  0xcf   :  { %v1449_v13 = vsub.f32 1.0, %v1417_v5  ;;  %v450_v39 = vmul.f32 0.3275911, %v2296_v45  ;;  %vm1481_vm4 = vcmp.ge.f32.partialorder %v2098_v37, 0.0  ;;  %v2306_v21 = vmul.f32 0.70710677, %v2290_v55 }
  0xd0   :  { %v1537_v17 = vsel %vm1473_vm3, %v1441_v32, %v1505_v9  ;;  %v1041_v35 = vadd.f32 -1.4531521, %v1009_v11  ;;  %v1378_v48 = vmul.f32 1.442695, %v1329_v28  ;;  %v254_v44 = vadd.f32 %v2009_v18, %v253_v16 }
  0xd1   :  { %v1808_v15 = vpop.eup %1807  ;;  %v1569_v40 = vadd.f32 1.0, %v1537_v17  ;;  %v1513_v20 = vsub.f32 0.0, %v1449_v13  ;;  %v2308_v22 = vadd.f32 1.0, %v450_v39  ;;  %v2313_v24 = vand.u32 2147483647, %v2306_v21 }
  0xd2   :  { %v1073_v33 = vmul.f32 %v1041_v35, %v2292_v61  ;;  %v888_v52 = vmul.f32 %v1808_v15, %v2278_v1  ;;  %v1337_v29 = vmul.f32 %v1305_v14, %v2255_v41  ;;  %v2319_v31 = vmul.f32 0.5, %v2158_v47 }
  0xd3   :  { %v1601_v37 = vmul.f32 %v1569_v40, %v353_v63  ;;  %v1545_v25 = vsel %vm1481_vm4, %v1449_v13, %v1513_v20  ;;  %1809 = vrcp.f32 %v2308_v22  ;;  %v896_v38 = vand.u32 2147483647, %v2278_v1 }
  0xd4   :  { %v1577_v30 = vadd.f32 1.0, %v1545_v25  ;;  %v1105_v57 = vadd.f32 1.4214138, %v1073_v33  ;;  %v889_v34 = vsub.f32 1.0, %v888_v52  ;;  %v898_v41 = vand.u32 2147483648, %v2278_v1 }
  0xd5   :  { %1633 = vst.msk [vmem:[%s3270_s4 + $0x8] sm:$0xff] %vm150_vm0, %v1601_v37  ;;  %v458_v49 = vmul.f32 0.3275911, %v2313_v24  ;;  %vm893_vm5 = vweird.f32 %v1808_v15  ;;  %1811 = vpow2.f32 %v1378_v48  ;;  %v1394_v43 = vmul.f32 1.442695, %v1337_v29 }
  0xd6   :  { %v1609_v47 = vmul.f32 %v1577_v30, %v361_v10  ;;  %v1137_v51 = vmul.f32 %v1105_v57, %v2292_v61  ;;  %v890_v53 = vmul.f32 %v1808_v15, %v889_v34  ;;  %v2334_v58 = vadd.f32 %v306_v36, %v254_v44 }
  0xd7   :  { %v2332_v54 = vadd.f32 1.0, %v458_v49  ;;  %vm892_vm6 = vweird.f32 %v2278_v1  ;;  %v274_v62 = vadd.f32 %v2009_v18, %v273_v7  ;;  %v899_v0 = vor.u32 1.1754944e-38, %v898_v41 }
  0xd8   :  { %1641 = vst.msk [vmem:[%s3270_s4 + $0x48] sm:$0xff] %vm150_vm0, %v1609_v47  ;;  %v1169_v59 = vadd.f32 -0.28449672, %v1137_v51  ;;  %v891_v26 = vadd.f32 %v1808_v15, %v890_v53  ;;  %vm894_vm7 = vmor %vm892_vm6, %vm893_vm5  ;;  %v551_v12 = vand.u32 2147483647, %v2308_v22  ;;  %v553_v2 = vand.u32 2147483648, %v2308_v22 }
  0xd9   :  { %v1810_v27 = vpop.eup %1809  ;;  %1813 = vrcp.f32 %v2332_v54  ;;  %vm897_vm8 = vcmp.eq.f32.partialorder %v896_v38, 8.507059e+37  ;;  %vm547_vm9 = vweird.f32 %v2308_v22  ;;  %v1282_v50 = vsub.f32 0.0, %v2296_v45 }
  0xda   :  { %v1201_v56 = vmul.f32 %v1169_v59, %v2292_v61  ;;  %v895_v4 = vsel %vm894_vm7, %v1808_v15, %v891_v26  ;;  %v543_v1 = vmul.f32 %v1810_v27, %v2308_v22  ;;  %1815 = vpow2.f32 %v1394_v43 }
  0xdb   :  { %v2350_v23 = vsel %vm897_vm8, %v899_v0, %v895_v4  ;;  %v2355_v28 = vadd.f32 %v314_v19, %v274_v62  ;;  %v1812_v63 = vpop.eup %1811  ;;  %vm2357_vm10 = vcmp.eq.f32.partialorder %v551_v12, 8.507059e+37  ;;  %v554_v10 = vor.u32 1.1754944e-38, %v553_v2  ;;  %v215_v19 = vpop.f32.mrf.mxu0 }
  0xdc   :  { %v1233_v32 = vadd.f32 0.2548296, %v1201_v56  ;;  %v1017_v6 = vmul.f32 1.0614054, %v2350_v23  ;;  %v544_v5 = vsub.f32 1.0, %v543_v1  ;;  %v1290_v11 = vsub.f32 0.0, %v2313_v24  ;;  %v235_v56 = vpop.f32.mrf.mxu1 }
  0xdd   :  { %v2363_v13 = vmul.f32 0.70710677, %v2334_v58  ;;  %vm548_vm11 = vweird.f32 %v1810_v27  ;;  %v1314_v35 = vmul.f32 %v1282_v50, %v2296_v45  ;;  %v671_v15 = vand.u32 2147483647, %v2332_v54 }
  0xde   :  { %v1265_v14 = vmul.f32 %v1233_v32, %v2292_v61  ;;  %v1049_v39 = vadd.f32 -1.4531521, %v1017_v6  ;;  %v545_v16 = vmul.f32 %v1810_v27, %v544_v5  ;;  %v2372_v20 = vmul.f32 0.70710677, %v2355_v28  ;;  %vm549_vm12 = vmor %vm547_vm9, %vm548_vm11 }
  0xdf   :  { %v1814_v17 = vpop.eup %1813  ;;  %v2369_v40 = vand.u32 2147483647, %v2363_v13  ;;  %vm667_vm13 = vweird.f32 %v2332_v54  ;;  %v673_v45 = vand.u32 2147483648, %v2332_v54  ;;  %vm1489_vm15 = vcmp.ge.f32.partialorder %v2188_v8, 0.0 }
  0xe0   :  { %v1425_v48 = vmul.f32 %v1812_v63, %v1265_v14  ;;  %v1081_v33 = vmul.f32 %v1049_v39, %v2350_v23  ;;  %v546_v52 = vadd.f32 %v1810_v27, %v545_v16  ;;  %v663_v61 = vmul.f32 %v1814_v17, %v2332_v54  ;;  %v1816_v44 = vpop.eup %1815 }
  0xe1   :  { %v466_v37 = vmul.f32 0.3275911, %v2369_v40  ;;  %v2382_v25 = vand.u32 2147483647, %v2372_v20  ;;  %vm668_vm14 = vweird.f32 %v1814_v17  ;;  %v2395_v51 = vmul.f32 0.5, %v2245_v3 }
  0xe2   :  { %v1457_v29 = vsub.f32 1.0, %v1425_v48  ;;  %v1113_v30 = vadd.f32 1.4214138, %v1081_v33  ;;  %v550_v57 = vsel %vm549_vm12, %v1810_v27, %v546_v52  ;;  %v664_v34 = vsub.f32 1.0, %v663_v61  ;;  %vm669_vm1 = vmor %vm667_vm13, %vm668_vm14 }
  0xe3   :  { %v2386_v36 = vsel %vm2357_vm10, %v554_v10, %v550_v57  ;;  %v2388_v22 = vadd.f32 1.0, %v466_v37  ;;  %v474_v38 = vmul.f32 0.3275911, %v2382_v25  ;;  %v1322_v53 = vmul.f32 %v1290_v11, %v2313_v24 }
  0xe4   :  { %v1521_v41 = vsub.f32 0.0, %v1457_v29  ;;  %v1145_v49 = vmul.f32 %v1113_v30, %v2350_v23  ;;  %v994_v7 = vmul.f32 1.0614054, %v2386_v36  ;;  %v665_v47 = vmul.f32 %v1814_v17, %v664_v34 }
  0xe5   :  { %1817 = vrcp.f32 %v2388_v22  ;;  %v1348_v0 = vmul.f32 1.442695, %v1314_v35  ;;  %vm672_vm2 = vcmp.eq.f32.partialorder %v671_v15, 8.507059e+37  ;;  %v674_v12 = vor.u32 1.1754944e-38, %v673_v45 }
  0xe6   :  { %v1553_v43 = vsel %vm1489_vm15, %v1457_v29, %v1521_v41  ;;  %v1177_v59 = vadd.f32 -0.28449672, %v1145_v49  ;;  %v1026_v26 = vadd.f32 -1.4531521, %v994_v7  ;;  %v666_v62 = vadd.f32 %v1814_v17, %v665_v47 }
  0xe7   :  { %v1585_v27 = vadd.f32 1.0, %v1553_v43  ;;  %v2404_v24 = vadd.f32 1.0, %v474_v38  ;;  %v1364_v50 = vmul.f32 1.442695, %v1322_v53  ;;  %v791_v32 = vand.u32 2147483647, %v2388_v22 }
  0xe8   :  { %v1209_v8 = vmul.f32 %v1177_v59, %v2350_v23  ;;  %v1058_v3 = vmul.f32 %v1026_v26, %v2386_v36  ;;  %v670_v2 = vsel %vm669_vm1, %v1814_v17, %v666_v62  ;;  %vm1497_vm3 = vcmp.ge.f32.partialorder %v2250_v46, 0.0  ;;  %v291_v17 = vld [vmem:[%s3269_s3 + $0x18] sm:$0xff] }
  0xe9   :  { %v1617_v4 = vmul.f32 %v1585_v27, %v2319_v31  ;;  %v2407_v1 = vsel %vm672_vm2, %v674_v12, %v670_v2  ;;  %1819 = vrcp.f32 %v2404_v24  ;;  %v793_v31 = vand.u32 2147483648, %v2388_v22 }
  0xea   :  { %v1241_v54 = vadd.f32 0.2548296, %v1209_v8  ;;  %v1090_v6 = vadd.f32 1.4214138, %v1058_v3  ;;  %v1002_v5 = vmul.f32 1.0614054, %v2407_v1  ;;  %1821 = vpow2.f32 %v1348_v0 }
  0xeb   :  { %v1818_v63 = vpop.eup %1817  ;;  %1649 = vst.msk [vmem:[%s3270_s4 + $0x88] sm:$0xff] %vm150_vm0, %v1617_v4  ;;  %v216_v9 = vadd.f32 %v2009_v18, %v215_v19  ;;  %v236_v10 = vadd.f32 %v2009_v18, %v235_v56  ;;  %1823 = vpow2.f32 %v1364_v50  ;;  %vm787_vm4 = vweird.f32 %v2388_v22 }
  0xec   :  { %v1273_v11 = vmul.f32 %v1241_v54, %v2350_v23  ;;  %v1122_v14 = vmul.f32 %v1090_v6, %v2386_v36  ;;  %v1034_v39 = vadd.f32 -1.4531521, %v1002_v5  ;;  %v783_v16 = vmul.f32 %v1818_v63, %v2388_v22 }
  0xed   :  { %vm2427_vm5 = vcmp.eq.f32.partialorder %v791_v32, 8.507059e+37  ;;  %v1298_v18 = vsub.f32 0.0, %v2369_v40  ;;  %vm788_vm6 = vweird.f32 %v1818_v63  ;;  %v794_v52 = vor.u32 1.1754944e-38, %v793_v31 }
  0xee   :  { %v1433_v15 = vmul.f32 %v1816_v44, %v1273_v11  ;;  %v1154_v23 = vadd.f32 -0.28449672, %v1122_v14  ;;  %v1066_v48 = vmul.f32 %v1034_v39, %v2407_v1  ;;  %v784_v33 = vsub.f32 1.0, %v783_v16  ;;  %v299_v44 = vld [vmem:[%s3269_s3 + $0x58] sm:$0xff]  ;;  %vm789_vm7 = vmor %vm787_vm4, %vm788_vm6 }
  0xef   :  { %v1306_v61 = vsub.f32 0.0, %v2382_v25  ;;  %v2434_v45 = vadd.f32 %v291_v17, %v216_v9  ;;  %v1820_v37 = vpop.eup %1819  ;;  %v911_v49 = vand.u32 2147483647, %v2404_v24  ;;  %v913_v7 = vand.u32 2147483648, %v2404_v24 }
  0xf0   :  { %v1465_v29 = vsub.f32 1.0, %v1433_v15  ;;  %v1186_v30 = vmul.f32 %v1154_v23, %v2386_v36  ;;  %v1098_v57 = vadd.f32 1.4214138, %v1066_v48  ;;  %v785_v34 = vmul.f32 %v1818_v63, %v784_v33  ;;  %v1822_v38 = vpop.eup %1821 }
  0xf1   :  { %v903_v41 = vmul.f32 %v1820_v37, %v2404_v24  ;;  %v2444_v47 = vmul.f32 0.70710677, %v2434_v45  ;;  %v1824_v62 = vpop.eup %1823  ;;  %vm908_vm8 = vweird.f32 %v1820_v37  ;;  %v2453_v12 = vadd.f32 %v299_v44, %v236_v10 }
  0xf2   :  { %v1529_v53 = vsub.f32 0.0, %v1465_v29  ;;  %v1218_v43 = vadd.f32 0.2548296, %v1186_v30  ;;  %v1130_v59 = vmul.f32 %v1098_v57, %v2407_v1  ;;  %v786_v26 = vadd.f32 %v1818_v63, %v785_v34 }
  0xf3   :  { %v904_v27 = vsub.f32 1.0, %v903_v41  ;;  %v2451_v0 = vand.u32 2147483647, %v2444_v47  ;;  %vm907_vm9 = vweird.f32 %v2404_v24  ;;  %v914_v11 = vor.u32 1.1754944e-38, %v913_v7 }
  0xf4   :  { %v1561_v8 = vsel %vm1497_vm3, %v1465_v29, %v1529_v53  ;;  %v1250_v3 = vmul.f32 %v1218_v43, %v2386_v36  ;;  %v1162_v2 = vadd.f32 -0.28449672, %v1130_v59  ;;  %v790_v19 = vsel %vm789_vm7, %v1818_v63, %v786_v26  ;;  %vm909_vm10 = vmor %vm907_vm9, %vm908_vm8  ;;  %v307_v43 = vld [vmem:[%s3269_s3 + $0x98] sm:$0xff] }
  0xf5   :  { %v1593_v56 = vadd.f32 1.0, %v1561_v8  ;;  %v2460_v4 = vsel %vm2427_vm5, %v794_v52, %v790_v19  ;;  %v905_v22 = vmul.f32 %v1820_v37, %v904_v27  ;;  %v451_v50 = vmul.f32 0.3275911, %v2451_v0  ;;  %v255_v52 = vpop.f32.mrf.mxu2  ;;  %v275_v27 = vpop.f32.mrf.mxu3 }
  0xf6   :  { %v1410_v32 = vmul.f32 %v1822_v38, %v1250_v3  ;;  %v1194_v54 = vmul.f32 %v1162_v2, %v2407_v1  ;;  %v1010_v6 = vmul.f32 1.0614054, %v2460_v4  ;;  %v2470_v63 = vmul.f32 0.70710677, %v2453_v12  ;;  %v2498_v38 = vld [vmem:[%s3268_s2] ss:$0 sm:$0xff] }
  0xf7   :  { %v1625_v46 = vmul.f32 %v1593_v56, %v2395_v51  ;;  %v906_v36 = vadd.f32 %v1820_v37, %v905_v22  ;;  %v2467_v5 = vadd.f32 1.0, %v451_v50  ;;  %v1330_v24 = vmul.f32 %v1298_v18, %v2369_v40 }
  0xf8   :  { %v1442_v31 = vsub.f32 1.0, %v1410_v32  ;;  %v1226_v9 = vadd.f32 0.2548296, %v1194_v54  ;;  %v1042_v10 = vadd.f32 -1.4531521, %v1010_v6  ;;  %vm912_vm11 = vcmp.eq.f32.partialorder %v911_v49, 8.507059e+37 }
  0xf9   :  { %1657 = vst.msk [vmem:[%s3270_s4 + $0xc8] sm:$0xff] %vm150_vm0, %v1625_v46  ;;  %v910_v51 = vsel %vm909_vm10, %v1820_v37, %v906_v36  ;;  %1825 = vrcp.f32 %v2467_v5  ;;  %v354_v35 = vmul.f32 0.5, %v2274_v60  ;;  %vm1474_vm12 = vcmp.ge.f32.partialorder %v2285_v42, 0.0 }
  0xfa   :  { %v1506_v14 = vsub.f32 0.0, %v1442_v31  ;;  %v1258_v39 = vmul.f32 %v1226_v9, %v2407_v1  ;;  %v1074_v16 = vmul.f32 %v1042_v10, %v2460_v4  ;;  %v2481_v17 = vsel %vm912_vm11, %v914_v11, %v910_v51 }
  0xfb   :  { %v1018_v15 = vmul.f32 1.0614054, %v2481_v17  ;;  %v1338_v23 = vmul.f32 %v1306_v61, %v2382_v25  ;;  %v2488_v33 = vand.u32 2147483647, %v2470_v63  ;;  %v362_v37 = vmul.f32 0.5, %v2290_v55 }
  0xfc   :  { %v1538_v40 = vsel %vm1474_vm12, %v1442_v31, %v1506_v14  ;;  %v1418_v18 = vmul.f32 %v1824_v62, %v1258_v39  ;;  %v1106_v48 = vadd.f32 1.4214138, %v1074_v16  ;;  %v1380_v29 = vmul.f32 1.442695, %v1330_v24  ;;  %v315_v31 = vld [vmem:[%s3269_s3 + $0xd8] sm:$0xff] }
  0xfd   :  { %v1570_v1 = vadd.f32 1.0, %v1538_v40  ;;  %v1050_v30 = vadd.f32 -1.4531521, %v1018_v15  ;;  %vm1482_vm13 = vcmp.ge.f32.partialorder %v2306_v21, 0.0  ;;  %v459_v42 = vmul.f32 0.3275911, %v2488_v33 }
  0xfe   :  { %v1450_v57 = vsub.f32 1.0, %v1418_v18  ;;  %v1138_v60 = vmul.f32 %v1106_v48, %v2460_v4  ;;  %v1396_v44 = vmul.f32 1.442695, %v1338_v23  ;;  %v256_v55 = vadd.f32 %v2498_v38, %v255_v52 }
  0xff   :  { %v1826_v25 = vpop.eup %1825  ;;  %v1602_v61 = vmul.f32 %v1570_v1, %v354_v35  ;;  %v1082_v34 = vmul.f32 %v1050_v30, %v2481_v17  ;;  %v1283_v53 = vsub.f32 0.0, %v2451_v0  ;;  %1827 = vpow2.f32 %v1380_v29 }
 0x100   :  { %v1514_v41 = vsub.f32 0.0, %v1450_v57  ;;  %v1170_v49 = vadd.f32 -0.28449672, %v1138_v60  ;;  %v558_v7 = vmul.f32 %v1826_v25, %v2467_v5  ;;  %v566_v26 = vand.u32 2147483647, %v2467_v5 }
 0x101   :  { %1634 = vst.msk [vmem:[%s3270_s4 + $0x10] sm:$0xff] %vm150_vm0, %v1602_v61  ;;  %v1114_v59 = vadd.f32 1.4214138, %v1082_v34  ;;  %v2511_v62 = vadd.f32 1.0, %v459_v42  ;;  %v568_v19 = vand.u32 2147483648, %v2467_v5  ;;  %v2519_v50 = vadd.f32 %v307_v43, %v256_v55 }
 0x102   :  { %v1546_v8 = vsel %vm1482_vm13, %v1450_v57, %v1514_v41  ;;  %v1202_v3 = vmul.f32 %v1170_v49, %v2460_v4  ;;  %v559_v2 = vsub.f32 1.0, %v558_v7  ;;  %vm563_vm14 = vweird.f32 %v1826_v25  ;;  %v218_v7 = vpop.f32.mrf.mxu0 }
 0x103   :  { %v1578_v56 = vadd.f32 1.0, %v1546_v8  ;;  %v1146_v22 = vmul.f32 %v1114_v59, %v2481_v17  ;;  %1829 = vrcp.f32 %v2511_v62  ;;  %v276_v6 = vadd.f32 %v2498_v38, %v275_v27 }
 0x104   :  { %v1234_v32 = vadd.f32 0.2548296, %v1202_v3  ;;  %v560_v54 = vmul.f32 %v1826_v25, %v559_v2  ;;  %v370_v21 = vmul.f32 0.5, %v2334_v58  ;;  %1831 = vpow2.f32 %v1396_v44 }
 0x105   :  { %v1610_v46 = vmul.f32 %v1578_v56, %v362_v37  ;;  %v1178_v36 = vadd.f32 -0.28449672, %v1146_v22  ;;  %vm562_vm15 = vweird.f32 %v2467_v5  ;;  %v1315_v11 = vmul.f32 %v1283_v53, %v2451_v0  ;;  %v1828_v24 = vpop.eup %1827  ;;  %v292_v22 = vld [vmem:[%s3269_s3 + $0x20] sm:$0xff] }
 0x106   :  { %v1266_v9 = vmul.f32 %v1234_v32, %v2460_v4  ;;  %v561_v10 = vadd.f32 %v1826_v25, %v560_v54  ;;  %v2534_v58 = vmul.f32 0.5, %v2355_v28  ;;  %vm564_vm1 = vmor %vm562_vm15, %vm563_vm14  ;;  %v569_v14 = vor.u32 1.1754944e-38, %v568_v19 }
 0x107   :  { %1642 = vst.msk [vmem:[%s3270_s4 + $0x50] sm:$0xff] %vm150_vm0, %v1610_v46  ;;  %v1210_v51 = vmul.f32 %v1178_v36, %v2481_v17  ;;  %v2539_v4 = vmul.f32 0.70710677, %v2519_v50  ;;  %vm567_vm2 = vcmp.eq.f32.partialorder %v566_v26, 8.507059e+37  ;;  %v2541_v0 = vadd.f32 %v315_v31, %v276_v6 }
 0x108   :  { %v1426_v5 = vmul.f32 %v1828_v24, %v1266_v9  ;;  %v565_v39 = vsel %vm564_vm1, %v1826_v25, %v561_v10  ;;  %vm1490_vm3 = vcmp.ge.f32.partialorder %v2363_v13, 0.0  ;;  %v1350_v18 = vmul.f32 1.442695, %v1315_v11 }
 0x109   :  { %v1830_v16 = vpop.eup %1829  ;;  %v1242_v35 = vadd.f32 0.2548296, %v1210_v51  ;;  %v2544_v15 = vsel %vm567_vm2, %v569_v14, %v565_v39  ;;  %v2547_v28 = vand.u32 2147483647, %v2539_v4  ;;  %v688_v37 = vand.u32 2147483648, %v2511_v62  ;;  %v300_v39 = vld [vmem:[%s3269_s3 + $0x60] sm:$0xff] }
 0x10a   :  { %v1458_v23 = vsub.f32 1.0, %v1426_v5  ;;  %v995_v40 = vmul.f32 1.0614054, %v2544_v15  ;;  %v678_v48 = vmul.f32 %v1830_v16, %v2511_v62  ;;  %v1832_v52 = vpop.eup %1831  ;;  %v1291_v29 = vsub.f32 0.0, %v2488_v33 }
 0x10b   :  { %v1274_v1 = vmul.f32 %v1242_v35, %v2481_v17  ;;  %v467_v30 = vmul.f32 0.3275911, %v2547_v28  ;;  %v2556_v25 = vmul.f32 0.70710677, %v2541_v0  ;;  %vm683_vm4 = vweird.f32 %v1830_v16 }
 0x10c   :  { %v1522_v57 = vsub.f32 0.0, %v1458_v23  ;;  %v1027_v60 = vadd.f32 -1.4531521, %v995_v40  ;;  %v679_v42 = vsub.f32 1.0, %v678_v48  ;;  %v686_v34 = vand.u32 2147483647, %v2511_v62 }
 0x10d   :  { %v1434_v61 = vmul.f32 %v1832_v52, %v1274_v1  ;;  %v2559_v44 = vadd.f32 1.0, %v467_v30  ;;  %v2565_v49 = vand.u32 2147483647, %v2556_v25  ;;  %v1323_v59 = vmul.f32 %v1291_v29, %v2488_v33 }
 0x10e   :  { %v1554_v17 = vsel %vm1490_vm3, %v1458_v23, %v1522_v57  ;;  %v1059_v55 = vmul.f32 %v1027_v60, %v2544_v15  ;;  %v680_v41 = vmul.f32 %v1830_v16, %v679_v42  ;;  %vm682_vm5 = vweird.f32 %v2511_v62  ;;  %v238_v62 = vpop.f32.mrf.mxu1 }
 0x10f   :  { %v1586_v53 = vadd.f32 1.0, %v1554_v17  ;;  %v1466_v43 = vsub.f32 1.0, %v1434_v61  ;;  %1833 = vrcp.f32 %v2559_v44  ;;  %v689_v8 = vor.u32 1.1754944e-38, %v688_v37  ;;  %vm684_vm6 = vmor %vm682_vm5, %vm683_vm4 }
 0x110   :  { %v1091_v26 = vadd.f32 1.4214138, %v1059_v55  ;;  %v681_v27 = vadd.f32 %v1830_v16, %v680_v41  ;;  %v475_v2 = vmul.f32 0.3275911, %v2565_v49  ;;  %v219_v19 = vadd.f32 %v2498_v38, %v218_v7 }
 0x111   :  { %v1618_v13 = vmul.f32 %v1586_v53, %v370_v21  ;;  %v1530_v3 = vsub.f32 0.0, %v1466_v43  ;;  %vm1498_vm7 = vcmp.ge.f32.partialorder %v2372_v20, 0.0  ;;  %vm687_vm8 = vcmp.eq.f32.partialorder %v686_v34, 8.507059e+37 }
 0x112   :  { %v1123_v56 = vmul.f32 %v1091_v26, %v2544_v15  ;;  %v685_v33 = vsel %vm684_vm6, %v1830_v16, %v681_v27  ;;  %v1366_v6 = vmul.f32 1.442695, %v1323_v59  ;;  %v2584_v46 = vadd.f32 1.0, %v475_v2 }
 0x113   :  { %1650 = vst.msk [vmem:[%s3270_s4 + $0x90] sm:$0xff] %vm150_vm0, %v1618_v13  ;;  %v1562_v32 = vsel %vm1498_vm7, %v1466_v43, %v1530_v3  ;;  %v2582_v54 = vsel %vm687_vm8, %v689_v8, %v685_v33  ;;  %1835 = vpow2.f32 %v1350_v18  ;;  %v1299_v9 = vsub.f32 0.0, %v2547_v28 }
 0x114   :  { %v1594_v20 = vadd.f32 1.0, %v1562_v32  ;;  %v1155_v21 = vadd.f32 -0.28449672, %v1123_v56  ;;  %v1003_v36 = vmul.f32 1.0614054, %v2582_v54  ;;  %1837 = vrcp.f32 %v2584_v46 }
 0x115   :  { %v1834_v31 = vpop.eup %1833  ;;  %v2589_v10 = vadd.f32 %v292_v22, %v219_v19  ;;  %v239_v11 = vadd.f32 %v2498_v38, %v238_v62  ;;  %v355_v16 = vmul.f32 0.5, %v2434_v45  ;;  %v806_v35 = vand.u32 2147483647, %v2559_v44 }
 0x116   :  { %v1626_v24 = vmul.f32 %v1594_v20, %v2534_v58  ;;  %v1187_v51 = vmul.f32 %v1155_v21, %v2544_v15  ;;  %v1035_v14 = vadd.f32 -1.4531521, %v1003_v36  ;;  %v798_v5 = vmul.f32 %v1834_v31, %v2559_v44  ;;  %v258_v36 = vpop.f32.mrf.mxu2 }
 0x117   :  { %v808_v23 = vand.u32 2147483648, %v2559_v44  ;;  %1839 = vpow2.f32 %v1366_v6  ;;  %vm802_vm9 = vweird.f32 %v2559_v44  ;;  %v1331_v48 = vmul.f32 %v1299_v9, %v2547_v28 }
 0x118   :  { %1658 = vst.msk [vmem:[%s3270_s4 + $0xd0] sm:$0xff] %vm150_vm0, %v1626_v24  ;;  %v1219_v58 = vadd.f32 0.2548296, %v1187_v51  ;;  %v1067_v40 = vmul.f32 %v1035_v14, %v2582_v54  ;;  %v799_v18 = vsub.f32 1.0, %v798_v5  ;;  %v2609_v45 = vmul.f32 0.70710677, %v2589_v10 }
 0x119   :  { %v2611_v52 = vadd.f32 %v300_v39, %v239_v11  ;;  %v1836_v1 = vpop.eup %1835  ;;  %vm803_vm10 = vweird.f32 %v1834_v31  ;;  %vm2614_vm11 = vcmp.eq.f32.partialorder %v806_v35, 8.507059e+37  ;;  %v809_v42 = vor.u32 1.1754944e-38, %v808_v23 }
 0x11a   :  { %v1251_v37 = vmul.f32 %v1219_v58, %v2544_v15  ;;  %v1099_v29 = vadd.f32 1.4214138, %v1067_v40  ;;  %v800_v30 = vmul.f32 %v1834_v31, %v799_v18  ;;  %v1838_v57 = vpop.eup %1837  ;;  %v926_v61 = vand.u32 2147483647, %v2584_v46  ;;  %vm804_vm12 = vmor %vm802_vm9, %vm803_vm10 }
 0x11b   :  { %v2620_v28 = vand.u32 2147483647, %v2609_v45  ;;  %v918_v15 = vmul.f32 %v1838_v57, %v2584_v46  ;;  %v928_v41 = vand.u32 2147483648, %v2584_v46  ;;  %v1307_v7 = vsub.f32 0.0, %v2565_v49 }
 0x11c   :  { %v1411_v34 = vmul.f32 %v1836_v1, %v1251_v37  ;;  %v1131_v17 = vmul.f32 %v1099_v29, %v2582_v54  ;;  %v801_v55 = vadd.f32 %v1834_v31, %v800_v30  ;;  %v2630_v43 = vmul.f32 0.70710677, %v2611_v52  ;;  %v278_v30 = vpop.f32.mrf.mxu3 }
 0x11d   :  { %v452_v53 = vmul.f32 0.3275911, %v2620_v28  ;;  %v1840_v59 = vpop.eup %1839  ;;  %v919_v13 = vsub.f32 1.0, %v918_v15  ;;  %vm923_vm13 = vweird.f32 %v1838_v57  ;;  %vm1475_vm14 = vcmp.ge.f32.partialorder %v2444_v47, 0.0 }
 0x11e   :  { %v1443_v26 = vsub.f32 1.0, %v1411_v34  ;;  %v1163_v27 = vadd.f32 -0.28449672, %v1131_v17  ;;  %v805_v8 = vsel %vm804_vm12, %v1834_v31, %v801_v55  ;;  %v2639_v2 = vand.u32 2147483647, %v2630_v43 }
 0x11f   :  { %v2634_v3 = vsel %vm2614_vm11, %v809_v42, %v805_v8  ;;  %v2636_v44 = vadd.f32 1.0, %v452_v53  ;;  %v920_v22 = vmul.f32 %v1838_v57, %v919_v13  ;;  %v1382_v62 = vmul.f32 1.442695, %v1331_v48 }
 0x120   :  { %v1507_v19 = vsub.f32 0.0, %v1443_v26  ;;  %v1195_v56 = vmul.f32 %v1163_v27, %v2582_v54  ;;  %v1011_v33 = vmul.f32 1.0614054, %v2634_v3  ;;  %vm922_vm15 = vweird.f32 %v2584_v46 }
 0x121   :  { %1841 = vrcp.f32 %v2636_v44  ;;  %v921_v21 = vadd.f32 %v1838_v57, %v920_v22  ;;  %vm924_vm1 = vmor %vm922_vm15, %vm923_vm13  ;;  %vm927_vm2 = vcmp.eq.f32.partialorder %v926_v61, 8.507059e+37  ;;  %v929_v9 = vor.u32 1.1754944e-38, %v928_v41 }
 0x122   :  { %v1539_v32 = vsel %vm1475_vm14, %v1443_v26, %v1507_v19  ;;  %v1227_v6 = vadd.f32 0.2548296, %v1195_v56  ;;  %v1043_v20 = vadd.f32 -1.4531521, %v1011_v33  ;;  %v1339_v11 = vmul.f32 %v1307_v7, %v2565_v49  ;;  %v308_v49 = vld [vmem:[%s3269_s3 + $0xa0] sm:$0xff] }
 0x123   :  { %v1571_v31 = vadd.f32 1.0, %v1539_v32  ;;  %v925_v51 = vsel %vm924_vm1, %v1838_v57, %v921_v21  ;;  %v460_v46 = vmul.f32 0.3275911, %v2639_v2  ;;  %v363_v5 = vmul.f32 0.5, %v2453_v12  ;;  %v316_v26 = vld [vmem:[%s3269_s3 + $0xe0] sm:$0xff] }
 0x124   :  { %v1259_v24 = vmul.f32 %v1227_v6, %v2582_v54  ;;  %v1075_v47 = vmul.f32 %v1043_v20, %v2634_v3  ;;  %v2652_v39 = vsel %vm927_vm2, %v929_v9, %v925_v51  ;;  %v259_v35 = vadd.f32 %v2498_v38, %v258_v36 }
 0x125   :  { %v1603_v14 = vmul.f32 %v1571_v31, %v355_v16  ;;  %v1019_v40 = vmul.f32 1.0614054, %v2652_v39  ;;  %v2656_v18 = vadd.f32 1.0, %v460_v46  ;;  %vm1483_vm3 = vcmp.ge.f32.partialorder %v2470_v63, 0.0 }
 0x126   :  { %v1419_v23 = vmul.f32 %v1840_v59, %v1259_v24  ;;  %v1107_v58 = vadd.f32 1.4214138, %v1075_v47  ;;  %1843 = vpow2.f32 %v1382_v62  ;;  %v1398_v12 = vmul.f32 1.442695, %v1339_v11 }
 0x127   :  { %v1842_v54 = vpop.eup %1841  ;;  %1635 = vst.msk [vmem:[%s3270_s4 + $0x18] sm:$0xff] %vm150_vm0, %v1603_v14  ;;  %v1284_v16 = vsub.f32 0.0, %v2620_v28  ;;  %v1051_v37 = vadd.f32 -1.4531521, %v1019_v40  ;;  %v581_v57 = vand.u32 2147483647, %v2636_v44  ;;  %1845 = vrcp.f32 %v2656_v18 }
 0x128   :  { %v1451_v48 = vsub.f32 1.0, %v1419_v23  ;;  %v1139_v1 = vmul.f32 %v1107_v58, %v2634_v3  ;;  %v573_v29 = vmul.f32 %v1842_v54, %v2636_v44  ;;  %v583_v60 = vand.u32 2147483648, %v2636_v44 }
 0x129   :  { %v2672_v42 = vadd.f32 %v308_v49, %v259_v35  ;;  %v1083_v17 = vmul.f32 %v1051_v37, %v2652_v39  ;;  %1847 = vpow2.f32 %v1398_v12  ;;  %vm577_vm4 = vweird.f32 %v2636_v44 }
 0x12a   :  { %v1515_v61 = vsub.f32 0.0, %v1451_v48  ;;  %v1171_v34 = vadd.f32 -0.28449672, %v1139_v1  ;;  %v574_v55 = vsub.f32 1.0, %v573_v29  ;;  %vm578_vm5 = vweird.f32 %v1842_v54 }
 0x12b   :  { %v279_v15 = vadd.f32 %v2498_v38, %v278_v30  ;;  %v1115_v53 = vadd.f32 1.4214138, %v1083_v17  ;;  %vm2683_vm6 = vcmp.eq.f32.partialorder %v581_v57, 8.507059e+37  ;;  %v1316_v19 = vmul.f32 %v1284_v16, %v2620_v28  ;;  %vm579_vm7 = vmor %vm577_vm4, %vm578_vm5  ;;  %v220_v57 = vpop.f32.mrf.mxu0 }
 0x12c   :  { %v1547_v41 = vsel %vm1483_vm3, %v1451_v48, %v1515_v61  ;;  %v1203_v7 = vmul.f32 %v1171_v34, %v2634_v3  ;;  %v575_v59 = vmul.f32 %v1842_v54, %v574_v55  ;;  %v1844_v27 = vpop.eup %1843  ;;  %v2689_v56 = vmul.f32 0.70710677, %v2672_v42 }
 0x12d   :  { %v1579_v8 = vadd.f32 1.0, %v1547_v41  ;;  %v1147_v33 = vmul.f32 %v1115_v53, %v2652_v39  ;;  %v584_v62 = vor.u32 1.1754944e-38, %v583_v60  ;;  %v1846_v32 = vpop.eup %1845  ;;  %v1292_v20 = vsub.f32 0.0, %v2639_v2 }
 0x12e   :  { %v1235_v63 = vadd.f32 0.2548296, %v1203_v7  ;;  %v576_v22 = vadd.f32 %v1842_v54, %v575_v59  ;;  %v2697_v21 = vand.u32 2147483647, %v2689_v56  ;;  %v2699_v28 = vadd.f32 %v316_v26, %v279_v15  ;;  %v293_v26 = vld [vmem:[%s3269_s3 + $0x28] sm:$0xff] }
 0x12f   :  { %v1611_v6 = vmul.f32 %v1579_v8, %v363_v5  ;;  %v1179_v31 = vadd.f32 -0.28449672, %v1147_v33  ;;  %v693_v11 = vmul.f32 %v1846_v32, %v2656_v18  ;;  %v1848_v24 = vpop.eup %1847  ;;  %vm697_vm8 = vweird.f32 %v2656_v18 }
 0x130   :  { %v1267_v36 = vmul.f32 %v1235_v63, %v2634_v3  ;;  %v580_v9 = vsel %vm579_vm7, %v1842_v54, %v576_v22  ;;  %v701_v47 = vand.u32 2147483647, %v2656_v18  ;;  %v468_v3 = vmul.f32 0.3275911, %v2697_v21 }
 0x131   :  { %1643 = vst.msk [vmem:[%s3270_s4 + $0x58] sm:$0xff] %vm150_vm0, %v1611_v6  ;;  %v2709_v44 = vsel %vm2683_vm6, %v584_v62, %v580_v9  ;;  %v1211_v46 = vmul.f32 %v1179_v31, %v2652_v39  ;;  %v694_v5 = vsub.f32 1.0, %v693_v11  ;;  %vm698_vm9 = vweird.f32 %v1846_v32 }
 0x132   :  { %v1427_v51 = vmul.f32 %v1844_v27, %v1267_v36  ;;  %v996_v14 = vmul.f32 1.0614054, %v2709_v44  ;;  %v703_v35 = vand.u32 2147483648, %v2656_v18  ;;  %v2717_v23 = vadd.f32 1.0, %v468_v3  ;;  %vm699_vm11 = vmor %vm697_vm8, %vm698_vm9 }
 0x133   :  { %v2720_v58 = vmul.f32 0.70710677, %v2699_v28  ;;  %v1243_v49 = vadd.f32 0.2548296, %v1211_v46  ;;  %v695_v12 = vmul.f32 %v1846_v32, %v694_v5  ;;  %v371_v16 = vmul.f32 0.5, %v2519_v50 }
 0x134   :  { %v1459_v40 = vsub.f32 1.0, %v1427_v51  ;;  %v1028_v54 = vadd.f32 -1.4531521, %v996_v14  ;;  %vm1491_vm10 = vcmp.ge.f32.partialorder %v2539_v4, 0.0  ;;  %v1352_v48 = vmul.f32 1.442695, %v1316_v19 }
 0x135   :  { %1849 = vrcp.f32 %v2717_v23  ;;  %v1275_v37 = vmul.f32 %v1243_v49, %v2652_v39  ;;  %v696_v30 = vadd.f32 %v1846_v32, %v695_v12  ;;  %vm702_vm12 = vcmp.eq.f32.partialorder %v701_v47, 8.507059e+37 }
 0x136   :  { %v1523_v1 = vsub.f32 0.0, %v1459_v40  ;;  %v1060_v29 = vmul.f32 %v1028_v54, %v2709_v44  ;;  %v704_v60 = vor.u32 1.1754944e-38, %v703_v35  ;;  %v1324_v50 = vmul.f32 %v1292_v20, %v2639_v2  ;;  %v240_v54 = vpop.f32.mrf.mxu1 }
 0x137   :  { %v2732_v4 = vand.u32 2147483647, %v2720_v58  ;;  %v1435_v34 = vmul.f32 %v1848_v24, %v1275_v37  ;;  %v700_v55 = vsel %vm699_vm11, %v1846_v32, %v696_v30  ;;  %v221_v7 = vadd.f32 %v2498_v38, %v220_v57 }
 0x138   :  { %v1555_v61 = vsel %vm1491_vm10, %v1459_v40, %v1523_v1  ;;  %v1092_v17 = vadd.f32 1.4214138, %v1060_v29  ;;  %v2734_v15 = vsel %vm702_vm12, %v704_v60, %v700_v55  ;;  %v379_v18 = vmul.f32 0.5, %v2541_v0  ;;  %v301_v55 = vld [vmem:[%s3269_s3 + $0x68] sm:$0xff] }
 0x139   :  { %v1587_v39 = vadd.f32 1.0, %v1555_v61  ;;  %v476_v41 = vmul.f32 0.3275911, %v2732_v4  ;;  %v1467_v53 = vsub.f32 1.0, %v1435_v34  ;;  %v1004_v2 = vmul.f32 1.0614054, %v2734_v15 }
 0x13a   :  { %v1124_v59 = vmul.f32 %v1092_v17, %v2709_v44  ;;  %vm1499_vm13 = vcmp.ge.f32.partialorder %v2556_v25, 0.0  ;;  %1851 = vpow2.f32 %v1352_v48  ;;  %v2753_v22 = vmul.f32 0.5, %v2589_v10 }
 0x13b   :  { %v1850_v27 = vpop.eup %1849  ;;  %v1619_v8 = vmul.f32 %v1587_v39, %v371_v16  ;;  %v2745_v13 = vadd.f32 1.0, %v476_v41  ;;  %v1531_v19 = vsub.f32 0.0, %v1467_v53  ;;  %v1036_v33 = vadd.f32 -1.4531521, %v1004_v2 }
 0x13c   :  { %v1156_v63 = vadd.f32 -0.28449672, %v1124_v59  ;;  %v813_v0 = vmul.f32 %v1850_v27, %v2717_v23  ;;  %v1368_v62 = vmul.f32 1.442695, %v1324_v50  ;;  %v2756_v25 = vadd.f32 %v293_v26, %v221_v7 }
 0x13d   :  { %1651 = vst.msk [vmem:[%s3270_s4 + $0x98] sm:$0xff] %vm150_vm0, %v1619_v8  ;;  %1853 = vrcp.f32 %v2745_v13  ;;  %v1563_v32 = vsel %vm1499_vm13, %v1467_v53, %v1531_v19  ;;  %v1068_v20 = vmul.f32 %v1036_v33, %v2734_v15  ;;  %v821_v9 = vand.u32 2147483647, %v2717_v23 }
 0x13e   :  { %v1188_v6 = vmul.f32 %v1156_v63, %v2709_v44  ;;  %v814_v36 = vsub.f32 1.0, %v813_v0  ;;  %v1595_v31 = vadd.f32 1.0, %v1563_v32  ;;  %v823_v11 = vand.u32 2147483648, %v2717_v23 }
 0x13f   :  { %v1300_v24 = vsub.f32 0.0, %v2697_v21  ;;  %v1100_v47 = vadd.f32 1.4214138, %v1068_v20  ;;  %vm818_vm14 = vweird.f32 %v1850_v27  ;;  %vm1476_vm15 = vcmp.ge.f32.partialorder %v2609_v45, 0.0 }
 0x140   :  { %v1220_v10 = vadd.f32 0.2548296, %v1188_v6  ;;  %v815_v3 = vmul.f32 %v1850_v27, %v814_v36  ;;  %v1852_v51 = vpop.eup %1851  ;;  %v1627_v46 = vmul.f32 %v1595_v31, %v379_v18  ;;  %v2765_v14 = vmul.f32 0.5, %v2611_v52 }
 0x141   :  { %1855 = vpow2.f32 %v1368_v62  ;;  %v2768_v5 = vmul.f32 0.70710677, %v2756_v25  ;;  %v1132_v40 = vmul.f32 %v1100_v47, %v2734_v15  ;;  %vm817_vm1 = vweird.f32 %v2717_v23  ;;  %v260_v23 = vpop.f32.mrf.mxu2 }
 0x142   :  { %v1252_v35 = vmul.f32 %v1220_v10, %v2709_v44  ;;  %v816_v49 = vadd.f32 %v1850_v27, %v815_v3  ;;  %1659 = vst.msk [vmem:[%s3270_s4 + $0xd8] sm:$0xff] %vm150_vm0, %v1627_v46  ;;  %vm819_vm2 = vmor %vm817_vm1, %vm818_vm14  ;;  %vm822_vm3 = vcmp.eq.f32.partialorder %v821_v9, 8.507059e+37  ;;  %v824_v52 = vor.u32 1.1754944e-38, %v823_v11 }
 0x143   :  { %v1854_v12 = vpop.eup %1853  ;;  %v1332_v16 = vmul.f32 %v1300_v24, %v2697_v21  ;;  %v421_v48 = vand.u32 2147483647, %v2768_v5  ;;  %v1164_v1 = vadd.f32 -0.28449672, %v1132_v40  ;;  %v941_v57 = vand.u32 2147483647, %v2745_v13 }
 0x144   :  { %v1412_v44 = vmul.f32 %v1852_v51, %v1252_v35  ;;  %v820_v37 = vsel %vm819_vm2, %v1850_v27, %v816_v49  ;;  %v933_v29 = vmul.f32 %v1854_v12, %v2745_v13  ;;  %v241_v50 = vadd.f32 %v2498_v38, %v240_v54  ;;  %v309_v27 = vld [vmem:[%s3269_s3 + $0xa8] sm:$0xff] }
 0x145   :  { %v2780_v30 = vsel %vm822_vm3, %v824_v52, %v820_v37  ;;  %v453_v60 = vmul.f32 0.3275911, %v421_v48  ;;  %v1196_v34 = vmul.f32 %v1164_v1, %v2734_v15  ;;  %vm938_vm4 = vweird.f32 %v1854_v12 }
 0x146   :  { %v1444_v61 = vsub.f32 1.0, %v1412_v44  ;;  %v1012_v21 = vmul.f32 1.0614054, %v2780_v30  ;;  %v934_v17 = vsub.f32 1.0, %v933_v29  ;;  %v943_v41 = vand.u32 2147483648, %v2745_v13 }
 0x147   :  { %v1856_v39 = vpop.eup %1855  ;;  %v2790_v7 = vadd.f32 1.0, %v453_v60  ;;  %v261_v18 = vadd.f32 %v2498_v38, %v260_v23  ;;  %v1228_v59 = vadd.f32 0.2548296, %v1196_v34  ;;  %v1384_v8 = vmul.f32 1.442695, %v1332_v16 }
 0x148   :  { %v1508_v53 = vsub.f32 0.0, %v1444_v61  ;;  %v1044_v2 = vadd.f32 -1.4531521, %v1012_v21  ;;  %v935_v26 = vmul.f32 %v1854_v12, %v934_v17  ;;  %vm937_vm5 = vweird.f32 %v2745_v13 }
 0x149   :  { %1857 = vrcp.f32 %v2790_v7  ;;  %v2798_v19 = vadd.f32 %v301_v55, %v241_v50  ;;  %v1260_v33 = vmul.f32 %v1228_v59, %v2734_v15  ;;  %vm939_vm6 = vmor %vm937_vm5, %vm938_vm4  ;;  %v944_v6 = vor.u32 1.1754944e-38, %v943_v41  ;;  %v280_v59 = vpop.f32.mrf.mxu3 }
 0x14a   :  { %v1540_v63 = vsel %vm1476_vm15, %v1444_v61, %v1508_v53  ;;  %v1076_v0 = vmul.f32 %v1044_v2, %v2780_v30  ;;  %v936_v62 = vadd.f32 %v1854_v12, %v935_v26  ;;  %v1308_v20 = vsub.f32 0.0, %v2732_v4 }
 0x14b   :  { %v1572_v32 = vadd.f32 1.0, %v1540_v63  ;;  %v2806_v36 = vadd.f32 %v309_v27, %v261_v18  ;;  %v1420_v13 = vmul.f32 %v1856_v39, %v1260_v33  ;;  %vm942_vm7 = vcmp.eq.f32.partialorder %v941_v57, 8.507059e+37 }
 0x14c   :  { %v1108_v31 = vadd.f32 1.4214138, %v1076_v0  ;;  %v940_v9 = vsel %vm939_vm6, %v1854_v12, %v936_v62  ;;  %v1285_v15 = vsub.f32 0.0, %v421_v48  ;;  %v2812_v24 = vmul.f32 0.70710677, %v2798_v19 }
 0x14d   :  { %v1604_v45 = vmul.f32 %v1572_v32, %v2753_v22  ;;  %v2809_v11 = vsel %vm942_vm7, %v944_v6, %v940_v9  ;;  %v1452_v10 = vsub.f32 1.0, %v1420_v13  ;;  %vm1484_vm8 = vcmp.ge.f32.partialorder %v2630_v43, 0.0  ;;  %v317_v32 = vld [vmem:[%s3269_s3 + $0xe8] sm:$0xff] }
 0x14e   :  { %v1140_v47 = vmul.f32 %v1108_v31, %v2780_v30  ;;  %v1020_v3 = vmul.f32 1.0614054, %v2809_v11  ;;  %1859 = vpow2.f32 %v1384_v8  ;;  %v1340_v22 = vmul.f32 %v1308_v20, %v2732_v4 }
 0x14f   :  { %v1858_v51 = vpop.eup %1857  ;;  %1636 = vst.msk [vmem:[%s3270_s4 + $0x20] sm:$0xff] %vm150_vm0, %v1604_v45  ;;  %v2823_v46 = vand.u32 2147483647, %v2812_v24  ;;  %v2826_v35 = vmul.f32 0.70710677, %v2806_v36  ;;  %v1516_v40 = vsub.f32 0.0, %v1452_v10  ;;  %v1317_v16 = vmul.f32 %v1285_v15, %v421_v48 }
 0x150   :  { %v1172_v49 = vadd.f32 -0.28449672, %v1140_v47  ;;  %v1052_v54 = vadd.f32 -1.4531521, %v1020_v3  ;;  %v588_v12 = vmul.f32 %v1858_v51, %v2790_v7  ;;  %v596_v52 = vand.u32 2147483647, %v2790_v7 }
 0x151   :  { %v461_v44 = vmul.f32 0.3275911, %v2823_v46  ;;  %v2832_v1 = vand.u32 2147483647, %v2826_v35  ;;  %v1548_v4 = vsel %vm1484_vm8, %v1452_v10, %v1516_v40  ;;  %v598_v60 = vand.u32 2147483648, %v2790_v7 }
 0x152   :  { %v1204_v37 = vmul.f32 %v1172_v49, %v2780_v30  ;;  %v1084_v29 = vmul.f32 %v1052_v54, %v2809_v11  ;;  %v589_v23 = vsub.f32 1.0, %v588_v12  ;;  %v1580_v57 = vadd.f32 1.0, %v1548_v4 }
 0x153   :  { %v2839_v50 = vadd.f32 1.0, %v461_v44  ;;  %v469_v48 = vmul.f32 0.3275911, %v2832_v1  ;;  %vm593_vm9 = vweird.f32 %v1858_v51  ;;  %v372_v55 = vmul.f32 0.5, %v2672_v42 }
 0x154   :  { %v1236_v61 = vadd.f32 0.2548296, %v1204_v37  ;;  %v1116_v34 = vadd.f32 1.4214138, %v1084_v29  ;;  %v590_v21 = vmul.f32 %v1858_v51, %v589_v23  ;;  %v1860_v17 = vpop.eup %1859  ;;  %v1612_v43 = vmul.f32 %v1580_v57, %v2765_v14 }
 0x155   :  { %v1400_v39 = vmul.f32 1.442695, %v1340_v22  ;;  %1861 = vrcp.f32 %v2839_v50  ;;  %vm592_vm10 = vweird.f32 %v2790_v7  ;;  %vm1492_vm11 = vcmp.ge.f32.partialorder %v2689_v56, 0.0 }
 0x156   :  { %v1268_v41 = vmul.f32 %v1236_v61, %v2780_v30  ;;  %v1148_v18 = vmul.f32 %v1116_v34, %v2809_v11  ;;  %v591_v53 = vadd.f32 %v1858_v51, %v590_v21  ;;  %1644 = vst.msk [vmem:[%s3270_s4 + $0x60] sm:$0xff] %vm150_vm0, %v1612_v43  ;;  %vm594_vm12 = vmor %vm592_vm10, %vm593_vm9  ;;  %v599_v42 = vor.u32 1.1754944e-38, %v598_v60  ;;  %v243_v61 = vpop.f32.mrf.mxu1 }
 0x157   :  { %v1354_v14 = vmul.f32 1.442695, %v1317_v16  ;;  %v2853_v2 = vadd.f32 1.0, %v469_v48  ;;  %vm597_vm13 = vcmp.eq.f32.partialorder %v596_v52, 8.507059e+37  ;;  %1863 = vpow2.f32 %v1400_v39 }
 0x158   :  { %v1428_v26 = vmul.f32 %v1860_v17, %v1268_v41  ;;  %v1180_v30 = vadd.f32 -0.28449672, %v1148_v18  ;;  %v595_v27 = vsel %vm594_vm12, %v1858_v51, %v591_v53  ;;  %v1293_v7 = vsub.f32 0.0, %v2823_v46 }
 0x159   :  { %v2855_v8 = vsel %vm597_vm13, %v599_v42, %v595_v27  ;;  %v281_v63 = vadd.f32 %v2498_v38, %v280_v59  ;;  %1865 = vrcp.f32 %v2853_v2  ;;  %v2866_v20 = vmul.f32 0.5, %v2699_v28  ;;  %v294_v42 = vld [vmem:[%s3269_s3 + $0x30] sm:$0xff] }
 0x15a   :  { %v1460_v33 = vsub.f32 1.0, %v1428_v26  ;;  %v1212_v0 = vmul.f32 %v1180_v30, %v2809_v11  ;;  %v997_v62 = vmul.f32 1.0614054, %v2855_v8  ;;  %1867 = vpow2.f32 %v1354_v14  ;;  %v302_v27 = vld [vmem:[%s3269_s3 + $0x70] sm:$0xff] }
 0x15b   :  { %v1862_v6 = vpop.eup %1861  ;;  %v716_v13 = vand.u32 2147483647, %v2839_v50  ;;  %v1301_v31 = vsub.f32 0.0, %v2832_v1  ;;  %vm1500_vm14 = vcmp.ge.f32.partialorder %v2720_v58, 0.0  ;;  %vm712_vm15 = vweird.f32 %v2839_v50 }
 0x15c   :  { %v1524_v9 = vsub.f32 0.0, %v1460_v33  ;;  %v1244_v45 = vadd.f32 0.2548296, %v1212_v0  ;;  %v1029_v15 = vadd.f32 -1.4531521, %v997_v62  ;;  %v708_v10 = vmul.f32 %v1862_v6, %v2839_v50 }
 0x15d   :  { %v718_v47 = vand.u32 2147483648, %v2839_v50  ;;  %v1325_v3 = vmul.f32 %v1293_v7, %v2823_v46  ;;  %v2875_v28 = vadd.f32 %v317_v32, %v281_v63  ;;  %v1864_v54 = vpop.eup %1863  ;;  %vm2881_vm1 = vcmp.eq.f32.partialorder %v716_v13, 8.507059e+37 }
 0x15e   :  { %v1556_v51 = vsel %vm1492_vm11, %v1460_v33, %v1524_v9  ;;  %v1276_v22 = vmul.f32 %v1244_v45, %v2809_v11  ;;  %v1061_v40 = vmul.f32 %v1029_v15, %v2855_v8  ;;  %v709_v49 = vsub.f32 1.0, %v708_v10  ;;  %v223_v11 = vpop.f32.mrf.mxu0 }
 0x15f   :  { %v1588_v12 = vadd.f32 1.0, %v1556_v51  ;;  %v1333_v16 = vmul.f32 %v1301_v31, %v2832_v1  ;;  %v2887_v46 = vmul.f32 0.70710677, %v2875_v28  ;;  %v1866_v44 = vpop.eup %1865  ;;  %vm713_vm2 = vweird.f32 %v1862_v6 }
 0x160   :  { %v1436_v4 = vmul.f32 %v1864_v54, %v1276_v22  ;;  %v1093_v56 = vadd.f32 1.4214138, %v1061_v40  ;;  %v710_v37 = vmul.f32 %v1862_v6, %v709_v49  ;;  %v1868_v29 = vpop.eup %1867  ;;  %v719_v57 = vor.u32 1.1754944e-38, %v718_v47  ;;  %vm714_vm3 = vmor %vm712_vm15, %vm713_vm2 }
 0x161   :  { %v1620_v23 = vmul.f32 %v1588_v12, %v372_v55  ;;  %v828_v60 = vmul.f32 %v1866_v44, %v2853_v2  ;;  %v445_v48 = vand.u32 2147483647, %v2887_v46  ;;  %v836_v17 = vand.u32 2147483647, %v2853_v2 }
 0x162   :  { %v1468_v34 = vsub.f32 1.0, %v1436_v4  ;;  %v1125_v1 = vmul.f32 %v1093_v56, %v2855_v8  ;;  %v711_v21 = vadd.f32 %v1862_v6, %v710_v37  ;;  %v838_v55 = vand.u32 2147483648, %v2853_v2 }
 0x163   :  { %1652 = vst.msk [vmem:[%s3270_s4 + $0xa0] sm:$0xff] %vm150_vm0, %v1620_v23  ;;  %v829_v43 = vsub.f32 1.0, %v828_v60  ;;  %v477_v39 = vmul.f32 0.3275911, %v445_v48  ;;  %v224_v41 = vadd.f32 %v2498_v38, %v223_v11  ;;  %v244_v14 = vadd.f32 %v2498_v38, %v243_v61 }
 0x164   :  { %v1532_v18 = vsub.f32 0.0, %v1468_v34  ;;  %v1157_v53 = vadd.f32 -0.28449672, %v1125_v1  ;;  %v715_v59 = vsel %vm714_vm3, %v1862_v6, %v711_v21  ;;  %vm833_vm4 = vweird.f32 %v1866_v44 }
 0x165   :  { %v2907_v26 = vsel %vm2881_vm1, %v719_v57, %v715_v59  ;;  %v830_v50 = vmul.f32 %v1866_v44, %v829_v43  ;;  %v2909_v30 = vadd.f32 1.0, %v477_v39  ;;  %vm832_vm5 = vweird.f32 %v2853_v2 }
 0x166   :  { %v1564_v7 = vsel %vm1500_vm14, %v1468_v34, %v1532_v18  ;;  %v1189_v63 = vmul.f32 %v1157_v53, %v2855_v8  ;;  %v1005_v33 = vmul.f32 1.0614054, %v2907_v26  ;;  %v2920_v62 = vadd.f32 %v294_v42, %v224_v41  ;;  %vm834_vm6 = vmor %vm832_vm5, %vm833_vm4 }
 0x167   :  { %v1596_v38 = vadd.f32 1.0, %v1564_v7  ;;  %v831_v0 = vadd.f32 %v1866_v44, %v830_v50  ;;  %1869 = vrcp.f32 %v2909_v30  ;;  %v839_v13 = vor.u32 1.1754944e-38, %v838_v55 }
 0x168   :  { %v1221_v32 = vadd.f32 0.2548296, %v1189_v63  ;;  %v1037_v6 = vadd.f32 -1.4531521, %v1005_v33  ;;  %v2922_v31 = vadd.f32 %v302_v27, %v244_v14  ;;  %v1370_v9 = vmul.f32 1.442695, %v1325_v3 }
 0x169   :  { %v1628_v58 = vmul.f32 %v1596_v38, %v2866_v20  ;;  %v835_v45 = vsel %vm834_vm6, %v1866_v44, %v831_v0  ;;  %vm837_vm7 = vcmp.eq.f32.partialorder %v836_v17, 8.507059e+37  ;;  %v1386_v47 = vmul.f32 1.442695, %v1333_v16  ;;  %v263_v17 = vpop.f32.mrf.mxu2  ;;  %v310_v33 = vld [vmem:[%s3269_s3 + $0xb0] sm:$0xff] }
 0x16a   :  { %v1253_v15 = vmul.f32 %v1221_v32, %v2855_v8  ;;  %v1069_v2 = vmul.f32 %v1037_v6, %v2907_v26  ;;  %v2927_v10 = vsel %vm837_vm7, %v839_v13, %v835_v45  ;;  %v1309_v22 = vsub.f32 0.0, %v445_v48 }
 0x16b   :  { %1660 = vst.msk [vmem:[%s3270_s4 + $0xe0] sm:$0xff] %vm150_vm0, %v1628_v58  ;;  %v1013_v51 = vmul.f32 1.0614054, %v2927_v10  ;;  %v2935_v20 = vmul.f32 0.70710677, %v2920_v62  ;;  %v357_v3 = vmul.f32 0.5, %v2756_v25  ;;  %1871 = vpow2.f32 %v1370_v9 }
 0x16c   :  { %v1413_v40 = vmul.f32 %v1868_v29, %v1253_v15  ;;  %v1101_v8 = vadd.f32 1.4214138, %v1069_v2  ;;  %v2939_v49 = vmul.f32 0.70710677, %v2922_v31  ;;  %vm1477_vm8 = vcmp.ge.f32.partialorder %v2768_v5, 0.0 }
 0x16d   :  { %v1870_v54 = vpop.eup %1869  ;;  %v1045_v12 = vadd.f32 -1.4531521, %v1013_v51  ;;  %v2943_v52 = vand.u32 2147483647, %v2935_v20  ;;  %1873 = vpow2.f32 %v1386_v47  ;;  %v1341_v56 = vmul.f32 %v1309_v22, %v445_v48  ;;  %v2969_v5 = vld [vmem:[%s3268_s2] ss:$0 sm:$0xff] }
 0x16e   :  { %v1445_v16 = vsub.f32 1.0, %v1413_v40  ;;  %v1133_v44 = vmul.f32 %v1101_v8, %v2907_v26  ;;  %v948_v4 = vmul.f32 %v1870_v54, %v2909_v30  ;;  %v2950_v11 = vand.u32 2147483647, %v2939_v49 }
 0x16f   :  { %v1077_v25 = vmul.f32 %v1045_v12, %v2927_v10  ;;  %v454_v37 = vmul.f32 0.3275911, %v2943_v52  ;;  %v956_v60 = vand.u32 2147483647, %v2909_v30  ;;  %v958_v34 = vand.u32 2147483648, %v2909_v30 }
 0x170   :  { %v1509_v29 = vsub.f32 0.0, %v1445_v16  ;;  %v1165_v23 = vadd.f32 -0.28449672, %v1133_v44  ;;  %v949_v57 = vsub.f32 1.0, %v948_v4  ;;  %v462_v21 = vmul.f32 0.3275911, %v2950_v11 }
 0x171   :  { %v1109_v61 = vadd.f32 1.4214138, %v1077_v25  ;;  %v2954_v1 = vadd.f32 1.0, %v454_v37  ;;  %vm953_vm9 = vweird.f32 %v1870_v54  ;;  %v1872_v39 = vpop.eup %1871  ;;  %v2961_v18 = vmul.f32 0.5, %v2798_v19 }
 0x172   :  { %v1541_v48 = vsel %vm1477_vm8, %v1445_v16, %v1509_v29  ;;  %v1197_v43 = vmul.f32 %v1165_v23, %v2907_v26  ;;  %v950_v55 = vmul.f32 %v1870_v54, %v949_v57  ;;  %vm952_vm10 = vweird.f32 %v2909_v30 }
 0x173   :  { %v1573_v41 = vadd.f32 1.0, %v1541_v48  ;;  %v1141_v53 = vmul.f32 %v1109_v61, %v2927_v10  ;;  %1875 = vrcp.f32 %v2954_v1  ;;  %v1874_v59 = vpop.eup %1873  ;;  %v264_v50 = vadd.f32 %v2969_v5, %v263_v17  ;;  %vm954_vm11 = vmor %vm952_vm10, %vm953_vm9 }
 0x174   :  { %v1229_v42 = vadd.f32 0.2548296, %v1197_v43  ;;  %v951_v14 = vadd.f32 %v1870_v54, %v950_v55  ;;  %v959_v19 = vor.u32 1.1754944e-38, %v958_v34  ;;  %v2972_v63 = vadd.f32 1.0, %v462_v21 }
 0x175   :  { %v1605_v27 = vmul.f32 %v1573_v41, %v357_v3  ;;  %v1173_v7 = vadd.f32 -0.28449672, %v1141_v53  ;;  %vm957_vm12 = vcmp.eq.f32.partialorder %v956_v60, 8.507059e+37  ;;  %v1402_v0 = vmul.f32 1.442695, %v1341_v56  ;;  %v283_v60 = vpop.f32.mrf.mxu3 }
 0x176   :  { %v1261_v38 = vmul.f32 %v1229_v42, %v2907_v26  ;;  %v955_v30 = vsel %vm954_vm11, %v1870_v54, %v951_v14  ;;  %v2983_v32 = vmul.f32 0.5, %v2806_v36  ;;  %v1286_v58 = vsub.f32 0.0, %v2943_v52 }
 0x177   :  { %1637 = vst.msk [vmem:[%s3270_s4 + $0x28] sm:$0xff] %vm150_vm0, %v1605_v27  ;;  %v1205_v6 = vmul.f32 %v1173_v7, %v2927_v10  ;;  %v2986_v13 = vsel %vm957_vm12, %v959_v19, %v955_v30  ;;  %1877 = vrcp.f32 %v2972_v63  ;;  %v2991_v45 = vadd.f32 %v310_v33, %v264_v50  ;;  %v318_v7 = vld [vmem:[%s3269_s3 + $0xf0] sm:$0xff]  ;;  %v225_v33 = vpop.f32.mrf.mxu0 }
 0x178   :  { %v1421_v9 = vmul.f32 %v1872_v39, %v1261_v38  ;;  %v1021_v26 = vmul.f32 1.0614054, %v2986_v13  ;;  %vm1485_vm13 = vcmp.ge.f32.partialorder %v2812_v24, 0.0  ;;  %v611_v36 = vand.u32 2147483647, %v2954_v1 }
 0x179   :  { %v1876_v15 = vpop.eup %1875  ;;  %v1237_v2 = vadd.f32 0.2548296, %v1205_v6  ;;  %v613_v47 = vand.u32 2147483648, %v2954_v1  ;;  %vm1493_vm14 = vcmp.ge.f32.partialorder %v2826_v35, 0.0  ;;  %1879 = vpow2.f32 %v1402_v0 }
 0x17a   :  { %v1453_v51 = vsub.f32 1.0, %v1421_v9  ;;  %v1053_v22 = vadd.f32 -1.4531521, %v1021_v26  ;;  %v603_v3 = vmul.f32 %v1876_v15, %v2954_v1  ;;  %vm607_vm15 = vweird.f32 %v2954_v1 }
 0x17b   :  { %v1269_v40 = vmul.f32 %v1237_v2, %v2927_v10  ;;  %v1318_v8 = vmul.f32 %v1286_v58, %v2943_v52  ;;  %v1294_v54 = vsub.f32 0.0, %v2950_v11  ;;  %v3004_v4 = vmul.f32 0.70710677, %v2991_v45 }
 0x17c   :  { %v1517_v12 = vsub.f32 0.0, %v1453_v51  ;;  %v1085_v16 = vmul.f32 %v1053_v22, %v2986_v13  ;;  %v604_v44 = vsub.f32 1.0, %v603_v3  ;;  %vm608_vm1 = vweird.f32 %v1876_v15  ;;  %v295_v22 = vld [vmem:[%s3269_s3 + $0x38] sm:$0xff] }
 0x17d   :  { %v1429_v25 = vmul.f32 %v1874_v59, %v1269_v40  ;;  %vm3006_vm2 = vcmp.eq.f32.partialorder %v611_v36, 8.507059e+37  ;;  %v614_v10 = vor.u32 1.1754944e-38, %v613_v47  ;;  %v1878_v37 = vpop.eup %1877  ;;  %v3013_v57 = vand.u32 2147483647, %v3004_v4  ;;  %vm609_vm4 = vmor %vm607_vm15, %vm608_vm1 }
 0x17e   :  { %v1549_v52 = vsel %vm1485_vm13, %v1453_v51, %v1517_v12  ;;  %v1117_v29 = vadd.f32 1.4214138, %v1085_v16  ;;  %v605_v23 = vmul.f32 %v1876_v15, %v604_v44  ;;  %v723_v21 = vmul.f32 %v1878_v37, %v2972_v63 }
 0x17f   :  { %v1581_v61 = vadd.f32 1.0, %v1549_v52  ;;  %v1461_v34 = vsub.f32 1.0, %v1429_v25  ;;  %vm727_vm3 = vweird.f32 %v2972_v63  ;;  %v1880_v17 = vpop.eup %1879  ;;  %v733_v55 = vand.u32 2147483648, %v2972_v63 }
 0x180   :  { %v1149_v48 = vmul.f32 %v1117_v29, %v2986_v13  ;;  %v606_v43 = vadd.f32 %v1876_v15, %v605_v23  ;;  %v470_v24 = vmul.f32 0.3275911, %v3013_v57  ;;  %v724_v53 = vsub.f32 1.0, %v723_v21 }
 0x181   :  { %v1613_v39 = vmul.f32 %v1581_v61, %v2961_v18  ;;  %v1525_v41 = vsub.f32 0.0, %v1461_v34  ;;  %v284_v59 = vadd.f32 %v2969_v5, %v283_v60  ;;  %v731_v50 = vand.u32 2147483647, %v2972_v63 }
 0x182   :  { %v1181_v42 = vadd.f32 -0.28449672, %v1149_v48  ;;  %v610_v14 = vsel %vm609_vm4, %v1876_v15, %v606_v43  ;;  %v3026_v27 = vadd.f32 1.0, %v470_v24  ;;  %v725_v19 = vmul.f32 %v1878_v37, %v724_v53 }
 0x183   :  { %1645 = vst.msk [vmem:[%s3270_s4 + $0x68] sm:$0xff] %vm150_vm0, %v1613_v39  ;;  %v1557_v1 = vsel %vm1493_vm14, %v1461_v34, %v1525_v41  ;;  %v3039_v18 = vsel %vm3006_vm2, %v614_v10, %v610_v14  ;;  %vm728_vm5 = vweird.f32 %v1878_v37  ;;  %v1356_v6 = vmul.f32 1.442695, %v1318_v8 }
 0x184   :  { %v1589_v38 = vadd.f32 1.0, %v1557_v1  ;;  %v1213_v30 = vmul.f32 %v1181_v42, %v2986_v13  ;;  %v998_v0 = vmul.f32 1.0614054, %v3039_v18  ;;  %1881 = vrcp.f32 %v3026_v27  ;;  %vm729_vm6 = vmor %vm727_vm3, %vm728_vm5 }
 0x185   :  { %v726_v58 = vadd.f32 %v1878_v37, %v725_v19  ;;  %v734_v9 = vor.u32 1.1754944e-38, %v733_v55  ;;  %v3044_v26 = vadd.f32 %v318_v7, %v284_v59  ;;  %v226_v36 = vadd.f32 %v2969_v5, %v225_v33 }
 0x186   :  { %v1621_v35 = vmul.f32 %v1589_v38, %v2983_v32  ;;  %v1245_v15 = vadd.f32 0.2548296, %v1213_v30  ;;  %v1030_v2 = vadd.f32 -1.4531521, %v998_v0  ;;  %vm732_vm7 = vcmp.eq.f32.partialorder %v731_v50, 8.507059e+37 }
 0x187   :  { %v730_v47 = vsel %vm729_vm6, %v1878_v37, %v726_v58  ;;  %v1326_v51 = vmul.f32 %v1294_v54, %v2950_v11  ;;  %v1302_v40 = vsub.f32 0.0, %v3013_v57  ;;  %v381_v8 = vmul.f32 0.5, %v2875_v28  ;;  %v245_v28 = vpop.f32.mrf.mxu1 }
 0x188   :  { %1653 = vst.msk [vmem:[%s3270_s4 + $0xa8] sm:$0xff] %vm150_vm0, %v1621_v35  ;;  %v1277_v32 = vmul.f32 %v1245_v15, %v2986_v13  ;;  %v1062_v63 = vmul.f32 %v1030_v2, %v3039_v18  ;;  %v3060_v3 = vsel %vm732_vm7, %v734_v9, %v730_v47  ;;  %vm1501_vm8 = vcmp.ge.f32.partialorder %v2887_v46, 0.0 }
 0x189   :  { %v1006_v11 = vmul.f32 1.0614054, %v3060_v3  ;;  %v3067_v54 = vmul.f32 0.70710677, %v3044_v26  ;;  %1883 = vpow2.f32 %v1356_v6  ;;  %v3069_v13 = vadd.f32 %v295_v22, %v226_v36 }
 0x18a   :  { %v1882_v12 = vpop.eup %1881  ;;  %v1437_v16 = vmul.f32 %v1880_v17, %v1277_v32  ;;  %v1094_v44 = vadd.f32 1.4214138, %v1062_v63  ;;  %v1372_v56 = vmul.f32 1.442695, %v1326_v51  ;;  %v851_v23 = vand.u32 2147483647, %v3026_v27 }
 0x18b   :  { %v1038_v25 = vadd.f32 -1.4531521, %v1006_v11  ;;  %v843_v10 = vmul.f32 %v1882_v12, %v3026_v27  ;;  %v3073_v37 = vand.u32 2147483647, %v3067_v54  ;;  %v1334_v60 = vmul.f32 %v1302_v40, %v3013_v57  ;;  %v303_v57 = vld [vmem:[%s3269_s3 + $0x78] sm:$0xff] }
 0x18c   :  { %v1469_v52 = vsub.f32 1.0, %v1437_v16  ;;  %v1126_v29 = vmul.f32 %v1094_v44, %v3039_v18  ;;  %v853_v21 = vand.u32 2147483648, %v3026_v27  ;;  %v3082_v55 = vmul.f32 0.70710677, %v3069_v13 }
 0x18d   :  { %v1070_v61 = vmul.f32 %v1038_v25, %v3060_v3  ;;  %v844_v34 = vsub.f32 1.0, %v843_v10  ;;  %v478_v17 = vmul.f32 0.3275911, %v3073_v37  ;;  %v246_v24 = vadd.f32 %v2969_v5, %v245_v28 }
 0x18e   :  { %v1533_v48 = vsub.f32 0.0, %v1469_v52  ;;  %v1158_v43 = vadd.f32 -0.28449672, %v1126_v29  ;;  %vm848_vm9 = vweird.f32 %v1882_v12  ;;  %vm847_vm10 = vweird.f32 %v3026_v27  ;;  %v285_v29 = vpop.f32.mrf.mxu3 }
 0x18f   :  { %v1102_v39 = vadd.f32 1.4214138, %v1070_v61  ;;  %v845_v41 = vmul.f32 %v1882_v12, %v844_v34  ;;  %v3085_v53 = vadd.f32 1.0, %v478_v17  ;;  %v1884_v59 = vpop.eup %1883  ;;  %v3095_v50 = vand.u32 2147483647, %v3082_v55  ;;  %vm849_vm11 = vmor %vm847_vm10, %vm848_vm9 }
 0x190   :  { %v1565_v42 = vsel %vm1501_vm8, %v1469_v52, %v1533_v48  ;;  %v1190_v14 = vmul.f32 %v1158_v43, %v3039_v18  ;;  %v854_v38 = vor.u32 1.1754944e-38, %v853_v21  ;;  %v3099_v30 = vadd.f32 %v303_v57, %v246_v24 }
 0x191   :  { %v1597_v7 = vadd.f32 1.0, %v1565_v42  ;;  %v1134_v1 = vmul.f32 %v1102_v39, %v3060_v3  ;;  %v846_v19 = vadd.f32 %v1882_v12, %v845_v41  ;;  %1885 = vrcp.f32 %v3085_v53 }
 0x192   :  { %v1222_v33 = vadd.f32 0.2548296, %v1190_v14  ;;  %vm852_vm12 = vcmp.eq.f32.partialorder %v851_v23, 8.507059e+37  ;;  %1887 = vpow2.f32 %v1372_v56  ;;  %v1388_v9 = vmul.f32 1.442695, %v1334_v60 }
 0x193   :  { %v1629_v46 = vmul.f32 %v1597_v7, %v381_v8  ;;  %v1166_v0 = vadd.f32 -0.28449672, %v1134_v1  ;;  %v850_v6 = vsel %vm849_vm11, %v1882_v12, %v846_v19  ;;  %v358_v35 = vmul.f32 0.5, %v2920_v62  ;;  %v265_v8 = vpop.f32.mrf.mxu2 }
 0x194   :  { %v1254_v27 = vmul.f32 %v1222_v33, %v3039_v18  ;;  %v3102_v58 = vsel %vm852_vm12, %v854_v38, %v850_v6  ;;  %v455_v36 = vmul.f32 0.3275911, %v3095_v50  ;;  %v3113_v18 = vmul.f32 0.5, %v2922_v31 }
 0x195   :  { %1661 = vst.msk [vmem:[%s3270_s4 + $0xe8] sm:$0xff] %vm150_vm0, %v1629_v46  ;;  %v1198_v15 = vmul.f32 %v1166_v0, %v3060_v3  ;;  %v1014_v2 = vmul.f32 1.0614054, %v3102_v58  ;;  %v1310_v51 = vsub.f32 0.0, %v3073_v37  ;;  %v3117_v22 = vmul.f32 0.70710677, %v3099_v30 }
 0x196   :  { %v1414_v47 = vmul.f32 %v1884_v59, %v1254_v27  ;;  %vm1478_vm13 = vcmp.ge.f32.partialorder %v2935_v20, 0.0  ;;  %v3120_v40 = vadd.f32 1.0, %v455_v36  ;;  %vm1486_vm14 = vcmp.ge.f32.partialorder %v2939_v49, 0.0  ;;  %v311_v20 = vld [vmem:[%s3269_s3 + $0xb8] sm:$0xff] }
 0x197   :  { %v1886_v32 = vpop.eup %1885  ;;  %v1230_v63 = vadd.f32 0.2548296, %v1198_v15  ;;  %v1046_v62 = vadd.f32 -1.4531521, %v1014_v2  ;;  %1889 = vpow2.f32 %v1388_v9  ;;  %v3126_v16 = vmul.f32 0.5, %v2991_v45  ;;  %v319_v49 = vld [vmem:[%s3269_s3 + $0xf8] sm:$0xff] }
 0x198   :  { %v1446_v11 = vsub.f32 1.0, %v1414_v47  ;;  %v963_v31 = vmul.f32 %v1886_v32, %v3085_v53  ;;  %1891 = vrcp.f32 %v3120_v40  ;;  %v1888_v25 = vpop.eup %1887  ;;  %v1342_v28 = vmul.f32 %v1310_v51, %v3073_v37 }
 0x199   :  { %v1262_v12 = vmul.f32 %v1230_v63, %v3060_v3  ;;  %v1078_v44 = vmul.f32 %v1046_v62, %v3102_v58  ;;  %v266_v52 = vadd.f32 %v2969_v5, %v265_v8  ;;  %v973_v61 = vand.u32 2147483648, %v3085_v53 }
 0x19a   :  { %v1510_v56 = vsub.f32 0.0, %v1446_v11  ;;  %v964_v10 = vsub.f32 1.0, %v963_v31  ;;  %v3134_v3 = vand.u32 2147483647, %v3117_v22  ;;  %vm968_vm15 = vweird.f32 %v1886_v32 }
 0x19b   :  { %v1422_v23 = vmul.f32 %v1888_v25, %v1262_v12  ;;  %v1110_v60 = vadd.f32 1.4214138, %v1078_v44  ;;  %v971_v21 = vand.u32 2147483647, %v3085_v53  ;;  %v286_v43 = vadd.f32 %v2969_v5, %v285_v29 }
 0x19c   :  { %v1542_v45 = vsel %vm1478_vm13, %v1446_v11, %v1510_v56  ;;  %v965_v34 = vmul.f32 %v1886_v32, %v964_v10  ;;  %vm967_vm1 = vweird.f32 %v3085_v53  ;;  %v1404_v41 = vmul.f32 1.442695, %v1342_v28 }
 0x19d   :  { %v1574_v17 = vadd.f32 1.0, %v1542_v45  ;;  %v1454_v48 = vsub.f32 1.0, %v1422_v23  ;;  %v1142_v37 = vmul.f32 %v1110_v60, %v3102_v58  ;;  %v1890_v24 = vpop.eup %1889  ;;  %v463_v57 = vmul.f32 0.3275911, %v3134_v3  ;;  %vm969_vm2 = vmor %vm967_vm1, %vm968_vm15 }
 0x19e   :  { %v966_v39 = vadd.f32 %v1886_v32, %v965_v34  ;;  %v1892_v59 = vpop.eup %1891  ;;  %v974_v1 = vor.u32 1.1754944e-38, %v973_v61  ;;  %vm972_vm3 = vcmp.eq.f32.partialorder %v971_v21, 8.507059e+37  ;;  %v3159_v0 = vadd.f32 %v311_v20, %v266_v52 }
 0x19f   :  { %v1606_v42 = vmul.f32 %v1574_v17, %v358_v35  ;;  %v1518_v14 = vsub.f32 0.0, %v1454_v48  ;;  %v1174_v7 = vadd.f32 -0.28449672, %v1142_v37  ;;  %v618_v5 = vmul.f32 %v1892_v59, %v3120_v40 }
 0x1a0   :  { %v970_v19 = vsel %vm969_vm2, %v1886_v32, %v966_v39  ;;  %v3148_v33 = vadd.f32 1.0, %v463_v57  ;;  %v626_v15 = vand.u32 2147483647, %v3120_v40  ;;  %v628_v2 = vand.u32 2147483648, %v3120_v40 }
 0x1a1   :  { %1638 = vst.msk [vmem:[%s3270_s4 + $0x30] sm:$0xff] %vm150_vm0, %v1606_v42  ;;  %v1550_v53 = vsel %vm1486_vm14, %v1454_v48, %v1518_v14  ;;  %v1206_v38 = vmul.f32 %v1174_v7, %v3102_v58  ;;  %v3157_v46 = vsel %vm972_vm3, %v974_v1, %v970_v19  ;;  %v619_v9 = vsub.f32 1.0, %v618_v5 }
 0x1a2   :  { %v1582_v6 = vadd.f32 1.0, %v1550_v53  ;;  %v1022_v27 = vmul.f32 1.0614054, %v3157_v46  ;;  %1893 = vrcp.f32 %v3148_v33  ;;  %vm623_vm4 = vweird.f32 %v1892_v59 }
 0x1a3   :  { %v1238_v35 = vadd.f32 0.2548296, %v1206_v38  ;;  %v620_v51 = vmul.f32 %v1892_v59, %v619_v9  ;;  %vm1494_vm5 = vcmp.ge.f32.partialorder %v3004_v4, 0.0  ;;  %v1287_v63 = vsub.f32 0.0, %v3095_v50 }
 0x1a4   :  { %v1614_v36 = vmul.f32 %v1582_v6, %v3113_v18  ;;  %v1054_v47 = vadd.f32 -1.4531521, %v1022_v27  ;;  %v3173_v62 = vmul.f32 0.70710677, %v3159_v0  ;;  %vm622_vm6 = vweird.f32 %v3120_v40 }
 0x1a5   :  { %v1270_v32 = vmul.f32 %v1238_v35, %v3102_v58  ;;  %v621_v18 = vadd.f32 %v1892_v59, %v620_v51  ;;  %v3181_v11 = vadd.f32 %v319_v49, %v286_v43  ;;  %1895 = vpow2.f32 %v1404_v41  ;;  %vm624_vm7 = vmor %vm622_vm6, %vm623_vm4 }
 0x1a6   :  { %1646 = vst.msk [vmem:[%s3270_s4 + $0x70] sm:$0xff] %vm150_vm0, %v1614_v36  ;;  %v1086_v8 = vmul.f32 %v1054_v47, %v3157_v46  ;;  %v629_v31 = vor.u32 1.1754944e-38, %v628_v2  ;;  %v3184_v12 = vand.u32 2147483647, %v3173_v62  ;;  %vm627_vm8 = vcmp.eq.f32.partialorder %v626_v15, 8.507059e+37 }
 0x1a7   :  { %v1430_v58 = vmul.f32 %v1890_v24, %v1270_v32  ;;  %v625_v56 = vsel %vm624_vm7, %v1892_v59, %v621_v18  ;;  %v3187_v10 = vmul.f32 0.70710677, %v3181_v11  ;;  %v1319_v40 = vmul.f32 %v1287_v63, %v3095_v50 }
 0x1a8   :  { %v1894_v44 = vpop.eup %1893  ;;  %v1118_v25 = vadd.f32 1.4214138, %v1086_v8  ;;  %v3189_v52 = vsel %vm627_vm8, %v629_v31, %v625_v56  ;;  %v1295_v61 = vsub.f32 0.0, %v3134_v3  ;;  %v471_v45 = vmul.f32 0.3275911, %v3184_v12 }
 0x1a9   :  { %v1462_v28 = vsub.f32 1.0, %v1430_v58  ;;  %v738_v29 = vmul.f32 %v1894_v44, %v3148_v33  ;;  %v999_v60 = vmul.f32 1.0614054, %v3189_v52  ;;  %v746_v17 = vand.u32 2147483647, %v3148_v33 }
 0x1aa   :  { %v1150_v23 = vmul.f32 %v1118_v25, %v3157_v46  ;;  %v3199_v48 = vand.u32 2147483647, %v3187_v10  ;;  %v748_v50 = vand.u32 2147483648, %v3148_v33  ;;  %v503_v24 = vadd.f32 1.0, %v471_v45 }
 0x1ab   :  { %v1526_v34 = vsub.f32 0.0, %v1462_v28  ;;  %v739_v21 = vsub.f32 1.0, %v738_v29  ;;  %v1031_v43 = vadd.f32 -1.4531521, %v999_v60  ;;  %v1896_v39 = vpop.eup %1895  ;;  %vm743_vm9 = vweird.f32 %v1894_v44 }
 0x1ac   :  { %v1182_v37 = vadd.f32 -0.28449672, %v1150_v23  ;;  %v479_v20 = vmul.f32 0.3275911, %v3199_v48  ;;  %1897 = vrcp.f32 %v503_v24  ;;  %vm742_vm10 = vweird.f32 %v3148_v33 }
 0x1ad   :  { %v1558_v41 = vsel %vm1494_vm5, %v1462_v28, %v1526_v34  ;;  %v740_v57 = vmul.f32 %v1894_v44, %v739_v21  ;;  %v1063_v14 = vmul.f32 %v1031_v43, %v3189_v52  ;;  %v1327_v1 = vmul.f32 %v1295_v61, %v3134_v3  ;;  %vm744_vm11 = vmor %vm742_vm10, %vm743_vm9 }
 0x1ae   :  { %v1590_v59 = vadd.f32 1.0, %v1558_v41  ;;  %v1214_v42 = vmul.f32 %v1182_v37, %v3157_v46  ;;  %v749_v53 = vor.u32 1.1754944e-38, %v748_v50  ;;  %v1358_v38 = vmul.f32 1.442695, %v1319_v40 }
 0x1af   :  { %v741_v7 = vadd.f32 %v1894_v44, %v740_v57  ;;  %v1095_v4 = vadd.f32 1.4214138, %v1063_v14  ;;  %vm747_vm12 = vcmp.eq.f32.partialorder %v746_v17, 8.507059e+37  ;;  %v3210_v27 = vadd.f32 1.0, %v479_v20 }
 0x1b0   :  { %v1622_v19 = vmul.f32 %v1590_v59, %v3126_v16  ;;  %v1246_v5 = vadd.f32 0.2548296, %v1214_v42  ;;  %v1374_v49 = vmul.f32 1.442695, %v1327_v1  ;;  %v382_v51 = vmul.f32 0.5, %v3044_v26 }
 0x1b1   :  { %v745_v6 = vsel %vm744_vm11, %v1894_v44, %v741_v7  ;;  %v1127_v3 = vmul.f32 %v1095_v4, %v3189_v52  ;;  %1899 = vrcp.f32 %v3210_v27  ;;  %vm1502_vm13 = vcmp.ge.f32.partialorder %v3067_v54, 0.0 }
 0x1b2   :  { %1654 = vst.msk [vmem:[%s3270_s4 + $0xb0] sm:$0xff] %vm150_vm0, %v1622_v19  ;;  %v1278_v33 = vmul.f32 %v1246_v5, %v3157_v46  ;;  %v3218_v9 = vsel %vm747_vm12, %v749_v53, %v745_v6  ;;  %v1898_v35 = vpop.eup %1897  ;;  %1901 = vpow2.f32 %v1358_v38  ;;  %v866_v18 = vand.u32 2147483647, %v503_v24 }
 0x1b3   :  { %v1007_v16 = vmul.f32 1.0614054, %v3218_v9  ;;  %v1159_v2 = vadd.f32 -0.28449672, %v1127_v3  ;;  %v858_v47 = vmul.f32 %v1898_v35, %v503_v24  ;;  %1903 = vpow2.f32 %v1374_v49 }
 0x1b4   :  { %v1438_v15 = vmul.f32 %v1896_v39, %v1278_v33  ;;  %v868_v44 = vand.u32 2147483648, %v503_v24  ;;  %vm863_vm14 = vweird.f32 %v1898_v35  ;;  %v1303_v40 = vsub.f32 0.0, %v3184_v12 }
 0x1b5   :  { %v1039_v36 = vadd.f32 -1.4531521, %v1007_v16  ;;  %v1191_v46 = vmul.f32 %v1159_v2, %v3189_v52  ;;  %v859_v8 = vsub.f32 1.0, %v858_v47  ;;  %vm862_vm15 = vweird.f32 %v503_v24 }
 0x1b6   :  { %v1470_v32 = vsub.f32 1.0, %v1438_v15  ;;  %vm867_vm1 = vcmp.eq.f32.partialorder %v866_v18, 8.507059e+37  ;;  %vm864_vm2 = vmor %vm862_vm15, %vm863_vm14  ;;  %v869_v21 = vor.u32 1.1754944e-38, %v868_v44  ;;  %v986_v37 = vand.u32 2147483647, %v3210_v27 }
 0x1b7   :  { %v1071_v63 = vmul.f32 %v1039_v36, %v3218_v9  ;;  %v1223_v31 = vadd.f32 0.2548296, %v1191_v46  ;;  %v1900_v25 = vpop.eup %1899  ;;  %v860_v28 = vmul.f32 %v1898_v35, %v859_v8  ;;  %v359_v59 = vmul.f32 0.5, %v3069_v13 }
 0x1b8   :  { %v1534_v58 = vsub.f32 0.0, %v1470_v32  ;;  %v978_v54 = vmul.f32 %v1900_v25, %v3210_v27  ;;  %v1902_v23 = vpop.eup %1901  ;;  %vm983_vm3 = vweird.f32 %v1900_v25  ;;  %vm1479_vm4 = vcmp.ge.f32.partialorder %v3082_v55, 0.0 }
 0x1b9   :  { %v1103_v56 = vadd.f32 1.4214138, %v1071_v63  ;;  %v1255_v29 = vmul.f32 %v1223_v31, %v3189_v52  ;;  %v861_v45 = vadd.f32 %v1898_v35, %v860_v28  ;;  %v988_v52 = vand.u32 2147483648, %v3210_v27  ;;  %v1904_v24 = vpop.eup %1903 }
 0x1ba   :  { %v1566_v26 = vsel %vm1502_vm13, %v1470_v32, %v1534_v58  ;;  %v979_v17 = vsub.f32 1.0, %v978_v54  ;;  %vm982_vm5 = vweird.f32 %v3210_v27  ;;  %v1335_v4 = vmul.f32 %v1303_v40, %v3184_v12 }
 0x1bb   :  { %v1598_v60 = vadd.f32 1.0, %v1566_v26  ;;  %v1135_v61 = vmul.f32 %v1103_v56, %v3218_v9  ;;  %v1415_v34 = vmul.f32 %v1902_v23, %v1255_v29  ;;  %v865_v39 = vsel %vm864_vm2, %v1898_v35, %v861_v45  ;;  %vm984_vm6 = vmor %vm982_vm5, %vm983_vm3 }
 0x1bc   :  { %v870_v57 = vsel %vm867_vm1, %v869_v21, %v865_v39  ;;  %v980_v20 = vmul.f32 %v1900_v25, %v979_v17  ;;  %v989_v53 = vor.u32 1.1754944e-38, %v988_v52  ;;  %vm987_vm7 = vcmp.eq.f32.partialorder %v986_v37, 8.507059e+37 }
 0x1bd   :  { %v1630_v43 = vmul.f32 %v1598_v60, %v382_v51  ;;  %v1167_v50 = vadd.f32 -0.28449672, %v1135_v61  ;;  %v1447_v41 = vsub.f32 1.0, %v1415_v34  ;;  %v1015_v14 = vmul.f32 1.0614054, %v870_v57 }
 0x1be   :  { %v981_v1 = vadd.f32 %v1900_v25, %v980_v20  ;;  %v1311_v13 = vsub.f32 0.0, %v3199_v48  ;;  %v1390_v49 = vmul.f32 1.442695, %v1335_v4  ;;  %vm1487_vm8 = vcmp.ge.f32.partialorder %v3117_v22, 0.0 }
 0x1bf   :  { %1662 = vst.msk [vmem:[%s3270_s4 + $0xf0] sm:$0xff] %vm150_vm0, %v1630_v43  ;;  %v1199_v42 = vmul.f32 %v1167_v50, %v3218_v9  ;;  %v1511_v7 = vsub.f32 0.0, %v1447_v41  ;;  %v1047_v5 = vadd.f32 -1.4531521, %v1015_v14  ;;  %v367_v31 = vmul.f32 0.5, %v3099_v30 }
 0x1c0   :  { %v985_v6 = vsel %vm984_vm6, %v1900_v25, %v981_v1  ;;  %v1343_v51 = vmul.f32 %v1311_v13, %v3199_v48  ;;  %1905 = vpow2.f32 %v1390_v49  ;;  %vm1495_vm9 = vcmp.ge.f32.partialorder %v3173_v62, 0.0 }
 0x1c1   :  { %v1231_v19 = vadd.f32 0.2548296, %v1199_v42  ;;  %v1543_v38 = vsel %vm1479_vm4, %v1447_v41, %v1511_v7  ;;  %v1079_v16 = vmul.f32 %v1047_v5, %v870_v57  ;;  %v990_v55 = vsel %vm987_vm7, %v989_v53, %v985_v6 }
 0x1c2   :  { %v1575_v33 = vadd.f32 1.0, %v1543_v38  ;;  %v1023_v35 = vmul.f32 1.0614054, %v990_v55  ;;  %v1406_v58 = vmul.f32 1.442695, %v1343_v51  ;;  %v375_v21 = vmul.f32 0.5, %v3159_v0 }
 0x1c3   :  { %v1263_v3 = vmul.f32 %v1231_v19, %v3218_v9  ;;  %v1111_v27 = vadd.f32 1.4214138, %v1079_v16  ;;  %vm1503_vm10 = vcmp.ge.f32.partialorder %v3187_v10, 0.0  ;;  %v383_v52 = vmul.f32 0.5, %v3181_v11 }
 0x1c4   :  { %v1607_v15 = vmul.f32 %v1575_v33, %v359_v59  ;;  %v1055_v36 = vadd.f32 -1.4531521, %v1023_v35  ;;  %1907 = vpow2.f32 %v1406_v58 }
 0x1c5   :  { %v1423_v2 = vmul.f32 %v1904_v24, %v1263_v3  ;;  %v1143_v47 = vmul.f32 %v1111_v27, %v870_v57 }
 0x1c6   :  { %1639 = vst.msk [vmem:[%s3270_s4 + $0x38] sm:$0xff] %vm150_vm0, %v1607_v15  ;;  %v1087_v32 = vmul.f32 %v1055_v36, %v990_v55  ;;  %v1906_v48 = vpop.eup %1905 }
 0x1c7   :  { %v1455_v12 = vsub.f32 1.0, %v1423_v2  ;;  %v1175_v9 = vadd.f32 -0.28449672, %v1143_v47 }
 0x1c8   :  { %v1119_v63 = vadd.f32 1.4214138, %v1087_v32 }
 0x1c9   :  { %v1519_v46 = vsub.f32 0.0, %v1455_v12  ;;  %v1207_v18 = vmul.f32 %v1175_v9, %v870_v57 }
 0x1ca   :  { %v1151_v25 = vmul.f32 %v1119_v63, %v990_v55  ;;  %v1908_v61 = vpop.eup %1907 }
 0x1cb   :  { %v1551_v8 = vsel %vm1487_vm8, %v1455_v12, %v1519_v46  ;;  %v1239_v56 = vadd.f32 0.2548296, %v1207_v18 }
 0x1cc   :  { %v1583_v44 = vadd.f32 1.0, %v1551_v8  ;;  %v1183_v40 = vadd.f32 -0.28449672, %v1151_v25 }
 0x1cd   :  { %v1271_v26 = vmul.f32 %v1239_v56, %v870_v57 }
 0x1ce   :  { %v1615_v28 = vmul.f32 %v1583_v44, %v367_v31  ;;  %v1215_v22 = vmul.f32 %v1183_v40, %v990_v55 }
 0x1cf   :  { %v1431_v29 = vmul.f32 %v1906_v48, %v1271_v26 }
 0x1d0   :  { %1647 = vst.msk [vmem:[%s3270_s4 + $0x78] sm:$0xff] %vm150_vm0, %v1615_v28  ;;  %v1247_v54 = vadd.f32 0.2548296, %v1215_v22 }
 0x1d1   :  { %v1463_v23 = vsub.f32 1.0, %v1431_v29 }
 0x1d2   :  { %v1279_v60 = vmul.f32 %v1247_v54, %v990_v55 }
 0x1d3   :  { %v1527_v30 = vsub.f32 0.0, %v1463_v23 }
 0x1d4   :  { %v1439_v45 = vmul.f32 %v1908_v61, %v1279_v60 }
 0x1d5   :  { %v1559_v34 = vsel %vm1495_vm9, %v1463_v23, %v1527_v30 }
 0x1d6   :  { %v1591_v17 = vadd.f32 1.0, %v1559_v34  ;;  %v1471_v37 = vsub.f32 1.0, %v1439_v45 }
 0x1d8   :  { %v1623_v43 = vmul.f32 %v1591_v17, %v375_v21  ;;  %v1535_v50 = vsub.f32 0.0, %v1471_v37 }
 0x1da   :  { %1655 = vst.msk [vmem:[%s3270_s4 + $0xb8] sm:$0xff] %vm150_vm0, %v1623_v43  ;;  %v1567_v39 = vsel %vm1503_vm10, %v1471_v37, %v1535_v50 }
 0x1db   :  { %v1599_v24 = vadd.f32 1.0, %v1567_v39 }
 0x1dd   :  { %v1631_v62 = vmul.f32 %v1599_v24, %v383_v52 }
 0x1df   :  { %1663 = vst.msk [vmem:[%s3270_s4 + $0xf8] sm:$0xff] %vm150_vm0, %v1631_v62 }

// kernel: _lambda_.11
= control target key start
LH: loop header
LB: loop body
LE: loop exit
PB: predicated region body
PF: predicated region fallthrough
CT: control target
= control target key end

     0   :  { %s3755_s30 = smov 0   ;;  %s5516_s0 = inlined_call_operand.vmem [shape: bf16[2,128,288], index: 0, kind: input, shape index: {}]   ;;  %s5517_s1 = inlined_call_operand.vmem [shape: bf16[2,288,32], index: 1, kind: input, shape index: {}]   ;;  %s5518_s2 = inlined_call_operand.vmem [shape: f32[2,1,32], index: 2, kind: input, shape index: {}]   ;;  %s5519_s3 = inlined_call_operand.vmem [shape: bf16[32,128], index: 3, kind: input, shape index: {}]   ;;  %s5520_s4 = inlined_call_operand.vmem [shape: f32[1,128], index: 4, kind: input, shape index: {}]   ;;  %s5521_s5 = inlined_call_operand.vmem [shape: bf16[128,32], index: 5, kind: input, shape index: {}]   ;;  %s5522_s6 = inlined_call_operand.vmem [shape: f32[1,32], index: 6, kind: input, shape index: {}]   ;;  %s5523_s7 = inlined_call_operand.vmem [shape: bf16[32,2], index: 7, kind: input, shape index: {}]   ;;  %s5524_s8 = inlined_call_operand.vmem [shape: f32[1,2], index: 8, kind: input, shape index: {}]   ;;  %s5525_s9 = inlined_call_operand.vmem [shape: f32[2,128,2], index: 9, kind: output, shape index: {}]  }
   0x1 LB: > { %s3180_s10 = sadd.s32 4294967295, %s3703_s30   ;;  %p3184_p0 = scmp.ge.s32.totalorder %s3703_s30, 1  ;;  %s3703_s30 = sphi %s3755_s30, %s19_s30  }
   0x2   : > { %p305_p1 = scmp.lt.s32.totalorder %s3703_s30, 3 }
   0x4   : > { %p306_p2 = pnand %p3184_p0, %p305_p1 }
   0x6   : > { %309 = sbr.rel (%p306_p2) target bundleno = 1065 (0x429), region = 56 }
   0xb   : > { %p349_p3 = scmp.lt.s32.totalorder %s3180_s10, 1  ;;  %vm668_vm0 = vcmask 261120  }
   0xd   : > { %s5596_s10 = smov (!%p349_p3, %s3180_s10), 1 }
   0xe   : > { %s3491_s11 = smul.u32 144, %s5596_s10  ;;  %s361_s17 = scalar_lea.vmem %s5518_s2, %s5596_s10 }
   0xf   : > { %s3490_s18 = smul.u32 192, %s5596_s10  ;;  %s3431_s16 = sshll.u32 %s5596_s10, 7 }
  0x10   : > { %s3769_s14 = scalar_lea.vmem %s5517_s1, %s3491_s11  ;;  %s5453_s20 = scalar_lea.vmem %s5525_s9, %s3431_s16 }
  0x11   : > { %v3463_v0 = vld [vmem:[%s3769_s14 + $0x38] sm:$0xff]  ;;  %v3462_v2 = vld [vmem:[%s3769_s14 + $0x30] sm:$0xff]  ;;  %v3473_v4 = vld [vmem:[%s3769_s14 + $0x88] sm:$0xff]  ;;  %s3792_s21 = scalar_lea.vmem %s5516_s0, %s3490_s18 }
  0x12   : > { %v3471_v1 = vld [vmem:[%s3769_s14 + $0x78] sm:$0xff]  ;;  %693 = vmatpush.bf16.msra.mxu0 %v3463_v0  ;;  %v3470_v3 = vld [vmem:[%s3769_s14 + $0x70] sm:$0xff]  ;;  %v3461_v5 = vld [vmem:[%s3769_s14 + $0x28] sm:$0xff]  ;;  %3486 = vmatpush.bf16.msra.mxu2 %v3473_v4 }
  0x13   : > { %742 = vmatpush.bf16.msra.mxu1 %v3471_v1  ;;  %v3469_v6 = vld [vmem:[%s3769_s14 + $0x68] sm:$0xff]  ;;  %v3460_v7 = vld [vmem:[%s3769_s14 + $0x20] sm:$0xff]  ;;  %v3459_v9 = vld [vmem:[%s3769_s14 + $0x18] sm:$0xff] }
  0x14   : > { %v3468_v8 = vld [vmem:[%s3769_s14 + $0x60] sm:$0xff]  ;;  %v3467_v10 = vld [vmem:[%s3769_s14 + $0x58] sm:$0xff]  ;;  %v3458_v11 = vld [vmem:[%s3769_s14 + $0x10] sm:$0xff] }
  0x15   : > { %v3466_v12 = vld [vmem:[%s3769_s14 + $0x50] sm:$0xff]  ;;  %v3457_v13 = vld [vmem:[%s3769_s14 + $0x8] sm:$0xff]  ;;  %v3456_v15 = vld [vmem:[%s3769_s14] sm:$0xff] }
  0x16   : > { %694 = vmatpush.bf16.msra.mxu0 %v3462_v2  ;;  %v3465_v14 = vld [vmem:[%s3769_s14 + $0x48] sm:$0xff]  ;;  %v3191_v16 = vld [vmem:[%s3792_s21] sm:$0xf]  ;;  %v3432_v19 = vld [vmem:[%s3792_s21 + $0x4] sm:$0xf] }
  0x17   : > { %743 = vmatpush.bf16.msra.mxu1 %v3470_v3  ;;  %v3433_v17 = vld [vmem:[%s3792_s21 + $0x8] sm:$0xf0]  ;;  %v3464_v18 = vld [vmem:[%s3769_s14 + $0x40] sm:$0xff]  ;;  %v3193_v20 = vld [vmem:[%s3792_s21 + $0xc] sm:$0xf0] }
  0x18   : > { %v3192_v21 = vor.u32 %v3433_v17, %v3191_v16  ;;  %v3196_v22 = vor.u32 %v3432_v19, %v3193_v20  ;;  %v3472_v23 = vld [vmem:[%s3769_s14 + $0x80] sm:$0xff]  ;;  %v3235_v24 = vld [vmem:[%s3792_s21 + $0x50] sm:$0xf]  ;;  %v3443_v25 = vld [vmem:[%s3792_s21 + $0x58] sm:$0xf0] }
  0x19   : > { %v3236_v26 = vor.u32 %v3443_v25, %v3235_v24  ;;  %3487 = vmatpush.bf16.msra.mxu2 %v3472_v23  ;;  %v3203_v27 = vld [vmem:[%s3792_s21 + $0x18] sm:$0xf]  ;;  %v3436_v28 = vld [vmem:[%s3792_s21 + $0x20] sm:$0xf0]  ;;  %v3435_v29 = vld [vmem:[%s3792_s21 + $0x1c] sm:$0xf] }
  0x1a   : > { %695 = vmatpush.bf16.msra.mxu0 %v3461_v5  ;;  %v3205_v30 = vld [vmem:[%s3792_s21 + $0x24] sm:$0xf0]  ;;  %v3204_v31 = vor.u32 %v3436_v28, %v3203_v27  ;;  %v3446_v34 = vld [vmem:[%s3792_s21 + $0x70] sm:$0xf0]  ;;  %v3215_v36 = vld [vmem:[%s3792_s21 + $0x30] sm:$0xf] }
  0x1b   : > { %744 = vmatpush.bf16.msra.mxu1 %v3469_v6  ;;  %v3208_v32 = vor.u32 %v3435_v29, %v3205_v30  ;;  %v3247_v33 = vld [vmem:[%s3792_s21 + $0x68] sm:$0xf]  ;;  %v3439_v37 = vld [vmem:[%s3792_s21 + $0x38] sm:$0xf0]  ;;  %v3438_v38 = vld [vmem:[%s3792_s21 + $0x34] sm:$0xf] }
  0x1c   : > { %3360 = vmatmul.msk.bf16.vlgmr.msra.gmra.mxu2 %vm668_vm0, %v3236_v26  ;;  %v3248_v35 = vor.u32 %v3446_v34, %v3247_v33  ;;  %v3217_v39 = vld [vmem:[%s3792_s21 + $0x3c] sm:$0xf0]  ;;  %v3216_v40 = vor.u32 %v3439_v37, %v3215_v36  ;;  %v3449_v43 = vld [vmem:[%s3792_s21 + $0x88] sm:$0xf0]  ;;  %v3227_v45 = vld [vmem:[%s3792_s21 + $0x48] sm:$0xf] }
  0x1d   : > { %v3220_v41 = vor.u32 %v3438_v38, %v3217_v39  ;;  %v3259_v42 = vld [vmem:[%s3792_s21 + $0x80] sm:$0xf]  ;;  %v3442_v46 = vld [vmem:[%s3792_s21 + $0x50] sm:$0xf0]  ;;  %v3441_v47 = vld [vmem:[%s3792_s21 + $0x4c] sm:$0xf] }
  0x1e   : > { %696 = vmatpush.bf16.msra.mxu0 %v3460_v7  ;;  %v3260_v44 = vor.u32 %v3449_v43, %v3259_v42  ;;  %v3229_v48 = vld [vmem:[%s3792_s21 + $0x54] sm:$0xf0]  ;;  %v3228_v49 = vor.u32 %v3442_v46, %v3227_v45  ;;  %v3452_v52 = vld [vmem:[%s3792_s21 + $0xa0] sm:$0xf0]  ;;  %v3239_v54 = vld [vmem:[%s3792_s21 + $0x60] sm:$0xf] }
  0x1f   : > { %745 = vmatpush.bf16.msra.mxu1 %v3468_v8  ;;  %v3232_v50 = vor.u32 %v3441_v47, %v3229_v48  ;;  %v3271_v51 = vld [vmem:[%s3792_s21 + $0x98] sm:$0xf]  ;;  %v3445_v55 = vld [vmem:[%s3792_s21 + $0x68] sm:$0xf0]  ;;  %v3444_v56 = vld [vmem:[%s3792_s21 + $0x64] sm:$0xf] }
  0x20   : > { %v3272_v53 = vor.u32 %v3452_v52, %v3271_v51  ;;  %v3241_v57 = vld [vmem:[%s3792_s21 + $0x6c] sm:$0xf0]  ;;  %v3240_v58 = vor.u32 %v3445_v55, %v3239_v54  ;;  %v3455_v61 = vld [vmem:[%s3792_s21 + $0xb8] sm:$0xf0]  ;;  %v3251_v63 = vld [vmem:[%s3792_s21 + $0x78] sm:$0xf] }
  0x21   : > { %v3244_v59 = vor.u32 %v3444_v56, %v3241_v57  ;;  %v3283_v60 = vld [vmem:[%s3792_s21 + $0xb0] sm:$0xf]  ;;  %v3448_v0 = vld [vmem:[%s3792_s21 + $0x80] sm:$0xf0]  ;;  %v3447_v1 = vld [vmem:[%s3792_s21 + $0x7c] sm:$0xf] }
  0x22   : > { %697 = vmatpush.bf16.msra.mxu0 %v3459_v9  ;;  %v3284_v62 = vor.u32 %v3455_v61, %v3283_v60  ;;  %v3253_v2 = vld [vmem:[%s3792_s21 + $0x84] sm:$0xf0]  ;;  %v3252_v3 = vor.u32 %v3448_v0, %v3251_v63  ;;  %v3263_v5 = vld [vmem:[%s3792_s21 + $0x90] sm:$0xf]  ;;  %v3451_v6 = vld [vmem:[%s3792_s21 + $0x98] sm:$0xf0] }
  0x23   : > { %746 = vmatpush.bf16.msra.mxu1 %v3467_v10  ;;  %v3450_v7 = vld [vmem:[%s3792_s21 + $0x94] sm:$0xf]  ;;  %v3265_v8 = vld [vmem:[%s3792_s21 + $0x9c] sm:$0xf0]  ;;  %v3264_v9 = vor.u32 %v3451_v6, %v3263_v5  ;;  %v3199_v17 = vld [vmem:[%s3792_s21 + $0x8] sm:$0xf] }
  0x24   : > { %v3268_v10 = vor.u32 %v3450_v7, %v3265_v8  ;;  %v3853_v19 = vld [vmem:[%s361_s17] ss:$0 sm:$0xff]  ;;  %v3437_v30 = vld [vmem:[%s3792_s21 + $0x28] sm:$0xf0] }
  0x25   : > { %v3211_v29 = vld [vmem:[%s3792_s21 + $0x20] sm:$0xf] }
  0x26   : > { %698 = vmatpush.bf16.msra.mxu0 %v3458_v11  ;;  %v3275_v11 = vld [vmem:[%s3792_s21 + $0xa8] sm:$0xf] }
  0x27   : > { %747 = vmatpush.bf16.msra.mxu1 %v3466_v12  ;;  %v3454_v12 = vld [vmem:[%s3792_s21 + $0xb0] sm:$0xf0] }
  0x2a   : > { %699 = vmatpush.bf16.msra.mxu0 %v3457_v13  ;;  %v3453_v13 = vld [vmem:[%s3792_s21 + $0xac] sm:$0xf] }
  0x2b   : > { %748 = vmatpush.bf16.msra.mxu1 %v3465_v14  ;;  %v3277_v14 = vld [vmem:[%s3792_s21 + $0xb4] sm:$0xf0] }
  0x2c   : > { %3361 = vmatmul.msk.bf16.gmra.mxu2 %vm668_vm0, %v3248_v35  ;;  %v3280_v16 = vor.u32 %v3453_v13, %v3277_v14 }
  0x2e   : > { %700 = vmatpush.bf16.msra.mxu0 %v3456_v15  ;;  %v3276_v15 = vor.u32 %v3454_v12, %v3275_v11 }
  0x2f   : > { %749 = vmatpush.bf16.msra.mxu1 %v3464_v18  ;;  %v3434_v18 = vld [vmem:[%s3792_s21 + $0x10] sm:$0xf0] }
  0x30   : > { %v3200_v20 = vor.u32 %v3434_v18, %v3199_v17 }
  0x31   : > { %701 = vmatmul.bf16.vlgmr.msra.gmra.mxu0 %v3192_v21 }
  0x32   : > { %797 = vmatpush.bf16.msrb.mxu0 %v3473_v4  ;;  %750 = vmatmul.bf16.vlgmr.msra.gmra.mxu1 %v3196_v22  ;;  %v3256_v4 = vor.u32 %v3447_v1, %v3253_v2 }
  0x36   : > { %798 = vmatpush.bf16.msrb.mxu0 %v3472_v23 }
  0x3c   : > { %3362 = vmatmul.msk.bf16.gmra.mxu2 %vm668_vm0, %v3260_v44 }
  0x41   : > { %706 = vmatmul.bf16.gmra.mxu0 %v3204_v31  ;;  %v3212_v31 = vor.u32 %v3437_v30, %v3211_v29 }
  0x42   : > { %755 = vmatmul.bf16.gmra.mxu1 %v3208_v32 }
  0x4c   : > { %3363 = vmatmul.msk.bf16.gmra.mxu2 %vm668_vm0, %v3272_v53 }
  0x51   : > { %711 = vmatmul.bf16.gmra.mxu0 %v3216_v40  ;;  %v3223_v40 = vld [vmem:[%s3792_s21 + $0x38] sm:$0xf] }
  0x52   : > { %760 = vmatmul.bf16.gmra.mxu1 %v3220_v41  ;;  %v3440_v41 = vld [vmem:[%s3792_s21 + $0x40] sm:$0xf0] }
  0x53   : > { %v3224_v42 = vor.u32 %v3440_v41, %v3223_v40  ;;  %v3475_v41 = vld [vmem:[%s5519_s3 + $0x8] sm:$0xff] }
  0x54   : > { %1538 = vmatpush.bf16.msrb.mxu1 %v3475_v41  ;;  %3488 = vmatpush.bf16.msra.mxu3 %v3475_v41 }
  0x5c   : > { %3364 = vmatmul.msk.bf16.gmra.mxu2 %vm668_vm0, %v3284_v62 }
  0x61   : > { %716 = vmatmul.bf16.gmra.mxu0 %v3228_v49 }
  0x62   : > { %765 = vmatmul.bf16.gmra.mxu1 %v3232_v50 }
  0x71   : > { %721 = vmatmul.bf16.gmra.mxu0 %v3240_v58 }
  0x72   : > { %770 = vmatmul.bf16.gmra.mxu1 %v3244_v59 }
  0x81   : > { %726 = vmatmul.bf16.gmra.mxu0 %v3252_v3 }
  0x82   : > { %775 = vmatmul.bf16.gmra.mxu1 %v3256_v4 }
  0x91   : > { %731 = vmatmul.bf16.gmra.mxu0 %v3264_v9 }
  0x92   : > { %780 = vmatmul.bf16.gmra.mxu1 %v3268_v10 }
  0x9f   : > { %v815_v51 = vpop.f32.mrf.mxu2 }
  0xa1   : > { %736 = vmatmul.bf16.gmra.mxu0 %v3276_v15 }
  0xa2   : > { %785 = vmatmul.bf16.gmra.mxu1 %v3280_v16 }
  0xa7   : > { %v817_v57 = vpop.f32.mrf.mxu2 }
  0xae   : > { %v702_v21 = vpop.f32.mrf.mxu0 }
  0xaf   : > { %v751_v22 = vpop.f32.mrf.mxu1  ;;  %v703_v23 = vadd.f32 %v3853_v19, %v702_v21  ;;  %v820_v3 = vpop.f32.mrf.mxu2 }
  0xb1   : > { %v3856_v24 = vadd.f32 %v751_v22, %v703_v23  ;;  %3357 = vmatmul.msk.bf16.vlgmr.msrb.gmra.mxu0 %vm668_vm0, %v3200_v20 }
  0xb6   : > { %v704_v25 = vpop.f32.mrf.mxu0 }
  0xb7   : > { %v753_v26 = vpop.f32.mrf.mxu1  ;;  %v705_v27 = vadd.f32 %v3853_v19, %v704_v25 }
  0xb9   : > { %v3860_v28 = vadd.f32 %v753_v26, %v705_v27  ;;  %v822_v26 = vpop.f32.mrf.mxu2 }
  0xbe   : > { %v707_v32 = vpop.f32.mrf.mxu0 }
  0xbf   : > { %v756_v33 = vpop.f32.mrf.mxu1  ;;  %v708_v34 = vadd.f32 %v3853_v19, %v707_v32 }
  0xc1   : > { %v3865_v35 = vadd.f32 %v756_v33, %v708_v34  ;;  %3358 = vmatmul.msk.bf16.gmra.mxu0 %vm668_vm0, %v3212_v31 }
  0xc6   : > { %v709_v36 = vpop.f32.mrf.mxu0 }
  0xc7   : > { %v758_v37 = vpop.f32.mrf.mxu1  ;;  %v710_v38 = vadd.f32 %v3853_v19, %v709_v36 }
  0xc9   : > { %v3869_v39 = vadd.f32 %v758_v37, %v710_v38 }
  0xce   : > { %v712_v43 = vpop.f32.mrf.mxu0 }
  0xcf   : > { %v761_v44 = vpop.f32.mrf.mxu1  ;;  %v713_v45 = vadd.f32 %v3853_v19, %v712_v43 }
  0xd1   : > { %v3874_v46 = vadd.f32 %v761_v44, %v713_v45  ;;  %3359 = vmatmul.msk.bf16.gmra.mxu0 %vm668_vm0, %v3224_v42 }
  0xd6   : > { %v714_v47 = vpop.f32.mrf.mxu0 }
  0xd7   : > { %v763_v48 = vpop.f32.mrf.mxu1  ;;  %v715_v49 = vadd.f32 %v3853_v19, %v714_v47 }
  0xd9   : > { %v3878_v50 = vadd.f32 %v763_v48, %v715_v49 }
  0xde   : > { %v717_v52 = vpop.f32.mrf.mxu0 }
  0xdf   : > { %v766_v53 = vpop.f32.mrf.mxu1  ;;  %v718_v54 = vadd.f32 %v3853_v19, %v717_v52 }
  0xe1   : > { %v767_v55 = vadd.f32 %v766_v53, %v718_v54 }
  0xe3   : > { %v3881_v56 = vadd.f32 %v815_v51, %v767_v55 }
  0xe5   : > { %v3884_v58 = vmul.f32 0.70710677, %v3881_v56 }
  0xe6   : > { %v719_v59 = vpop.f32.mrf.mxu0 }
  0xe7   : > { %v768_v60 = vpop.f32.mrf.mxu1  ;;  %v3887_v61 = vand.u32 2147483647, %v3884_v58  ;;  %v720_v62 = vadd.f32 %v3853_v19, %v719_v59  ;;  %v825_v59 = vpop.f32.mrf.mxu2 }
  0xe9   : > { %v894_v63 = vmul.f32 0.3275911, %v3887_v61  ;;  %v769_v0 = vadd.f32 %v768_v60, %v720_v62  ;;  %v1310_v55 = vsub.f32 0.0, %v3887_v61 }
  0xeb   : > { %v910_v1 = vadd.f32 1.0, %v894_v63  ;;  %v3891_v2 = vadd.f32 %v817_v57, %v769_v0 }
  0xed   : > { %3504 = vrcp.f32 %v910_v1  ;;  %v3894_v4 = vmul.f32 0.70710677, %v3891_v2  ;;  %v1021_v20 = vand.u32 2147483648, %v910_v1  ;;  %v1019_v23 = vand.u32 2147483647, %v910_v1 }
  0xee   : > { %v722_v5 = vpop.f32.mrf.mxu0  ;;  %vm1015_vm2 = vweird.f32 %v910_v1 }
  0xef   : > { %v771_v6 = vpop.f32.mrf.mxu1  ;;  %v723_v7 = vadd.f32 %v3853_v19, %v722_v5  ;;  %v3898_v8 = vand.u32 2147483647, %v3894_v4  ;;  %v1022_v31 = vor.u32 1.1754944e-38, %v1021_v20  ;;  %vm1020_vm4 = vcmp.eq.f32.partialorder %v1019_v23, 8.507059e+37 }
  0xf1   : > { %v772_v9 = vadd.f32 %v771_v6, %v723_v7  ;;  %v895_v10 = vmul.f32 0.3275911, %v3898_v8  ;;  %v1311_v63 = vsub.f32 0.0, %v3898_v8 }
  0xf3   : > { %v3505_v11 = vpop.eup %3504  ;;  %v3901_v12 = vadd.f32 %v820_v3, %v772_v9  ;;  %v911_v14 = vadd.f32 1.0, %v895_v10 }
  0xf4   : > { %v1011_v13 = vmul.f32 %v3505_v11, %v910_v1  ;;  %vm1016_vm1 = vweird.f32 %v3505_v11 }
  0xf5   : > { %v3904_v15 = vmul.f32 0.70710677, %v3901_v12  ;;  %3506 = vrcp.f32 %v911_v14  ;;  %vm1017_vm3 = vmor %vm1015_vm2, %vm1016_vm1  ;;  %v1036_v48 = vand.u32 2147483648, %v911_v14  ;;  %v1034_v52 = vand.u32 2147483647, %v911_v14 }
  0xf6   : > { %v1012_v16 = vsub.f32 1.0, %v1011_v13  ;;  %v724_v17 = vpop.f32.mrf.mxu0  ;;  %vm1030_vm6 = vweird.f32 %v911_v14 }
  0xf7   : > { %v773_v18 = vpop.f32.mrf.mxu1  ;;  %v3907_v21 = vand.u32 2147483647, %v3904_v15  ;;  %v725_v25 = vadd.f32 %v3853_v19, %v724_v17  ;;  %v1037_v3 = vor.u32 1.1754944e-38, %v1036_v48  ;;  %vm1035_vm8 = vcmp.eq.f32.partialorder %v1034_v52, 8.507059e+37  ;;  %v827_v52 = vpop.f32.mrf.mxu2 }
  0xf8   : > { %v1013_v22 = vmul.f32 %v3505_v11, %v1012_v16 }
  0xf9   : > { %v896_v27 = vmul.f32 0.3275911, %v3907_v21  ;;  %v774_v30 = vadd.f32 %v773_v18, %v725_v25  ;;  %v1327_v18 = vmul.f32 %v1311_v63, %v3898_v8 }
  0xfa   : > { %v1014_v29 = vadd.f32 %v3505_v11, %v1013_v22 }
  0xfb   : > { %v3911_v32 = vadd.f32 1.0, %v896_v27  ;;  %v3507_v33 = vpop.eup %3506  ;;  %v3913_v36 = vadd.f32 %v822_v26, %v774_v30  ;;  %v1350_v41 = vmul.f32 1.442695, %v1327_v18 }
  0xfc   : > { %v1018_v34 = vsel %vm1017_vm3, %v3505_v11, %v1014_v29  ;;  %v1026_v38 = vmul.f32 %v3507_v33, %v911_v14  ;;  %vm1031_vm5 = vweird.f32 %v3507_v33  ;;  %v1326_v11 = vmul.f32 %v1310_v55, %v3887_v61 }
  0xfd   : > { %v3915_v37 = vsel %vm1020_vm4, %v1022_v31, %v1018_v34  ;;  %3508 = vrcp.f32 %v3911_v32  ;;  %v3923_v44 = vmul.f32 0.70710677, %v3913_v36  ;;  %vm1032_vm7 = vmor %vm1030_vm6, %vm1031_vm5  ;;  %v1051_v20 = vand.u32 2147483648, %v3911_v32 }
  0xfe   : > { %v1166_v40 = vmul.f32 1.0614054, %v3915_v37  ;;  %v727_v42 = vpop.f32.mrf.mxu0  ;;  %v1027_v43 = vsub.f32 1.0, %v1026_v38  ;;  %v1049_v25 = vand.u32 2147483647, %v3911_v32  ;;  %vm1045_vm10 = vweird.f32 %v3911_v32 }
  0xff   : > { %v776_v45 = vpop.f32.mrf.mxu1  ;;  %v728_v49 = vadd.f32 %v3853_v19, %v727_v42  ;;  %v3927_v53 = vand.u32 2147483647, %v3923_v44  ;;  %v1348_v29 = vmul.f32 1.442695, %v1326_v11  ;;  %v1312_v34 = vsub.f32 0.0, %v3907_v21 }
 0x100   : > { %v1182_v47 = vadd.f32 -1.4531521, %v1166_v40  ;;  %v1028_v51 = vmul.f32 %v3507_v33, %v1027_v43  ;;  %vm1050_vm12 = vcmp.eq.f32.partialorder %v1049_v25, 8.507059e+37  ;;  %vm1406_vm3 = vcmp.ge.f32.partialorder %v3884_v58, 0.0 }
 0x101   : > { %v777_v57 = vadd.f32 %v776_v45, %v728_v49  ;;  %v897_v0 = vmul.f32 0.3275911, %v3927_v53  ;;  %v1328_v55 = vmul.f32 %v1312_v34, %v3907_v21 }
 0x102   : > { %v1198_v54 = vmul.f32 %v1182_v47, %v3915_v37  ;;  %v1029_v62 = vadd.f32 %v3507_v33, %v1028_v51 }
 0x103   : > { %v3509_v60 = vpop.eup %3508  ;;  %v3934_v7 = vadd.f32 1.0, %v897_v0  ;;  %v3936_v9 = vadd.f32 %v825_v59, %v777_v57 }
 0x104   : > { %v1214_v1 = vadd.f32 1.4214138, %v1198_v54  ;;  %v1041_v5 = vmul.f32 %v3509_v60, %v3911_v32  ;;  %v1033_v6 = vsel %vm1032_vm7, %v3507_v33, %v1029_v62  ;;  %vm1046_vm9 = vweird.f32 %v3509_v60 }
 0x105   : > { %v3940_v13 = vsel %vm1035_vm8, %v1037_v3, %v1033_v6  ;;  %3510 = vrcp.f32 %v3934_v7  ;;  %v3948_v61 = vmul.f32 0.70710677, %v3936_v9  ;;  %vm1047_vm11 = vmor %vm1045_vm10, %vm1046_vm9  ;;  %v1052_v33 = vor.u32 1.1754944e-38, %v1051_v20 }
 0x106   : > { %v1230_v10 = vmul.f32 %v1214_v1, %v3915_v37  ;;  %v1042_v14 = vsub.f32 1.0, %v1041_v5  ;;  %v729_v16 = vpop.f32.mrf.mxu0  ;;  %v1167_v17 = vmul.f32 1.0614054, %v3940_v13  ;;  %3512 = vpow2.f32 %v1348_v29 }
 0x107   : > { %v730_v27 = vadd.f32 %v3853_v19, %v729_v16  ;;  %v778_v8 = vpop.f32.mrf.mxu1  ;;  %v3955_v38 = vand.u32 2147483647, %v3948_v61  ;;  %3514 = vpow2.f32 %v1350_v41  ;;  %v1066_v62 = vand.u32 2147483648, %v3934_v7 }
 0x108   : > { %v1246_v22 = vadd.f32 -0.28449672, %v1230_v10  ;;  %v1043_v23 = vmul.f32 %v3509_v60, %v1042_v14  ;;  %v1183_v26 = vadd.f32 -1.4531521, %v1167_v17  ;;  %v1064_v6 = vand.u32 2147483647, %v3934_v7 }
 0x109   : > { %v898_v32 = vmul.f32 0.3275911, %v3955_v38  ;;  %v779_v48 = vadd.f32 %v778_v8, %v730_v27  ;;  %v3474_v10 = vld [vmem:[%s5519_s3] sm:$0xff]  ;;  %v1352_v14 = vmul.f32 1.442695, %v1328_v55  ;;  %vm1060_vm14 = vweird.f32 %v3934_v7 }
 0x10a   : > { %v1044_v30 = vadd.f32 %v3509_v60, %v1043_v23  ;;  %v1199_v31 = vmul.f32 %v1183_v26, %v3940_v13  ;;  %v1262_v40 = vmul.f32 %v1246_v22, %v3915_v37  ;;  %v1067_v18 = vor.u32 1.1754944e-38, %v1066_v62  ;;  %3489 = vmatpush.bf16.msra.mxu3 %v3474_v10  ;;  %1539 = vmatpush.bf16.msrb.mxu1 %v3474_v10 }
 0x10b   : > { %v3511_v43 = vpop.eup %3510  ;;  %v3965_v57 = vadd.f32 1.0, %v898_v32  ;;  %v3969_v1 = vadd.f32 %v827_v52, %v779_v48  ;;  %vm1065_vm1 = vcmp.eq.f32.partialorder %v1064_v6, 8.507059e+37  ;;  %vm1407_vm7 = vcmp.ge.f32.partialorder %v3894_v4, 0.0 }
 0x10c   : > { %v1048_v42 = vsel %vm1047_vm11, %v3509_v60, %v1044_v30  ;;  %v1215_v45 = vadd.f32 1.4214138, %v1199_v31  ;;  %v1056_v51 = vmul.f32 %v3511_v43, %v3934_v7  ;;  %v1278_v63 = vadd.f32 0.2548296, %v1262_v40  ;;  %v3513_v20 = vpop.eup %3512 }
 0x10d   : > { %v3958_v47 = vsel %vm1050_vm12, %v1052_v33, %v1048_v42  ;;  %3516 = vrcp.f32 %v3965_v57  ;;  %vm1061_vm13 = vweird.f32 %v3511_v43  ;;  %v3981_v25 = vmul.f32 0.70710677, %v3969_v1  ;;  %v3515_v27 = vpop.eup %3514 }
 0x10e   : > { %v1168_v49 = vmul.f32 1.0614054, %v3958_v47  ;;  %v1231_v54 = vmul.f32 %v1215_v45, %v3940_v13  ;;  %v1057_v60 = vsub.f32 1.0, %v1056_v51  ;;  %v732_v21 = vpop.f32.mrf.mxu0  ;;  %v1294_v22 = vmul.f32 %v1278_v63, %v3915_v37  ;;  %vm1062_vm15 = vmor %vm1060_vm14, %vm1061_vm13  ;;  %v830_v45 = vpop.f32.mrf.mxu2 }
 0x10f   : > { %v733_v26 = vadd.f32 %v3853_v19, %v732_v21  ;;  %v1313_v7 = vsub.f32 0.0, %v3927_v53  ;;  %v781_v8 = vpop.f32.mrf.mxu1  ;;  %v3987_v33 = vmul.f32 0.5, %v3881_v56  ;;  %v3993_v40 = vand.u32 2147483647, %v3981_v25 }
 0x110   : > { %v1184_v59 = vadd.f32 -1.4531521, %v1168_v49  ;;  %v1247_v0 = vadd.f32 -0.28449672, %v1231_v54  ;;  %v1058_v5 = vmul.f32 %v3511_v43, %v1057_v60  ;;  %3518 = vpow2.f32 %v1352_v14 }
 0x111   : > { %v1374_v32 = vmul.f32 %v3513_v20, %v1294_v22  ;;  %v899_v49 = vmul.f32 0.3275911, %v3993_v40  ;;  %v782_v56 = vadd.f32 %v781_v8, %v733_v26  ;;  %v1329_v52 = vmul.f32 %v1313_v7, %v3927_v53 }
 0x112   : > { %v1200_v3 = vmul.f32 %v1184_v59, %v3958_v47  ;;  %v1263_v11 = vmul.f32 %v1247_v0, %v3940_v13  ;;  %v1059_v17 = vadd.f32 %v3511_v43, %v1058_v5  ;;  %v1079_v55 = vand.u32 2147483647, %v3965_v57 }
 0x113   : > { %v3517_v31 = vpop.eup %3516  ;;  %v1081_v59 = vand.u32 2147483648, %v3965_v57  ;;  %v1314_v60 = vsub.f32 0.0, %v3955_v38  ;;  %v4003_v62 = vadd.f32 1.0, %v899_v49  ;;  %v1390_v6 = vsub.f32 1.0, %v1374_v32 }
 0x114   : > { %v1216_v16 = vadd.f32 1.4214138, %v1200_v3  ;;  %v1279_v23 = vadd.f32 0.2548296, %v1263_v11  ;;  %v1063_v30 = vsel %vm1062_vm15, %v3511_v43, %v1059_v17  ;;  %v1071_v43 = vmul.f32 %v3517_v31, %v3965_v57 }
 0x115   : > { %v3990_v34 = vsel %vm1065_vm1, %v1067_v18, %v1063_v30  ;;  %vm1076_vm2 = vweird.f32 %v3517_v31  ;;  %3520 = vrcp.f32 %v4003_v62  ;;  %v4008_v53 = vadd.f32 %v830_v45, %v782_v56 }
 0x116   : > { %v1232_v29 = vmul.f32 %v1216_v16, %v3958_v47  ;;  %v1295_v37 = vmul.f32 %v1279_v23, %v3940_v13  ;;  %v1169_v42 = vmul.f32 1.0614054, %v3990_v34  ;;  %v1072_v54 = vsub.f32 1.0, %v1071_v43  ;;  %v734_v5 = vpop.f32.mrf.mxu0  ;;  %v3519_v21 = vpop.eup %3518 }
 0x117   : > { %vm1075_vm4 = vweird.f32 %v3965_v57  ;;  %v1354_v16 = vmul.f32 1.442695, %v1329_v52  ;;  %v1082_v17 = vor.u32 1.1754944e-38, %v1081_v59  ;;  %v1330_v18 = vmul.f32 %v1314_v60, %v3955_v38 }
 0x118   : > { %v1248_v41 = vadd.f32 -0.28449672, %v1232_v29  ;;  %v1375_v48 = vmul.f32 %v3515_v27, %v1295_v37  ;;  %v1185_v13 = vadd.f32 -1.4531521, %v1169_v42  ;;  %v1073_v3 = vmul.f32 %v3517_v31, %v1072_v54  ;;  %vm1077_vm5 = vmor %vm1075_vm4, %vm1076_vm2  ;;  %v783_v27 = vpop.f32.mrf.mxu1 }
 0x119   : > { %v735_v20 = vadd.f32 %v3853_v19, %v734_v5  ;;  %vm1080_vm6 = vcmp.eq.f32.partialorder %v1079_v55, 8.507059e+37  ;;  %v1422_v29 = vsub.f32 0.0, %v1390_v6  ;;  %v847_v30 = vmul.f32 0.5, %v3891_v2 }
 0x11a   : > { %v1264_v51 = vmul.f32 %v1248_v41, %v3958_v47  ;;  %v1391_v63 = vsub.f32 1.0, %v1375_v48  ;;  %v1201_v0 = vmul.f32 %v1185_v13, %v3990_v34  ;;  %v1074_v14 = vadd.f32 %v3517_v31, %v1073_v3  ;;  %v832_v41 = vpop.f32.mrf.mxu2 }
 0x11b   : > { %v4018_v57 = vmul.f32 0.70710677, %v4008_v53  ;;  %v3521_v42 = vpop.eup %3520  ;;  %3522 = vpow2.f32 %v1354_v16  ;;  %v784_v2 = vadd.f32 %v783_v27, %v735_v20  ;;  %v1438_v4 = vsel %vm1406_vm3, %v1390_v6, %v1422_v29 }
 0x11c   : > { %v1280_v10 = vadd.f32 0.2548296, %v1264_v51  ;;  %v1217_v11 = vadd.f32 1.4214138, %v1201_v0  ;;  %v1423_v22 = vsub.f32 0.0, %v1391_v63  ;;  %v1078_v26 = vsel %vm1077_vm5, %v3517_v31, %v1074_v14 }
 0x11d   : > { %v4015_v7 = vsel %vm1080_vm6, %v1082_v17, %v1078_v26  ;;  %v1356_v31 = vmul.f32 1.442695, %v1330_v18  ;;  %v4024_v43 = vand.u32 2147483647, %v4018_v57  ;;  %v1086_v49 = vmul.f32 %v3521_v42, %v4003_v62 }
 0x11e   : > { %v1233_v23 = vmul.f32 %v1217_v11, %v3990_v34  ;;  %v1296_v38 = vmul.f32 %v1280_v10, %v3958_v47  ;;  %v1170_v37 = vmul.f32 1.0614054, %v4015_v7  ;;  %v1439_v45 = vsel %vm1407_vm7, %v1391_v63, %v1423_v22  ;;  %v737_v59 = vpop.f32.mrf.mxu0 }
 0x11f   : > { %v1094_v47 = vand.u32 2147483647, %v4003_v62  ;;  %v900_v56 = vmul.f32 0.3275911, %v4024_v43  ;;  %v4032_v51 = vadd.f32 %v832_v41, %v784_v2  ;;  %v1087_v55 = vsub.f32 1.0, %v1086_v49 }
 0x120   : > { %v1249_v8 = vadd.f32 -0.28449672, %v1233_v23  ;;  %v1186_v48 = vadd.f32 -1.4531521, %v1170_v37  ;;  %v1376_v13 = vmul.f32 %v3519_v21, %v1296_v38  ;;  %v1455_v60 = vadd.f32 1.0, %v1439_v45  ;;  %v786_v20 = vpop.f32.mrf.mxu1 }
 0x121   : > { %vm1091_vm8 = vweird.f32 %v3521_v42  ;;  %v1096_v63 = vand.u32 2147483648, %v4003_v62  ;;  %v4036_v0 = vadd.f32 1.0, %v900_v56  ;;  %v1088_v5 = vmul.f32 %v3521_v42, %v1087_v55  ;;  %v3523_v10 = vpop.eup %3522 }
 0x122   : > { %v1265_v32 = vmul.f32 %v1249_v8, %v3990_v34  ;;  %v1202_v54 = vmul.f32 %v1186_v48, %v4015_v7  ;;  %v4040_v6 = vmul.f32 0.70710677, %v4032_v51  ;;  %v1454_v21 = vadd.f32 1.0, %v1438_v4 }
 0x123   : > { %vm1090_vm9 = vweird.f32 %v4003_v62  ;;  %v1315_v11 = vsub.f32 0.0, %v3993_v40  ;;  %3524 = vrcp.f32 %v4036_v0  ;;  %v1392_v14 = vsub.f32 1.0, %v1376_v13 }
 0x124   : > { %v1281_v52 = vadd.f32 0.2548296, %v1265_v32  ;;  %v1218_v3 = vadd.f32 1.4214138, %v1202_v54  ;;  %v1089_v18 = vadd.f32 %v3521_v42, %v1088_v5  ;;  %vm1092_vm10 = vmor %vm1090_vm9, %vm1091_vm8  ;;  %v1097_v22 = vor.u32 1.1754944e-38, %v1096_v63  ;;  %v835_v32 = vpop.f32.mrf.mxu2 }
 0x125   : > { %v4048_v23 = vand.u32 2147483647, %v4040_v6  ;;  %v738_v26 = vadd.f32 %v3853_v19, %v737_v59  ;;  %vm1095_vm11 = vcmp.eq.f32.partialorder %v1094_v47, 8.507059e+37  ;;  %v1470_v38 = vmul.f32 %v1454_v21, %v3987_v33 }
 0x126   : > { %v1297_v58 = vmul.f32 %v1281_v52, %v3990_v34  ;;  %v1234_v17 = vmul.f32 %v1218_v3, %v4015_v7  ;;  %v1471_v34 = vmul.f32 %v1455_v60, %v847_v30  ;;  %v1093_v29 = vsel %vm1092_vm10, %v3521_v42, %v1089_v18  ;;  %v739_v13 = vpop.f32.mrf.mxu0 }
 0x127   : > { %v4052_v8 = vsel %vm1095_vm11, %v1097_v22, %v1093_v29  ;;  %v1331_v37 = vmul.f32 %v1315_v11, %v3993_v40  ;;  %v901_v30 = vmul.f32 0.3275911, %v4048_v23  ;;  %v1424_v41 = vsub.f32 0.0, %v1392_v14 }
 0x128   : > { %v1377_v16 = vmul.f32 %v3523_v10, %v1297_v58  ;;  %v1250_v27 = vadd.f32 -0.28449672, %v1234_v17  ;;  %v1171_v45 = vmul.f32 1.0614054, %v4052_v8  ;;  %v787_v42 = vadd.f32 %v786_v20, %v738_v26  ;;  %v788_v5 = vpop.f32.mrf.mxu1 }
 0x129   : > { %v3525_v48 = vpop.eup %3524  ;;  %v4058_v4 = vadd.f32 1.0, %v901_v30  ;;  %v1483_v47 = vpack.c.bf16 %v1471_v34, %v1470_v38  ;;  %v848_v33 = vmul.f32 0.5, %v3901_v12  ;;  %3526 = vpow2.f32 %v1356_v31 }
 0x12a   : > { %v1393_v62 = vsub.f32 1.0, %v1377_v16  ;;  %v1266_v49 = vmul.f32 %v1250_v27, %v4015_v7  ;;  %v1187_v56 = vadd.f32 -1.4531521, %v1171_v45  ;;  %v1101_v40 = vmul.f32 %v3525_v48, %v4036_v0 }
 0x12b   : > { %vm1408_vm12 = vcmp.ge.f32.partialorder %v3904_v15, 0.0  ;;  %vm1409_vm13 = vcmp.ge.f32.partialorder %v3923_v44, 0.0  ;;  %v1358_v52 = vmul.f32 1.442695, %v1331_v37  ;;  %3528 = vrcp.f32 %v4058_v4  ;;  %3376 = vmatmul.msk.bf16.vlgmr.msra.gmra.mxu3 %vm668_vm0, %v1483_v47 }
 0x12c   : > { %v1425_v2 = vsub.f32 0.0, %v1393_v62  ;;  %v1440_v54 = vsel %vm1408_vm12, %v1392_v14, %v1424_v41  ;;  %v1203_v59 = vmul.f32 %v1187_v56, %v4052_v8  ;;  %v1102_v60 = vsub.f32 1.0, %v1101_v40  ;;  %v837_v29 = vpop.f32.mrf.mxu2 }
 0x12d   : > { %v1282_v12 = vadd.f32 0.2548296, %v1266_v49  ;;  %v1111_v31 = vand.u32 2147483648, %v4036_v0  ;;  %v4068_v63 = vadd.f32 %v835_v32, %v787_v42  ;;  %v740_v58 = vadd.f32 %v3853_v19, %v739_v13 }
 0x12e   : > { %v1441_v55 = vsel %vm1409_vm13, %v1393_v62, %v1425_v2  ;;  %v1219_v15 = vadd.f32 1.4214138, %v1203_v59  ;;  %v1103_v3 = vmul.f32 %v3525_v48, %v1102_v60  ;;  %vm1106_vm14 = vweird.f32 %v3525_v48  ;;  %v800_v32 = vpop.f32.mrf.mxu0 }
 0x12f   : > { %v1109_v44 = vand.u32 2147483647, %v4036_v0  ;;  %v1456_v10 = vadd.f32 1.0, %v1440_v54  ;;  %v849_v21 = vmul.f32 0.5, %v3913_v36  ;;  %v1457_v11 = vadd.f32 1.0, %v1441_v55  ;;  %v3527_v16 = vpop.eup %3526 }
 0x130   : > { %v4074_v14 = vmul.f32 0.70710677, %v4068_v63  ;;  %v1235_v17 = vmul.f32 %v1219_v15, %v4052_v8  ;;  %3530 = vpow2.f32 %v1358_v52  ;;  %v1104_v18 = vadd.f32 %v3525_v48, %v1103_v3 }
 0x131   : > { %vm1105_vm15 = vweird.f32 %v4036_v0  ;;  %v3529_v19 = vpop.eup %3528  ;;  %v1298_v20 = vmul.f32 %v1282_v12, %v4015_v7  ;;  %v1112_v34 = vor.u32 1.1754944e-38, %v1111_v31  ;;  %v789_v36 = vadd.f32 %v788_v5, %v740_v58 }
 0x132   : > { %vm1107_vm1 = vmor %vm1105_vm15, %vm1106_vm14  ;;  %v4080_v22 = vand.u32 2147483647, %v4074_v14  ;;  %v1251_v26 = vadd.f32 -0.28449672, %v1235_v17  ;;  %vm1110_vm2 = vcmp.eq.f32.partialorder %v1109_v44, 8.507059e+37  ;;  %v1116_v27 = vmul.f32 %v3529_v19, %v4058_v4 }
 0x133   : > { %v1108_v62 = vsel %vm1107_vm1, %v3525_v48, %v1104_v18  ;;  %v1472_v38 = vmul.f32 %v1456_v10, %v848_v33  ;;  %v1473_v37 = vmul.f32 %v1457_v11, %v849_v21  ;;  %v1124_v45 = vand.u32 2147483647, %v4058_v4 }
 0x134   : > { %v4083_v30 = vsel %vm1110_vm2, %v1112_v34, %v1108_v62  ;;  %v902_v0 = vmul.f32 0.3275911, %v4080_v22  ;;  %v1267_v7 = vmul.f32 %v1251_v26, %v4052_v8  ;;  %v1117_v2 = vsub.f32 1.0, %v1116_v27 }
 0x135   : > { %v1172_v41 = vmul.f32 1.0614054, %v4083_v30  ;;  %v1378_v49 = vmul.f32 %v3527_v16, %v1298_v20  ;;  %v1126_v48 = vand.u32 2147483648, %v4058_v4  ;;  %v4092_v47 = vadd.f32 %v837_v29, %v789_v36 }
 0x136   : > { %v4090_v42 = vadd.f32 1.0, %v902_v0  ;;  %v3531_v33 = vpop.eup %3530  ;;  %v1283_v56 = vadd.f32 0.2548296, %v1267_v7  ;;  %v1118_v13 = vmul.f32 %v3529_v19, %v1117_v2  ;;  %vm1121_vm3 = vweird.f32 %v3529_v19 }
 0x137   : > { %v1188_v40 = vadd.f32 -1.4531521, %v1172_v41  ;;  %v1316_v52 = vsub.f32 0.0, %v4024_v43  ;;  %v1317_v54 = vsub.f32 0.0, %v4048_v23  ;;  %v1484_v55 = vpack.c.bf16 %v1473_v37, %v1472_v38 }
 0x138   : > { %3532 = vrcp.f32 %v4090_v42  ;;  %v1119_v60 = vadd.f32 %v3529_v19, %v1118_v13  ;;  %vm1120_vm4 = vweird.f32 %v4058_v4  ;;  %v4100_v12 = vadd.f32 %v800_v32, %v3856_v24 }
 0x139   : > { %v1204_v59 = vmul.f32 %v1188_v40, %v4083_v30  ;;  %v1394_v31 = vsub.f32 1.0, %v1378_v49  ;;  %vm1122_vm5 = vmor %vm1120_vm4, %vm1121_vm3  ;;  %v1127_v58 = vor.u32 1.1754944e-38, %v1126_v48  ;;  %v4103_v15 = vmul.f32 0.70710677, %v4092_v47 }
 0x13a   : > { %v1299_v3 = vmul.f32 %v1283_v56, %v4052_v8  ;;  %v1123_v44 = vsel %vm1122_vm5, %v3529_v19, %v1119_v60  ;;  %vm1125_vm6 = vcmp.eq.f32.partialorder %v1124_v45, 8.507059e+37  ;;  %v1332_v24 = vmul.f32 %v1316_v52, %v4024_v43  ;;  %v802_v43 = vpop.f32.mrf.mxu0 }
 0x13b   : > { %v1220_v5 = vadd.f32 1.4214138, %v1204_v59  ;;  %v4106_v10 = vsel %vm1125_vm6, %v1127_v58, %v1123_v44  ;;  %v4109_v21 = vand.u32 2147483647, %v4103_v15  ;;  %3377 = vmatmul.msk.bf16.gmra.mxu3 %vm668_vm0, %v1484_v55  ;;  %v1333_v11 = vmul.f32 %v1317_v54, %v4048_v23 }
 0x13c   : > { %v1173_v4 = vmul.f32 1.0614054, %v4106_v10  ;;  %v4116_v16 = vmul.f32 0.70710677, %v4100_v12  ;;  %v850_v17 = vmul.f32 0.5, %v3936_v9  ;;  %v1426_v18 = vsub.f32 0.0, %v1394_v31 }
 0x13d   : > { %v903_v19 = vmul.f32 0.3275911, %v4109_v21  ;;  %vm1410_vm7 = vcmp.ge.f32.partialorder %v3948_v61, 0.0  ;;  %v1379_v20 = vmul.f32 %v3531_v33, %v1299_v3  ;;  %v4123_v26 = vmul.f32 0.5, %v3969_v1 }
 0x13e   : > { %v3533_v8 = vpop.eup %3532  ;;  %v1189_v34 = vadd.f32 -1.4531521, %v1173_v4  ;;  %v1236_v23 = vmul.f32 %v1220_v5, %v4083_v30  ;;  %v4129_v27 = vand.u32 2147483647, %v4116_v16  ;;  %v1360_v9 = vmul.f32 1.442695, %v1332_v24 }
 0x13f   : > { %v1131_v36 = vmul.f32 %v3533_v8, %v4090_v42  ;;  %v4126_v62 = vadd.f32 1.0, %v903_v19  ;;  %v1362_v38 = vmul.f32 1.442695, %v1333_v11  ;;  %v1442_v37 = vsel %vm1410_vm7, %v1394_v31, %v1426_v18 }
 0x140   : > { %v1205_v29 = vmul.f32 %v1189_v34, %v4106_v10  ;;  %vm1411_vm8 = vcmp.ge.f32.partialorder %v3981_v25, 0.0  ;;  %v1139_v0 = vand.u32 2147483647, %v4090_v42  ;;  %v1141_v1 = vand.u32 2147483648, %v4090_v42 }
 0x141   : > { %v1132_v61 = vsub.f32 1.0, %v1131_v36  ;;  %3534 = vrcp.f32 %v4126_v62  ;;  %v1395_v7 = vsub.f32 1.0, %v1379_v20  ;;  %vm1136_vm9 = vweird.f32 %v3533_v8 }
 0x142   : > { %v1221_v41 = vadd.f32 1.4214138, %v1205_v29  ;;  %v4137_v45 = vmul.f32 0.5, %v4008_v53  ;;  %v1252_v32 = vadd.f32 -0.28449672, %v1236_v23  ;;  %v4140_v49 = vmul.f32 0.5, %v4032_v51  ;;  %v805_v5 = vpop.f32.mrf.mxu0 }
 0x143   : > { %v1133_v2 = vmul.f32 %v3533_v8, %v1132_v61  ;;  %v888_v48 = vmul.f32 0.3275911, %v4129_v27  ;;  %3536 = vpow2.f32 %v1360_v9  ;;  %vm1135_vm10 = vweird.f32 %v4090_v42 }
 0x144   : > { %v1318_v56 = vsub.f32 0.0, %v4080_v22  ;;  %v1458_v40 = vadd.f32 1.0, %v1442_v37  ;;  %v1237_v13 = vmul.f32 %v1221_v41, %v4106_v10  ;;  %vm1137_vm11 = vmor %vm1135_vm10, %vm1136_vm9  ;;  %v1142_v52 = vor.u32 1.1754944e-38, %v1141_v1 }
 0x145   : > { %v1134_v33 = vadd.f32 %v3533_v8, %v1133_v2  ;;  %v4146_v54 = vadd.f32 1.0, %v888_v48  ;;  %v1427_v53 = vsub.f32 0.0, %v1395_v7  ;;  %3538 = vpow2.f32 %v1362_v38 }
 0x146   : > { %vm1140_vm12 = vcmp.eq.f32.partialorder %v1139_v0, 8.507059e+37  ;;  %v1268_v59 = vmul.f32 %v1252_v32, %v4083_v30  ;;  %v4153_v42 = vadd.f32 %v802_v43, %v3860_v28  ;;  %v4156_v31 = vmul.f32 0.5, %v4068_v63 }
 0x147   : > { %v1138_v55 = vsel %vm1137_vm11, %v3533_v8, %v1134_v33  ;;  %v3535_v51 = vpop.eup %3534  ;;  %3540 = vrcp.f32 %v4146_v54  ;;  %v1319_v44 = vsub.f32 0.0, %v4109_v21  ;;  %v4161_v24 = vmul.f32 %v1458_v40, %v850_v17 }
 0x148   : > { %v4149_v60 = vsel %vm1140_vm12, %v1142_v52, %v1138_v55  ;;  %v1146_v3 = vmul.f32 %v3535_v51, %v4126_v62  ;;  %v1253_v4 = vadd.f32 -0.28449672, %v1237_v13  ;;  %v1334_v11 = vmul.f32 %v1318_v56, %v4080_v22 }
 0x149   : > { %v1174_v58 = vmul.f32 1.0614054, %v4149_v60  ;;  %v4165_v8 = vmul.f32 0.5, %v4100_v12  ;;  %v3537_v28 = vpop.eup %3536  ;;  %v1443_v63 = vsel %vm1411_vm8, %v1395_v7, %v1427_v53  ;;  %v1154_v20 = vand.u32 2147483647, %v4126_v62 }
 0x14a   : > { %v1147_v19 = vsub.f32 1.0, %v1146_v3  ;;  %v1284_v34 = vadd.f32 0.2548296, %v1268_v59  ;;  %v1156_v36 = vand.u32 2147483648, %v4126_v62  ;;  %v4172_v17 = vmul.f32 0.70710677, %v4153_v42 }
 0x14b   : > { %v1190_v18 = vadd.f32 -1.4531521, %v1174_v58  ;;  %v4175_v43 = vadd.f32 %v805_v5, %v3865_v35  ;;  %v3539_v22 = vpop.eup %3538  ;;  %vm1151_vm13 = vweird.f32 %v3535_v51  ;;  %v1335_v25 = vmul.f32 %v1319_v44, %v4109_v21  ;;  %v807_v5 = vpop.f32.mrf.mxu0 }
 0x14c   : > { %v1148_v23 = vmul.f32 %v3535_v51, %v1147_v19  ;;  %v1459_v29 = vadd.f32 1.0, %v1443_v63  ;;  %v1269_v38 = vmul.f32 %v1253_v4, %v4106_v10  ;;  %vm1150_vm14 = vweird.f32 %v4126_v62 }
 0x14d   : > { %v1206_v12 = vmul.f32 %v1190_v18, %v4149_v60  ;;  %v3541_v9 = vpop.eup %3540  ;;  %v4182_v61 = vand.u32 2147483647, %v4172_v17  ;;  %vm1155_vm15 = vcmp.eq.f32.partialorder %v1154_v20, 8.507059e+37  ;;  %v1300_v1 = vmul.f32 %v1284_v34, %v4083_v30  ;;  %vm1152_vm1 = vmor %vm1150_vm14, %vm1151_vm13 }
 0x14e   : > { %v1149_v0 = vadd.f32 %v3535_v51, %v1148_v23  ;;  %v921_v35 = vmul.f32 %v3541_v9, %v4146_v54  ;;  %v1157_v7 = vor.u32 1.1754944e-38, %v1156_v36  ;;  %v929_v21 = vand.u32 2147483647, %v4146_v54 }
 0x14f   : > { %v1222_v37 = vadd.f32 1.4214138, %v1206_v12  ;;  %v889_v41 = vmul.f32 0.3275911, %v4182_v61  ;;  %v931_v48 = vand.u32 2147483648, %v4146_v54  ;;  %vm926_vm2 = vweird.f32 %v3541_v9 }
 0x150   : > { %v1153_v32 = vsel %vm1152_vm1, %v3535_v51, %v1149_v0  ;;  %v922_v62 = vsub.f32 1.0, %v921_v35  ;;  %v1285_v33 = vadd.f32 0.2548296, %v1269_v38  ;;  %v4196_v53 = vmul.f32 0.70710677, %v4175_v43 }
 0x151   : > { %v1238_v2 = vmul.f32 %v1222_v37, %v4149_v60  ;;  %v4190_v56 = vsel %vm1155_vm15, %v1157_v7, %v1153_v32  ;;  %v4192_v40 = vadd.f32 1.0, %v889_v41  ;;  %v1380_v55 = vmul.f32 %v3537_v28, %v1300_v1 }
 0x152   : > { %v1175_v30 = vmul.f32 1.0614054, %v4190_v56  ;;  %v923_v52 = vmul.f32 %v3541_v9, %v922_v62  ;;  %v1364_v59 = vmul.f32 1.442695, %v1334_v11  ;;  %v1304_v51 = vsub.f32 0.0, %v4129_v27 }
 0x153   : > { %v1254_v13 = vadd.f32 -0.28449672, %v1238_v2  ;;  %3542 = vrcp.f32 %v4192_v40  ;;  %vm925_vm3 = vweird.f32 %v4146_v54  ;;  %v1475_v4 = vmul.f32 %v1459_v29, %v4123_v26 }
 0x154   : > { %v1191_v3 = vadd.f32 -1.4531521, %v1175_v30  ;;  %v924_v44 = vadd.f32 %v3541_v9, %v923_v52  ;;  %v1301_v63 = vmul.f32 %v1285_v33, %v4106_v10  ;;  %v1366_v18 = vmul.f32 1.442695, %v1335_v25  ;;  %vm927_vm4 = vmor %vm925_vm3, %vm926_vm2 }
 0x155   : > { %v1270_v58 = vmul.f32 %v1254_v13, %v4149_v60  ;;  %v932_v28 = vor.u32 1.1754944e-38, %v931_v48  ;;  %vm1412_vm5 = vcmp.ge.f32.partialorder %v4018_v57, 0.0  ;;  %vm930_vm6 = vcmp.eq.f32.partialorder %v929_v21, 8.507059e+37  ;;  %v810_v13 = vpop.f32.mrf.mxu0 }
 0x156   : > { %v1207_v11 = vmul.f32 %v1191_v3, %v4190_v56  ;;  %v928_v19 = vsel %vm927_vm4, %v3541_v9, %v924_v44  ;;  %v4208_v20 = vand.u32 2147483647, %v4196_v53  ;;  %v1396_v34 = vsub.f32 1.0, %v1380_v55 }
 0x157   : > { %v1286_v54 = vadd.f32 0.2548296, %v1270_v58  ;;  %3544 = vpow2.f32 %v1364_v59  ;;  %v4210_v36 = vsel %vm930_vm6, %v932_v28, %v928_v19  ;;  %v1320_v12 = vmul.f32 %v1304_v51, %v4129_v27 }
 0x158   : > { %v1223_v26 = vadd.f32 1.4214138, %v1207_v11  ;;  %v1160_v10 = vmul.f32 1.0614054, %v4210_v36  ;;  %v890_v23 = vmul.f32 0.3275911, %v4208_v20  ;;  %v1381_v29 = vmul.f32 %v3539_v22, %v1301_v63 }
 0x159   : > { %v3543_v25 = vpop.eup %3542  ;;  %v4216_v9 = vmul.f32 0.5, %v4092_v47  ;;  %3546 = vpow2.f32 %v1366_v18  ;;  %v1485_v38 = vpack.c.bf16 %v1475_v4, %v4161_v24  ;;  %v4221_v35 = vmul.f32 0.5, %v4153_v42 }
 0x15a   : > { %v1239_v37 = vmul.f32 %v1223_v26, %v4190_v56  ;;  %v1176_v0 = vadd.f32 -1.4531521, %v1160_v10  ;;  %v936_v1 = vmul.f32 %v3543_v25, %v4192_v40  ;;  %v1428_v7 = vsub.f32 0.0, %v1396_v34 }
 0x15b   : > { %v1302_v27 = vmul.f32 %v1286_v54, %v4149_v60  ;;  %v4225_v21 = vadd.f32 1.0, %v890_v23  ;;  %3378 = vmatmul.msk.bf16.gmra.mxu3 %vm668_vm0, %v1485_v38  ;;  %v4229_v47 = vadd.f32 %v807_v5, %v3869_v39  ;;  %vm1413_vm7 = vcmp.ge.f32.partialorder %v4040_v6, 0.0 }
 0x15c   : > { %v1255_v24 = vadd.f32 -0.28449672, %v1239_v37  ;;  %v1192_v22 = vmul.f32 %v1176_v0, %v4210_v36  ;;  %v1336_v41 = vmul.f32 1.442695, %v1320_v12  ;;  %v937_v42 = vsub.f32 1.0, %v936_v1 }
 0x15d   : > { %v3545_v2 = vpop.eup %3544  ;;  %v1397_v32 = vsub.f32 1.0, %v1381_v29  ;;  %v944_v62 = vand.u32 2147483647, %v4192_v40  ;;  %v946_v60 = vand.u32 2147483648, %v4192_v40  ;;  %3548 = vrcp.f32 %v4225_v21 }
 0x15e   : > { %v1271_v48 = vmul.f32 %v1255_v24, %v4190_v56  ;;  %v1208_v33 = vadd.f32 1.4214138, %v1192_v22  ;;  %v938_v39 = vmul.f32 %v3543_v25, %v937_v42  ;;  %vm941_vm8 = vweird.f32 %v3543_v25 }
 0x15f   : > { %v3547_v30 = vpop.eup %3546  ;;  %v1444_v52 = vsel %vm1412_vm5, %v1396_v34, %v1428_v7  ;;  %v1382_v55 = vmul.f32 %v3545_v2, %v1302_v27  ;;  %v1305_v59 = vsub.f32 0.0, %v4182_v61  ;;  %v4241_v51 = vmul.f32 0.70710677, %v4229_v47 }
 0x160   : > { %v1287_v58 = vadd.f32 0.2548296, %v1271_v48  ;;  %v1224_v3 = vmul.f32 %v1208_v33, %v4210_v36  ;;  %v939_v44 = vadd.f32 %v3543_v25, %v938_v39  ;;  %vm940_vm9 = vweird.f32 %v4192_v40 }
 0x161   : > { %v1429_v5 = vsub.f32 0.0, %v1397_v32  ;;  %vm942_vm10 = vmor %vm940_vm9, %vm941_vm8  ;;  %v947_v4 = vor.u32 1.1754944e-38, %v946_v60  ;;  %v4246_v63 = vand.u32 2147483647, %v4241_v51  ;;  %v4249_v57 = vadd.f32 %v810_v13, %v3874_v46 }
 0x162   : > { %v1240_v18 = vadd.f32 -0.28449672, %v1224_v3  ;;  %3550 = vpow2.f32 %v1336_v41  ;;  %v943_v28 = vsel %vm942_vm10, %v3543_v25, %v939_v44  ;;  %vm945_vm11 = vcmp.eq.f32.partialorder %v944_v62, 8.507059e+37 }
 0x163   : > { %v3549_v11 = vpop.eup %3548  ;;  %v1398_v19 = vsub.f32 1.0, %v1382_v55  ;;  %vm1414_vm12 = vcmp.ge.f32.partialorder %v4074_v14, 0.0  ;;  %v1303_v34 = vmul.f32 %v1287_v58, %v4190_v56  ;;  %v4253_v40 = vsel %vm945_vm11, %v947_v4, %v943_v28 }
 0x164   : > { %v891_v54 = vmul.f32 0.3275911, %v4246_v63  ;;  %v1256_v26 = vmul.f32 %v1240_v18, %v4210_v36  ;;  %v1161_v10 = vmul.f32 1.0614054, %v4253_v40  ;;  %v1321_v46 = vmul.f32 %v1305_v59, %v4182_v61 }
 0x165   : > { %v951_v12 = vmul.f32 %v3549_v11, %v4225_v21  ;;  %v1445_v23 = vsel %vm1413_vm7, %v1397_v32, %v1429_v5  ;;  %v959_v25 = vand.u32 2147483647, %v4225_v21  ;;  %v4266_v56 = vmul.f32 0.70710677, %v4249_v57 }
 0x166   : > { %v4263_v29 = vadd.f32 1.0, %v891_v54  ;;  %v1272_v38 = vadd.f32 0.2548296, %v1256_v26  ;;  %v1177_v37 = vadd.f32 -1.4531521, %v1161_v10  ;;  %v1306_v1 = vsub.f32 0.0, %v4208_v20  ;;  %v812_v54 = vpop.f32.mrf.mxu0 }
 0x167   : > { %v952_v0 = vsub.f32 1.0, %v951_v12  ;;  %v1430_v7 = vsub.f32 0.0, %v1398_v19  ;;  %v1383_v27 = vmul.f32 %v3547_v30, %v1303_v34  ;;  %v961_v61 = vand.u32 2147483648, %v4225_v21 }
 0x168   : > { %3552 = vrcp.f32 %v4263_v29  ;;  %v3551_v6 = vpop.eup %3550  ;;  %v1288_v24 = vmul.f32 %v1272_v38, %v4210_v36  ;;  %v1193_v22 = vmul.f32 %v1177_v37, %v4253_v40  ;;  %vm956_vm13 = vweird.f32 %v3549_v11 }
 0x169   : > { %v953_v41 = vmul.f32 %v3549_v11, %v952_v0  ;;  %v1460_v42 = vadd.f32 1.0, %v1444_v52  ;;  %v1461_v2 = vadd.f32 1.0, %v1445_v23  ;;  %v1338_v32 = vmul.f32 1.442695, %v1321_v46 }
 0x16a   : > { %v4274_v62 = vand.u32 2147483647, %v4266_v56  ;;  %v1209_v60 = vadd.f32 1.4214138, %v1193_v22  ;;  %vm955_vm14 = vweird.f32 %v4225_v21  ;;  %v1322_v33 = vmul.f32 %v1306_v1, %v4208_v20 }
 0x16b   : > { %v954_v48 = vadd.f32 %v3549_v11, %v953_v41  ;;  %vm1415_vm15 = vcmp.ge.f32.partialorder %v4103_v15, 0.0  ;;  %v1368_v39 = vmul.f32 %v3551_v6, %v1288_v24  ;;  %vm957_vm1 = vmor %vm955_vm14, %vm956_vm13  ;;  %vm960_vm2 = vcmp.eq.f32.partialorder %v959_v25, 8.507059e+37 }
 0x16c   : > { %v962_v36 = vor.u32 1.1754944e-38, %v961_v61  ;;  %v892_v13 = vmul.f32 0.3275911, %v4274_v62  ;;  %v1446_v30 = vsel %vm1414_vm12, %v1398_v19, %v1430_v7  ;;  %v1399_v52 = vsub.f32 1.0, %v1383_v27 }
 0x16d   : > { %v1225_v55 = vmul.f32 %v1209_v60, %v4253_v40  ;;  %v958_v59 = vsel %vm957_vm1, %v3549_v11, %v954_v48  ;;  %v1476_v21 = vmul.f32 %v1460_v42, %v4137_v45  ;;  %v1477_v20 = vmul.f32 %v1461_v2, %v4140_v49 }
 0x16e   : > { %v3553_v58 = vpop.eup %3552  ;;  %v4285_v3 = vsel %vm960_vm2, %v962_v36, %v958_v59  ;;  %v4287_v44 = vadd.f32 1.0, %v892_v13  ;;  %vm1400_vm3 = vcmp.ge.f32.partialorder %v4116_v16, 0.0  ;;  %3554 = vpow2.f32 %v1338_v32 }
 0x16f   : > { %v1241_v5 = vadd.f32 -0.28449672, %v1225_v55  ;;  %v1162_v14 = vmul.f32 1.0614054, %v4285_v3  ;;  %v966_v4 = vmul.f32 %v3553_v58, %v4263_v29  ;;  %v4292_v18 = vadd.f32 1.0, %v1446_v30 }
 0x170   : > { %v1384_v28 = vsub.f32 1.0, %v1368_v39  ;;  %v1340_v11 = vmul.f32 1.442695, %v1322_v33  ;;  %3556 = vrcp.f32 %v4287_v44  ;;  %v1431_v45 = vsub.f32 0.0, %v1399_v52 }
 0x171   : > { %v1257_v49 = vmul.f32 %v1241_v5, %v4253_v40  ;;  %v1178_v19 = vadd.f32 -1.4531521, %v1162_v14  ;;  %v967_v34 = vsub.f32 1.0, %v966_v4  ;;  %vm971_vm4 = vweird.f32 %v3553_v58 }
 0x172   : > { %v974_v26 = vand.u32 2147483647, %v4263_v29  ;;  %v976_v10 = vand.u32 2147483648, %v4263_v29  ;;  %v1307_v46 = vsub.f32 0.0, %v4246_v63  ;;  %v1486_v38 = vpack.c.bf16 %v1477_v20, %v1476_v21 }
 0x173   : > { %v1273_v12 = vadd.f32 0.2548296, %v1257_v49  ;;  %v1194_v23 = vmul.f32 %v1178_v19, %v4285_v3  ;;  %v968_v25 = vmul.f32 %v3553_v58, %v967_v34  ;;  %v1416_v37 = vsub.f32 0.0, %v1384_v28 }
 0x174   : > { %vm1401_vm5 = vcmp.ge.f32.partialorder %v4172_v17, 0.0  ;;  %3558 = vpow2.f32 %v1340_v11  ;;  %vm970_vm6 = vweird.f32 %v4263_v29  ;;  %v4303_v0 = vadd.f32 %v812_v54, %v3878_v50  ;;  %v3555_v1 = vpop.eup %3554  ;;  %3379 = vmatmul.msk.bf16.gmra.mxu3 %vm668_vm0, %v1486_v38 }
 0x175   : > { %v1447_v7 = vsel %vm1415_vm15, %v1399_v52, %v1431_v45  ;;  %v1289_v27 = vmul.f32 %v1273_v12, %v4253_v40  ;;  %v1210_v61 = vadd.f32 1.4214138, %v1194_v23  ;;  %v969_v6 = vadd.f32 %v3553_v58, %v968_v25  ;;  %vm972_vm7 = vmor %vm970_vm6, %vm971_vm4 }
 0x176   : > { %v3557_v24 = vpop.eup %3556  ;;  %vm975_vm8 = vcmp.eq.f32.partialorder %v974_v26, 8.507059e+37  ;;  %v977_v22 = vor.u32 1.1754944e-38, %v976_v10  ;;  %v1323_v29 = vmul.f32 %v1307_v46, %v4246_v63  ;;  %v4312_v50 = vmul.f32 0.70710677, %v4303_v0 }
 0x177   : > { %v1369_v41 = vmul.f32 %v3555_v1, %v1289_v27  ;;  %v1226_v15 = vmul.f32 %v1210_v61, %v4285_v3  ;;  %v973_v42 = vsel %vm972_vm7, %v3553_v58, %v969_v6  ;;  %v981_v40 = vmul.f32 %v3557_v24, %v4287_v44 }
 0x178   : > { %v1463_v2 = vadd.f32 1.0, %v1447_v7  ;;  %v1432_v32 = vsel %vm1400_vm3, %v1384_v28, %v1416_v37  ;;  %v978_v60 = vsel %vm975_vm8, %v977_v22, %v973_v42  ;;  %v4319_v48 = vand.u32 2147483647, %v4312_v50 }
 0x179   : > { %v1385_v33 = vsub.f32 1.0, %v1369_v41  ;;  %v1242_v39 = vadd.f32 -0.28449672, %v1226_v15  ;;  %v1163_v63 = vmul.f32 1.0614054, %v978_v60  ;;  %v982_v36 = vsub.f32 1.0, %v981_v40 }
 0x17a   : > { %v3559_v13 = vpop.eup %3558  ;;  %vm986_vm9 = vweird.f32 %v3557_v24  ;;  %v989_v30 = vand.u32 2147483647, %v4287_v44  ;;  %v991_v52 = vand.u32 2147483648, %v4287_v44  ;;  %v893_v55 = vmul.f32 0.3275911, %v4319_v48 }
 0x17b   : > { %v1417_v59 = vsub.f32 0.0, %v1385_v33  ;;  %v1258_v16 = vmul.f32 %v1242_v39, %v4285_v3  ;;  %v1179_v58 = vadd.f32 -1.4531521, %v1163_v63  ;;  %v983_v21 = vmul.f32 %v3557_v24, %v982_v36 }
 0x17c   : > { %v1479_v20 = vmul.f32 %v1463_v2, %v4216_v9  ;;  %v1448_v5 = vadd.f32 1.0, %v1432_v32  ;;  %vm985_vm10 = vweird.f32 %v4287_v44  ;;  %v909_v14 = vadd.f32 1.0, %v893_v55 }
 0x17d   : > { %v1433_v4 = vsel %vm1401_vm5, %v1385_v33, %v1417_v59  ;;  %v1274_v28 = vadd.f32 0.2548296, %v1258_v16  ;;  %v1195_v11 = vmul.f32 %v1179_v58, %v978_v60  ;;  %v984_v45 = vadd.f32 %v3557_v24, %v983_v21  ;;  %vm987_vm11 = vmor %vm985_vm10, %vm986_vm9 }
 0x17e   : > { %v1478_v49 = vmul.f32 %v4292_v18, %v4156_v31  ;;  %v1449_v19 = vadd.f32 1.0, %v1433_v4  ;;  %v992_v34 = vor.u32 1.1754944e-38, %v991_v52  ;;  %3560 = vrcp.f32 %v909_v14 }
 0x17f   : > { %v1290_v9 = vmul.f32 %v1274_v28, %v4285_v3  ;;  %v1211_v54 = vadd.f32 1.4214138, %v1195_v11  ;;  %v988_v26 = vsel %vm987_vm11, %v3557_v24, %v984_v45  ;;  %vm990_vm12 = vcmp.eq.f32.partialorder %v989_v30, 8.507059e+37 }
 0x180   : > { %v1464_v44 = vmul.f32 %v1448_v5, %v4165_v8  ;;  %v1465_v17 = vmul.f32 %v1449_v19, %v4221_v35  ;;  %v1342_v10 = vmul.f32 1.442695, %v1323_v29  ;;  %v993_v46 = vsel %vm990_vm12, %v992_v34, %v988_v26 }
 0x181   : > { %v1370_v12 = vmul.f32 %v3559_v13, %v1290_v9  ;;  %v1227_v23 = vmul.f32 %v1211_v54, %v978_v60  ;;  %v1164_v25 = vmul.f32 1.0614054, %v993_v46  ;;  %v1487_v31 = vpack.c.bf16 %v1479_v20, %v1478_v49 }
 0x182   : > { %v1480_v18 = vpack.c.bf16 %v1465_v17, %v1464_v44  ;;  %3562 = vpow2.f32 %v1342_v10  ;;  %v1308_v3 = vsub.f32 0.0, %v4274_v62  ;;  %v1004_v41 = vand.u32 2147483647, %v909_v14 }
 0x183   : > { %v1243_v38 = vadd.f32 -0.28449672, %v1227_v23  ;;  %v1180_v37 = vadd.f32 -1.4531521, %v1164_v25  ;;  %v1386_v7 = vsub.f32 1.0, %v1370_v12  ;;  %v1006_v15 = vand.u32 2147483648, %v909_v14 }
 0x184   : > { %v3561_v1 = vpop.eup %3560  ;;  %3373 = vmatmul.msk.bf16.vlgmr.msrb.gmra.mxu1 %vm668_vm0, %v1480_v18  ;;  %3380 = vmatmul.msk.bf16.gmra.mxu3 %vm668_vm0, %v1487_v31  ;;  %v1324_v29 = vmul.f32 %v1308_v3, %v4274_v62  ;;  %vm1000_vm14 = vweird.f32 %v909_v14  ;;  %vm1402_vm15 = vcmp.ge.f32.partialorder %v4196_v53, 0.0  ;;  %vm1005_vm2 = vcmp.eq.f32.partialorder %v1004_v41, 8.507059e+37 }
 0x185   : > { %v1259_v27 = vmul.f32 %v1243_v38, %v978_v60  ;;  %v1196_v8 = vmul.f32 %v1180_v37, %v993_v46  ;;  %v996_v61 = vmul.f32 %v3561_v1, %v909_v14  ;;  %v1418_v22 = vsub.f32 0.0, %v1386_v7 }
 0x186   : > { %vm1001_vm13 = vweird.f32 %v3561_v1  ;;  %v1344_v36 = vmul.f32 1.442695, %v1324_v29  ;;  %v1007_v13 = vor.u32 1.1754944e-38, %v1006_v15  ;;  %vm1403_vm3 = vcmp.ge.f32.partialorder %v4241_v51, 0.0 }
 0x187   : > { %v1275_v35 = vadd.f32 0.2548296, %v1259_v27  ;;  %v1212_v6 = vadd.f32 1.4214138, %v1196_v8  ;;  %v997_v24 = vsub.f32 1.0, %v996_v61  ;;  %vm1002_vm1 = vmor %vm1000_vm14, %vm1001_vm13  ;;  %v1434_v30 = vsel %vm1402_vm15, %v1386_v7, %v1418_v22 }
 0x188   : > { %v3563_v32 = vpop.eup %3562  ;;  %v1450_v20 = vadd.f32 1.0, %v1434_v30  ;;  %3564 = vpow2.f32 %v1344_v36  ;;  %v842_v14 = vmul.f32 0.5, %v4175_v43  ;;  %v843_v4 = vmul.f32 0.5, %v4229_v47 }
 0x189   : > { %v1291_v42 = vmul.f32 %v1275_v35, %v978_v60  ;;  %v1228_v40 = vmul.f32 %v1212_v6, %v993_v46  ;;  %v998_v2 = vmul.f32 %v3561_v1, %v997_v24  ;;  %v1309_v60 = vsub.f32 0.0, %v4319_v48 }
 0x18a   : > { %v1466_v19 = vmul.f32 %v1450_v20, %v842_v14  ;;  %vm1404_vm4 = vcmp.ge.f32.partialorder %v4266_v56, 0.0  ;;  %vm1405_vm5 = vcmp.ge.f32.partialorder %v4312_v50, 0.0  ;;  %v844_v7 = vmul.f32 0.5, %v4249_v57  ;;  %v4354_v56 = vld [vmem:[%s5520_s4] ss:$0 sm:$0xff] }
 0x18b   : > { %v1371_v33 = vmul.f32 %v3563_v32, %v1291_v42  ;;  %v1244_v39 = vadd.f32 -0.28449672, %v1228_v40  ;;  %v999_v63 = vadd.f32 %v3561_v1, %v998_v2  ;;  %v1325_v11 = vmul.f32 %v1309_v60, %v4319_v48 }
 0x18c   : > { %v845_v3 = vmul.f32 0.5, %v4303_v0 }
 0x18d   : > { %v1387_v52 = vsub.f32 1.0, %v1371_v33  ;;  %v1260_v62 = vmul.f32 %v1244_v39, %v993_v46  ;;  %v1003_v55 = vsel %vm1002_vm1, %v3561_v1, %v999_v63  ;;  %v1346_v26 = vmul.f32 1.442695, %v1325_v11  ;;  %v3483_v39 = vld [vmem:[%s5521_s5 + $0x38] sm:$0xff] }
 0x18e   : > { %v1008_v59 = vsel %vm1005_vm2, %v1007_v13, %v1003_v55  ;;  %v3565_v54 = vpop.eup %3564  ;;  %2297 = vmatpush.bf16.msrb.mxu2 %v3483_v39 }
 0x18f   : > { %v1419_v16 = vsub.f32 0.0, %v1387_v52  ;;  %v1276_v58 = vadd.f32 0.2548296, %v1260_v62  ;;  %v1165_v21 = vmul.f32 1.0614054, %v1008_v59  ;;  %3566 = vpow2.f32 %v1346_v26 }
 0x191   : > { %v1435_v5 = vsel %vm1403_vm3, %v1387_v52, %v1419_v16  ;;  %v1181_v53 = vadd.f32 -1.4531521, %v1165_v21  ;;  %v1292_v45 = vmul.f32 %v1276_v58, %v993_v46 }
 0x192   : > { %v1451_v28 = vadd.f32 1.0, %v1435_v5 }
 0x193   : > { %v1197_v49 = vmul.f32 %v1181_v53, %v1008_v59  ;;  %v1372_v17 = vmul.f32 %v3565_v54, %v1292_v45 }
 0x194   : > { %v1467_v34 = vmul.f32 %v1451_v28, %v843_v4 }
 0x195   : > { %v1213_v9 = vadd.f32 1.4214138, %v1197_v49  ;;  %v1388_v43 = vsub.f32 1.0, %v1372_v17  ;;  %v3567_v48 = vpop.eup %3566 }
 0x196   : > { %v1481_v44 = vpack.c.bf16 %v1467_v34, %v1466_v19 }
 0x197   : > { %v1229_v51 = vmul.f32 %v1213_v9, %v1008_v59  ;;  %v1420_v23 = vsub.f32 0.0, %v1388_v43 }
 0x198   : > { %3374 = vmatmul.msk.bf16.gmra.mxu1 %vm668_vm0, %v1481_v44 }
 0x199   : > { %v1245_v10 = vadd.f32 -0.28449672, %v1229_v51  ;;  %v1436_v31 = vsel %vm1404_vm4, %v1388_v43, %v1420_v23 }
 0x19a   : > { %v1452_v37 = vadd.f32 1.0, %v1436_v31 }
 0x19b   : > { %v1261_v12 = vmul.f32 %v1245_v10, %v1008_v59 }
 0x19c   : > { %v1468_v8 = vmul.f32 %v1452_v37, %v844_v7 }
 0x19d   : > { %v1277_v47 = vadd.f32 0.2548296, %v1261_v12 }
 0x19f   : > { %v1293_v25 = vmul.f32 %v1277_v47, %v1008_v59 }
 0x1a1   : > { %v1373_v46 = vmul.f32 %v3567_v48, %v1293_v25 }
 0x1a3   : > { %v1389_v18 = vsub.f32 1.0, %v1373_v46 }
 0x1a5   : > { %v1421_v38 = vsub.f32 0.0, %v1389_v18 }
 0x1a7   : > { %v1437_v1 = vsel %vm1405_vm5, %v1389_v18, %v1421_v38 }
 0x1a8   : > { %v1453_v27 = vadd.f32 1.0, %v1437_v1 }
 0x1aa   : > { %v1469_v61 = vmul.f32 %v1453_v27, %v845_v3 }
 0x1ac   : > { %v1482_v35 = vpack.c.bf16 %v1469_v61, %v1468_v8 }
 0x1ae   : > { %3375 = vmatmul.msk.bf16.gmra.mxu1 %vm668_vm0, %v1482_v35  ;;  %v1556_v6 = vpop.f32.mrf.mxu3 }
 0x1af   : > { %v4357_v24 = vadd.f32 %v4354_v56, %v1556_v6 }
 0x1b1   : > { %5543 = vst [vmem:[#allocation2_spill] sm:$0xff] %v4357_v24  ;;  %v4360_v50 = vmul.f32 0.70710677, %v4357_v24 }
 0x1b3   : > { %5544 = vst [vmem:[#allocation3_spill] sm:$0xff] %v4360_v50  ;;  %v1619_v22 = vand.u32 2147483647, %v4360_v50 }
 0x1b5   : > { %v1635_v41 = vmul.f32 0.3275911, %v1619_v22  ;;  %v2051_v44 = vsub.f32 0.0, %v1619_v22 }
 0x1b6   : > { %v1558_v57 = vpop.f32.mrf.mxu3 }
 0x1b7   : > { %v4363_v0 = vadd.f32 %v4354_v56, %v1558_v57  ;;  %v1651_v42 = vadd.f32 1.0, %v1635_v41  ;;  %v2067_v23 = vmul.f32 %v2051_v44, %v1619_v22  ;;  %v3481_v44 = vld [vmem:[%s5521_s5 + $0x28] sm:$0xff] }
 0x1b9   : > { %5545 = vst [vmem:[#allocation4_spill] sm:$0xff] %v4363_v0  ;;  %v4367_v29 = vmul.f32 0.70710677, %v4363_v0  ;;  %3568 = vrcp.f32 %v1651_v42  ;;  %v1762_v28 = vand.u32 2147483648, %v1651_v42  ;;  %vm1756_vm7 = vweird.f32 %v1651_v42 }
 0x1ba   : > { %v1760_v49 = vand.u32 2147483647, %v1651_v42  ;;  %v2089_v3 = vmul.f32 1.442695, %v2067_v23 }
 0x1bb   : > { %v4370_v15 = vand.u32 2147483647, %v4367_v29  ;;  %v1763_v26 = vor.u32 1.1754944e-38, %v1762_v28 }
 0x1bc   : > { %vm1761_vm9 = vcmp.eq.f32.partialorder %v1760_v49, 8.507059e+37 }
 0x1bd   : > { %v1636_v40 = vmul.f32 0.3275911, %v4370_v15  ;;  %v2052_v46 = vsub.f32 0.0, %v4370_v15 }
 0x1be   : > { %v1561_v2 = vpop.f32.mrf.mxu3 }
 0x1bf   : > { %v1652_v32 = vadd.f32 1.0, %v1636_v40  ;;  %v3569_v33 = vpop.eup %3568  ;;  %v4377_v63 = vadd.f32 %v4354_v56, %v1561_v2  ;;  %v2068_v61 = vmul.f32 %v2052_v46, %v4370_v15  ;;  %v3482_v15 = vld [vmem:[%s5521_s5 + $0x30] sm:$0xff] }
 0x1c0   : > { %v1752_v36 = vmul.f32 %v3569_v33, %v1651_v42  ;;  %vm1757_vm6 = vweird.f32 %v3569_v33  ;;  %2298 = vmatpush.bf16.msrb.mxu2 %v3482_v15 }
 0x1c1   : > { %3570 = vrcp.f32 %v1652_v32  ;;  %5546 = vst [vmem:[#allocation5_spill] sm:$0xff] %v4377_v63  ;;  %v4380_v30 = vmul.f32 0.70710677, %v4377_v63  ;;  %vm1758_vm8 = vmor %vm1756_vm7, %vm1757_vm6  ;;  %v1777_v47 = vand.u32 2147483648, %v1652_v32  ;;  %vm1771_vm11 = vweird.f32 %v1652_v32 }
 0x1c2   : > { %v1753_v62 = vsub.f32 1.0, %v1752_v36  ;;  %v1775_v48 = vand.u32 2147483647, %v1652_v32 }
 0x1c3   : > { %5547 = vst [vmem:[#allocation6_spill] sm:$0xff] %v4380_v30  ;;  %v4386_v60 = vand.u32 2147483647, %v4380_v30  ;;  %v1778_v1 = vor.u32 1.1754944e-38, %v1777_v47 }
 0x1c4   : > { %v1754_v16 = vmul.f32 %v3569_v33, %v1753_v62  ;;  %vm1776_vm13 = vcmp.eq.f32.partialorder %v1775_v48, 8.507059e+37  ;;  %2299 = vmatpush.bf16.msrb.mxu2 %v3481_v44 }
 0x1c5   : > { %v1637_v53 = vmul.f32 0.3275911, %v4386_v60  ;;  %v2053_v62 = vsub.f32 0.0, %v4386_v60 }
 0x1c6   : > { %v1563_v13 = vpop.f32.mrf.mxu3  ;;  %v1755_v4 = vadd.f32 %v3569_v33, %v1754_v16 }
 0x1c7   : > { %v3571_v52 = vpop.eup %3570  ;;  %v4383_v55 = vadd.f32 %v4354_v56, %v1563_v13  ;;  %v4404_v34 = vadd.f32 1.0, %v1637_v53  ;;  %v4475_v48 = vmul.f32 %v2053_v62, %v4386_v60  ;;  %v3480_v60 = vld [vmem:[%s5521_s5 + $0x20] sm:$0xff] }
 0x1c8   : > { %v1767_v59 = vmul.f32 %v3571_v52, %v1652_v32  ;;  %v1759_v54 = vsel %vm1758_vm8, %v3569_v33, %v1755_v4  ;;  %vm1772_vm10 = vweird.f32 %v3571_v52  ;;  %v2091_v33 = vmul.f32 1.442695, %v2068_v61  ;;  %2300 = vmatpush.bf16.msrb.mxu2 %v3480_v60 }
 0x1c9   : > { %5548 = vst [vmem:[#allocation7_spill] sm:$0xff] %v4383_v55  ;;  %v4389_v21 = vmul.f32 0.70710677, %v4383_v55  ;;  %3572 = vrcp.f32 %v4404_v34  ;;  %v4411_v43 = vsel %vm1761_vm9, %v1763_v26, %v1759_v54  ;;  %vm1773_vm12 = vmor %vm1771_vm11, %vm1772_vm10  ;;  %vm1786_vm3 = vweird.f32 %v4404_v34 }
 0x1ca   : > { %v1768_v5 = vsub.f32 1.0, %v1767_v59  ;;  %v1907_v18 = vmul.f32 1.0614054, %v4411_v43 }
 0x1cb   : > { %5549 = vst [vmem:[#allocation8_spill] sm:$0xff] %v4389_v21  ;;  %v4399_v11 = vand.u32 2147483647, %v4389_v21 }
 0x1cc   : > { %v1769_v19 = vmul.f32 %v3571_v52, %v1768_v5  ;;  %v1923_v57 = vadd.f32 -1.4531521, %v1907_v18  ;;  %v1792_v5 = vand.u32 2147483648, %v4404_v34 }
 0x1cd   : > { %v1638_v17 = vmul.f32 0.3275911, %v4399_v11 }
 0x1ce   : > { %v1770_v12 = vadd.f32 %v3571_v52, %v1769_v19  ;;  %v1939_v13 = vmul.f32 %v1923_v57, %v4411_v43 }
 0x1cf   : > { %v4414_v25 = vadd.f32 1.0, %v1638_v17  ;;  %v4421_v7 = vpop.eup %3572 }
 0x1d0   : > { %v1774_v37 = vsel %vm1773_vm12, %v3571_v52, %v1770_v12  ;;  %v1782_v41 = vmul.f32 %v4421_v7, %v4404_v34  ;;  %vm1787_vm4 = vweird.f32 %v4421_v7 }
 0x1d1   : > { %v4431_v6 = vsel %vm1776_vm13, %v1778_v1, %v1774_v37  ;;  %vm1801_vm5 = vweird.f32 %v4414_v25  ;;  %vm4520_vm6 = vmor %vm1786_vm3, %vm1787_vm4 }
 0x1d2   : > { %v1908_v32 = vmul.f32 1.0614054, %v4431_v6 }
 0x1de   : > { %v1566_v31 = vpop.f32.mrf.mxu3 }
 0x1df   : > { %v4425_v27 = vadd.f32 %v4354_v56, %v1566_v31 }
 0x1e1   : > { %5550 = vst [vmem:[#allocation9_spill] sm:$0xff] %v4425_v27  ;;  %v4437_v40 = vmul.f32 0.70710677, %v4425_v27 }
 0x1e3   : > { %5551 = vst [vmem:[#allocation10_spill] sm:$0xff] %v4437_v40  ;;  %v4458_v49 = vand.u32 2147483647, %v4437_v40 }
 0x1e5   : > { %5552 = vst [vmem:[#allocation11_spill] sm:$0xff] %v4458_v49  ;;  %v1639_v18 = vmul.f32 0.3275911, %v4458_v49 }
 0x1e6   : > { %v1568_v53 = vpop.f32.mrf.mxu3 }
 0x1e7   : > { %v4471_v47 = vadd.f32 %v4354_v56, %v1568_v53  ;;  %v3479_v53 = vld [vmem:[%s5521_s5 + $0x18] sm:$0xff] }
 0x1e8   : > { %2301 = vmatpush.bf16.msrb.mxu2 %v3479_v53 }
 0x1e9   : > { %5553 = vst [vmem:[#allocation12_spill] sm:$0xff] %v4471_v47 }
 0x201   : > { %v1541_v58 = vpop.f32.mrf.mxu1 }
 0x202   : > { %v4392_v20 = vadd.f32 %v4354_v56, %v1541_v58  ;;  %v1783_v58 = vsub.f32 1.0, %v1782_v41  ;;  %v2054_v41 = vsub.f32 0.0, %v4399_v11 }
 0x204   : > { %v4396_v14 = vmul.f32 0.70710677, %v4392_v20  ;;  %v1784_v23 = vmul.f32 %v4421_v7, %v1783_v58 }
 0x206   : > { %v4402_v45 = vand.u32 2147483647, %v4396_v14 }
 0x208   : > { %v1629_v9 = vmul.f32 0.3275911, %v4402_v45 }
 0x209   : > { %v1543_v10 = vpop.f32.mrf.mxu1 }
 0x20a   : > { %v4408_v51 = vadd.f32 1.0, %v1629_v9  ;;  %v4419_v38 = vadd.f32 %v4354_v56, %v1543_v10  ;;  %v1924_v9 = vadd.f32 -1.4531521, %v1908_v32  ;;  %v1955_v10 = vadd.f32 1.4214138, %v1939_v13 }
 0x20b   : > { %v1785_v32 = vadd.f32 %v4421_v7, %v1784_v23  ;;  %v4504_v13 = vadd.f32 1.0, %v1639_v18 }
 0x20c   : > { %3574 = vrcp.f32 %v4408_v51  ;;  %v4429_v35 = vmul.f32 0.70710677, %v4419_v38  ;;  %v1672_v39 = vand.u32 2147483648, %v4408_v51  ;;  %v1670_v16 = vand.u32 2147483647, %v4408_v51 }
 0x20d   : > { %3576 = vrcp.f32 %v4414_v25  ;;  %vm1666_vm15 = vweird.f32 %v4408_v51  ;;  %v1940_v1 = vmul.f32 %v1924_v9, %v4431_v6  ;;  %v1971_v57 = vmul.f32 %v1955_v10, %v4411_v43 }
 0x20e   : > { %3578 = vpow2.f32 %v2089_v3  ;;  %v4445_v36 = vand.u32 2147483647, %v4429_v35  ;;  %v1673_v26 = vor.u32 1.1754944e-38, %v1672_v39  ;;  %vm1671_vm2 = vcmp.eq.f32.partialorder %v1670_v16, 8.507059e+37 }
 0x20f   : > { %3580 = vpow2.f32 %v2091_v33  ;;  %v1793_v3 = vor.u32 1.1754944e-38, %v1792_v5  ;;  %v1790_v33 = vand.u32 2147483647, %v4404_v34  ;;  %v1956_v16 = vadd.f32 1.4214138, %v1940_v1 }
 0x210   : > { %v1630_v4 = vmul.f32 0.3275911, %v4445_v36  ;;  %v2045_v10 = vsub.f32 0.0, %v4402_v45  ;;  %v1789_v34 = vsel %vm4520_vm6, %v4421_v7, %v1785_v32 }
 0x211   : > { %v1972_v1 = vmul.f32 %v1956_v16, %v4431_v6  ;;  %vm1791_vm8 = vcmp.eq.f32.partialorder %v1790_v33, 8.507059e+37  ;;  %v3478_v16 = vld [vmem:[%s5521_s5 + $0x10] sm:$0xff]  ;;  %v1805_v33 = vand.u32 2147483647, %v4414_v25 }
 0x212   : > { %v3575_v8 = vpop.eup %3574  ;;  %v4466_v17 = vadd.f32 1.0, %v1630_v4  ;;  %v1987_v4 = vadd.f32 -0.28449672, %v1971_v57  ;;  %v4545_v7 = vsel %vm1791_vm8, %v1793_v3, %v1789_v34  ;;  %2302 = vmatpush.bf16.msrb.mxu2 %v3478_v16  ;;  %vm2142_vm8 = vcmp.ge.f32.partialorder %v4429_v35, 0.0 }
 0x213   : > { %v1662_v22 = vmul.f32 %v3575_v8, %v4408_v51  ;;  %v4448_v52 = vpop.eup %3576  ;;  %vm1667_vm14 = vweird.f32 %v3575_v8  ;;  %vm1806_vm13 = vcmp.eq.f32.partialorder %v1805_v33, 8.507059e+37 }
 0x214   : > { %v1797_v54 = vmul.f32 %v4448_v52, %v4414_v25  ;;  %vm1668_vm1 = vmor %vm1666_vm15, %vm1667_vm14  ;;  %v4468_v12 = vpop.eup %3578  ;;  %3582 = vrcp.f32 %v4466_v17  ;;  %vm1802_vm7 = vweird.f32 %v4448_v52  ;;  %v1687_v32 = vand.u32 2147483648, %v4466_v17 }
 0x215   : > { %v1546_v42 = vpop.f32.mrf.mxu1  ;;  %v1663_v2 = vsub.f32 1.0, %v1662_v22  ;;  %v1807_v22 = vand.u32 2147483648, %v4414_v25  ;;  %v4502_v39 = vpop.eup %3580  ;;  %3584 = vrcp.f32 %v4504_v13  ;;  %vm4560_vm9 = vmor %vm1801_vm5, %vm1802_vm7  ;;  %v1909_v25 = vmul.f32 1.0614054, %v4545_v7 }
 0x216   : > { %v4455_v28 = vadd.f32 %v4354_v56, %v1546_v42  ;;  %v4494_v42 = vmul.f32 0.70710677, %v4471_v47  ;;  %vm1681_vm11 = vweird.f32 %v4466_v17  ;;  %vm2141_vm7 = vcmp.ge.f32.partialorder %v4396_v14, 0.0 }
 0x217   : > { %v1664_v59 = vmul.f32 %v3575_v8, %v1663_v2  ;;  %v1808_v9 = vor.u32 1.1754944e-38, %v1807_v22 }
 0x218   : > { %v4480_v31 = vmul.f32 0.70710677, %v4455_v28  ;;  %5554 = vst [vmem:[#allocation13_spill] sm:$0xff] %v4494_v42 }
 0x219   : > { %v1665_v19 = vadd.f32 %v3575_v8, %v1664_v59 }
 0x21a   : > { %v4498_v2 = vand.u32 2147483647, %v4480_v31  ;;  %v3583_v44 = vpop.eup %3582 }
 0x21b   : > { %v1669_v51 = vsel %vm1668_vm1, %v3575_v8, %v1665_v19  ;;  %v1798_v8 = vsub.f32 1.0, %v1797_v54  ;;  %v4526_v54 = vand.u32 2147483647, %v4494_v42  ;;  %vm1682_vm10 = vweird.f32 %v3583_v44 }
 0x21c   : > { %v4477_v46 = vsel %vm1671_vm2, %v1673_v26, %v1669_v51  ;;  %v1631_v5 = vmul.f32 0.3275911, %v4498_v2  ;;  %vm1683_vm12 = vmor %vm1681_vm11, %vm1682_vm10 }
 0x21d   : > { %v1901_v37 = vmul.f32 1.0614054, %v4477_v46  ;;  %v1548_v61 = vpop.f32.mrf.mxu1  ;;  %v1799_v58 = vmul.f32 %v4448_v52, %v1798_v8  ;;  %v2003_v8 = vmul.f32 %v1987_v4, %v4411_v43 }
 0x21e   : > { %v4508_v59 = vadd.f32 %v4354_v56, %v1548_v61  ;;  %v4529_v51 = vadd.f32 1.0, %v1631_v5  ;;  %v1640_v61 = vmul.f32 0.3275911, %v4526_v54  ;;  %v1988_v5 = vadd.f32 -0.28449672, %v1972_v1 }
 0x21f   : > { %v1917_v15 = vadd.f32 -1.4531521, %v1901_v37  ;;  %v1677_v37 = vmul.f32 %v3583_v44, %v4466_v17  ;;  %v1800_v60 = vadd.f32 %v4448_v52, %v1799_v58  ;;  %v1685_v58 = vand.u32 2147483647, %v4466_v17 }
 0x220   : > { %v4532_v23 = vmul.f32 0.70710677, %v4508_v59  ;;  %3586 = vrcp.f32 %v4529_v51  ;;  %v2019_v19 = vadd.f32 0.2548296, %v2003_v8  ;;  %v4572_v34 = vadd.f32 1.0, %v1640_v61 }
 0x221   : > { %v1933_v62 = vmul.f32 %v1917_v15, %v4477_v46  ;;  %v1678_v22 = vsub.f32 1.0, %v1677_v37  ;;  %v2061_v15 = vmul.f32 %v2045_v10, %v4402_v45  ;;  %v4570_v10 = vpop.eup %3584  ;;  %v1688_v8 = vor.u32 1.1754944e-38, %v1687_v32 }
 0x222   : > { %vm1686_vm14 = vcmp.eq.f32.partialorder %v1685_v58, 8.507059e+37  ;;  %v2046_v61 = vsub.f32 0.0, %v4445_v36  ;;  %v3476_v58 = vld [vmem:[%s5521_s5] sm:$0xff]  ;;  %vm1696_vm1 = vweird.f32 %v4529_v51 }
 0x223   : > { %v1949_v26 = vadd.f32 1.4214138, %v1933_v62  ;;  %v4550_v62 = vand.u32 2147483647, %v4532_v23  ;;  %v1679_v45 = vmul.f32 %v3583_v44, %v1678_v22  ;;  %v2077_v16 = vmul.f32 1.442695, %v2061_v15 }
 0x225   : > { %v1965_v18 = vmul.f32 %v1949_v26, %v4477_v46  ;;  %v1632_v53 = vmul.f32 0.3275911, %v4550_v62  ;;  %v1804_v26 = vsel %vm4560_vm9, %v4448_v52, %v1800_v60  ;;  %v1680_v22 = vadd.f32 %v3583_v44, %v1679_v45  ;;  %v3477_v52 = vld [vmem:[%s5521_s5 + $0x8] sm:$0xff] }
 0x226   : > { %v4576_v1 = vpop.eup %3586  ;;  %2303 = vmatpush.bf16.msrb.mxu2 %v3477_v52  ;;  %v4591_v32 = vsel %vm1806_vm13, %v1808_v9, %v1804_v26  ;;  %v1812_v45 = vmul.f32 %v4570_v10, %v4504_v13  ;;  %v1925_v9 = vadd.f32 -1.4531521, %v1909_v25 }
 0x227   : > { %v1981_v57 = vadd.f32 -0.28449672, %v1965_v18  ;;  %v1571_v18 = vpop.f32.mrf.mxu3  ;;  %v4579_v3 = vadd.f32 1.0, %v1632_v53  ;;  %v1684_v60 = vsel %vm1683_vm12, %v3583_v44, %v1680_v22  ;;  %v1692_v15 = vmul.f32 %v4576_v1, %v4529_v51 }
 0x228   : > { %v4586_v17 = vsel %vm1686_vm14, %v1688_v8, %v1684_v60  ;;  %v1822_v53 = vand.u32 2147483648, %v4504_v13  ;;  %v2062_v22 = vmul.f32 %v2046_v61, %v4445_v36  ;;  %v1910_v52 = vmul.f32 1.0614054, %v4591_v32 }
 0x229   : > { %v1997_v37 = vmul.f32 %v1981_v57, %v4477_v46  ;;  %v2004_v57 = vmul.f32 %v1988_v5, %v4431_v6  ;;  %3588 = vrcp.f32 %v4579_v3  ;;  %v1902_v33 = vmul.f32 1.0614054, %v4586_v17 }
 0x22a   : > { %3590 = vrcp.f32 %v4572_v34  ;;  %v4601_v5 = vmul.f32 1.442695, %v4475_v48  ;;  %v1693_v60 = vsub.f32 1.0, %v1692_v15  ;;  %2304 = vmatpush.bf16.msrb.mxu2 %v3476_v58  ;;  %v4615_v48 = vmul.f32 %v2019_v19, %v4411_v43 }
 0x22b   : > { %v1551_v4 = vpop.f32.mrf.mxu1  ;;  %v2013_v44 = vadd.f32 0.2548296, %v1997_v37  ;;  %3592 = vpow2.f32 %v2077_v16  ;;  %v1918_v26 = vadd.f32 -1.4531521, %v1902_v33  ;;  %v2020_v8 = vadd.f32 0.2548296, %v2004_v57 }
 0x22c   : > { %v4609_v37 = vmul.f32 %v2054_v41, %v4399_v11  ;;  %v4612_v27 = vadd.f32 %v4354_v56, %v1551_v4  ;;  %v1813_v25 = vsub.f32 1.0, %v1812_v45  ;;  %v4618_v16 = vadd.f32 %v4354_v56, %v1571_v18 }
 0x22d   : > { %v2029_v36 = vmul.f32 %v2013_v44, %v4477_v46  ;;  %v1934_v61 = vmul.f32 %v1918_v26, %v4586_v17  ;;  %v4624_v11 = vor.u32 1.1754944e-38, %v1822_v53  ;;  %v1837_v41 = vand.u32 2147483648, %v4572_v34 }
 0x22e   : > { %5559 = vst [vmem:[#allocation14_spill] sm:$0xff] %v4618_v16  ;;  %v4628_v4 = vmul.f32 0.70710677, %v4612_v27  ;;  %v4631_v43 = vmul.f32 %v1925_v9, %v4545_v7  ;;  %v2079_v46 = vmul.f32 1.442695, %v2062_v22  ;;  %v4636_v45 = vmul.f32 %v2020_v8, %v4431_v6 }
 0x22f   : > { %v4622_v33 = vpop.eup %3588  ;;  %v1573_v18 = vpop.f32.mrf.mxu3  ;;  %v1950_v15 = vadd.f32 1.4214138, %v1934_v61  ;;  %v1926_v44 = vadd.f32 -1.4531521, %v1910_v52  ;;  %v1694_v53 = vmul.f32 %v4576_v1, %v1693_v60  ;;  %v4648_v40 = vmul.f32 %v4570_v10, %v1813_v25 }
 0x230   : > { %v4633_v19 = vpop.eup %3590  ;;  %v1707_v26 = vmul.f32 %v4622_v33, %v4579_v3  ;;  %v4642_v47 = vand.u32 2147483647, %v4628_v4  ;;  %v4651_v22 = vmul.f32 0.70710677, %v4618_v16  ;;  %v4654_v52 = vor.u32 1.1754944e-38, %v1837_v41 }
 0x231   : > { %v3593_v58 = vpop.eup %3592  ;;  %v1966_v8 = vmul.f32 %v1950_v15, %v4586_v17  ;;  %v4657_v60 = vadd.f32 %v4354_v56, %v1573_v18  ;;  %3594 = vpow2.f32 %v2079_v46  ;;  %v4665_v16 = vmul.f32 %v1926_v44, %v4591_v32 }
 0x232   : > { %5560 = vst [vmem:[#allocation15_spill] sm:$0xff] %v4651_v22  ;;  %v2109_v6 = vmul.f32 %v3593_v58, %v2029_v36  ;;  %v1708_v61 = vsub.f32 1.0, %v1707_v26  ;;  %v1633_v42 = vmul.f32 0.3275911, %v4642_v47  ;;  %vm1697_vm15 = vweird.f32 %v4576_v1 }
 0x233   : > { %v1553_v57 = vpop.f32.mrf.mxu1  ;;  %5561 = vst [vmem:[#allocation16_spill] sm:$0xff] %v4657_v60  ;;  %v1982_v25 = vadd.f32 -0.28449672, %v1966_v8  ;;  %v1695_v18 = vadd.f32 %v4576_v1, %v1694_v53  ;;  %v4675_v15 = vand.u32 2147483647, %v4651_v22  ;;  %v1702_v46 = vand.u32 2147483648, %v4529_v51  ;;  %vm4686_vm2 = vmor %vm1696_vm1, %vm1697_vm15 }
 0x234   : > { %v4645_v9 = vadd.f32 %v4354_v56, %v1553_v57  ;;  %v4662_v57 = vmul.f32 %v4633_v19, %v4572_v34  ;;  %v4668_v36 = vadd.f32 1.0, %v1633_v42  ;;  %v2125_v58 = vsub.f32 1.0, %v2109_v6 }
 0x235   : > { %v1998_v26 = vmul.f32 %v1982_v25, %v4586_v17  ;;  %v4680_v44 = vmul.f32 0.70710677, %v4657_v60  ;;  %v1709_v42 = vmul.f32 %v4622_v33, %v1708_v61  ;;  %v1581_v8 = vmul.f32 0.5, %v4392_v20 }
 0x236   : > { %v4671_v41 = vmul.f32 0.70710677, %v4645_v9  ;;  %3596 = vrcp.f32 %v4668_v36  ;;  %v2047_v6 = vsub.f32 0.0, %v4498_v2  ;;  %vm1712_vm3 = vweird.f32 %v4622_v33 }
 0x237   : > { %5562 = vst [vmem:[#allocation17_spill] sm:$0xff] %v4680_v44  ;;  %v2014_v53 = vadd.f32 0.2548296, %v1998_v26  ;;  %v1717_v60 = vand.u32 2147483648, %v4579_v3  ;;  %v1699_v61 = vsel %vm4686_vm2, %v4576_v1, %v1695_v18  ;;  %v1700_v20 = vand.u32 2147483647, %v4529_v51  ;;  %v3595_v26 = vpop.eup %3594 }
 0x238   : > { %v4692_v25 = vand.u32 2147483647, %v4671_v41  ;;  %v2157_v63 = vsub.f32 0.0, %v2125_v58  ;;  %v1703_v30 = vor.u32 1.1754944e-38, %v1702_v46  ;;  %vm1711_vm4 = vweird.f32 %v4579_v3 }
 0x239   : > { %v2030_v55 = vmul.f32 %v2014_v53, %v4586_v17  ;;  %vm1701_vm5 = vcmp.eq.f32.partialorder %v1700_v20, 8.507059e+37  ;;  %v1710_v0 = vadd.f32 %v4622_v33, %v1709_v42  ;;  %v1715_v24 = vand.u32 2147483647, %v4579_v3  ;;  %vm4705_vm6 = vmor %vm1711_vm4, %vm1712_vm3 }
 0x23a   : > { %v1634_v21 = vmul.f32 0.3275911, %v4692_v25  ;;  %v2048_v51 = vsub.f32 0.0, %v4550_v62  ;;  %v4712_v17 = vsel %vm1701_vm5, %v1703_v30, %v1699_v61  ;;  %v4715_v46 = vand.u32 2147483647, %v4680_v44  ;;  %v1576_v61 = vpop.f32.mrf.mxu3 }
 0x23b   : > { %v2110_v50 = vmul.f32 %v3595_v26, %v2030_v55  ;;  %v1718_v42 = vor.u32 1.1754944e-38, %v1717_v60  ;;  %v1714_v55 = vsel %vm4705_vm6, %v4622_v33, %v1710_v0  ;;  %v2173_v3 = vsel %vm2141_vm7, %v2125_v58, %v2157_v63 }
 0x23c   : > { %v4710_v1 = vadd.f32 1.0, %v1634_v21  ;;  %v3597_v18 = vpop.eup %3596  ;;  %v1903_v21 = vmul.f32 1.0614054, %v4712_v17  ;;  %v2063_v30 = vmul.f32 %v2047_v6, %v4498_v2  ;;  %vm1716_vm9 = vcmp.eq.f32.partialorder %v1715_v24, 8.507059e+37 }
 0x23d   : > { %v2126_v53 = vsub.f32 1.0, %v2110_v50  ;;  %v1722_v20 = vmul.f32 %v3597_v18, %v4668_v36  ;;  %v2064_v60 = vmul.f32 %v2048_v51, %v4550_v62  ;;  %v4727_v22 = vsel %vm1716_vm9, %v1718_v42, %v1714_v55 }
 0x23e   : > { %3598 = vrcp.f32 %v4710_v1  ;;  %v2189_v0 = vadd.f32 1.0, %v2173_v3  ;;  %vm1727_vm10 = vweird.f32 %v3597_v18  ;;  %v1732_v50 = vand.u32 2147483648, %v4668_v36 }
 0x23f   : > { %v2158_v14 = vsub.f32 0.0, %v2126_v53  ;;  %v1723_v26 = vsub.f32 1.0, %v1722_v20  ;;  %v1904_v63 = vmul.f32 1.0614054, %v4727_v22  ;;  %v1919_v58 = vadd.f32 -1.4531521, %v1903_v21 }
 0x240   : > { %v1730_v2 = vand.u32 2147483647, %v4668_v36  ;;  %v1582_v24 = vmul.f32 0.5, %v4419_v38  ;;  %v2081_v44 = vmul.f32 1.442695, %v2063_v30  ;;  %vm1726_vm11 = vweird.f32 %v4668_v36 }
 0x241   : > { %v2174_v33 = vsel %vm2142_vm8, %v2126_v53, %v2158_v14  ;;  %v1724_v35 = vmul.f32 %v3597_v18, %v1723_v26  ;;  %v1920_v49 = vadd.f32 -1.4531521, %v1904_v63  ;;  %v2083_v62 = vmul.f32 1.442695, %v2064_v60  ;;  %vm1728_vm12 = vmor %vm1726_vm11, %vm1727_vm10 }
 0x242   : > { %v2190_v6 = vadd.f32 1.0, %v2174_v33  ;;  %v1935_v51 = vmul.f32 %v1919_v58, %v4712_v17  ;;  %v2205_v3 = vmul.f32 %v2189_v0, %v1581_v8  ;;  %v1733_v53 = vor.u32 1.1754944e-38, %v1732_v50  ;;  %v1578_v58 = vpop.f32.mrf.mxu3 }
 0x243   : > { %v1725_v42 = vadd.f32 %v3597_v18, %v1724_v35  ;;  %v1936_v21 = vmul.f32 %v1920_v49, %v4727_v22  ;;  %vm1731_vm13 = vcmp.eq.f32.partialorder %v1730_v2, 8.507059e+37  ;;  %v2049_v30 = vsub.f32 0.0, %v4642_v47 }
 0x244   : > { %v3599_v55 = vpop.eup %3598  ;;  %v2206_v20 = vmul.f32 %v2190_v6, %v1582_v24  ;;  %v1951_v38 = vadd.f32 1.4214138, %v1935_v51  ;;  %v1641_v33 = vmul.f32 0.3275911, %v4675_v15  ;;  %3600 = vpow2.f32 %v2081_v44 }
 0x245   : > { %v1737_v14 = vmul.f32 %v3599_v55, %v4710_v1  ;;  %v1729_v26 = vsel %vm1728_vm12, %v3597_v18, %v1725_v42  ;;  %v1952_v36 = vadd.f32 1.4214138, %v1936_v21  ;;  %v1747_v49 = vand.u32 2147483648, %v4710_v1 }
 0x246   : > { %v2221_v60 = vpack.c.bf16 %v2206_v20, %v2205_v3  ;;  %v4739_v63 = vsel %vm1731_vm13, %v1733_v53, %v1729_v26  ;;  %v1967_v0 = vmul.f32 %v1951_v38, %v4712_v17  ;;  %v1745_v35 = vand.u32 2147483647, %v4710_v1 }
 0x247   : > { %v1738_v8 = vsub.f32 1.0, %v1737_v14  ;;  %v1905_v50 = vmul.f32 1.0614054, %v4739_v63  ;;  %v1968_v18 = vmul.f32 %v1952_v36, %v4727_v22  ;;  %vm1742_vm14 = vweird.f32 %v3599_v55 }
 0x248   : > { %2305 = vmatmul.bf16.vlgmr.msrb.gmra.mxu2 %v2221_v60  ;;  %v1983_v24 = vadd.f32 -0.28449672, %v1967_v0  ;;  %v1642_v51 = vmul.f32 0.3275911, %v4715_v46  ;;  %3602 = vpow2.f32 %v2083_v62  ;;  %v2065_v42 = vmul.f32 %v2049_v30, %v4642_v47 }
 0x249   : > { %v1739_v2 = vmul.f32 %v3599_v55, %v1738_v8  ;;  %v1921_v6 = vadd.f32 -1.4531521, %v1905_v50  ;;  %v1984_v3 = vadd.f32 -0.28449672, %v1968_v18  ;;  %vm1741_vm15 = vweird.f32 %v4710_v1 }
 0x24a   : > { %v1999_v44 = vmul.f32 %v1983_v24, %v4712_v17  ;;  %v4753_v21 = vadd.f32 %v4354_v56, %v1576_v61  ;;  %v4756_v14 = vadd.f32 %v4354_v56, %v1578_v58  ;;  %vm1743_vm1 = vmor %vm1741_vm15, %vm1742_vm14  ;;  %v1748_v38 = vor.u32 1.1754944e-38, %v1747_v49  ;;  %v3601_v1 = vpop.eup %3600 }
 0x24b   : > { %v1740_v20 = vadd.f32 %v3599_v55, %v1739_v2  ;;  %v1937_v53 = vmul.f32 %v1921_v6, %v4739_v63  ;;  %v2000_v62 = vmul.f32 %v1984_v3, %v4727_v22  ;;  %vm1746_vm2 = vcmp.eq.f32.partialorder %v1745_v35, 8.507059e+37 }
 0x24c   : > { %v2015_v26 = vadd.f32 0.2548296, %v1999_v44  ;;  %v2085_v60 = vmul.f32 1.442695, %v2065_v42  ;;  %v2050_v36 = vsub.f32 0.0, %v4692_v25  ;;  %v4762_v61 = vadd.f32 1.0, %v1642_v51 }
 0x24d   : > { %v1744_v47 = vsel %vm1743_vm1, %v3599_v55, %v1740_v20  ;;  %v1953_v30 = vadd.f32 1.4214138, %v1937_v53  ;;  %v2016_v8 = vadd.f32 0.2548296, %v2000_v62  ;;  %v1828_v55 = vsub.f32 1.0, %v4662_v57 }
 0x24e   : > { %v4760_v0 = vsel %vm1746_vm2, %v1748_v38, %v1744_v47  ;;  %v2031_v56 = vmul.f32 %v2015_v26, %v4712_v17  ;;  %v3603_v18 = vpop.eup %3602  ;;  %v4768_v35 = vadd.f32 1.0, %v1641_v33  ;;  %v4771_v58 = vmul.f32 0.70710677, %v4753_v21 }
 0x24f   : > { %v1906_v50 = vmul.f32 1.0614054, %v4760_v0  ;;  %v1969_v49 = vmul.f32 %v1953_v30, %v4739_v63  ;;  %v2032_v2 = vmul.f32 %v2016_v8, %v4727_v22  ;;  %v4775_v42 = vadd.f32 1.4214138, %v4665_v16 }
 0x250   : > { %v2111_v24 = vmul.f32 %v3601_v1, %v2031_v56  ;;  %vm1817_vm3 = vweird.f32 %v4570_v10  ;;  %vm1831_vm4 = vweird.f32 %v4572_v34  ;;  %v4780_v17 = vmul.f32 0.70710677, %v4756_v14 }
 0x251   : > { %v1922_v6 = vadd.f32 -1.4531521, %v1906_v50  ;;  %v1985_v51 = vadd.f32 -0.28449672, %v1969_v49  ;;  %3604 = vpow2.f32 %v2085_v60  ;;  %v2066_v57 = vmul.f32 %v2050_v36, %v4692_v25 }
 0x252   : > { %v2112_v33 = vmul.f32 %v3603_v18, %v2032_v2  ;;  %3606 = vrcp.f32 %v4762_v61  ;;  %v2127_v22 = vsub.f32 1.0, %v2111_v24  ;;  %vm1816_vm5 = vweird.f32 %v4504_v13 }
 0x253   : > { %v1938_v3 = vmul.f32 %v1922_v6, %v4760_v0  ;;  %v2001_v44 = vmul.f32 %v1985_v51, %v4739_v63  ;;  %v1829_v16 = vmul.f32 %v4633_v19, %v1828_v55  ;;  %3608 = vrcp.f32 %v4768_v35  ;;  %vm4831_vm10 = vmor %vm1816_vm5, %vm1817_vm3 }
 0x254   : > { %v4790_v20 = vand.u32 2147483647, %v4771_v58  ;;  %v2128_v53 = vsub.f32 1.0, %v2112_v33  ;;  %vm1832_vm6 = vweird.f32 %v4633_v19  ;;  %v2159_v25 = vsub.f32 0.0, %v2127_v22 }
 0x255   : > { %v1954_v38 = vadd.f32 1.4214138, %v1938_v3  ;;  %v2017_v62 = vadd.f32 0.2548296, %v2001_v44  ;;  %v4794_v26 = vand.u32 2147483647, %v4780_v17  ;;  %v1830_v18 = vadd.f32 %v4633_v19, %v1829_v16  ;;  %vm4815_vm9 = vmor %vm1831_vm4, %vm1832_vm6 }
 0x256   : > { %vm2143_vm7 = vcmp.ge.f32.partialorder %v4480_v31, 0.0  ;;  %v2087_v47 = vmul.f32 1.442695, %v2066_v57  ;;  %v2160_v30 = vsub.f32 0.0, %v2128_v53  ;;  %vm2144_vm8 = vcmp.ge.f32.partialorder %v4532_v23, 0.0 }
 0x257   : > { %v2175_v1 = vsel %vm2143_vm7, %v2127_v22, %v2159_v25  ;;  %v1970_v60 = vmul.f32 %v1954_v38, %v4760_v0  ;;  %v2033_v36 = vmul.f32 %v2017_v62, %v4739_v63  ;;  %v3605_v8 = vpop.eup %3604  ;;  %v1583_v56 = vmul.f32 0.5, %v4455_v28 }
 0x258   : > { %v2176_v50 = vsel %vm2144_vm8, %v2128_v53, %v2160_v30  ;;  %v2191_v49 = vadd.f32 1.0, %v2175_v1  ;;  %v4802_v55 = vpop.eup %3606  ;;  %v1584_v31 = vmul.f32 0.5, %v4508_v59  ;;  %v1644_v51 = vmul.f32 0.3275911, %v4794_v26 }
 0x259   : > { %v2192_v2 = vadd.f32 1.0, %v2176_v50  ;;  %v1986_v24 = vadd.f32 -0.28449672, %v1970_v60  ;;  %v2113_v6 = vmul.f32 %v3605_v8, %v2033_v36  ;;  %v4805_v23 = vpop.eup %3608  ;;  %3610 = vpow2.f32 %v2087_v47 }
 0x25a   : > { %v1815_v63 = vadd.f32 %v4570_v10, %v4648_v40  ;;  %v1835_v28 = vand.u32 2147483647, %v4572_v34  ;;  %v2207_v59 = vmul.f32 %v2191_v49, %v1583_v56  ;;  %v1857_v44 = vmul.f32 %v4802_v55, %v4762_v61 }
 0x25b   : > { %v2208_v33 = vmul.f32 %v2192_v2, %v1584_v31  ;;  %v2002_v22 = vmul.f32 %v1986_v24, %v4760_v0  ;;  %v2129_v3 = vsub.f32 1.0, %v2113_v6  ;;  %v1957_v40 = vadd.f32 1.4214138, %v4631_v43 }
 0x25c   : > { %v1820_v16 = vand.u32 2147483647, %v4504_v13  ;;  %v1834_v34 = vsel %vm4815_vm9, %v4633_v19, %v1830_v18  ;;  %v1842_v25 = vmul.f32 %v4805_v23, %v4768_v35  ;;  %v1643_v38 = vmul.f32 0.3275911, %v4790_v20 }
 0x25d   : > { %v2222_v43 = vpack.c.bf16 %v2208_v33, %v2207_v59  ;;  %v2018_v62 = vadd.f32 0.2548296, %v2002_v22  ;;  %v4838_v47 = vadd.f32 1.0, %v1644_v51  ;;  %v4842_v19 = vmul.f32 %v4502_v39, %v4636_v45 }
 0x25e   : > { %v1819_v13 = vsel %vm4831_vm10, %v4570_v10, %v1815_v63  ;;  %vm1836_vm11 = vcmp.eq.f32.partialorder %v1835_v28, 8.507059e+37  ;;  %v2161_v1 = vsub.f32 0.0, %v2129_v3  ;;  %v1974_v60 = vmul.f32 %v4775_v42, %v4591_v32 }
 0x25f   : > { %2310 = vmatmul.bf16.gmra.mxu2 %v2222_v43  ;;  %v2034_v30 = vmul.f32 %v2018_v62, %v4760_v0  ;;  %v4851_v36 = vsel %vm1836_vm11, %v4654_v52, %v1834_v34  ;;  %v3611_v8 = vpop.eup %3610  ;;  %v1858_v56 = vsub.f32 1.0, %v1857_v44  ;;  %v4855_v39 = vmul.f32 %v4468_v12, %v4615_v48 }
 0x260   : > { %v1973_v45 = vmul.f32 %v1957_v40, %v4545_v7  ;;  %vm1821_vm12 = vcmp.eq.f32.partialorder %v1820_v16, 8.507059e+37  ;;  %v1843_v10 = vsub.f32 1.0, %v1842_v25  ;;  %v4858_v50 = vadd.f32 1.0, %v1643_v38 }
 0x261   : > { %v2114_v0 = vmul.f32 %v3611_v8, %v2034_v30  ;;  %v4861_v49 = vsel %vm1821_vm12, %v4624_v11, %v1819_v13  ;;  %3612 = vrcp.f32 %v4838_v47  ;;  %vm2145_vm13 = vcmp.ge.f32.partialorder %v4628_v4, 0.0 }
 0x262   : > { %v2132_v52 = vsub.f32 1.0, %v4842_v19  ;;  %v1912_v42 = vmul.f32 1.0614054, %v4851_v36  ;;  %3614 = vpow2.f32 %v4601_v5  ;;  %v2177_v48 = vsel %vm2145_vm13, %v2129_v3, %v2161_v1 }
 0x263   : > { %v2130_v12 = vsub.f32 1.0, %v2114_v0  ;;  %v1990_v18 = vadd.f32 -0.28449672, %v1974_v60  ;;  %v2095_v31 = vmul.f32 1.442695, %v4609_v37  ;;  %v1859_v2 = vmul.f32 %v4802_v55, %v1858_v56 }
 0x264   : > { %v2131_v11 = vsub.f32 1.0, %v4855_v39  ;;  %v1911_v24 = vmul.f32 1.0614054, %v4861_v49  ;;  %v1844_v6 = vmul.f32 %v4805_v23, %v1843_v10  ;;  %3616 = vrcp.f32 %v4858_v50 }
 0x265   : > { %v2162_v4 = vsub.f32 0.0, %v2130_v12  ;;  %v1989_v51 = vadd.f32 -0.28449672, %v1973_v45  ;;  %vm2146_vm14 = vcmp.ge.f32.partialorder %v4671_v41, 0.0  ;;  %v2193_v5 = vadd.f32 1.0, %v2177_v48 }
 0x266   : > { %v2164_v63 = vsub.f32 0.0, %v2132_v52  ;;  %v1928_v28 = vadd.f32 -1.4531521, %v1912_v42  ;;  %vm2148_vm15 = vcmp.ge.f32.partialorder %v4367_v29, 0.0  ;;  %vm1862_vm1 = vweird.f32 %v4802_v55 }
 0x267   : > { %v1585_v37 = vmul.f32 0.5, %v4612_v27  ;;  %v2178_v57 = vsel %vm2146_vm14, %v2130_v12, %v2162_v4  ;;  %v2006_v59 = vmul.f32 %v1990_v18, %v4591_v32  ;;  %v4881_v33 = vpop.eup %3612  ;;  %v1586_v22 = vmul.f32 0.5, %v4645_v9 }
 0x268   : > { %v2194_v3 = vadd.f32 1.0, %v2178_v57  ;;  %v1927_v41 = vadd.f32 -1.4531521, %v1911_v24  ;;  %v1860_v44 = vadd.f32 %v4802_v55, %v1859_v2  ;;  %v3615_v40 = vpop.eup %3614  ;;  %vm1847_vm2 = vweird.f32 %v4805_v23 }
 0x269   : > { %vm1861_vm3 = vweird.f32 %v4762_v61  ;;  %v1867_v16 = vand.u32 2147483648, %v4762_v61  ;;  %v1845_v27 = vadd.f32 %v4805_v23, %v1844_v6  ;;  %v2209_v34 = vmul.f32 %v2193_v5, %v1585_v37 }
 0x26a   : > { %v2210_v53 = vmul.f32 %v2194_v3, %v1586_v22  ;;  %v1944_v25 = vmul.f32 %v1928_v28, %v4851_v36  ;;  %v1865_v38 = vand.u32 2147483647, %v4762_v61  ;;  %v4891_v9 = vpop.eup %3616  ;;  %vm1846_vm4 = vweird.f32 %v4768_v35  ;;  %vm4897_vm5 = vmor %vm1861_vm3, %vm1862_vm1  ;;  %v5576_v22 = vld [vmem:[#allocation3_spill] sm:$0xff] }
 0x26b   : > { %v1852_v43 = vand.u32 2147483648, %v4768_v35  ;;  %v1887_v13 = vmul.f32 %v4881_v33, %v4838_v47  ;;  %v2005_v30 = vmul.f32 %v1989_v51, %v4545_v7  ;;  %v1943_v61 = vmul.f32 %v1927_v41, %v4861_v49  ;;  %vm4912_vm6 = vmor %vm1846_vm4, %vm1847_vm2  ;;  %v5575_v51 = vld [vmem:[#allocation11_spill] sm:$0xff] }
 0x26c   : > { %v2223_v1 = vpack.c.bf16 %v2210_v53, %v2209_v34  ;;  %v1850_v60 = vand.u32 2147483647, %v4768_v35  ;;  %v1864_v8 = vsel %vm4897_vm5, %v4802_v55, %v1860_v44  ;;  %3618 = vpow2.f32 %v2095_v31  ;;  %v5577_v44 = vld [vmem:[#allocation2_spill] sm:$0xff] }
 0x26d   : > { %v2056_v56 = vsub.f32 0.0, %v4526_v54  ;;  %v1868_v10 = vor.u32 1.1754944e-38, %v1867_v16  ;;  %v2022_v0 = vadd.f32 0.2548296, %v2006_v59  ;;  %v1872_v42 = vmul.f32 %v4891_v9, %v4858_v50 }
 0x26e   : > { %v1960_v12 = vadd.f32 1.4214138, %v1944_v25  ;;  %v1849_v35 = vsel %vm4912_vm6, %v4805_v23, %v1845_v27  ;;  %vm1866_vm7 = vcmp.eq.f32.partialorder %v1865_v38, 8.507059e+37  ;;  %v1853_v55 = vor.u32 1.1754944e-38, %v1852_v43  ;;  %v5578_v27 = vld [vmem:[#allocation4_spill] sm:$0xff] }
 0x26f   : > { %2315 = vmatmul.bf16.gmra.mxu2 %v2223_v1  ;;  %v2163_v48 = vsub.f32 0.0, %v2131_v11  ;;  %v2021_v18 = vadd.f32 0.2548296, %v2005_v30  ;;  %v4923_v31 = vsel %vm1866_vm7, %v1868_v10, %v1864_v8  ;;  %v1888_v2 = vsub.f32 1.0, %v1887_v13 }
 0x270   : > { %v2180_v24 = vsel %vm2148_vm15, %v2132_v52, %v2164_v63  ;;  %v1959_v6 = vadd.f32 1.4214138, %v1943_v61  ;;  %vm1851_vm8 = vcmp.eq.f32.partialorder %v1850_v60, 8.507059e+37  ;;  %v2038_v4 = vmul.f32 %v2022_v0, %v4591_v32 }
 0x271   : > { %v4930_v23 = vsel %vm1851_vm8, %v1853_v55, %v1849_v35  ;;  %v2055_v5 = vsub.f32 0.0, %v5575_v51  ;;  %v1873_v28 = vsub.f32 1.0, %v1872_v42  ;;  %v1976_v37 = vmul.f32 %v1960_v12, %v4851_v36 }
 0x272   : > { %v1914_v57 = vmul.f32 1.0614054, %v4923_v31  ;;  %v3619_v59 = vpop.eup %3618  ;;  %vm2147_vm9 = vcmp.ge.f32.partialorder %v5576_v22, 0.0  ;;  %v2072_v19 = vmul.f32 %v2056_v56, %v4526_v54  ;;  %v2196_v29 = vadd.f32 1.0, %v2180_v24  ;;  %v5583_v22 = vld [vmem:[#allocation8_spill] sm:$0xff] }
 0x273   : > { %v2037_v52 = vmul.f32 %v2021_v18, %v4545_v7  ;;  %v1889_v63 = vmul.f32 %v4881_v33, %v1888_v2  ;;  %v2179_v32 = vsel %vm2147_vm9, %v2131_v11, %v2163_v48  ;;  %v1975_v3 = vmul.f32 %v1959_v6, %v4861_v49 }
 0x274   : > { %v1913_v41 = vmul.f32 1.0614054, %v4930_v23  ;;  %v1587_v16 = vmul.f32 0.5, %v5577_v44  ;;  %v1588_v34 = vmul.f32 0.5, %v5578_v27  ;;  %v2118_v53 = vmul.f32 %v3619_v59, %v2038_v4 }
 0x275   : > { %v2071_v25 = vmul.f32 %v2055_v5, %v5575_v51  ;;  %v1874_v54 = vmul.f32 %v4891_v9, %v1873_v28  ;;  %v1992_v38 = vadd.f32 -0.28449672, %v1976_v37  ;;  %v1930_v7 = vadd.f32 -1.4531521, %v1914_v57 }
 0x276   : > { %v2099_v43 = vmul.f32 1.442695, %v2072_v19  ;;  %v2195_v62 = vadd.f32 1.0, %v2179_v32  ;;  %v2212_v13 = vmul.f32 %v2196_v29, %v1588_v34  ;;  %v2117_v39 = vmul.f32 %v3615_v40, %v2037_v52  ;;  %v5584_v32 = vld [vmem:[#allocation6_spill] sm:$0xff] }
 0x277   : > { %v1890_v11 = vadd.f32 %v4881_v33, %v1889_v63  ;;  %vm1892_vm10 = vweird.f32 %v4881_v33  ;;  %v1991_v30 = vadd.f32 -0.28449672, %v1975_v3  ;;  %v1929_v1 = vadd.f32 -1.4531521, %v1913_v41 }
 0x278   : > { %vm1877_vm11 = vweird.f32 %v4891_v9  ;;  %vm1891_vm12 = vweird.f32 %v4838_v47  ;;  %v1897_v61 = vand.u32 2147483648, %v4838_v47  ;;  %v2134_v60 = vsub.f32 1.0, %v2118_v53 }
 0x279   : > { %v1875_v8 = vadd.f32 %v4891_v9, %v1874_v54  ;;  %v1895_v56 = vand.u32 2147483647, %v4838_v47  ;;  %v2008_v45 = vmul.f32 %v1992_v38, %v4851_v36  ;;  %v1946_v40 = vmul.f32 %v1930_v7, %v4923_v31  ;;  %vm4958_vm14 = vmor %vm1891_vm12, %vm1892_vm10 }
 0x27a   : > { %vm1876_vm13 = vweird.f32 %v4858_v50  ;;  %v1882_v10 = vand.u32 2147483648, %v4858_v50  ;;  %v2211_v42 = vmul.f32 %v2195_v62, %v1587_v16  ;;  %v2133_v12 = vsub.f32 1.0, %v2117_v39 }
 0x27b   : > { %v1880_v35 = vand.u32 2147483647, %v4858_v50  ;;  %v1894_v47 = vsel %vm4958_vm14, %v4881_v33, %v1890_v11  ;;  %v2007_v55 = vmul.f32 %v1991_v30, %v4861_v49  ;;  %v1945_v48 = vmul.f32 %v1929_v1, %v4930_v23  ;;  %vm4970_vm15 = vmor %vm1876_vm13, %vm1877_vm11 }
 0x27c   : > { %v2097_v18 = vmul.f32 1.442695, %v2071_v25  ;;  %v1898_v24 = vor.u32 1.1754944e-38, %v1897_v61  ;;  %v2224_v6 = vpack.c.bf16 %v2212_v13, %v2211_v42  ;;  %v2166_v4 = vsub.f32 0.0, %v2134_v60  ;;  %v5586_v61 = vld [vmem:[#allocation5_spill] sm:$0xff] }
 0x27d   : > { %v1879_v50 = vsel %vm4970_vm15, %v4891_v9, %v1875_v8  ;;  %vm1896_vm1 = vcmp.eq.f32.partialorder %v1895_v56, 8.507059e+37  ;;  %v2024_v33 = vadd.f32 0.2548296, %v2008_v45  ;;  %v1962_v51 = vadd.f32 1.4214138, %v1946_v40 }
 0x27e   : > { %3620 = vpow2.f32 %v2099_v43  ;;  %v1883_v5 = vor.u32 1.1754944e-38, %v1882_v10  ;;  %v4977_v28 = vsel %vm1896_vm1, %v1898_v24, %v1894_v47  ;;  %vm1881_vm2 = vcmp.eq.f32.partialorder %v1880_v35, 8.507059e+37  ;;  %v5585_v43 = vld [vmem:[#allocation7_spill] sm:$0xff] }
 0x27f   : > { %2320 = vmatmul.bf16.gmra.mxu2 %v2224_v6  ;;  %v2165_v37 = vsub.f32 0.0, %v2133_v12  ;;  %v2023_v57 = vadd.f32 0.2548296, %v2007_v55  ;;  %v1961_v59 = vadd.f32 1.4214138, %v1945_v48  ;;  %vm2150_vm3 = vcmp.ge.f32.partialorder %v5583_v22, 0.0 }
 0x280   : > { %3622 = vpow2.f32 %v2097_v18  ;;  %v4980_v19 = vsel %vm1881_vm2, %v1883_v5, %v1879_v50  ;;  %v1916_v29 = vmul.f32 1.0614054, %v4977_v28  ;;  %v2182_v9 = vsel %vm2150_vm3, %v2134_v60, %v2166_v4  ;;  %v5587_v6 = vld [vmem:[#allocation13_spill] sm:$0xff] }
 0x281   : > { %v2040_v52 = vmul.f32 %v2024_v33, %v4851_v36  ;;  %v1978_v63 = vmul.f32 %v1962_v51, %v4923_v31  ;;  %vm2149_vm4 = vcmp.ge.f32.partialorder %v5584_v32, 0.0  ;;  %v2058_v3 = vsub.f32 0.0, %v4715_v46  ;;  %v5588_v51 = vld [vmem:[#allocation10_spill] sm:$0xff] }
 0x282   : > { %v1915_v41 = vmul.f32 1.0614054, %v4980_v19  ;;  %v2181_v44 = vsel %vm2149_vm4, %v2133_v12, %v2165_v37  ;;  %v2039_v16 = vmul.f32 %v2023_v57, %v4861_v49  ;;  %v1977_v27 = vmul.f32 %v1961_v59, %v4930_v23 }
 0x283   : > { %v2057_v53 = vsub.f32 0.0, %v4675_v15  ;;  %v2198_v25 = vadd.f32 1.0, %v2182_v9  ;;  %v1932_v54 = vadd.f32 -1.4531521, %v1916_v29  ;;  %v1994_v36 = vadd.f32 -0.28449672, %v1978_v63 }
 0x284   : > { %v3621_v34 = vpop.eup %3620  ;;  %v1590_v62 = vmul.f32 0.5, %v5585_v43  ;;  %v2074_v13 = vmul.f32 %v2058_v3, %v4715_v46  ;;  %v2197_v39 = vadd.f32 1.0, %v2181_v44  ;;  %v1931_v11 = vadd.f32 -1.4531521, %v1915_v41  ;;  %v5589_v3 = vld [vmem:[#allocation12_spill] sm:$0xff] }
 0x285   : > { %v2120_v38 = vmul.f32 %v3621_v34, %v2040_v52  ;;  %v1993_v1 = vadd.f32 -0.28449672, %v1977_v27  ;;  %v1589_v49 = vmul.f32 0.5, %v5586_v61  ;;  %v2073_v60 = vmul.f32 %v2057_v53, %v4675_v15  ;;  %v5590_v34 = vld [vmem:[#allocation9_spill] sm:$0xff] }
 0x286   : > { %v3623_v7 = vpop.eup %3622  ;;  %v2214_v8 = vmul.f32 %v2198_v25, %v1590_v62  ;;  %v1948_v56 = vmul.f32 %v1932_v54, %v4977_v28  ;;  %v2010_v40 = vmul.f32 %v1994_v36, %v4923_v31  ;;  %v2103_v10 = vmul.f32 1.442695, %v2074_v13  ;;  %v5591_v61 = vld [vmem:[#allocation17_spill] sm:$0xff] }
 0x287   : > { %v2119_v30 = vmul.f32 %v3623_v7, %v2039_v16  ;;  %v2136_v45 = vsub.f32 1.0, %v2120_v38  ;;  %v2213_v0 = vmul.f32 %v2197_v39, %v1589_v49  ;;  %v1947_v42 = vmul.f32 %v1931_v11, %v4980_v19 }
 0x288   : > { %v2009_v46 = vmul.f32 %v1993_v1, %v4930_v23  ;;  %v2101_v35 = vmul.f32 1.442695, %v2073_v60  ;;  %v1964_v55 = vadd.f32 1.4214138, %v1948_v56  ;;  %v2026_v18 = vadd.f32 0.2548296, %v2010_v40 }
 0x289   : > { %v2135_v12 = vsub.f32 1.0, %v2119_v30  ;;  %v2225_v47 = vpack.c.bf16 %v2214_v8, %v2213_v0  ;;  %v2168_v48 = vsub.f32 0.0, %v2136_v45  ;;  %3624 = vpow2.f32 %v2103_v10  ;;  %v3485_v30 = vld [vmem:[%s5523_s7 + $0x8] sm:$0xff] }
 0x28a   : > { %v1963_v15 = vadd.f32 1.4214138, %v1947_v42  ;;  %v2025_v24 = vadd.f32 0.2548296, %v2009_v46  ;;  %vm2152_vm5 = vcmp.ge.f32.partialorder %v5587_v6, 0.0  ;;  %3626 = vpow2.f32 %v2101_v35  ;;  %3044 = vmatpush.bf16.msrb.mxu3 %v3485_v30  ;;  %v5592_v8 = vld [vmem:[#allocation15_spill] sm:$0xff] }
 0x28b   : > { %v2167_v2 = vsub.f32 0.0, %v2135_v12  ;;  %v1980_v4 = vmul.f32 %v1964_v55, %v4977_v28  ;;  %v2184_v50 = vsel %vm2152_vm5, %v2136_v45, %v2168_v48  ;;  %v2042_v33 = vmul.f32 %v2026_v18, %v4923_v31  ;;  %v5594_v55 = vld [vmem:[#allocation14_spill] sm:$0xff] }
 0x28c   : > { %vm2151_vm6 = vcmp.ge.f32.partialorder %v5588_v51, 0.0  ;;  %v2060_v5 = vsub.f32 0.0, %v4794_v26  ;;  %v1979_v37 = vmul.f32 %v1963_v15, %v4980_v19  ;;  %v2041_v59 = vmul.f32 %v2025_v24, %v4930_v23 }
 0x28d   : > { %v2183_v57 = vsel %vm2151_vm6, %v2135_v12, %v2167_v2  ;;  %v2059_v29 = vsub.f32 0.0, %v4790_v20  ;;  %v2200_v9 = vadd.f32 1.0, %v2184_v50  ;;  %v1996_v52 = vadd.f32 -0.28449672, %v1980_v4  ;;  %v5593_v12 = vld [vmem:[#allocation16_spill] sm:$0xff] }
 0x28e   : > { %v1592_v41 = vmul.f32 0.5, %v5589_v3  ;;  %v2076_v31 = vmul.f32 %v2060_v5, %v4794_v26  ;;  %v2199_v44 = vadd.f32 1.0, %v2183_v57  ;;  %v1995_v16 = vadd.f32 -0.28449672, %v1979_v37 }
 0x28f   : > { %2325 = vmatmul.bf16.gmra.mxu2 %v2225_v47  ;;  %v3625_v22 = vpop.eup %3624  ;;  %v1591_v53 = vmul.f32 0.5, %v5590_v34  ;;  %v2075_v25 = vmul.f32 %v2059_v29, %v4790_v20  ;;  %v2012_v23 = vmul.f32 %v1996_v52, %v4977_v28  ;;  %vm2154_vm7 = vcmp.ge.f32.partialorder %v5591_v61, 0.0  ;;  %v5029_v29 = vld [vmem:[%s5522_s6] ss:$0 sm:$0xff] }
 0x290   : > { %v2122_v63 = vmul.f32 %v3625_v22, %v2042_v33  ;;  %v3627_v32 = vpop.eup %3626  ;;  %v2216_v54 = vmul.f32 %v2200_v9, %v1592_v41  ;;  %v2107_v36 = vmul.f32 1.442695, %v2076_v31  ;;  %v2011_v43 = vmul.f32 %v1995_v16, %v4980_v19 }
 0x291   : > { %v2121_v27 = vmul.f32 %v3627_v32, %v2041_v59  ;;  %v2215_v7 = vmul.f32 %v2199_v44, %v1591_v53  ;;  %v2105_v13 = vmul.f32 1.442695, %v2075_v25  ;;  %v2028_v11 = vadd.f32 0.2548296, %v2012_v23 }
 0x292   : > { %v2138_v38 = vsub.f32 1.0, %v2122_v63  ;;  %3628 = vpow2.f32 %v2107_v36  ;;  %v2027_v20 = vadd.f32 0.2548296, %v2011_v43  ;;  %vm2153_vm8 = vcmp.ge.f32.partialorder %v5592_v8, 0.0 }
 0x293   : > { %v2137_v62 = vsub.f32 1.0, %v2121_v27  ;;  %v2226_v39 = vpack.c.bf16 %v2216_v54, %v2215_v7  ;;  %3630 = vpow2.f32 %v2105_v13  ;;  %v2044_v49 = vmul.f32 %v2028_v11, %v4977_v28 }
 0x294   : > { %v2170_v26 = vsub.f32 0.0, %v2138_v38  ;;  %v2043_v56 = vmul.f32 %v2027_v20, %v4980_v19  ;;  %v1594_v46 = vmul.f32 0.5, %v5593_v12  ;;  %v1593_v48 = vmul.f32 0.5, %v5594_v55 }
 0x295   : > { %v2169_v1 = vsub.f32 0.0, %v2137_v62  ;;  %vm2156_vm9 = vcmp.ge.f32.partialorder %v4780_v17, 0.0  ;;  %vm2155_vm10 = vcmp.ge.f32.partialorder %v4771_v58, 0.0  ;;  %v1596_v5 = vmul.f32 0.5, %v4756_v14 }
 0x296   : > { %v2186_v60 = vsel %vm2154_vm7, %v2138_v38, %v2170_v26  ;;  %v1595_v37 = vmul.f32 0.5, %v4753_v21 }
 0x297   : > { %v2185_v45 = vsel %vm2153_vm8, %v2137_v62, %v2169_v1  ;;  %v2202_v10 = vadd.f32 1.0, %v2186_v60 }
 0x298   : > { %v3629_v40 = vpop.eup %3628  ;;  %v2201_v35 = vadd.f32 1.0, %v2185_v45 }
 0x299   : > { %v2124_v0 = vmul.f32 %v3629_v40, %v2044_v49  ;;  %v3631_v42 = vpop.eup %3630  ;;  %v2218_v18 = vmul.f32 %v2202_v10, %v1594_v46 }
 0x29a   : > { %v2123_v47 = vmul.f32 %v3631_v42, %v2043_v56  ;;  %v2217_v2 = vmul.f32 %v2201_v35, %v1593_v48 }
 0x29b   : > { %v2140_v15 = vsub.f32 1.0, %v2124_v0 }
 0x29c   : > { %v2139_v28 = vsub.f32 1.0, %v2123_v47  ;;  %v2227_v24 = vpack.c.bf16 %v2218_v18, %v2217_v2 }
 0x29d   : > { %v2172_v6 = vsub.f32 0.0, %v2140_v15 }
 0x29e   : > { %v2171_v4 = vsub.f32 0.0, %v2139_v28 }
 0x29f   : > { %2330 = vmatmul.bf16.gmra.mxu2 %v2226_v39  ;;  %v2188_v19 = vsel %vm2156_vm9, %v2140_v15, %v2172_v6 }
 0x2a0   : > { %v2187_v50 = vsel %vm2155_vm10, %v2139_v28, %v2171_v4  ;;  %v2204_v33 = vadd.f32 1.0, %v2188_v19 }
 0x2a1   : > { %v2203_v51 = vadd.f32 1.0, %v2187_v50 }
 0x2a2   : > { %v2220_v57 = vmul.f32 %v2204_v33, %v1596_v5 }
 0x2a3   : > { %v2219_v59 = vmul.f32 %v2203_v51, %v1595_v37 }
 0x2a5   : > { %v2228_v22 = vpack.c.bf16 %v2220_v57, %v2219_v59 }
 0x2af   : > { %2335 = vmatmul.bf16.gmra.mxu2 %v2227_v24 }
 0x2bf   : > { %2340 = vmatmul.bf16.gmra.mxu2 %v2228_v22 }
 0x2cb   : > { %v2306_v17 = vpop.f32.mrf.mxu2 }
 0x2cc   : > { %v5032_v9 = vadd.f32 %v5029_v29, %v2306_v17 }
 0x2ce   : > { %v5035_v58 = vmul.f32 0.70710677, %v5032_v9 }
 0x2d0   : > { %v2378_v14 = vand.u32 2147483647, %v5035_v58  ;;  %vm2906_vm9 = vcmp.ge.f32.partialorder %v5035_v58, 0.0 }
 0x2d2   : > { %v2394_v52 = vmul.f32 0.3275911, %v2378_v14  ;;  %v2810_v47 = vsub.f32 0.0, %v2378_v14 }
 0x2d3   : > { %v2308_v41 = vpop.f32.mrf.mxu2 }
 0x2d4   : > { %v2410_v21 = vadd.f32 1.0, %v2394_v52  ;;  %v5039_v44 = vadd.f32 %v5029_v29, %v2308_v41  ;;  %v2826_v24 = vmul.f32 %v2810_v47, %v2378_v14  ;;  %v3484_v47 = vld [vmem:[%s5523_s7] sm:$0xff] }
 0x2d5   : > { %3045 = vmatpush.bf16.msrb.mxu3 %v3484_v47 }
 0x2d6   : > { %3632 = vrcp.f32 %v2410_v21  ;;  %v5042_v16 = vmul.f32 0.70710677, %v5039_v44  ;;  %v2437_v53 = vand.u32 2147483648, %v2410_v21  ;;  %vm2431_vm12 = vweird.f32 %v2410_v21 }
 0x2d7   : > { %v2435_v25 = vand.u32 2147483647, %v2410_v21  ;;  %v2842_v33 = vmul.f32 1.442695, %v2826_v24 }
 0x2d8   : > { %v2379_v34 = vand.u32 2147483647, %v5042_v16  ;;  %v2438_v36 = vor.u32 1.1754944e-38, %v2437_v53  ;;  %vm2907_vm7 = vcmp.ge.f32.partialorder %v5042_v16, 0.0 }
 0x2d9   : > { %vm2436_vm14 = vcmp.eq.f32.partialorder %v2435_v25, 8.507059e+37 }
 0x2da   : > { %v2395_v54 = vmul.f32 0.3275911, %v2379_v34  ;;  %v2811_v12 = vsub.f32 0.0, %v2379_v34 }
 0x2dc   : > { %v3633_v63 = vpop.eup %3632  ;;  %v2411_v38 = vadd.f32 1.0, %v2395_v54  ;;  %v2827_v15 = vmul.f32 %v2811_v12, %v2379_v34 }
 0x2dd   : > { %v2427_v32 = vmul.f32 %v3633_v63, %v2410_v21  ;;  %vm2432_vm11 = vweird.f32 %v3633_v63 }
 0x2de   : > { %vm2433_vm13 = vmor %vm2431_vm12, %vm2432_vm11  ;;  %3634 = vrcp.f32 %v2411_v38  ;;  %v2452_v26 = vand.u32 2147483648, %v2411_v38  ;;  %v2450_v20 = vand.u32 2147483647, %v2411_v38  ;;  %vm2446_vm1 = vweird.f32 %v2411_v38 }
 0x2df   : > { %v2428_v3 = vsub.f32 1.0, %v2427_v32  ;;  %v2844_v19 = vmul.f32 1.442695, %v2827_v15 }
 0x2e0   : > { %v2453_v49 = vor.u32 1.1754944e-38, %v2452_v26  ;;  %vm2451_vm3 = vcmp.eq.f32.partialorder %v2450_v20, 8.507059e+37 }
 0x2e1   : > { %v2429_v31 = vmul.f32 %v3633_v63, %v2428_v3 }
 0x2e2   : > { %v2311_v60 = vpop.f32.mrf.mxu2 }
 0x2e3   : > { %v2430_v27 = vadd.f32 %v3633_v63, %v2429_v31  ;;  %v5046_v56 = vadd.f32 %v5029_v29, %v2311_v60  ;;  %v2347_v60 = vmul.f32 0.5, %v5039_v44 }
 0x2e4   : > { %v3635_v62 = vpop.eup %3634 }
 0x2e5   : > { %v2434_v23 = vsel %vm2433_vm13, %v3633_v63, %v2430_v27  ;;  %v2442_v13 = vmul.f32 %v3635_v62, %v2411_v38  ;;  %vm2447_vm15 = vweird.f32 %v3635_v62  ;;  %v5049_v0 = vmul.f32 0.70710677, %v5046_v56 }
 0x2e6   : > { %v2439_v7 = vsel %vm2436_vm14, %v2438_v36, %v2434_v23  ;;  %vm2448_vm2 = vmor %vm2446_vm1, %vm2447_vm15 }
 0x2e7   : > { %v2666_v43 = vmul.f32 1.0614054, %v2439_v7  ;;  %v2443_v11 = vsub.f32 1.0, %v2442_v13  ;;  %v5052_v46 = vand.u32 2147483647, %v5049_v0 }
 0x2e9   : > { %v2682_v39 = vadd.f32 -1.4531521, %v2666_v43  ;;  %v2444_v30 = vmul.f32 %v3635_v62, %v2443_v11  ;;  %v2396_v48 = vmul.f32 0.3275911, %v5052_v46 }
 0x2ea   : > { %v2313_v63 = vpop.f32.mrf.mxu2 }
 0x2eb   : > { %v2698_v1 = vmul.f32 %v2682_v39, %v2439_v7  ;;  %v2445_v61 = vadd.f32 %v3635_v62, %v2444_v30  ;;  %v2412_v2 = vadd.f32 1.0, %v2396_v48  ;;  %v5056_v14 = vadd.f32 %v5029_v29, %v2313_v63 }
 0x2ed   : > { %v2449_v8 = vsel %vm2448_vm2, %v3635_v62, %v2445_v61  ;;  %v2714_v45 = vadd.f32 1.4214138, %v2698_v1  ;;  %3636 = vrcp.f32 %v2412_v2  ;;  %v5059_v27 = vmul.f32 0.70710677, %v5056_v14 }
 0x2ee   : > { %v2454_v40 = vsel %vm2451_vm3, %v2453_v49, %v2449_v8  ;;  %3638 = vpow2.f32 %v2844_v19  ;;  %v2467_v38 = vand.u32 2147483648, %v2412_v2  ;;  %vm2461_vm5 = vweird.f32 %v2412_v2 }
 0x2ef   : > { %v2667_v10 = vmul.f32 1.0614054, %v2454_v40  ;;  %v2730_v35 = vmul.f32 %v2714_v45, %v2439_v7  ;;  %3640 = vpow2.f32 %v2842_v33  ;;  %v5062_v53 = vand.u32 2147483647, %v5059_v27 }
 0x2f0   : > { %v2468_v39 = vor.u32 1.1754944e-38, %v2467_v38  ;;  %v2346_v45 = vmul.f32 0.5, %v5032_v9 }
 0x2f1   : > { %v2683_v42 = vadd.f32 -1.4531521, %v2667_v10  ;;  %v2746_v28 = vadd.f32 -0.28449672, %v2730_v35  ;;  %v2397_v23 = vmul.f32 0.3275911, %v5062_v53 }
 0x2f3   : > { %v2699_v55 = vmul.f32 %v2683_v42, %v2454_v40  ;;  %v2762_v50 = vmul.f32 %v2746_v28, %v2439_v7  ;;  %v3637_v5 = vpop.eup %3636  ;;  %v2413_v43 = vadd.f32 1.0, %v2397_v23 }
 0x2f4   : > { %v2457_v59 = vmul.f32 %v3637_v5, %v2412_v2  ;;  %v3639_v21 = vpop.eup %3638  ;;  %vm2462_vm4 = vweird.f32 %v3637_v5 }
 0x2f5   : > { %v2715_v18 = vadd.f32 1.4214138, %v2699_v55  ;;  %v2778_v57 = vadd.f32 0.2548296, %v2762_v50  ;;  %v3641_v3 = vpop.eup %3640  ;;  %vm2463_vm6 = vmor %vm2461_vm5, %vm2462_vm4  ;;  %3642 = vrcp.f32 %v2413_v43  ;;  %v2482_v42 = vand.u32 2147483648, %v2413_v43  ;;  %v2316_v55 = vpop.f32.mrf.mxu2 }
 0x2f6   : > { %v2458_v52 = vsub.f32 1.0, %v2457_v59  ;;  %v2480_v58 = vand.u32 2147483647, %v2413_v43  ;;  %vm2476_vm11 = vweird.f32 %v2413_v43  ;;  %v5076_v44 = vadd.f32 %v5029_v29, %v2316_v55 }
 0x2f7   : > { %v2731_v6 = vmul.f32 %v2715_v18, %v2454_v40  ;;  %v2794_v17 = vmul.f32 %v2778_v57, %v2439_v7  ;;  %v2465_v7 = vand.u32 2147483647, %v2412_v2  ;;  %v2483_v15 = vor.u32 1.1754944e-38, %v2482_v42 }
 0x2f8   : > { %v2459_v31 = vmul.f32 %v3637_v5, %v2458_v52  ;;  %vm2481_vm13 = vcmp.eq.f32.partialorder %v2480_v58, 8.507059e+37  ;;  %v5080_v28 = vmul.f32 0.70710677, %v5076_v44  ;;  %vm2908_vm4 = vcmp.ge.f32.partialorder %v5049_v0, 0.0 }
 0x2f9   : > { %v2747_v4 = vadd.f32 -0.28449672, %v2731_v6  ;;  %v2874_v41 = vmul.f32 %v3641_v3, %v2794_v17  ;;  %vm2466_vm8 = vcmp.eq.f32.partialorder %v2465_v7, 8.507059e+37 }
 0x2fa   : > { %v2460_v54 = vadd.f32 %v3637_v5, %v2459_v31 }
 0x2fb   : > { %v2763_v51 = vmul.f32 %v2747_v4, %v2454_v40  ;;  %v2890_v25 = vsub.f32 1.0, %v2874_v41  ;;  %v3643_v1 = vpop.eup %3642  ;;  %v5086_v4 = vand.u32 2147483647, %v5080_v28 }
 0x2fc   : > { %v2464_v13 = vsel %vm2463_vm6, %v3637_v5, %v2460_v54  ;;  %v2472_v8 = vmul.f32 %v3643_v1, %v2413_v43  ;;  %vm2477_vm10 = vweird.f32 %v3643_v1 }
 0x2fd   : > { %v2779_v37 = vadd.f32 0.2548296, %v2763_v51  ;;  %v2922_v62 = vsub.f32 0.0, %v2890_v25  ;;  %v5067_v26 = vsel %vm2466_vm8, %v2468_v39, %v2464_v13  ;;  %vm2478_vm12 = vmor %vm2476_vm11, %vm2477_vm10  ;;  %v2398_v33 = vmul.f32 0.3275911, %v5086_v4  ;;  %v2318_v51 = vpop.f32.mrf.mxu2 }
 0x2fe   : > { %v2668_v61 = vmul.f32 1.0614054, %v5067_v26  ;;  %v2473_v16 = vsub.f32 1.0, %v2472_v8  ;;  %v5093_v59 = vadd.f32 %v5029_v29, %v2318_v51  ;;  %v5141_v51 = vmul.f32 0.5, %v5046_v56 }
 0x2ff   : > { %v2795_v22 = vmul.f32 %v2779_v37, %v2454_v40  ;;  %v2938_v30 = vsel %vm2906_vm9, %v2890_v25, %v2922_v62  ;;  %v2414_v37 = vadd.f32 1.0, %v2398_v33  ;;  %v2813_v25 = vsub.f32 0.0, %v5062_v53 }
 0x300   : > { %v2954_v49 = vadd.f32 1.0, %v2938_v30  ;;  %v2684_v10 = vadd.f32 -1.4531521, %v2668_v61  ;;  %v2474_v35 = vmul.f32 %v3643_v1, %v2473_v16  ;;  %v5097_v52 = vmul.f32 0.70710677, %v5093_v59 }
 0x301   : > { %v2875_v32 = vmul.f32 %v3639_v21, %v2795_v22  ;;  %v2812_v22 = vsub.f32 0.0, %v5052_v46  ;;  %3644 = vrcp.f32 %v2414_v37  ;;  %v2829_v13 = vmul.f32 %v2813_v25, %v5062_v53 }
 0x302   : > { %v2970_v12 = vmul.f32 %v2954_v49, %v2346_v45  ;;  %v2475_v18 = vadd.f32 %v3643_v1, %v2474_v35  ;;  %v2700_v9 = vmul.f32 %v2684_v10, %v5067_v26  ;;  %v5100_v63 = vand.u32 2147483647, %v5097_v52 }
 0x303   : > { %v2891_v34 = vsub.f32 1.0, %v2875_v32  ;;  %v2828_v32 = vmul.f32 %v2812_v22, %v5052_v46  ;;  %v2497_v39 = vand.u32 2147483648, %v2414_v37  ;;  %vm2491_vm15 = vweird.f32 %v2414_v37 }
 0x304   : > { %v2479_v2 = vsel %vm2478_vm12, %v3643_v1, %v2475_v18  ;;  %v2716_v19 = vadd.f32 1.4214138, %v2700_v9  ;;  %v2399_v41 = vmul.f32 0.3275911, %v5100_v63  ;;  %v2495_v1 = vand.u32 2147483647, %v2414_v37 }
 0x305   : > { %v2923_v36 = vsub.f32 0.0, %v2891_v34  ;;  %v5082_v24 = vsel %vm2481_vm13, %v2483_v15, %v2479_v2  ;;  %v2321_v31 = vpop.f32.mrf.mxu2  ;;  %v2846_v7 = vmul.f32 1.442695, %v2828_v32  ;;  %v2848_v45 = vmul.f32 1.442695, %v2829_v13 }
 0x306   : > { %v2669_v6 = vmul.f32 1.0614054, %v5082_v24  ;;  %v2732_v57 = vmul.f32 %v2716_v19, %v5067_v26  ;;  %v5107_v54 = vadd.f32 %v5029_v29, %v2321_v31  ;;  %vm2496_vm2 = vcmp.eq.f32.partialorder %v2495_v1, 8.507059e+37 }
 0x307   : > { %v2939_v11 = vsel %vm2907_vm7, %v2891_v34, %v2923_v36  ;;  %v3645_v34 = vpop.eup %3644  ;;  %v5110_v36 = vadd.f32 1.0, %v2399_v41  ;;  %vm2909_vm12 = vcmp.ge.f32.partialorder %v5059_v27, 0.0 }
 0x308   : > { %v2955_v20 = vadd.f32 1.0, %v2939_v11  ;;  %v2685_v50 = vadd.f32 -1.4531521, %v2669_v6  ;;  %v2748_v21 = vadd.f32 -0.28449672, %v2732_v57  ;;  %v2487_v38 = vmul.f32 %v3645_v34, %v2414_v37 }
 0x309   : > { %v5113_v43 = vmul.f32 0.70710677, %v5107_v54  ;;  %3646 = vrcp.f32 %v5110_v36  ;;  %vm2492_vm14 = vweird.f32 %v3645_v34  ;;  %v2512_v6 = vand.u32 2147483648, %v5110_v36 }
 0x30a   : > { %v2971_v40 = vmul.f32 %v2955_v20, %v2347_v60  ;;  %v2701_v5 = vmul.f32 %v2685_v50, %v5082_v24  ;;  %v2764_v23 = vmul.f32 %v2748_v21, %v5067_v26  ;;  %v2488_v62 = vsub.f32 1.0, %v2487_v38  ;;  %vm2493_vm1 = vmor %vm2491_vm15, %vm2492_vm14 }
 0x30b   : > { %v5118_v11 = vand.u32 2147483647, %v5113_v43  ;;  %3648 = vpow2.f32 %v2846_v7  ;;  %v2510_v50 = vand.u32 2147483647, %v5110_v36  ;;  %vm2506_vm5 = vweird.f32 %v5110_v36 }
 0x30c   : > { %v2986_v48 = vpack.c.bf16 %v2971_v40, %v2970_v12  ;;  %v2717_v17 = vadd.f32 1.4214138, %v2701_v5  ;;  %v2780_v30 = vadd.f32 0.2548296, %v2764_v23  ;;  %v2489_v20 = vmul.f32 %v3645_v34, %v2488_v62 }
 0x30d   : > { %v2400_v61 = vmul.f32 0.3275911, %v5118_v11  ;;  %v2323_v8 = vpop.f32.mrf.mxu2  ;;  %v2498_v40 = vor.u32 1.1754944e-38, %v2497_v39  ;;  %v2814_v12 = vsub.f32 0.0, %v5086_v4  ;;  %v5144_v5 = vmul.f32 0.5, %v5056_v14 }
 0x30e   : > { %3421 = vmatmul.msk.bf16.vlgmr.msrb.gmra.mxu3 %vm668_vm0, %v2986_v48  ;;  %v2733_v3 = vmul.f32 %v2717_v17, %v5082_v24  ;;  %v2490_v60 = vadd.f32 %v3645_v34, %v2489_v20  ;;  %v2796_v10 = vmul.f32 %v2780_v30, %v5067_v26  ;;  %v5130_v47 = vadd.f32 %v5029_v29, %v2323_v8 }
 0x30f   : > { %v5122_v53 = vadd.f32 1.0, %v2400_v61  ;;  %v3647_v16 = vpop.eup %3646  ;;  %v2830_v2 = vmul.f32 %v2814_v12, %v5086_v4  ;;  %vm2511_vm7 = vcmp.eq.f32.partialorder %v2510_v50, 8.507059e+37  ;;  %v2815_v7 = vsub.f32 0.0, %v5100_v63 }
 0x310   : > { %v2749_v46 = vadd.f32 -0.28449672, %v2733_v3  ;;  %v2494_v42 = vsel %vm2493_vm1, %v3645_v34, %v2490_v60  ;;  %v2502_v58 = vmul.f32 %v3647_v16, %v5110_v36  ;;  %vm2507_vm3 = vweird.f32 %v3647_v16 }
 0x311   : > { %v5126_v35 = vsel %vm2496_vm2, %v2498_v40, %v2494_v42  ;;  %3650 = vrcp.f32 %v5122_v53  ;;  %v3649_v18 = vpop.eup %3648  ;;  %v5138_v33 = vmul.f32 0.70710677, %v5130_v47  ;;  %v2850_v3 = vmul.f32 1.442695, %v2830_v2  ;;  %vm2508_vm6 = vmor %vm2506_vm5, %vm2507_vm3 }
 0x312   : > { %v2765_v49 = vmul.f32 %v2749_v46, %v5082_v24  ;;  %v2670_v48 = vmul.f32 1.0614054, %v5126_v35  ;;  %3652 = vpow2.f32 %v2848_v45  ;;  %v2503_v9 = vsub.f32 1.0, %v2502_v58 }
 0x313   : > { %v2876_v26 = vmul.f32 %v3649_v18, %v2796_v10  ;;  %v5151_v17 = vand.u32 2147483647, %v5138_v33  ;;  %v2525_v1 = vand.u32 2147483647, %v5122_v53  ;;  %v2527_v61 = vand.u32 2147483648, %v5122_v53 }
 0x314   : > { %v2781_v55 = vadd.f32 0.2548296, %v2765_v49  ;;  %v2686_v15 = vadd.f32 -1.4531521, %v2670_v48  ;;  %v2504_v19 = vmul.f32 %v3647_v16, %v2503_v9  ;;  %v2831_v40 = vmul.f32 %v2815_v7, %v5100_v63 }
 0x315   : > { %v2326_v4 = vpop.f32.mrf.mxu2  ;;  %v2892_v32 = vsub.f32 1.0, %v2876_v26  ;;  %v2401_v25 = vmul.f32 0.3275911, %v5151_v17  ;;  %vm2521_vm9 = vweird.f32 %v5122_v53  ;;  %vm2526_vm11 = vcmp.eq.f32.partialorder %v2525_v1, 8.507059e+37 }
 0x316   : > { %v2797_v37 = vmul.f32 %v2781_v55, %v5082_v24  ;;  %v2702_v57 = vmul.f32 %v2686_v15, %v5126_v35  ;;  %v2505_v22 = vadd.f32 %v3647_v16, %v2504_v19  ;;  %v5154_v21 = vadd.f32 %v5029_v29, %v2326_v4 }
 0x317   : > { %v3651_v56 = vpop.eup %3650  ;;  %v2513_v24 = vor.u32 1.1754944e-38, %v2512_v6  ;;  %v5164_v13 = vadd.f32 1.0, %v2401_v25  ;;  %v2924_v30 = vsub.f32 0.0, %v2892_v32  ;;  %v2528_v48 = vor.u32 1.1754944e-38, %v2527_v61 }
 0x318   : > { %v2718_v14 = vadd.f32 1.4214138, %v2702_v57  ;;  %v3653_v41 = vpop.eup %3652  ;;  %v2509_v31 = vsel %vm2508_vm6, %v3647_v16, %v2505_v22  ;;  %v2517_v34 = vmul.f32 %v3651_v56, %v5122_v53  ;;  %v5167_v39 = vmul.f32 0.70710677, %v5154_v21 }
 0x319   : > { %v2877_v23 = vmul.f32 %v3653_v41, %v2797_v37  ;;  %v5160_v36 = vsel %vm2511_vm7, %v2513_v24, %v2509_v31  ;;  %vm2522_vm8 = vweird.f32 %v3651_v56  ;;  %3654 = vrcp.f32 %v5164_v13 }
 0x31a   : > { %v2734_v38 = vmul.f32 %v2718_v14, %v5126_v35  ;;  %v2671_v46 = vmul.f32 1.0614054, %v5160_v36  ;;  %v2518_v62 = vsub.f32 1.0, %v2517_v34  ;;  %v2816_v16 = vsub.f32 0.0, %v5118_v11  ;;  %vm2523_vm10 = vmor %vm2521_vm9, %vm2522_vm8 }
 0x31b   : > { %v2893_v8 = vsub.f32 1.0, %v2877_v23  ;;  %v5178_v58 = vand.u32 2147483647, %v5167_v39  ;;  %v2940_v55 = vsel %vm2908_vm4, %v2892_v32, %v2924_v30  ;;  %3656 = vpow2.f32 %v2850_v3 }
 0x31c   : > { %v2750_v20 = vadd.f32 -0.28449672, %v2734_v38  ;;  %v2687_v49 = vadd.f32 -1.4531521, %v2671_v46  ;;  %v2519_v60 = vmul.f32 %v3651_v56, %v2518_v62  ;;  %v2852_v2 = vmul.f32 1.442695, %v2831_v40 }
 0x31d   : > { %v2328_v10 = vpop.f32.mrf.mxu2  ;;  %v2402_v26 = vmul.f32 0.3275911, %v5178_v58  ;;  %v2925_v15 = vsub.f32 0.0, %v2893_v8  ;;  %v2832_v53 = vmul.f32 %v2816_v16, %v5118_v11  ;;  %v2956_v4 = vadd.f32 1.0, %v2940_v55 }
 0x31e   : > { %v2766_v45 = vmul.f32 %v2750_v20, %v5126_v35  ;;  %v2703_v42 = vmul.f32 %v2687_v49, %v5160_v36  ;;  %v2520_v12 = vadd.f32 %v3651_v56, %v2519_v60  ;;  %v5191_v57 = vadd.f32 %v5029_v29, %v2328_v10 }
 0x31f   : > { %v3655_v19 = vpop.eup %3654  ;;  %v5188_v37 = vadd.f32 1.0, %v2402_v26  ;;  %v5195_v22 = vmul.f32 0.5, %v5076_v44  ;;  %v2941_v24 = vsel %vm2909_vm12, %v2893_v8, %v2925_v15  ;;  %v2542_v31 = vand.u32 2147483648, %v5164_v13 }
 0x320   : > { %v2782_v18 = vadd.f32 0.2548296, %v2766_v45  ;;  %v2719_v63 = vadd.f32 1.4214138, %v2703_v42  ;;  %v2524_v9 = vsel %vm2523_vm10, %v3651_v56, %v2520_v12  ;;  %v2532_v56 = vmul.f32 %v3655_v19, %v5164_v13 }
 0x321   : > { %v5183_v6 = vsel %vm2526_vm11, %v2528_v48, %v2524_v9  ;;  %3658 = vrcp.f32 %v5188_v37  ;;  %v3657_v3 = vpop.eup %3656  ;;  %v2854_v25 = vmul.f32 1.442695, %v2832_v53  ;;  %v5204_v23 = vmul.f32 0.70710677, %v5191_v57 }
 0x322   : > { %v2735_v50 = vmul.f32 %v2719_v63, %v5160_v36  ;;  %v2672_v0 = vmul.f32 1.0614054, %v5183_v6  ;;  %v2798_v11 = vmul.f32 %v2782_v18, %v5126_v35  ;;  %3660 = vpow2.f32 %v2852_v2 }
 0x323   : > { %v2533_v41 = vsub.f32 1.0, %v2532_v56  ;;  %vm2537_vm13 = vweird.f32 %v3655_v19  ;;  %v2540_v38 = vand.u32 2147483647, %v5164_v13  ;;  %v2817_v7 = vsub.f32 0.0, %v5151_v17 }
 0x324   : > { %v2751_v32 = vadd.f32 -0.28449672, %v2735_v50  ;;  %v2688_v14 = vadd.f32 -1.4531521, %v2672_v0  ;;  %v2878_v46 = vmul.f32 %v3657_v3, %v2798_v11  ;;  %v5209_v20 = vand.u32 2147483647, %v5204_v23 }
 0x325   : > { %v2331_v34 = vpop.f32.mrf.mxu2  ;;  %v2534_v35 = vmul.f32 %v3655_v19, %v2533_v41  ;;  %v2957_v1 = vadd.f32 1.0, %v2941_v24  ;;  %vm2536_vm14 = vweird.f32 %v5164_v13  ;;  %v2543_v49 = vor.u32 1.1754944e-38, %v2542_v31 }
 0x326   : > { %v2767_v27 = vmul.f32 %v2751_v32, %v5160_v36  ;;  %v2704_v44 = vmul.f32 %v2688_v14, %v5183_v6  ;;  %vm2538_vm15 = vmor %vm2536_vm14, %vm2537_vm13  ;;  %v2403_v40 = vmul.f32 0.3275911, %v5209_v20  ;;  %v5216_v16 = vadd.f32 %v5029_v29, %v2331_v34 }
 0x327   : > { %v2535_v61 = vadd.f32 %v3655_v19, %v2534_v35  ;;  %v3659_v60 = vpop.eup %3658  ;;  %vm2541_vm1 = vcmp.eq.f32.partialorder %v2540_v38, 8.507059e+37  ;;  %v2833_v12 = vmul.f32 %v2817_v7, %v5151_v17  ;;  %v2894_v13 = vsub.f32 1.0, %v2878_v46 }
 0x328   : > { %v2783_v62 = vadd.f32 0.2548296, %v2767_v27  ;;  %v2720_v30 = vadd.f32 1.4214138, %v2704_v44  ;;  %v3661_v10 = vpop.eup %3660  ;;  %v2547_v55 = vmul.f32 %v3659_v60, %v5188_v37  ;;  %vm2910_vm2 = vcmp.ge.f32.partialorder %v5080_v28, 0.0 }
 0x329   : > { %v2539_v42 = vsel %vm2538_vm15, %v3655_v19, %v2535_v61  ;;  %v2818_v18 = vsub.f32 0.0, %v5178_v58  ;;  %v5225_v15 = vadd.f32 1.0, %v2403_v40  ;;  %v2555_v17 = vand.u32 2147483647, %v5188_v37 }
 0x32a   : > { %v2799_v8 = vmul.f32 %v2783_v62, %v5160_v36  ;;  %v2736_v45 = vmul.f32 %v2720_v30, %v5183_v6  ;;  %v5221_v36 = vsel %vm2541_vm1, %v2543_v49, %v2539_v42  ;;  %v2548_v26 = vsub.f32 1.0, %v2547_v55 }
 0x32b   : > { %v2673_v9 = vmul.f32 1.0614054, %v5221_v36  ;;  %v2557_v19 = vand.u32 2147483648, %v5188_v37  ;;  %v5231_v50 = vmul.f32 0.70710677, %v5216_v16  ;;  %vm2552_vm3 = vweird.f32 %v3659_v60 }
 0x32c   : > { %v2752_v48 = vadd.f32 -0.28449672, %v2736_v45  ;;  %v2879_v63 = vmul.f32 %v3661_v10, %v2799_v8  ;;  %v2549_v56 = vmul.f32 %v3659_v60, %v2548_v26  ;;  %3662 = vrcp.f32 %v5225_v15 }
 0x32d   : > { %v2333_v2 = vpop.f32.mrf.mxu2  ;;  %v2689_v0 = vadd.f32 -1.4531521, %v2673_v9  ;;  %v2972_v11 = vmul.f32 %v2956_v4, %v5141_v51  ;;  %v2926_v32 = vsub.f32 0.0, %v2894_v13  ;;  %3664 = vpow2.f32 %v2854_v25 }
 0x32e   : > { %v2768_v53 = vmul.f32 %v2752_v48, %v5183_v6  ;;  %vm2551_vm4 = vweird.f32 %v5188_v37  ;;  %v2895_v14 = vsub.f32 1.0, %v2879_v63  ;;  %v2550_v24 = vadd.f32 %v3659_v60, %v2549_v56 }
 0x32f   : > { %v2705_v3 = vmul.f32 %v2689_v0, %v5221_v36  ;;  %v5238_v41 = vand.u32 2147483647, %v5231_v50  ;;  %v2973_v31 = vmul.f32 %v2957_v1, %v5144_v5  ;;  %v2856_v27 = vmul.f32 1.442695, %v2833_v12  ;;  %vm2553_vm5 = vmor %vm2551_vm4, %vm2552_vm3 }
 0x330   : > { %v2784_v34 = vadd.f32 0.2548296, %v2768_v53  ;;  %v2558_v44 = vor.u32 1.1754944e-38, %v2557_v19  ;;  %v2554_v38 = vsel %vm2553_vm5, %v3659_v60, %v2550_v24  ;;  %vm2556_vm6 = vcmp.eq.f32.partialorder %v2555_v17, 8.507059e+37 }
 0x331   : > { %v2721_v35 = vadd.f32 1.4214138, %v2705_v3  ;;  %v2834_v51 = vmul.f32 %v2818_v18, %v5178_v58  ;;  %v2351_v37 = vmul.f32 0.5, %v5093_v59  ;;  %vm2911_vm7 = vcmp.ge.f32.partialorder %v5097_v52, 0.0 }
 0x332   : > { %v5244_v4 = vsel %vm2556_vm6, %v2558_v44, %v2554_v38  ;;  %v2404_v25 = vmul.f32 0.3275911, %v5238_v41  ;;  %v3663_v7 = vpop.eup %3662  ;;  %v2942_v5 = vsel %vm2910_vm2, %v2894_v13, %v2926_v32  ;;  %v2927_v46 = vsub.f32 0.0, %v2895_v14 }
 0x333   : > { %v2737_v62 = vmul.f32 %v2721_v35, %v5221_v36  ;;  %v2674_v30 = vmul.f32 1.0614054, %v5244_v4  ;;  %v3665_v1 = vpop.eup %3664  ;;  %v2800_v58 = vmul.f32 %v2784_v34, %v5183_v6  ;;  %3666 = vpow2.f32 %v2856_v27 }
 0x334   : > { %v2562_v59 = vmul.f32 %v3663_v7, %v5225_v15  ;;  %v5253_v61 = vadd.f32 1.0, %v2404_v25  ;;  %v2858_v8 = vmul.f32 1.442695, %v2834_v51  ;;  %v2987_v45 = vpack.c.bf16 %v2973_v31, %v2972_v11 }
 0x335   : > { %v2753_v49 = vadd.f32 -0.28449672, %v2737_v62  ;;  %v2690_v60 = vadd.f32 -1.4531521, %v2674_v30  ;;  %v2336_v40 = vpop.f32.mrf.mxu2  ;;  %v2958_v28 = vadd.f32 1.0, %v2942_v5  ;;  %v2572_v42 = vand.u32 2147483648, %v5225_v15 }
 0x336   : > { %v2563_v10 = vsub.f32 1.0, %v2562_v59  ;;  %3668 = vrcp.f32 %v5253_v61  ;;  %v2943_v12 = vsel %vm2911_vm7, %v2895_v14, %v2927_v46  ;;  %v2570_v13 = vand.u32 2147483647, %v5225_v15  ;;  %3422 = vmatmul.msk.bf16.gmra.mxu3 %vm668_vm0, %v2987_v45 }
 0x337   : > { %v2769_v6 = vmul.f32 %v2753_v49, %v5221_v36  ;;  %v2706_v55 = vmul.f32 %v2690_v60, %v5244_v4  ;;  %v2880_v48 = vmul.f32 %v3665_v1, %v2800_v58  ;;  %vm2567_vm8 = vweird.f32 %v3663_v7 }
 0x338   : > { %v2564_v18 = vmul.f32 %v3663_v7, %v2563_v10  ;;  %v5264_v63 = vadd.f32 %v5029_v29, %v2333_v2  ;;  %3670 = vpow2.f32 %v2858_v8  ;;  %v2819_v52 = vsub.f32 0.0, %v5209_v20 }
 0x339   : > { %v2785_v9 = vadd.f32 0.2548296, %v2769_v6  ;;  %v2722_v26 = vadd.f32 1.4214138, %v2706_v55  ;;  %v3667_v53 = vpop.eup %3666  ;;  %v2974_v17 = vmul.f32 %v2958_v28, %v5195_v22  ;;  %vm2566_vm9 = vweird.f32 %v5225_v15 }
 0x33a   : > { %v2565_v19 = vadd.f32 %v3663_v7, %v2564_v18  ;;  %v2573_v0 = vor.u32 1.1754944e-38, %v2572_v42  ;;  %v2959_v56 = vadd.f32 1.0, %v2943_v12  ;;  %vm2568_vm10 = vmor %vm2566_vm9, %vm2567_vm8  ;;  %v5272_v2 = vmul.f32 0.70710677, %v5264_v63 }
 0x33b   : > { %v2801_v11 = vmul.f32 %v2785_v9, %v5221_v36  ;;  %v2738_v32 = vmul.f32 %v2722_v26, %v5244_v4  ;;  %v2896_v3 = vsub.f32 1.0, %v2880_v48  ;;  %vm2912_vm11 = vcmp.ge.f32.partialorder %v5113_v43, 0.0 }
 0x33c   : > { %v3669_v14 = vpop.eup %3668  ;;  %v2569_v24 = vsel %vm2568_vm10, %v3663_v7, %v2565_v19  ;;  %vm2571_vm12 = vcmp.eq.f32.partialorder %v2570_v13, 8.507059e+37  ;;  %v5276_v22 = vadd.f32 %v5029_v29, %v2336_v40  ;;  %v2835_v44 = vmul.f32 %v2819_v52, %v5209_v20 }
 0x33d   : > { %v2881_v15 = vmul.f32 %v3667_v53, %v2801_v11  ;;  %v2754_v31 = vadd.f32 -0.28449672, %v2738_v32  ;;  %v5278_v34 = vsel %vm2571_vm12, %v2573_v0, %v2569_v24  ;;  %v2577_v36 = vmul.f32 %v3669_v14, %v5253_v61  ;;  %v2338_v62 = vpop.f32.mrf.mxu2 }
 0x33e   : > { %v2675_v27 = vmul.f32 1.0614054, %v5278_v34  ;;  %v2820_v35 = vsub.f32 0.0, %v5238_v41  ;;  %v5285_v38 = vand.u32 2147483647, %v5272_v2  ;;  %v3671_v51 = vpop.eup %3670  ;;  %v2975_v25 = vmul.f32 %v2959_v56, %v2351_v37 }
 0x33f   : > { %v2770_v7 = vmul.f32 %v2754_v31, %v5244_v4  ;;  %v2578_v5 = vsub.f32 1.0, %v2577_v36  ;;  %v2587_v46 = vand.u32 2147483648, %v5253_v61  ;;  %v2928_v30 = vsub.f32 0.0, %v2896_v3 }
 0x340   : > { %v2897_v1 = vsub.f32 1.0, %v2881_v15  ;;  %v2691_v58 = vadd.f32 -1.4531521, %v2675_v27  ;;  %v2405_v59 = vmul.f32 0.3275911, %v5285_v38  ;;  %vm2582_vm13 = vweird.f32 %v3669_v14 }
 0x341   : > { %v2579_v49 = vmul.f32 %v3669_v14, %v2578_v5  ;;  %v2585_v20 = vand.u32 2147483647, %v5253_v61  ;;  %v5292_v60 = vmul.f32 0.70710677, %v5276_v22  ;;  %v2786_v8 = vadd.f32 0.2548296, %v2770_v7 }
 0x342   : > { %v2707_v37 = vmul.f32 %v2691_v58, %v5278_v34  ;;  %v5295_v45 = vadd.f32 1.0, %v2405_v59  ;;  %v5298_v40 = vadd.f32 %v5029_v29, %v2338_v62  ;;  %vm2581_vm14 = vweird.f32 %v5253_v61 }
 0x343   : > { %v2580_v28 = vadd.f32 %v3669_v14, %v2579_v49  ;;  %v2588_v10 = vor.u32 1.1754944e-38, %v2587_v46  ;;  %v2988_v42 = vpack.c.bf16 %v2975_v25, %v2974_v17  ;;  %v2929_v12 = vsub.f32 0.0, %v2897_v1  ;;  %vm2583_vm15 = vmor %vm2581_vm14, %vm2582_vm13 }
 0x344   : > { %v2723_v6 = vadd.f32 1.4214138, %v2707_v37  ;;  %3672 = vrcp.f32 %v5295_v45  ;;  %v5303_v55 = vand.u32 2147483647, %v5292_v60  ;;  %v2944_v13 = vsel %vm2912_vm11, %v2896_v3, %v2928_v30 }
 0x345   : > { %v2860_v48 = vmul.f32 1.442695, %v2835_v44  ;;  %v2584_v18 = vsel %vm2583_vm15, %v3669_v14, %v2580_v28  ;;  %vm2586_vm1 = vcmp.eq.f32.partialorder %v2585_v20, 8.507059e+37  ;;  %v2802_v9 = vmul.f32 %v2786_v8, %v5244_v4  ;;  %v2341_v59 = vpop.f32.mrf.mxu2 }
 0x346   : > { %v2739_v61 = vmul.f32 %v2723_v6, %v5278_v34  ;;  %v5309_v26 = vsel %vm2586_vm1, %v2588_v10, %v2584_v18  ;;  %v5312_v52 = vmul.f32 0.70710677, %v5298_v40  ;;  %v2352_v53 = vmul.f32 0.5, %v5107_v54  ;;  %3423 = vmatmul.msk.bf16.gmra.mxu3 %vm668_vm0, %v2988_v42 }
 0x347   : > { %vm2913_vm2 = vcmp.ge.f32.partialorder %v5138_v33, 0.0  ;;  %v2676_v17 = vmul.f32 1.0614054, %v5309_v26  ;;  %v2836_v0 = vmul.f32 %v2820_v35, %v5238_v41  ;;  %v2406_v4 = vmul.f32 0.3275911, %v5303_v55 }
 0x348   : > { %v2945_v43 = vsel %vm2913_vm2, %v2897_v1, %v2929_v12  ;;  %v2755_v19 = vadd.f32 -0.28449672, %v2739_v61  ;;  %v2960_v56 = vadd.f32 1.0, %v2944_v13  ;;  %v2353_v11 = vmul.f32 0.5, %v5130_v47 }
 0x349   : > { %3674 = vpow2.f32 %v2860_v48  ;;  %v2692_v32 = vadd.f32 -1.4531521, %v2676_v17  ;;  %v2882_v3 = vmul.f32 %v3671_v51, %v2802_v9  ;;  %v5322_v33 = vadd.f32 1.0, %v2406_v4 }
 0x34a   : > { %v3673_v14 = vpop.eup %3672  ;;  %v2771_v54 = vmul.f32 %v2755_v19, %v5278_v34  ;;  %v5325_v24 = vand.u32 2147483647, %v5312_v52  ;;  %v2961_v15 = vadd.f32 1.0, %v2945_v43  ;;  %v5328_v31 = vmul.f32 0.5, %v5154_v21 }
 0x34b   : > { %v2708_v41 = vmul.f32 %v2692_v32, %v5309_v26  ;;  %v2592_v36 = vmul.f32 %v3673_v14, %v5295_v45  ;;  %v5333_v47 = vmul.f32 0.5, %v5191_v57  ;;  %v2862_v44 = vmul.f32 1.442695, %v2836_v0 }
 0x34c   : > { %v2787_v27 = vadd.f32 0.2548296, %v2771_v54  ;;  %3676 = vrcp.f32 %v5322_v33  ;;  %vm2914_vm3 = vcmp.ge.f32.partialorder %v5167_v39, 0.0  ;;  %v2600_v25 = vand.u32 2147483647, %v5295_v45 }
 0x34d   : > { %v2724_v35 = vadd.f32 1.4214138, %v2708_v41  ;;  %v2593_v51 = vsub.f32 1.0, %v2592_v36  ;;  %v2602_v21 = vand.u32 2147483648, %v5295_v45  ;;  %v2976_v7 = vmul.f32 %v2960_v56, %v2352_v53 }
 0x34e   : > { %v2898_v5 = vsub.f32 1.0, %v2882_v3  ;;  %v2803_v46 = vmul.f32 %v2787_v27, %v5278_v34  ;;  %vm2915_vm4 = vcmp.ge.f32.partialorder %v5204_v23, 0.0  ;;  %v2407_v57 = vmul.f32 0.3275911, %v5325_v24 }
 0x34f   : > { %v3675_v62 = vpop.eup %3674  ;;  %v2977_v30 = vmul.f32 %v2961_v15, %v2353_v11  ;;  %v2740_v1 = vmul.f32 %v2724_v35, %v5309_v26  ;;  %v2594_v58 = vmul.f32 %v3673_v14, %v2593_v51  ;;  %vm2597_vm5 = vweird.f32 %v3673_v14 }
 0x350   : > { %v2883_v49 = vmul.f32 %v3675_v62, %v2803_v46  ;;  %vm2596_vm6 = vweird.f32 %v5295_v45  ;;  %v2821_v20 = vsub.f32 0.0, %v5285_v38  ;;  %v5345_v8 = vadd.f32 1.0, %v2407_v57 }
 0x351   : > { %v2756_v37 = vadd.f32 -0.28449672, %v2740_v1  ;;  %v2595_v34 = vadd.f32 %v3673_v14, %v2594_v58  ;;  %vm2601_vm7 = vcmp.eq.f32.partialorder %v2600_v25, 8.507059e+37  ;;  %v2603_v28 = vor.u32 1.1754944e-38, %v2602_v21  ;;  %vm2598_vm8 = vmor %vm2596_vm6, %vm2597_vm5 }
 0x352   : > { %v3677_v10 = vpop.eup %3676  ;;  %v2930_v42 = vsub.f32 0.0, %v2898_v5  ;;  %v2899_v12 = vsub.f32 1.0, %v2883_v49  ;;  %3678 = vrcp.f32 %v5345_v8  ;;  %v5349_v6 = vadd.f32 %v5029_v29, %v2341_v59  ;;  %v3696_v59 = vld [vmem:[%s5522_s6] ss:$0 sm:$0xff] }
 0x353   : > { %v2772_v13 = vmul.f32 %v2756_v37, %v5309_v26  ;;  %v2599_v45 = vsel %vm2598_vm8, %v3673_v14, %v2595_v34  ;;  %v2607_v48 = vmul.f32 %v3677_v10, %v5322_v33  ;;  %v2989_v18 = vpack.c.bf16 %v2977_v30, %v2976_v7 }
 0x354   : > { %v2931_v9 = vsub.f32 0.0, %v2899_v12  ;;  %v5353_v61 = vsel %vm2601_vm7, %v2603_v28, %v2599_v45  ;;  %v2837_v53 = vmul.f32 %v2821_v20, %v5285_v38  ;;  %v2822_v17 = vsub.f32 0.0, %v5303_v55 }
 0x355   : > { %v2788_v43 = vadd.f32 0.2548296, %v2772_v13  ;;  %3680 = vpow2.f32 %v2862_v44  ;;  %v2677_v19 = vmul.f32 1.0614054, %v5353_v61  ;;  %v2608_v0 = vsub.f32 1.0, %v2607_v48 }
 0x356   : > { %v2946_v29 = vsel %vm2914_vm3, %v2898_v5, %v2930_v42  ;;  %v2615_v4 = vand.u32 2147483647, %v5322_v33  ;;  %v2617_v56 = vand.u32 2147483648, %v5322_v33  ;;  %v5363_v11 = vmul.f32 0.70710677, %v5349_v6  ;;  %3424 = vmatmul.msk.bf16.gmra.mxu3 %vm668_vm0, %v2989_v18 }
 0x357   : > { %v2947_v38 = vsel %vm2915_vm4, %v2899_v12, %v2931_v9  ;;  %v2693_v32 = vadd.f32 -1.4531521, %v2677_v19  ;;  %v2609_v14 = vmul.f32 %v3677_v10, %v2608_v0  ;;  %vm2612_vm9 = vweird.f32 %v3677_v10 }
 0x358   : > { %v3679_v3 = vpop.eup %3678  ;;  %v2804_v54 = vmul.f32 %v2788_v43, %v5309_v26  ;;  %v2864_v39 = vmul.f32 1.442695, %v2837_v53  ;;  %v2838_v15 = vmul.f32 %v2822_v17, %v5303_v55  ;;  %v5371_v41 = vand.u32 2147483647, %v5363_v11  ;;  %v2343_v26 = vpop.f32.mrf.mxu2 }
 0x359   : > { %v2962_v36 = vadd.f32 1.0, %v2946_v29  ;;  %v2709_v27 = vmul.f32 %v2693_v32, %v5353_v61  ;;  %v2610_v44 = vadd.f32 %v3677_v10, %v2609_v14  ;;  %vm2611_vm10 = vweird.f32 %v5322_v33 }
 0x35a   : > { %v2963_v23 = vadd.f32 1.0, %v2947_v38  ;;  %vm2613_vm11 = vmor %vm2611_vm10, %vm2612_vm9  ;;  %v2618_v35 = vor.u32 1.1754944e-38, %v2617_v56  ;;  %v2622_v51 = vmul.f32 %v3679_v3, %v5345_v8  ;;  %v2408_v25 = vmul.f32 0.3275911, %v5371_v41 }
 0x35b   : > { %v3681_v21 = vpop.eup %3680  ;;  %v2725_v7 = vadd.f32 1.4214138, %v2709_v27  ;;  %v2614_v55 = vsel %vm2613_vm11, %v3677_v10, %v2610_v44  ;;  %vm2616_vm12 = vcmp.eq.f32.partialorder %v2615_v4, 8.507059e+37  ;;  %v2630_v5 = vand.u32 2147483647, %v5345_v8 }
 0x35c   : > { %v2884_v46 = vmul.f32 %v3681_v21, %v2804_v54  ;;  %v5378_v57 = vsel %vm2616_vm12, %v2618_v35, %v2614_v55  ;;  %v2623_v62 = vsub.f32 1.0, %v2622_v51  ;;  %v5380_v30 = vadd.f32 1.0, %v2408_v25 }
 0x35d   : > { %v2741_v33 = vmul.f32 %v2725_v7, %v5353_v61  ;;  %v2678_v1 = vmul.f32 1.0614054, %v5378_v57  ;;  %v2632_v58 = vand.u32 2147483648, %v5345_v8  ;;  %v5388_v49 = vadd.f32 %v3696_v59, %v2343_v26 }
 0x35e   : > { %v2979_v20 = vmul.f32 %v2963_v23, %v5333_v47  ;;  %v2624_v37 = vmul.f32 %v3679_v3, %v2623_v62  ;;  %vm2627_vm13 = vweird.f32 %v3679_v3  ;;  %3682 = vrcp.f32 %v5380_v30 }
 0x35f   : > { %v2978_v34 = vmul.f32 %v2962_v36, %v5328_v31  ;;  %v2757_v28 = vadd.f32 -0.28449672, %v2741_v33  ;;  %3684 = vpow2.f32 %v2864_v39  ;;  %v2694_v10 = vadd.f32 -1.4531521, %v2678_v1 }
 0x360   : > { %v2900_v42 = vsub.f32 1.0, %v2884_v46  ;;  %v2866_v12 = vmul.f32 1.442695, %v2838_v15  ;;  %v2625_v13 = vadd.f32 %v3679_v3, %v2624_v37  ;;  %vm2626_vm14 = vweird.f32 %v5345_v8 }
 0x361   : > { %v2773_v45 = vmul.f32 %v2757_v28, %v5353_v61  ;;  %v2710_v48 = vmul.f32 %v2694_v10, %v5378_v57  ;;  %vm2628_vm15 = vmor %vm2626_vm14, %vm2627_vm13  ;;  %v2633_v47 = vor.u32 1.1754944e-38, %v2632_v58  ;;  %v5397_v18 = vmul.f32 0.70710677, %v5388_v49 }
 0x362   : > { %v2629_v9 = vsel %vm2628_vm15, %v3679_v3, %v2625_v13  ;;  %vm2631_vm1 = vcmp.eq.f32.partialorder %v2630_v5, 8.507059e+37  ;;  %v2823_v31 = vsub.f32 0.0, %v5325_v24  ;;  %v2990_v53 = vpack.c.bf16 %v2979_v20, %v2978_v34 }
 0x363   : > { %v2789_v17 = vadd.f32 0.2548296, %v2773_v45  ;;  %v2726_v43 = vadd.f32 1.4214138, %v2710_v48  ;;  %v5400_v19 = vsel %vm2631_vm1, %v2633_v47, %v2629_v9  ;;  %v5403_v8 = vand.u32 2147483647, %v5397_v18 }
 0x364   : > { %v3683_v0 = vpop.eup %3682  ;;  %v2932_v29 = vsub.f32 0.0, %v2900_v42  ;;  %v2679_v4 = vmul.f32 1.0614054, %v5400_v19  ;;  %vm2916_vm2 = vcmp.ge.f32.partialorder %v5231_v50, 0.0  ;;  %3686 = vpow2.f32 %v2866_v12 }
 0x365   : > { %v3685_v56 = vpop.eup %3684  ;;  %v2805_v38 = vmul.f32 %v2789_v17, %v5353_v61  ;;  %v2742_v32 = vmul.f32 %v2726_v43, %v5378_v57  ;;  %v2637_v14 = vmul.f32 %v3683_v0, %v5380_v30  ;;  %v2839_v54 = vmul.f32 %v2823_v31, %v5325_v24 }
 0x366   : > { %v2695_v3 = vadd.f32 -1.4531521, %v2679_v4  ;;  %v2409_v39 = vmul.f32 0.3275911, %v5403_v8  ;;  %v2645_v44 = vand.u32 2147483647, %v5380_v30  ;;  %3425 = vmatmul.msk.bf16.gmra.mxu3 %vm668_vm0, %v2990_v53  ;;  %v2948_v50 = vsel %vm2916_vm2, %v2900_v42, %v2932_v29 }
 0x367   : > { %v2885_v15 = vmul.f32 %v3685_v56, %v2805_v38  ;;  %v2758_v36 = vadd.f32 -0.28449672, %v2742_v32  ;;  %v2638_v27 = vsub.f32 1.0, %v2637_v14  ;;  %v2647_v23 = vand.u32 2147483648, %v5380_v30 }
 0x368   : > { %v2711_v61 = vmul.f32 %v2695_v3, %v5400_v19  ;;  %v5416_v35 = vadd.f32 1.0, %v2409_v39  ;;  %vm2642_vm3 = vweird.f32 %v3683_v0  ;;  %v2868_v21 = vmul.f32 1.442695, %v2839_v54 }
 0x369   : > { %v2901_v51 = vsub.f32 1.0, %v2885_v15  ;;  %v2774_v25 = vmul.f32 %v2758_v36, %v5378_v57  ;;  %v2639_v24 = vmul.f32 %v3683_v0, %v2638_v27  ;;  %vm2641_vm4 = vweird.f32 %v5380_v30 }
 0x36a   : > { %v2727_v26 = vadd.f32 1.4214138, %v2711_v61  ;;  %3688 = vrcp.f32 %v5416_v35  ;;  %v3687_v46 = vpop.eup %3686  ;;  %v2964_v62 = vadd.f32 1.0, %v2948_v50  ;;  %vm2917_vm5 = vcmp.ge.f32.partialorder %v5272_v2, 0.0  ;;  %vm2643_vm6 = vmor %vm2641_vm4, %vm2642_vm3 }
 0x36b   : > { %v2933_v7 = vsub.f32 0.0, %v2901_v51  ;;  %v2790_v55 = vadd.f32 0.2548296, %v2774_v25  ;;  %v2640_v5 = vadd.f32 %v3683_v0, %v2639_v24  ;;  %v2648_v1 = vor.u32 1.1754944e-38, %v2647_v23 }
 0x36c   : > { %v2743_v33 = vmul.f32 %v2727_v26, %v5400_v19  ;;  %vm2646_vm7 = vcmp.eq.f32.partialorder %v2645_v44, 8.507059e+37  ;;  %v2357_v37 = vmul.f32 0.5, %v5264_v63  ;;  %v2356_v30 = vmul.f32 0.5, %v5216_v16 }
 0x36d   : > { %v2949_v58 = vsel %vm2917_vm5, %v2901_v51, %v2933_v7  ;;  %v2806_v59 = vmul.f32 %v2790_v55, %v5378_v57  ;;  %v2644_v20 = vsel %vm2643_vm6, %v3683_v0, %v2640_v5  ;;  %3690 = vpow2.f32 %v2868_v21 }
 0x36e   : > { %v2965_v34 = vadd.f32 1.0, %v2949_v58  ;;  %v2759_v28 = vadd.f32 -0.28449672, %v2743_v33  ;;  %v5425_v10 = vsel %vm2646_vm7, %v2648_v1, %v2644_v20  ;;  %v2824_v57 = vsub.f32 0.0, %v5371_v41 }
 0x36f   : > { %v2886_v42 = vmul.f32 %v3687_v46, %v2806_v59  ;;  %v2680_v2 = vmul.f32 1.0614054, %v5425_v10  ;;  %v2980_v48 = vmul.f32 %v2964_v62, %v2356_v30  ;;  %v2662_v29 = vand.u32 2147483648, %v5416_v35 }
 0x370   : > { %v3689_v12 = vpop.eup %3688  ;;  %v2981_v13 = vmul.f32 %v2965_v34, %v2357_v37  ;;  %v2775_v45 = vmul.f32 %v2759_v28, %v5400_v19  ;;  %v2840_v0 = vmul.f32 %v2824_v57, %v5371_v41  ;;  %v2660_v32 = vand.u32 2147483647, %v5416_v35 }
 0x371   : > { %v2696_v47 = vadd.f32 -1.4531521, %v2680_v2  ;;  %v2652_v63 = vmul.f32 %v3689_v12, %v5416_v35  ;;  %v2902_v9 = vsub.f32 1.0, %v2886_v42  ;;  %vm2657_vm8 = vweird.f32 %v3689_v12 }
 0x372   : > { %v2791_v31 = vadd.f32 0.2548296, %v2775_v45  ;;  %v2991_v16 = vpack.c.bf16 %v2981_v13, %v2980_v48  ;;  %vm2656_vm9 = vweird.f32 %v5416_v35  ;;  %v2870_v41 = vmul.f32 1.442695, %v2840_v0  ;;  %v5446_v35 = vld [vmem:[%s5524_s8] ss:$0 sm:$0xff] }
 0x373   : > { %v2712_v53 = vmul.f32 %v2696_v47, %v5425_v10  ;;  %v2653_v17 = vsub.f32 1.0, %v2652_v63  ;;  %v3691_v4 = vpop.eup %3690  ;;  %v2934_v14 = vsub.f32 0.0, %v2902_v9  ;;  %vm2658_vm10 = vmor %vm2656_vm9, %vm2657_vm8  ;;  %v2663_v15 = vor.u32 1.1754944e-38, %v2662_v29 }
 0x374   : > { %v2807_v43 = vmul.f32 %v2791_v31, %v5400_v19  ;;  %vm2918_vm11 = vcmp.ge.f32.partialorder %v5292_v60, 0.0  ;;  %vm2661_vm12 = vcmp.eq.f32.partialorder %v2660_v32, 8.507059e+37  ;;  %v2825_v23 = vsub.f32 0.0, %v5403_v8 }
 0x375   : > { %v2728_v56 = vadd.f32 1.4214138, %v2712_v53  ;;  %v2654_v38 = vmul.f32 %v3689_v12, %v2653_v17  ;;  %v2950_v44 = vsel %vm2918_vm11, %v2902_v9, %v2934_v14  ;;  %vm2919_vm13 = vcmp.ge.f32.partialorder %v5312_v52, 0.0 }
 0x376   : > { %v2887_v3 = vmul.f32 %v3691_v4, %v2807_v43  ;;  %3426 = vmatmul.msk.bf16.gmra.mxu3 %vm668_vm0, %v2991_v16  ;;  %vm3087_vm14 = vcmask 15360   ;;  %v2359_v24 = vmul.f32 0.5, %v5298_v40  ;;  %3692 = vpow2.f32 %v2870_v41 }
 0x377   : > { %v2744_v54 = vmul.f32 %v2728_v56, %v5425_v10  ;;  %v2655_v39 = vadd.f32 %v3689_v12, %v2654_v38  ;;  %v2966_v7 = vadd.f32 1.0, %v2950_v44  ;;  %v2841_v46 = vmul.f32 %v2825_v23, %v5403_v8 }
 0x378   : > { %v2903_v19 = vsub.f32 1.0, %v2887_v3  ;;  %v2358_v62 = vmul.f32 0.5, %v5276_v22  ;;  %vm2920_vm15 = vcmp.ge.f32.partialorder %v5363_v11, 0.0  ;;  %vm2921_vm1 = vcmp.ge.f32.partialorder %v5397_v18, 0.0 }
 0x379   : > { %v2760_v36 = vadd.f32 -0.28449672, %v2744_v54  ;;  %v2659_v27 = vsel %vm2658_vm10, %v3689_v12, %v2655_v39  ;;  %v2872_v37 = vmul.f32 1.442695, %v2841_v46  ;;  %v2360_v17 = vmul.f32 0.5, %v5349_v6 }
 0x37a   : > { %v2935_v50 = vsub.f32 0.0, %v2903_v19  ;;  %v2664_v61 = vsel %vm2661_vm12, %v2663_v15, %v2659_v27  ;;  %v2982_v40 = vmul.f32 %v2966_v7, %v2358_v62  ;;  %v2361_v16 = vmul.f32 0.5, %v5388_v49 }
 0x37b   : > { %v2776_v51 = vmul.f32 %v2760_v36, %v5425_v10  ;;  %v2681_v25 = vmul.f32 1.0614054, %v2664_v61  ;;  %3694 = vpow2.f32 %v2872_v37 }
 0x37c   : > { %v2951_v26 = vsel %vm2919_vm13, %v2903_v19, %v2935_v50  ;;  %v3693_v20 = vpop.eup %3692 }
 0x37d   : > { %v2967_v55 = vadd.f32 1.0, %v2951_v26  ;;  %v2792_v52 = vadd.f32 0.2548296, %v2776_v51  ;;  %v2697_v5 = vadd.f32 -1.4531521, %v2681_v25 }
 0x37f   : > { %v2983_v33 = vmul.f32 %v2967_v55, %v2359_v24  ;;  %v2808_v1 = vmul.f32 %v2792_v52, %v5425_v10  ;;  %v2713_v58 = vmul.f32 %v2697_v5, %v2664_v61 }
 0x381   : > { %v2729_v59 = vadd.f32 1.4214138, %v2713_v58  ;;  %v2888_v34 = vmul.f32 %v3693_v20, %v2808_v1  ;;  %v2992_v30 = vpack.c.bf16 %v2983_v33, %v2982_v40  ;;  %v3695_v57 = vpop.eup %3694 }
 0x383   : > { %v2745_v28 = vmul.f32 %v2729_v59, %v2664_v61  ;;  %v2904_v12 = vsub.f32 1.0, %v2888_v34 }
 0x385   : > { %v2761_v8 = vadd.f32 -0.28449672, %v2745_v28  ;;  %v2936_v13 = vsub.f32 0.0, %v2904_v12 }
 0x386   : > { %3427 = vmatmul.msk.bf16.gmra.mxu3 %vm668_vm0, %v2992_v30 }
 0x387   : > { %v2777_v22 = vmul.f32 %v2761_v8, %v2664_v61  ;;  %v2952_v47 = vsel %vm2920_vm15, %v2904_v12, %v2936_v13 }
 0x388   : > { %v2968_v31 = vadd.f32 1.0, %v2952_v47 }
 0x389   : > { %v2793_v10 = vadd.f32 0.2548296, %v2777_v22 }
 0x38a   : > { %v2984_v0 = vmul.f32 %v2968_v31, %v2360_v17 }
 0x38b   : > { %v2809_v45 = vmul.f32 %v2793_v10, %v2664_v61 }
 0x38d   : > { %v2889_v48 = vmul.f32 %v3695_v57, %v2809_v45 }
 0x38f   : > { %v2905_v63 = vsub.f32 1.0, %v2889_v48 }
 0x391   : > { %v3047_v60 = vpop.f32.mrf.mxu3  ;;  %v2937_v9 = vsub.f32 0.0, %v2905_v63 }
 0x392   : > { %v3048_v21 = vadd.f32 %v5446_v35, %v3047_v60 }
 0x393   : > { %v2953_v53 = vsel %vm2921_vm1, %v2905_v63, %v2937_v9 }
 0x394   : > { %3088 = vst.msk [vmem:[%s5453_s20] sm:$0xff] %vm3087_vm14, %v3048_v21  ;;  %v2969_v43 = vadd.f32 1.0, %v2953_v53 }
 0x396   : > { %v2985_v29 = vmul.f32 %v2969_v43, %v2361_v16 }
 0x398   : > { %v2993_v4 = vpack.c.bf16 %v2985_v29, %v2984_v0 }
 0x399   : > { %v3049_v42 = vpop.f32.mrf.mxu3 }
 0x39a   : > { %v3050_v2 = vadd.f32 %v5446_v35, %v3049_v42  ;;  %3428 = vmatmul.msk.bf16.gmra.mxu3 %vm668_vm0, %v2993_v4 }
 0x39c   : > { %3089 = vst.msk [vmem:[%s5453_s20 + $0x8] sm:$0xff] %vm3087_vm14, %v3050_v2 }
 0x3b9   : > { %v3052_v11 = vpop.f32.mrf.mxu3 }
 0x3ba   : > { %v3053_v56 = vadd.f32 %v5446_v35, %v3052_v11 }
 0x3bc   : > { %3090 = vst.msk [vmem:[%s5453_s20 + $0x10] sm:$0xff] %vm3087_vm14, %v3053_v56 }
 0x3c1   : > { %v3054_v18 = vpop.f32.mrf.mxu3 }
 0x3c2   : > { %v3055_v38 = vadd.f32 %v5446_v35, %v3054_v18 }
 0x3c4   : > { %3091 = vst.msk [vmem:[%s5453_s20 + $0x18] sm:$0xff] %vm3087_vm14, %v3055_v38 }
 0x3c9   : > { %v3057_v6 = vpop.f32.mrf.mxu3 }
 0x3ca   : > { %v3058_v49 = vadd.f32 %v5446_v35, %v3057_v6 }
 0x3cc   : > { %3092 = vst.msk [vmem:[%s5453_s20 + $0x20] sm:$0xff] %vm3087_vm14, %v3058_v49 }
 0x3d1   : > { %v3059_v32 = vpop.f32.mrf.mxu3 }
 0x3d2   : > { %v3060_v14 = vadd.f32 %v5446_v35, %v3059_v32 }
 0x3d4   : > { %3093 = vst.msk [vmem:[%s5453_s20 + $0x28] sm:$0xff] %vm3087_vm14, %v3060_v14 }
 0x3d9   : > { %v3062_v3 = vpop.f32.mrf.mxu3 }
 0x3da   : > { %v3063_v54 = vadd.f32 %v5446_v35, %v3062_v3 }
 0x3dc   : > { %3094 = vst.msk [vmem:[%s5453_s20 + $0x30] sm:$0xff] %vm3087_vm14, %v3063_v54 }
 0x3e1   : > { %v3064_v39 = vpop.f32.mrf.mxu3 }
 0x3e2   : > { %v3065_v19 = vadd.f32 %v5446_v35, %v3064_v39 }
 0x3e4   : > { %3095 = vst.msk [vmem:[%s5453_s20 + $0x38] sm:$0xff] %vm3087_vm14, %v3065_v19 }
 0x3e9   : > { %v3067_v41 = vpop.f32.mrf.mxu3 }
 0x3ea   : > { %v3068_v15 = vadd.f32 %v5446_v35, %v3067_v41 }
 0x3ec   : > { %3096 = vst.msk [vmem:[%s5453_s20 + $0x40] sm:$0xff] %vm3087_vm14, %v3068_v15 }
 0x3f1   : > { %v3069_v36 = vpop.f32.mrf.mxu3 }
 0x3f2   : > { %v3070_v27 = vadd.f32 %v5446_v35, %v3069_v36 }
 0x3f4   : > { %3097 = vst.msk [vmem:[%s5453_s20 + $0x48] sm:$0xff] %vm3087_vm14, %v3070_v27 }
 0x3f9   : > { %v3072_v44 = vpop.f32.mrf.mxu3 }
 0x3fa   : > { %v3073_v50 = vadd.f32 %v5446_v35, %v3072_v44 }
 0x3fc   : > { %3098 = vst.msk [vmem:[%s5453_s20 + $0x50] sm:$0xff] %vm3087_vm14, %v3073_v50 }
 0x401   : > { %v3074_v61 = vpop.f32.mrf.mxu3 }
 0x402   : > { %v3075_v23 = vadd.f32 %v5446_v35, %v3074_v61 }
 0x404   : > { %3099 = vst.msk [vmem:[%s5453_s20 + $0x58] sm:$0xff] %vm3087_vm14, %v3075_v23 }
 0x409   : > { %v3077_v51 = vpop.f32.mrf.mxu3 }
 0x40a   : > { %v3078_v25 = vadd.f32 %v5446_v35, %v3077_v51 }
 0x40c   : > { %3100 = vst.msk [vmem:[%s5453_s20 + $0x60] sm:$0xff] %vm3087_vm14, %v3078_v25 }
 0x411   : > { %v3079_v60 = vpop.f32.mrf.mxu3 }
 0x412   : > { %v3080_v24 = vadd.f32 %v5446_v35, %v3079_v60 }
 0x414   : > { %3101 = vst.msk [vmem:[%s5453_s20 + $0x68] sm:$0xff] %vm3087_vm14, %v3080_v24 }
 0x41d   : > { %v3082_v26 = vpop.f32.mrf.mxu3 }
 0x41e   : > { %v3083_v21 = vadd.f32 %v5446_v35, %v3082_v26 }
 0x420   : > { %3102 = vst.msk [vmem:[%s5453_s20 + $0x70] sm:$0xff] %vm3087_vm14, %v3083_v21 }
 0x425   : > { %v3084_v7 = vpop.f32.mrf.mxu3 }
 0x426   : > { %v3085_v55 = vadd.f32 %v5446_v35, %v3084_v7 }
 0x428   : > { %3103 = vst.msk [vmem:[%s5453_s20 + $0x78] sm:$0xff] %vm3087_vm14, %v3085_v55 }
 0x429 PF: > { %s19_s30 = sadd.s32 1, %s3703_s30  }
 0x42a   : > { %p16_p4 = scmp.ge.s32.totalorder %s19_s30, 4  }
 0x42c   :  { %18 = sbr.rel (!%p16_p4) target bundleno = 1 (0x1), region = 92 }

</bundles_post_ra>
